<compile_context>
chip_gen: v7x
topology: tpu7x:2x2x1
jax: 0.10.0
libtpu: 0.0.40
codegen_flags: <defaults>
</compile_context>

<pallas_src>
import jax
import jax.numpy as jnp
from jax import lax
from jax.experimental import pallas as pl
from jax.experimental.pallas import tpu as pltpu

_NEG = float(jnp.finfo(jnp.float32).min)


def _silu(y):
    # y * sigmoid(y); the approximate reciprocal rides the (otherwise idle)
    # EUP slot in the matmul epilogue.
    return y * pl.reciprocal(1.0 + jnp.exp(-y), approx=True)


# ---------------------------------------------------------------------------
# Fused kernel: cv1 -> (maxpool5 x3, all in VMEM) -> cv2 accumulation
# Grid: (N, c_ // tc).  Per step (n, ct):
#   x_ref:     (1, HW, Cin)  bf16   resident across the ct loop (same block)
#   w1_ref:    (Cin, tc)     bf16   cv1 weight slice (BN scale folded)
#   b1_ref:    (1, tc)       f32    cv1 BN shift slice
#   w2_ref:    (4, tc, Cout) bf16   cv2 weight slices for [x0, x1, x2, x3]
#   b2_ref:    (1, Cout)     f32    cv2 BN shift
#   o_ref:     (1, HW, Cout) f32    resident across the ct loop
#   acc_ref:   (HW, Cout)    f32    cv2 accumulator (VMEM scratch)
#   hband_ref: (H+4, W, tc)  f32    H-halo band: rows [2:H+2] hold data
#   wband_ref: (H, Wp, tc)   f32    W-halo band: cols [0:W] hold data
# ---------------------------------------------------------------------------
def _sppf_fused_kernel(x_ref, w1_ref, b1_ref, w2_ref, b2_ref, o_ref,
                       acc_ref, hband_ref, wband_ref):
    ct = pl.program_id(1)
    n_ct = pl.num_programs(1)

    Hp4, W, tc = hband_ref.shape
    H = Hp4 - 4
    Wp = wband_ref.shape[1]
    HW = H * W

    @pl.when(ct == 0)
    def _init():
        acc_ref[...] = jnp.zeros_like(acc_ref)
        # -inf halo strips are written once per batch; the data regions are
        # fully overwritten by every pool call, so refilling the whole padded
        # buffer each step would only waste vst slots.
        hband_ref[0:2, :, :] = jnp.full((2, W, tc), _NEG, jnp.float32)
        hband_ref[H + 2:H + 4, :, :] = jnp.full((2, W, tc), _NEG, jnp.float32)
        wband_ref[:, W:Wp, :] = jnp.full((H, Wp - W, tc), _NEG, jnp.float32)

    # ---- cv1: 1x1 conv (BN scale folded into w1) + shift + SiLU -----------
    h = jnp.dot(x_ref[0], w1_ref[...], preferred_element_type=jnp.float32)
    x0 = _silu(h + b1_ref[...])                       # (HW, tc) f32

    # ---- fused cascade of three 5x5 / stride-1 / pad-2 maxpools -----------
    def pool(img):                                    # img: (H, W, tc) f32
        # Vertical 5-max: shifts run over the *outer* H dim (no sublane
        # alignment cost).  Halo rows are -inf.
        hband_ref[2:H + 2, :, :] = img                # aligned store
        band = hband_ref[...]                         # (H+4, W, tc)
        vmax = band[0:H]
        for dy in range(1, 5):
            vmax = jnp.maximum(vmax, band[dy:dy + H])
        # Horizontal 5-max: data sits at cols [0:W], cols [W:Wp] are -inf, so
        # pltpu.roll's wrap-around always lands in the halo.  The shift set
        # {+1,+2,-1,-2} is symmetric -> result is roll-direction agnostic.
        wband_ref[:, 0:W, :] = vmax                   # aligned store
        band = wband_ref[...]                         # (H, Wp, tc)
        out = band
        for s in (1, 2, Wp - 2, Wp - 1):
            out = jnp.maximum(out, pltpu.roll(band, shift=s, axis=1))
        return out[:, 0:W, :]                         # (H, W, tc)

    x0_img = x0.reshape(H, W, tc)
    x1 = pool(x0_img)
    x2 = pool(x1)
    x3 = pool(x2)

    # ---- cv2 (concat-free): acc += sum_k pooled_k @ w2[k], f32 in VMEM ----
    bf16 = jnp.bfloat16
    acc_ref[...] += jnp.dot(x0.astype(bf16), w2_ref[0],
                            preferred_element_type=jnp.float32)
    acc_ref[...] += jnp.dot(x1.reshape(HW, tc).astype(bf16), w2_ref[1],
                            preferred_element_type=jnp.float32)
    acc_ref[...] += jnp.dot(x2.reshape(HW, tc).astype(bf16), w2_ref[2],
                            preferred_element_type=jnp.float32)
    acc_ref[...] += jnp.dot(x3.reshape(HW, tc).astype(bf16), w2_ref[3],
                            preferred_element_type=jnp.float32)

    @pl.when(ct == n_ct - 1)
    def _finalize():
        y = acc_ref[...] + b2_ref[...]
        o_ref[0] = _silu(y).astype(o_ref.dtype)


# ---------------------------------------------------------------------------
# Wrappers
# ---------------------------------------------------------------------------
def sppf_forward_nhwc(x_nhwc, params, *, tc=None):
    """Native NHWC entry point (no transposes).  x_nhwc: (N, H, W, Cin)."""
    N, H, W, Cin = x_nhwc.shape
    c_ = params["w1"].shape[1]
    Cout = params["w2"].shape[1]
    assert params["w2"].shape[0] == 4 * c_

    if tc is None:
        tc = 128 if (c_ % 128 == 0) else c_
    assert c_ % tc == 0 and (tc == c_ or tc % 128 == 0), (
        "tc must equal c_ or be a 128-multiple dividing c_ (lane tiling rule)")
    n_ct = c_ // tc
    HW = H * W
    Wp = ((W + 4 + 7) // 8) * 8          # >=4-wide right halo, 8-aligned

    x2d = x_nhwc.astype(jnp.bfloat16).reshape(N, HW, Cin)
    w1 = params["w1"].astype(jnp.bfloat16)                      # (Cin, c_)
    b1 = params["b1"].reshape(1, c_).astype(jnp.float32)
    w2 = params["w2"].astype(jnp.bfloat16).reshape(4, c_, Cout)
    b2 = params["b2"].reshape(1, Cout).astype(jnp.float32)

    # Explicit VMEM budget: double-buffered blocks + resident scratch.
    blk = (HW * Cin * 2 + Cin * tc * 2 + tc * 4
           + 4 * tc * Cout * 2 + Cout * 4 + HW * Cout * 4)
    scratch = (HW * Cout + (H + 4) * W * tc + H * Wp * tc) * 4
    vmem_limit = int(min(max(2 * blk + scratch + (4 << 20), 32 << 20), 48 << 20))
    # TODO(synk): for very large feature maps (H*W*Cout beyond ~48 MiB) tile H
    # into row strips with a 4-row halo instead of raising the limit further.

    out = pl.pallas_call(
        _sppf_fused_kernel,
        out_shape=jax.ShapeDtypeStruct((N, HW, Cout), jnp.float32),
        grid=(N, n_ct),
        in_specs=[
            pl.BlockSpec((1, HW, Cin), lambda n, c: (n, 0, 0)),   # resident/batch
            pl.BlockSpec((Cin, tc), lambda n, c: (0, c)),
            pl.BlockSpec((1, tc), lambda n, c: (0, c)),
            pl.BlockSpec((4, tc, Cout), lambda n, c: (0, c, 0)),
            pl.BlockSpec((1, Cout), lambda n, c: (0, 0)),
        ],
        out_specs=pl.BlockSpec((1, HW, Cout), lambda n, c: (n, 0, 0)),
        scratch_shapes=[
            pltpu.VMEM((HW, Cout), jnp.float32),       # cv2 accumulator
            pltpu.VMEM((H + 4, W, tc), jnp.float32),   # H-halo band
            pltpu.VMEM((H, Wp, tc), jnp.float32),      # W-halo band
        ],
        compiler_params=pltpu.CompilerParams(
            dimension_semantics=("parallel", "arbitrary"),
            vmem_limit_bytes=vmem_limit),
    )(x2d, w1, b1, w2, b2)
    return out.reshape(N, H, W, Cout)


def sppf_forward(x_nchw, params, *, tc=None):
    """NCHW boundary wrapper matching the PyTorch module interface."""
    # In an NHWC-native pipeline call sppf_forward_nhwc directly and both
    # transposes disappear.
    # TODO(synk): if the surrounding model must stay NCHW, fold this relayout
    # into the kernel (per-tile XLU transpose of the (Cin, HW) block).
    x_nhwc = jnp.transpose(x_nchw, (0, 2, 3, 1))
    y = sppf_forward_nhwc(x_nhwc, params, tc=tc)
    return jnp.transpose(y, (0, 3, 1, 2))


# ---------------------------------------------------------------------------
# Parameters (eval-mode BatchNorm folded into the 1x1 conv weights)
# ---------------------------------------------------------------------------
def fold_bn(gamma, beta, mean, var, eps=1e-5):
    scale = gamma / jnp.sqrt(var + eps)
    shift = beta - mean * scale
    return scale, shift


def init_params(in_channel, out_channel, key):
    c_ = in_channel // 2
    ks = jax.random.split(key, 10)
    w1 = jax.random.normal(ks[0], (in_channel, c_), jnp.float32) * (in_channel ** -0.5)
    g1 = 1.0 + 0.1 * jax.random.normal(ks[1], (c_,), jnp.float32)
    be1 = 0.1 * jax.random.normal(ks[2], (c_,), jnp.float32)
    m1 = 0.1 * jax.random.normal(ks[3], (c_,), jnp.float32)
    v1 = jnp.abs(1.0 + 0.1 * jax.random.normal(ks[4], (c_,), jnp.float32))
    s1, sh1 = fold_bn(g1, be1, m1, v1)
    w2 = jax.random.normal(ks[5], (4 * c_, out_channel), jnp.float32) * ((4 * c_) ** -0.5)
    g2 = 1.0 + 0.1 * jax.random.normal(ks[6], (out_channel,), jnp.float32)
    be2 = 0.1 * jax.random.normal(ks[7], (out_channel,), jnp.float32)
    m2 = 0.1 * jax.random.normal(ks[8], (out_channel,), jnp.float32)
    v2 = jnp.abs(1.0 + 0.1 * jax.random.normal(ks[9], (out_channel,), jnp.float32))
    s2, sh2 = fold_bn(g2, be2, m2, v2)
    # BN scale folded into the weights offline -> kernel epilogue = +shift, SiLU.
    return {"w1": w1 * s1[None, :], "b1": sh1,
            "w2": w2 * s2[None, :], "b2": sh2}


# ---------------------------------------------------------------------------
# Pure-JAX reference (same bf16 matmul operands as the kernel)
# ---------------------------------------------------------------------------
def _ref_maxpool(x_nhwc):
    return lax.reduce_window(
        x_nhwc, -jnp.inf, lax.max,
        window_dimensions=(1, 5, 5, 1), window_strides=(1, 1, 1, 1),
        padding=((0, 0), (2, 2), (2, 2), (0, 0)))


def sppf_reference(x_nchw, p):
    x = jnp.transpose(x_nchw, (0, 2, 3, 1)).astype(jnp.bfloat16)
    w1 = p["w1"].astype(jnp.bfloat16)
    w2 = p["w2"].astype(jnp.bfloat16)
    h = jnp.einsum("nhwc,cd->nhwd", x, w1,
                   preferred_element_type=jnp.float32) + p["b1"]
    x0 = h * jax.nn.sigmoid(h)
    x1 = _ref_maxpool(x0)
    x2 = _ref_maxpool(x1)
    x3 = _ref_maxpool(x2)
    cat = jnp.concatenate([x0, x1, x2, x3], -1).astype(jnp.bfloat16)
    y = jnp.einsum("nhwc,cd->nhwd", cat, w2,
                   preferred_element_type=jnp.float32) + p["b2"]
    y = y * jax.nn.sigmoid(y)
    return jnp.transpose(y, (0, 3, 1, 2))


if __name__ == "__main__":
    key = jax.random.PRNGKey(0)
    k_x, k_p = jax.random.split(key)

    # Module defaults SPPF(512, 512) at a small spatial size; exercises the
    # multi-tile c_ reduction (c_=256 -> 2 tiles of 128).
    N, Cin, H, W = 2, 512, 16, 16
    Cout = 512
    x = jax.random.normal(k_x, (N, Cin, H, W), jnp.float32)   # NCHW like PyTorch
    params = init_params(Cin, Cout, k_p)

    out = jax.block_until_ready(sppf_forward(x, params))
    assert out.shape == (N, Cout, H, W), out.shape

    ref = sppf_reference(x, params)
    # bf16 matmul operands + EUP-approximated reciprocal in SiLU -> modest tol.
    err = float(jnp.max(jnp.abs(out - ref)))
    assert jnp.allclose(out, ref, atol=3e-2, rtol=3e-2), f"max abs err {err}"

    print("KERNEL_OK")
</pallas_src>

<mosaic_0001>
module attributes {stable_mosaic.version = 11 : i64} {
  func.func @_sppf_fused_kernel(%arg0: i32, %arg1: i32, %arg2: memref<1x256x512xbf16, #tpu.memory_space<vmem>>, %arg3: memref<512x128xbf16, #tpu.memory_space<vmem>>, %arg4: memref<1x128xf32, #tpu.memory_space<vmem>>, %arg5: memref<4x128x512xbf16, #tpu.memory_space<vmem>>, %arg6: memref<1x512xf32, #tpu.memory_space<vmem>>, %arg7: memref<1x256x512xf32, #tpu.memory_space<vmem>>, %arg8: memref<256x512xf32, #tpu.memory_space<vmem>>, %arg9: memref<20x16x128xf32, #tpu.memory_space<vmem>>, %arg10: memref<16x24x128xf32, #tpu.memory_space<vmem>>) attributes {dimension_semantics = [#tpu.dimension_semantics<parallel>, #tpu.dimension_semantics<arbitrary>], iteration_bounds = array<i64: 2, 2>, scalar_prefetch = 0 : i64, scratch_operands = 3 : i64, tpu.core_type = #tpu.core_type<tc>, window_params = [{transform_indices = @transform_0, window_bounds = array<i64: 1, 256, 512>}, {transform_indices = @transform_1, window_bounds = array<i64: 512, 128>}, {transform_indices = @transform_2, window_bounds = array<i64: 1, 128>}, {transform_indices = @transform_3, window_bounds = array<i64: 4, 128, 512>}, {pipeline_mode = #tpu.pipeline_mode<synchronous>, transform_indices = @transform_4, window_bounds = array<i64: 1, 512>}, {transform_indices = @transform_5, window_bounds = array<i64: 1, 256, 512>}]} {
    %c0_i32 = arith.constant 0 : i32
    %0 = arith.cmpi eq, %arg1, %c0_i32 : i32
    %1 = arith.extui %0 : i1 to i32
    %c0_i32_0 = arith.constant 0 : i32
    %2 = arith.cmpi ne, %1, %c0_i32_0 : i32
    scf.if %2 {
      %cst_84 = arith.constant 0.000000e+00 : f32
      %118 = vector.broadcast %cst_84 : f32 to vector<256x512xf32>
      %c0_85 = arith.constant 0 : index
      %c0_86 = arith.constant 0 : index
      %119 = vector.load %arg8[%c0_85, %c0_86] : memref<256x512xf32, #tpu.memory_space<vmem>>, vector<256x512xf32>
      tpu.vector_store %arg8[%c0_85, %c0_86], %118 {strides = array<i32>} : memref<256x512xf32, #tpu.memory_space<vmem>>, vector<256x512xf32>,
      %cst_87 = arith.constant -3.40282347E+38 : f32
      %120 = vector.broadcast %cst_87 : f32 to vector<2x16x128xf32>
      %c0_88 = arith.constant 0 : index
      %c0_89 = arith.constant 0 : index
      %c0_90 = arith.constant 0 : index
      %121 = vector.load %arg9[%c0_88, %c0_89, %c0_90] : memref<20x16x128xf32, #tpu.memory_space<vmem>>, vector<2x16x128xf32>
      tpu.vector_store %arg9[%c0_88, %c0_89, %c0_90], %120 {strides = array<i32>} : memref<20x16x128xf32, #tpu.memory_space<vmem>>, vector<2x16x128xf32>,
      %cst_91 = arith.constant -3.40282347E+38 : f32
      %122 = vector.broadcast %cst_91 : f32 to vector<2x16x128xf32>
      %c18 = arith.constant 18 : index
      %c0_92 = arith.constant 0 : index
      %c0_93 = arith.constant 0 : index
      %123 = vector.load %arg9[%c18, %c0_92, %c0_93] : memref<20x16x128xf32, #tpu.memory_space<vmem>>, vector<2x16x128xf32>
      tpu.vector_store %arg9[%c18, %c0_92, %c0_93], %122 {strides = array<i32>} : memref<20x16x128xf32, #tpu.memory_space<vmem>>, vector<2x16x128xf32>,
      %cst_94 = arith.constant -3.40282347E+38 : f32
      %124 = vector.broadcast %cst_94 : f32 to vector<16x8x128xf32>
      %c0_95 = arith.constant 0 : index
      %c16 = arith.constant 16 : index
      %c0_96 = arith.constant 0 : index
      %125 = vector.load %arg10[%c0_95, %c16, %c0_96] : memref<16x24x128xf32, #tpu.memory_space<vmem>>, vector<16x8x128xf32>
      tpu.vector_store %arg10[%c0_95, %c16, %c0_96], %124 {strides = array<i32>} : memref<16x24x128xf32, #tpu.memory_space<vmem>>, vector<16x8x128xf32>,
    } else {
    }
    %c0 = arith.constant 0 : index
    %c0_1 = arith.constant 0 : index
    %c0_2 = arith.constant 0 : index
    %3 = vector.load %arg2[%c0, %c0_1, %c0_2] : memref<1x256x512xbf16, #tpu.memory_space<vmem>>, vector<1x256x512xbf16>
    %4 = vector.shape_cast %3 : vector<1x256x512xbf16> to vector<256x512xbf16>
    %c0_3 = arith.constant 0 : index
    %c0_4 = arith.constant 0 : index
    %5 = vector.load %arg3[%c0_3, %c0_4] : memref<512x128xbf16, #tpu.memory_space<vmem>>, vector<512x128xbf16>
    %cst = arith.constant dense<0.000000e+00> : vector<256x128xf32>
    %6 = tpu.matmul %4, %5, %cst {dimension_numbers = #tpu.dot_dimension_numbers<[1], [0], [0], [1], [0, 0, 1, 1], [], []>} : vector<256x512xbf16>, vector<512x128xbf16>, vector<256x128xf32> -> vector<256x128xf32>
    %c0_5 = arith.constant 0 : index
    %c0_6 = arith.constant 0 : index
    %7 = vector.load %arg4[%c0_5, %c0_6] : memref<1x128xf32, #tpu.memory_space<vmem>>, vector<1x128xf32>
    %8 = vector.broadcast %7 : vector<1x128xf32> to vector<256x128xf32>
    %9 = arith.addf %6, %8 : vector<256x128xf32>
    %cst_7 = arith.constant 0.000000e+00 : f32
    %10 = vector.broadcast %cst_7 : f32 to vector<256x128xf32>
    %11 = arith.subf %10, %9 : vector<256x128xf32>
    %12 = math.exp %11 : vector<256x128xf32>
    %cst_8 = arith.constant 1.000000e+00 : f32
    %13 = vector.broadcast %cst_8 : f32 to vector<256x128xf32>
    %14 = arith.addf %13, %12 : vector<256x128xf32>
    %15 = tpu.reciprocal %14 {approx = true} : vector<256x128xf32> -> vector<256x128xf32>
    %16 = arith.mulf %9, %15 : vector<256x128xf32>
    %17 = vector.shape_cast %16 : vector<256x128xf32> to vector<16x16x128xf32>
    %c2 = arith.constant 2 : index
    %c0_9 = arith.constant 0 : index
    %c0_10 = arith.constant 0 : index
    %18 = vector.load %arg9[%c2, %c0_9, %c0_10] : memref<20x16x128xf32, #tpu.memory_space<vmem>>, vector<16x16x128xf32>
    tpu.vector_store %arg9[%c2, %c0_9, %c0_10], %17 {strides = array<i32>} : memref<20x16x128xf32, #tpu.memory_space<vmem>>, vector<16x16x128xf32>,
    %c0_11 = arith.constant 0 : index
    %c0_12 = arith.constant 0 : index
    %c0_13 = arith.constant 0 : index
    %19 = vector.load %arg9[%c0_11, %c0_12, %c0_13] : memref<20x16x128xf32, #tpu.memory_space<vmem>>, vector<20x16x128xf32>
    %20 = vector.extract_strided_slice %19 {offsets = [0, 0, 0], sizes = [16, 16, 128], strides = [1, 1, 1]} : vector<20x16x128xf32> to vector<16x16x128xf32>
    %21 = vector.extract_strided_slice %19 {offsets = [1, 0, 0], sizes = [16, 16, 128], strides = [1, 1, 1]} : vector<20x16x128xf32> to vector<16x16x128xf32>
    %22 = arith.maximumf %20, %21 : vector<16x16x128xf32>
    %23 = vector.extract_strided_slice %19 {offsets = [2, 0, 0], sizes = [16, 16, 128], strides = [1, 1, 1]} : vector<20x16x128xf32> to vector<16x16x128xf32>
    %24 = arith.maximumf %22, %23 : vector<16x16x128xf32>
    %25 = vector.extract_strided_slice %19 {offsets = [3, 0, 0], sizes = [16, 16, 128], strides = [1, 1, 1]} : vector<20x16x128xf32> to vector<16x16x128xf32>
    %26 = arith.maximumf %24, %25 : vector<16x16x128xf32>
    %27 = vector.extract_strided_slice %19 {offsets = [4, 0, 0], sizes = [16, 16, 128], strides = [1, 1, 1]} : vector<20x16x128xf32> to vector<16x16x128xf32>
    %28 = arith.maximumf %26, %27 : vector<16x16x128xf32>
    %c0_14 = arith.constant 0 : index
    %c0_15 = arith.constant 0 : index
    %c0_16 = arith.constant 0 : index
    %29 = vector.load %arg10[%c0_14, %c0_15, %c0_16] : memref<16x24x128xf32, #tpu.memory_space<vmem>>, vector<16x16x128xf32>
    tpu.vector_store %arg10[%c0_14, %c0_15, %c0_16], %28 {strides = array<i32>} : memref<16x24x128xf32, #tpu.memory_space<vmem>>, vector<16x16x128xf32>,
    %c0_17 = arith.constant 0 : index
    %c0_18 = arith.constant 0 : index
    %c0_19 = arith.constant 0 : index
    %30 = vector.load %arg10[%c0_17, %c0_18, %c0_19] : memref<16x24x128xf32, #tpu.memory_space<vmem>>, vector<16x24x128xf32>
    %c1_i32 = arith.constant 1 : i32
    %31 = tpu.dynamic_rotate %30 by %c1_i32 dim 1 : vector<16x24x128xf32>, i32 -> vector<16x24x128xf32>
    %32 = arith.maximumf %30, %31 : vector<16x24x128xf32>
    %c2_i32 = arith.constant 2 : i32
    %33 = tpu.dynamic_rotate %30 by %c2_i32 dim 1 : vector<16x24x128xf32>, i32 -> vector<16x24x128xf32>
    %34 = arith.maximumf %32, %33 : vector<16x24x128xf32>
    %c22_i32 = arith.constant 22 : i32
    %35 = tpu.dynamic_rotate %30 by %c22_i32 dim 1 : vector<16x24x128xf32>, i32 -> vector<16x24x128xf32>
    %36 = arith.maximumf %34, %35 : vector<16x24x128xf32>
    %c23_i32 = arith.constant 23 : i32
    %37 = tpu.dynamic_rotate %30 by %c23_i32 dim 1 : vector<16x24x128xf32>, i32 -> vector<16x24x128xf32>
    %38 = arith.maximumf %36, %37 : vector<16x24x128xf32>
    %39 = vector.extract_strided_slice %38 {offsets = [0, 0, 0], sizes = [16, 16, 128], strides = [1, 1, 1]} : vector<16x24x128xf32> to vector<16x16x128xf32>
    %c2_20 = arith.constant 2 : index
    %c0_21 = arith.constant 0 : index
    %c0_22 = arith.constant 0 : index
    %40 = vector.load %arg9[%c2_20, %c0_21, %c0_22] : memref<20x16x128xf32, #tpu.memory_space<vmem>>, vector<16x16x128xf32>
    tpu.vector_store %arg9[%c2_20, %c0_21, %c0_22], %39 {strides = array<i32>} : memref<20x16x128xf32, #tpu.memory_space<vmem>>, vector<16x16x128xf32>,
    %c0_23 = arith.constant 0 : index
    %c0_24 = arith.constant 0 : index
    %c0_25 = arith.constant 0 : index
    %41 = vector.load %arg9[%c0_23, %c0_24, %c0_25] : memref<20x16x128xf32, #tpu.memory_space<vmem>>, vector<20x16x128xf32>
    %42 = vector.extract_strided_slice %41 {offsets = [0, 0, 0], sizes = [16, 16, 128], strides = [1, 1, 1]} : vector<20x16x128xf32> to vector<16x16x128xf32>
    %43 = vector.extract_strided_slice %41 {offsets = [1, 0, 0], sizes = [16, 16, 128], strides = [1, 1, 1]} : vector<20x16x128xf32> to vector<16x16x128xf32>
    %44 = arith.maximumf %42, %43 : vector<16x16x128xf32>
    %45 = vector.extract_strided_slice %41 {offsets = [2, 0, 0], sizes = [16, 16, 128], strides = [1, 1, 1]} : vector<20x16x128xf32> to vector<16x16x128xf32>
    %46 = arith.maximumf %44, %45 : vector<16x16x128xf32>
    %47 = vector.extract_strided_slice %41 {offsets = [3, 0, 0], sizes = [16, 16, 128], strides = [1, 1, 1]} : vector<20x16x128xf32> to vector<16x16x128xf32>
    %48 = arith.maximumf %46, %47 : vector<16x16x128xf32>
    %49 = vector.extract_strided_slice %41 {offsets = [4, 0, 0], sizes = [16, 16, 128], strides = [1, 1, 1]} : vector<20x16x128xf32> to vector<16x16x128xf32>
    %50 = arith.maximumf %48, %49 : vector<16x16x128xf32>
    %c0_26 = arith.constant 0 : index
    %c0_27 = arith.constant 0 : index
    %c0_28 = arith.constant 0 : index
    %51 = vector.load %arg10[%c0_26, %c0_27, %c0_28] : memref<16x24x128xf32, #tpu.memory_space<vmem>>, vector<16x16x128xf32>
    tpu.vector_store %arg10[%c0_26, %c0_27, %c0_28], %50 {strides = array<i32>} : memref<16x24x128xf32, #tpu.memory_space<vmem>>, vector<16x16x128xf32>,
    %c0_29 = arith.constant 0 : index
    %c0_30 = arith.constant 0 : index
    %c0_31 = arith.constant 0 : index
    %52 = vector.load %arg10[%c0_29, %c0_30, %c0_31] : memref<16x24x128xf32, #tpu.memory_space<vmem>>, vector<16x24x128xf32>
    %c1_i32_32 = arith.constant 1 : i32
    %53 = tpu.dynamic_rotate %52 by %c1_i32_32 dim 1 : vector<16x24x128xf32>, i32 -> vector<16x24x128xf32>
    %54 = arith.maximumf %52, %53 : vector<16x24x128xf32>
    %c2_i32_33 = arith.constant 2 : i32
    %55 = tpu.dynamic_rotate %52 by %c2_i32_33 dim 1 : vector<16x24x128xf32>, i32 -> vector<16x24x128xf32>
    %56 = arith.maximumf %54, %55 : vector<16x24x128xf32>
    %c22_i32_34 = arith.constant 22 : i32
    %57 = tpu.dynamic_rotate %52 by %c22_i32_34 dim 1 : vector<16x24x128xf32>, i32 -> vector<16x24x128xf32>
    %58 = arith.maximumf %56, %57 : vector<16x24x128xf32>
    %c23_i32_35 = arith.constant 23 : i32
    %59 = tpu.dynamic_rotate %52 by %c23_i32_35 dim 1 : vector<16x24x128xf32>, i32 -> vector<16x24x128xf32>
    %60 = arith.maximumf %58, %59 : vector<16x24x128xf32>
    %61 = vector.extract_strided_slice %60 {offsets = [0, 0, 0], sizes = [16, 16, 128], strides = [1, 1, 1]} : vector<16x24x128xf32> to vector<16x16x128xf32>
    %c2_36 = arith.constant 2 : index
    %c0_37 = arith.constant 0 : index
    %c0_38 = arith.constant 0 : index
    %62 = vector.load %arg9[%c2_36, %c0_37, %c0_38] : memref<20x16x128xf32, #tpu.memory_space<vmem>>, vector<16x16x128xf32>
    tpu.vector_store %arg9[%c2_36, %c0_37, %c0_38], %61 {strides = array<i32>} : memref<20x16x128xf32, #tpu.memory_space<vmem>>, vector<16x16x128xf32>,
    %c0_39 = arith.constant 0 : index
    %c0_40 = arith.constant 0 : index
    %c0_41 = arith.constant 0 : index
    %63 = vector.load %arg9[%c0_39, %c0_40, %c0_41] : memref<20x16x128xf32, #tpu.memory_space<vmem>>, vector<20x16x128xf32>
    %64 = vector.extract_strided_slice %63 {offsets = [0, 0, 0], sizes = [16, 16, 128], strides = [1, 1, 1]} : vector<20x16x128xf32> to vector<16x16x128xf32>
    %65 = vector.extract_strided_slice %63 {offsets = [1, 0, 0], sizes = [16, 16, 128], strides = [1, 1, 1]} : vector<20x16x128xf32> to vector<16x16x128xf32>
    %66 = arith.maximumf %64, %65 : vector<16x16x128xf32>
    %67 = vector.extract_strided_slice %63 {offsets = [2, 0, 0], sizes = [16, 16, 128], strides = [1, 1, 1]} : vector<20x16x128xf32> to vector<16x16x128xf32>
    %68 = arith.maximumf %66, %67 : vector<16x16x128xf32>
    %69 = vector.extract_strided_slice %63 {offsets = [3, 0, 0], sizes = [16, 16, 128], strides = [1, 1, 1]} : vector<20x16x128xf32> to vector<16x16x128xf32>
    %70 = arith.maximumf %68, %69 : vector<16x16x128xf32>
    %71 = vector.extract_strided_slice %63 {offsets = [4, 0, 0], sizes = [16, 16, 128], strides = [1, 1, 1]} : vector<20x16x128xf32> to vector<16x16x128xf32>
    %72 = arith.maximumf %70, %71 : vector<16x16x128xf32>
    %c0_42 = arith.constant 0 : index
    %c0_43 = arith.constant 0 : index
    %c0_44 = arith.constant 0 : index
    %73 = vector.load %arg10[%c0_42, %c0_43, %c0_44] : memref<16x24x128xf32, #tpu.memory_space<vmem>>, vector<16x16x128xf32>
    tpu.vector_store %arg10[%c0_42, %c0_43, %c0_44], %72 {strides = array<i32>} : memref<16x24x128xf32, #tpu.memory_space<vmem>>, vector<16x16x128xf32>,
    %c0_45 = arith.constant 0 : index
    %c0_46 = arith.constant 0 : index
    %c0_47 = arith.constant 0 : index
    %74 = vector.load %arg10[%c0_45, %c0_46, %c0_47] : memref<16x24x128xf32, #tpu.memory_space<vmem>>, vector<16x24x128xf32>
    %c1_i32_48 = arith.constant 1 : i32
    %75 = tpu.dynamic_rotate %74 by %c1_i32_48 dim 1 : vector<16x24x128xf32>, i32 -> vector<16x24x128xf32>
    %76 = arith.maximumf %74, %75 : vector<16x24x128xf32>
    %c2_i32_49 = arith.constant 2 : i32
    %77 = tpu.dynamic_rotate %74 by %c2_i32_49 dim 1 : vector<16x24x128xf32>, i32 -> vector<16x24x128xf32>
    %78 = arith.maximumf %76, %77 : vector<16x24x128xf32>
    %c22_i32_50 = arith.constant 22 : i32
    %79 = tpu.dynamic_rotate %74 by %c22_i32_50 dim 1 : vector<16x24x128xf32>, i32 -> vector<16x24x128xf32>
    %80 = arith.maximumf %78, %79 : vector<16x24x128xf32>
    %c23_i32_51 = arith.constant 23 : i32
    %81 = tpu.dynamic_rotate %74 by %c23_i32_51 dim 1 : vector<16x24x128xf32>, i32 -> vector<16x24x128xf32>
    %82 = arith.maximumf %80, %81 : vector<16x24x128xf32>
    %83 = vector.extract_strided_slice %82 {offsets = [0, 0, 0], sizes = [16, 16, 128], strides = [1, 1, 1]} : vector<16x24x128xf32> to vector<16x16x128xf32>
    %c0_52 = arith.constant 0 : index
    %c0_53 = arith.constant 0 : index
    %84 = vector.load %arg8[%c0_52, %c0_53] : memref<256x512xf32, #tpu.memory_space<vmem>>, vector<256x512xf32>
    %85 = arith.truncf %16 : vector<256x128xf32> to vector<256x128xbf16>
    %c0_54 = arith.constant 0 : index
    %c0_55 = arith.constant 0 : index
    %c0_56 = arith.constant 0 : index
    %86 = vector.load %arg5[%c0_54, %c0_55, %c0_56] : memref<4x128x512xbf16, #tpu.memory_space<vmem>>, vector<1x128x512xbf16>
    %87 = vector.shape_cast %86 : vector<1x128x512xbf16> to vector<128x512xbf16>
    %cst_57 = arith.constant dense<0.000000e+00> : vector<256x512xf32>
    %88 = tpu.matmul %85, %87, %cst_57 {dimension_numbers = #tpu.dot_dimension_numbers<[1], [0], [0], [1], [0, 0, 1, 1], [], []>} : vector<256x128xbf16>, vector<128x512xbf16>, vector<256x512xf32> -> vector<256x512xf32>
    %89 = arith.addf %84, %88 : vector<256x512xf32>
    %c0_58 = arith.constant 0 : index
    %c0_59 = arith.constant 0 : index
    %90 = vector.load %arg8[%c0_58, %c0_59] : memref<256x512xf32, #tpu.memory_space<vmem>>, vector<256x512xf32>
    tpu.vector_store %arg8[%c0_58, %c0_59], %89 {strides = array<i32>} : memref<256x512xf32, #tpu.memory_space<vmem>>, vector<256x512xf32>,
    %c0_60 = arith.constant 0 : index
    %c0_61 = arith.constant 0 : index
    %91 = vector.load %arg8[%c0_60, %c0_61] : memref<256x512xf32, #tpu.memory_space<vmem>>, vector<256x512xf32>
    %92 = vector.shape_cast %39 : vector<16x16x128xf32> to vector<256x128xf32>
    %93 = arith.truncf %92 : vector<256x128xf32> to vector<256x128xbf16>
    %c1 = arith.constant 1 : index
    %c0_62 = arith.constant 0 : index
    %c0_63 = arith.constant 0 : index
    %94 = vector.load %arg5[%c1, %c0_62, %c0_63] : memref<4x128x512xbf16, #tpu.memory_space<vmem>>, vector<1x128x512xbf16>
    %95 = vector.shape_cast %94 : vector<1x128x512xbf16> to vector<128x512xbf16>
    %cst_64 = arith.constant dense<0.000000e+00> : vector<256x512xf32>
    %96 = tpu.matmul %93, %95, %cst_64 {dimension_numbers = #tpu.dot_dimension_numbers<[1], [0], [0], [1], [0, 0, 1, 1], [], []>} : vector<256x128xbf16>, vector<128x512xbf16>, vector<256x512xf32> -> vector<256x512xf32>
    %97 = arith.addf %91, %96 : vector<256x512xf32>
    %c0_65 = arith.constant 0 : index
    %c0_66 = arith.constant 0 : index
    %98 = vector.load %arg8[%c0_65, %c0_66] : memref<256x512xf32, #tpu.memory_space<vmem>>, vector<256x512xf32>
    tpu.vector_store %arg8[%c0_65, %c0_66], %97 {strides = array<i32>} : memref<256x512xf32, #tpu.memory_space<vmem>>, vector<256x512xf32>,
    %c0_67 = arith.constant 0 : index
    %c0_68 = arith.constant 0 : index
    %99 = vector.load %arg8[%c0_67, %c0_68] : memref<256x512xf32, #tpu.memory_space<vmem>>, vector<256x512xf32>
    %100 = vector.shape_cast %61 : vector<16x16x128xf32> to vector<256x128xf32>
    %101 = arith.truncf %100 : vector<256x128xf32> to vector<256x128xbf16>
    %c2_69 = arith.constant 2 : index
    %c0_70 = arith.constant 0 : index
    %c0_71 = arith.constant 0 : index
    %102 = vector.load %arg5[%c2_69, %c0_70, %c0_71] : memref<4x128x512xbf16, #tpu.memory_space<vmem>>, vector<1x128x512xbf16>
    %103 = vector.shape_cast %102 : vector<1x128x512xbf16> to vector<128x512xbf16>
    %cst_72 = arith.constant dense<0.000000e+00> : vector<256x512xf32>
    %104 = tpu.matmul %101, %103, %cst_72 {dimension_numbers = #tpu.dot_dimension_numbers<[1], [0], [0], [1], [0, 0, 1, 1], [], []>} : vector<256x128xbf16>, vector<128x512xbf16>, vector<256x512xf32> -> vector<256x512xf32>
    %105 = arith.addf %99, %104 : vector<256x512xf32>
    %c0_73 = arith.constant 0 : index
    %c0_74 = arith.constant 0 : index
    %106 = vector.load %arg8[%c0_73, %c0_74] : memref<256x512xf32, #tpu.memory_space<vmem>>, vector<256x512xf32>
    tpu.vector_store %arg8[%c0_73, %c0_74], %105 {strides = array<i32>} : memref<256x512xf32, #tpu.memory_space<vmem>>, vector<256x512xf32>,
    %c0_75 = arith.constant 0 : index
    %c0_76 = arith.constant 0 : index
    %107 = vector.load %arg8[%c0_75, %c0_76] : memref<256x512xf32, #tpu.memory_space<vmem>>, vector<256x512xf32>
    %108 = vector.shape_cast %83 : vector<16x16x128xf32> to vector<256x128xf32>
    %109 = arith.truncf %108 : vector<256x128xf32> to vector<256x128xbf16>
    %c3 = arith.constant 3 : index
    %c0_77 = arith.constant 0 : index
    %c0_78 = arith.constant 0 : index
    %110 = vector.load %arg5[%c3, %c0_77, %c0_78] : memref<4x128x512xbf16, #tpu.memory_space<vmem>>, vector<1x128x512xbf16>
    %111 = vector.shape_cast %110 : vector<1x128x512xbf16> to vector<128x512xbf16>
    %cst_79 = arith.constant dense<0.000000e+00> : vector<256x512xf32>
    %112 = tpu.matmul %109, %111, %cst_79 {dimension_numbers = #tpu.dot_dimension_numbers<[1], [0], [0], [1], [0, 0, 1, 1], [], []>} : vector<256x128xbf16>, vector<128x512xbf16>, vector<256x512xf32> -> vector<256x512xf32>
    %113 = arith.addf %107, %112 : vector<256x512xf32>
    %c0_80 = arith.constant 0 : index
    %c0_81 = arith.constant 0 : index
    %114 = vector.load %arg8[%c0_80, %c0_81] : memref<256x512xf32, #tpu.memory_space<vmem>>, vector<256x512xf32>
    tpu.vector_store %arg8[%c0_80, %c0_81], %113 {strides = array<i32>} : memref<256x512xf32, #tpu.memory_space<vmem>>, vector<256x512xf32>,
    %c1_i32_82 = arith.constant 1 : i32
    %115 = arith.cmpi eq, %arg1, %c1_i32_82 : i32
    %116 = arith.extui %115 : i1 to i32
    %c0_i32_83 = arith.constant 0 : i32
    %117 = arith.cmpi ne, %116, %c0_i32_83 : i32
    scf.if %117 {
      %c0_84 = arith.constant 0 : index
      %c0_85 = arith.constant 0 : index
      %118 = vector.load %arg8[%c0_84, %c0_85] : memref<256x512xf32, #tpu.memory_space<vmem>>, vector<256x512xf32>
      %c0_86 = arith.constant 0 : index
      %c0_87 = arith.constant 0 : index
      %119 = vector.load %arg6[%c0_86, %c0_87] : memref<1x512xf32, #tpu.memory_space<vmem>>, vector<1x512xf32>
      %120 = vector.broadcast %119 : vector<1x512xf32> to vector<256x512xf32>
      %121 = arith.addf %118, %120 : vector<256x512xf32>
      %cst_88 = arith.constant 0.000000e+00 : f32
      %122 = vector.broadcast %cst_88 : f32 to vector<256x512xf32>
      %123 = arith.subf %122, %121 : vector<256x512xf32>
      %124 = math.exp %123 : vector<256x512xf32>
      %cst_89 = arith.constant 1.000000e+00 : f32
      %125 = vector.broadcast %cst_89 : f32 to vector<256x512xf32>
      %126 = arith.addf %125, %124 : vector<256x512xf32>
      %127 = tpu.reciprocal %126 {approx = true} : vector<256x512xf32> -> vector<256x512xf32>
      %128 = arith.mulf %121, %127 : vector<256x512xf32>
      %c0_90 = arith.constant 0 : index
      %c0_91 = arith.constant 0 : index
      %c0_92 = arith.constant 0 : index
      %129 = vector.load %arg7[%c0_90, %c0_91, %c0_92] : memref<1x256x512xf32, #tpu.memory_space<vmem>>, vector<1x256x512xf32>
      %130 = vector.shape_cast %129 : vector<1x256x512xf32> to vector<256x512xf32>
      %131 = vector.shape_cast %128 : vector<256x512xf32> to vector<1x256x512xf32>
      tpu.vector_store %arg7[%c0_90, %c0_91, %c0_92], %131 {strides = array<i32>} : memref<1x256x512xf32, #tpu.memory_space<vmem>>, vector<1x256x512xf32>,
    } else {
    }
    return
  }
  func.func @transform_0(%arg0: i32, %arg1: i32) -> (i32, i32, i32) {
    %c0_i32 = arith.constant 0 : i32
    %c0_i32_0 = arith.constant 0 : i32
    %c0_i32_1 = arith.constant 0 : i32
    return %arg0, %c0_i32, %c0_i32_0 : i32, i32, i32
  }
  func.func @transform_1(%arg0: i32, %arg1: i32) -> (i32, i32) {
    %c0_i32 = arith.constant 0 : i32
    %c0_i32_0 = arith.constant 0 : i32
    return %c0_i32, %arg1 : i32, i32
  }
  func.func @transform_2(%arg0: i32, %arg1: i32) -> (i32, i32) {
    %c0_i32 = arith.constant 0 : i32
    %c0_i32_0 = arith.constant 0 : i32
    return %c0_i32, %arg1 : i32, i32
  }
  func.func @transform_3(%arg0: i32, %arg1: i32) -> (i32, i32, i32) {
    %c0_i32 = arith.constant 0 : i32
    %c0_i32_0 = arith.constant 0 : i32
    %c0_i32_1 = arith.constant 0 : i32
    return %c0_i32, %arg1, %c0_i32_0 : i32, i32, i32
  }
  func.func @transform_4(%arg0: i32, %arg1: i32) -> (i32, i32) {
    %c0_i32 = arith.constant 0 : i32
    %c0_i32_0 = arith.constant 0 : i32
    %c0_i32_1 = arith.constant 0 : i32
    return %c0_i32, %c0_i32_0 : i32, i32
  }
  func.func @transform_5(%arg0: i32, %arg1: i32) -> (i32, i32, i32) {
    %c0_i32 = arith.constant 0 : i32
    %c0_i32_0 = arith.constant 0 : i32
    %c0_i32_1 = arith.constant 0 : i32
    return %arg0, %c0_i32, %c0_i32_0 : i32, i32, i32
  }
}

</mosaic_0001>

<bundles_post_ra>
// kernel: tpu_custom_call.1
= control target key start
LH: loop header
LB: loop body
LE: loop exit
PB: predicated region body
PF: predicated region fallthrough
CT: control target
= control target key end

     0   :  { %s16347_s0 = inlined_call_operand.hbm [shape: bf16[2,256,512], index: 0, kind: input, shape index: {}]   ;;  %s16348_s1 = inlined_call_operand.hbm [shape: bf16[512,256], index: 1, kind: input, shape index: {}]   ;;  %s16349_s2 = inlined_call_operand.vmem [shape: f32[1,256], index: 2, kind: input, shape index: {}]   ;;  %s16350_s3 = inlined_call_operand.hbm [shape: bf16[4,256,512], index: 3, kind: input, shape index: {}]   ;;  %s16351_s4 = inlined_call_operand.vmem [shape: f32[1,512], index: 4, kind: input, shape index: {}]   ;;  %s16352_s5 = inlined_call_operand.hbm [shape: f32[2,256,512], index: 5, kind: output, shape index: {}]  }
   0x1   :  { %16367 = sst [smem:[#allocation27_spill]] %s16347_s0 }
   0x2   :  { %16368 = sst [smem:[#allocation28_spill]] %s16352_s5 }
   0x3   :  { %10 = vsyncpa [#allocation6], 0 }
   0x4   :  { %12 = vsyncpa [#allocation6 + $0x1], 0 }
   0x5   :  { %13 = vsyncpa [#allocation9], 0 }
   0x6   :  { %15 = vsyncpa [#allocation9 + $0x1], 0 }
   0x7   :  { %16 = vsyncpa [#allocation7], 0 }
   0x8   :  { %18 = vsyncpa [#allocation7 + $0x1], 0  ;;  %s11788_s18 = smov 0   ;;  %s11790_s19 = smov 0  }
   0x9   :  { %s11792_s20 = smov 0   ;;  %s11794_s21 = smov 0  }
   0xa   :  { %s11796_s22 = smov 0   ;;  %s11798_s23 = smov 0  }
   0xb   :  { %s11800_s24 = smov 0   ;;  %s11802_s25 = smov 0  }
   0xc   :  { %s11804_s26 = smov 0   ;;  %s11806_s27 = smov 0  }
   0xd   :  { %s11808_s28 = smov 0  }
   0xe LB: > { %16369 = sst [smem:[#allocation18_spill]] %s11710_s21  ;;  %s11844_s29 = sadd.s32 4294967295, %s11738_s28   ;;  %s11738_s28 = sphi %s11808_s28, %s24_s28   ;;  %s11734_s27 = sphi %s11806_s27, %s16428_s27   ;;  %s11730_s26 = sphi %s11804_s26, %s16435_s26   ;;  %s11726_s25 = sphi %s11802_s25, %s16426_s25   ;;  %s11722_s24 = sphi %s11800_s24, %s16434_s24   ;;  %s11718_s23 = sphi %s11798_s23, %s16425_s23   ;;  %s11714_s22 = sphi %s11796_s22, %s16433_s22   ;;  %s11710_s21 = sphi %s11794_s21, %s16432_s21   ;;  %s11706_s20 = sphi %s11792_s20, %s16431_s20   ;;  %s11702_s19 = sphi %s11790_s19, %s16430_s19   ;;  %s11698_s18 = sphi %s11788_s18, %s16429_s18  }
   0xf   : > { %16370 = sst [smem:[#allocation19_spill]] %s11718_s23  ;;  %s9126_s30 = sadd.s32 4294967294, %s11738_s28  }
  0x10   : > { %16371 = sst [smem:[#allocation20_spill]] %s11734_s27  ;;  %s33_s6 = sadd.s32 1, %s11730_s26 }
  0x11   : > { %s36_s7 = sadd.s32 1, %s11734_s27  ;;  %p34_p0 = scmp.ge.s32.totalorder %s33_s6, 2 }
  0x12   : > { %s43_s8 = sadd.s32 1, %s11718_s23  ;;  %p50_p1 = scmp.ne.s32.totalorder %s11718_s23, %s11714_s22 }
  0x13   : > { %p51_p2 = scmp.eq.s32.totalorder %s11738_s28, 0  ;;  %s16437_s6 = smov (%p34_p0, %s33_s6), 0 }
  0x14   : > { %16372 = sst [smem:[#allocation21_spill]] %s16437_s6  ;;  %s16439_s7 = smov (!%p34_p0, %s36_s7), %s11734_s27 }
  0x15   : > { %p11861_p3 = por %p51_p2, %p50_p1  ;;  %p16353_p4 = scmp.ne.s32.totalorder %s11714_s22, %s11710_s21 }
  0x16   : > { %p38_p5 = scmp.ge.s32.totalorder %s16439_s7, 2  ;;  %p57_p6 = scmp.eq.s32.totalorder %s11844_s29, 0 }
  0x17   : > { %s66_s10 = ssub.s32 %s11730_s26, %s16437_s6  ;;  %s69_s11 = sadd.s32 1, %s11706_s20 }
  0x18   : > { %s16441_s7 = smov (%p38_p5, %s16439_s7), 0  ;;  %p11878_p7 = por %p57_p6, %p16353_p4 }
  0x19   : > { %16374 = sst [smem:[#allocation22_spill]] %s16441_s7  ;;  %p67_p8 = scmp.eq.s32.totalorder %s66_s10, 0 }
  0x1a   : > { %s16375_s12 = scalar_select %p11878_p7, 1, 0 }
  0x1b   : > { %s40_s13 = ssub.s32 %s11734_s27, %s16441_s7  ;;  %p76_p9 = scmp.ne.s32.totalorder %s11706_s20, %s11702_s19 }
  0x1c   : > { %p41_p10 = scmp.eq.s32.totalorder %s40_s13, 0  ;;  %p82_p11 = scmp.ne.s32.totalorder %s11702_s19, %s11698_s18 }
  0x1d   : > { %s11889_s14 = scalar_select %p67_p8, %s11706_s20, %s69_s11  }
  0x1e   : > { %s11892_s15 = scalar_select %p41_p10, %s11718_s23, %s43_s8  }
  0x1f   : > { %16376 = sst [smem:[#allocation23_spill]] %s11889_s14  ;;  %p11896_p12 = por %p76_p9, %p51_p2 }
  0x20   : > { %16377 = sst [smem:[#allocation24_spill]] %s11892_s15  ;;  %p11902_p13 = por %p82_p11, %p57_p6 }
  0x21   : > { %p179_p0 = scmp.eq.s32.totalorder %s11844_s29, 3  ;;  %p185_p5 = scmp.eq.s32.totalorder %s9126_s30, 3 }
  0x22   : > { %s16379_s17 = scalar_select %p11902_p13, 1, 0 }
  0x23   : > { %p11910_p4 = por %p179_p0, %p50_p1  ;;  %p16381_p8 = scmp.ne.s32.totalorder %s11714_s22, %s11710_s21 }
  0x24   : > { %p9128_p2 = scmp.ge.s32.totalorder %s11738_s28, 4 }
  0x25   : > { %s16380_s10 = scalar_select %p11910_p4, 1, 0 }
  0x26   : > { %p11917_p10 = por %p185_p5, %p16381_p8  ;;  %204 = sbr.rel (%p9128_p2) target bundleno = 110 (0x6e), region = 20 }
  0x27   : > { %s208_s8 = sand.u32 (!%p9128_p2), 1, %s11718_s23   ;;  %s9473_s11 = sshll.u32 (!%p9128_p2), %s11734_s27, 13 }
  0x28   : > { %s16382_s18 = scalar_select %p11917_p10, 1, 0 }
  0x29   : > { %s9129_s13 = sshll.u32 (!%p9128_p2), %s208_s8, 9  ;;  %s16384_s0 = sld [smem:[#allocation27_spill]] (!%p9128_p2) }
  0x2a   : > { %16383 = sst [smem:[#allocation25_spill]] %s16382_s18  ;;  %s212_s15 = scalar_lea.vmem (!%p9128_p2), [#allocation5], %s9129_s13 }
  0x2b   : > { %s219_s14 = sshll.u32 (!%p9128_p2), %s212_s15, 4  ;;  %s11931_s18 = scalar_lea.sflag (!%p9128_p2), [#allocation6], %s208_s8  ;;  %s11929_s14 = int_to_ptr.vmem [resolvable:$true] %s219_s14 }
  0x2f   : > { %s11927_s6 = scalar_lea.hbm %s16384_s0, %s9473_s11  ;;  %s11560_s7 = scalar_lea.hbm %s16384_s0, 16384 }
  0x30   : > { %s11556_s21 = scalar_lea.hbm %s11927_s6, 8192  ;;  %p11561_p11 = scmp.lt.u32.totalorder %s11927_s6, %s16384_s0 }
  0x31   : > { %p11557_p1 = scmp.ne.s32.totalorder %s11927_s6, %s11556_s21  ;;  %p11562_p0 = scmp.lt.u32.totalorder %s11560_s7, %s11556_s21 }
  0x32   : > { %p11564_p8 = scmp.lt.u32.totalorder %s11556_s21, %s11927_s6 }
  0x33   : > { %p11558_p6 = pnand %p11557_p1, %p11861_p3  ;;  %p11563_p5 = por %p11562_p0, %p11561_p11 }
  0x35   : > { %p11559_p9 = pneg %p11558_p6  ;;  %p11565_p2 = por %p11564_p8, %p11563_p5 }
  0x37   : > { %p11566_p10 = pnand %p11565_p2, %p11559_p9 }
  0x39   : > { %11569 = shalt.err (!%p11566_p10)
}
  0x3a   : > { %s11570_s15 = scalar_lea.vmem %s11929_s14, 8192  ;;  %s11740_s23 = smov [#allocation5]  }
  0x3b   : > { %p11571_p1 = scmp.ne.s32.totalorder %s11929_s14, %s11570_s15  ;;  %s11574_s27 = sshll.u32 %s11740_s23, 4  ;;  %s11575_s27 = int_to_ptr.vmem [resolvable:$false] %s11574_s27 }
  0x3c   : > { %s11576_s8 = scalar_lea.vmem %s11575_s27, 16384  ;;  %p11577_p13 = scmp.lt.s32.totalorder %s11929_s14, %s11575_s27 }
  0x3d   : > { %p11572_p6 = pnand %p11571_p1, %p11861_p3  ;;  %p11578_p7 = scmp.lt.s32.totalorder %s11576_s8, %s11570_s15 }
  0x3f   : > { %p11573_p4 = pneg %p11572_p6  ;;  %p11579_p11 = por %p11578_p7, %p11577_p13 }
  0x41   : > { %p11580_p0 = pnand %p11579_p11, %p11573_p4 }
  0x43   : > { %11583 = shalt.err (!%p11580_p0)
}
  0x44   : > { %s11741_s21 = smov 256   ;;  %s11742_s13 = smov 16  }
  0x45   : > { %10469 = dma.hbm_to_vmem [thread:$0]  (%p11861_p3), %s11927_s6, 8192, %s11929_s14, %s11931_s18, %s11741_s21, %s11741_s21, %s11742_s13  }
  0x46   : > { %s229_s7 = sand.u32 1, %s11738_s28   ;;  %s231_s11 = sand.u32 1, %s11706_s20  }
  0x47   : > { %s9132_s30 = sshll.u32 %s231_s11, 8  ;;  %s9133_s15 = sshll.u32 %s11730_s26, 6 }
  0x48   : > { %s11963_s8 = scalar_lea.hbm %s16348_s1, %s9133_s15  ;;  %s233_s0 = scalar_lea.vmem [#allocation8], %s9132_s30 }
  0x49   : > { %s239_s5 = sshll.u32 %s233_s0, 4  ;;  %s11967_s9 = scalar_lea.sflag [#allocation9], %s229_s7  ;;  %s11965_s5 = int_to_ptr.vmem [resolvable:$true] %s239_s5 }
  0x4a   : > { %s11584_s6 = scalar_lea.hbm %s11963_s8, 4096  ;;  %s11588_s21 = scalar_lea.hbm %s16348_s1, 8192 }
  0x4b   : > { %p11585_p3 = scmp.ne.s32.totalorder %s11963_s8, %s11584_s6  ;;  %p11589_p13 = scmp.lt.u32.totalorder %s11963_s8, %s16348_s1 }
  0x4c   : > { %p11590_p10 = scmp.lt.u32.totalorder %s11588_s21, %s11584_s6  ;;  %p11592_p5 = scmp.lt.u32.totalorder %s11584_s6, %s11963_s8 }
  0x4d   : > { %p11586_p4 = pnand %p11585_p3, %p11896_p12 }
  0x4e   : > { %p11591_p9 = por %p11590_p10, %p11589_p13 }
  0x4f   : > { %p11587_p7 = pneg %p11586_p4 }
  0x50   : > { %p11593_p8 = por %p11592_p5, %p11591_p9 }
  0x52   : > { %p11594_p2 = pnand %p11593_p8, %p11587_p7 }
  0x54   : > { %11597 = shalt.err (!%p11594_p2)
}
  0x55   : > { %s11598_s0 = scalar_lea.vmem %s11965_s5, 4096  ;;  %s11743_s7 = smov [#allocation8]  }
  0x56   : > { %p11599_p1 = scmp.ne.s32.totalorder %s11965_s5, %s11598_s0  ;;  %s11602_s30 = sshll.u32 %s11743_s7, 4  ;;  %s11603_s30 = int_to_ptr.vmem [resolvable:$false] %s11602_s30 }
  0x57   : > { %s11604_s23 = scalar_lea.vmem %s11603_s30, 8192  ;;  %p11605_p0 = scmp.lt.s32.totalorder %s11965_s5, %s11603_s30 }
  0x58   : > { %p11600_p6 = pnand %p11599_p1, %p11896_p12  ;;  %p11606_p3 = scmp.lt.s32.totalorder %s11604_s23, %s11598_s0 }
  0x5a   : > { %p11601_p11 = pneg %p11600_p6  ;;  %p11607_p4 = por %p11606_p3, %p11605_p0 }
  0x5c   : > { %p11608_p13 = pnand %p11607_p4, %p11601_p11 }
  0x5e   : > { %11611 = shalt.err (!%p11608_p13)
}
  0x5f   : > { %s11744_s27 = smov 128   ;;  %s11745_s6 = smov 64  }
  0x60   : > { %s11746_s14 = smov 4  }
  0x61   : > { %10470 = dma.hbm_to_vmem [thread:$0]  (%p11896_p12), %s11963_s8, 4096, %s11965_s5, %s11967_s9, %s11744_s27, %s11745_s6, %s11746_s14  }
  0x62   : > { %s9134_s18 = sshll.u32 %s231_s11, 10  ;;  %s9475_s21 = sshll.u32 %s11730_s26, 12 }
  0x63   : > { %s10471_s13 = scalar_select %p11896_p12, [#allocation0], [#allocation14] }
  0x64   : > { %s266_s7 = scalar_lea.hbm %s16350_s3, %s9475_s21  ;;  %s259_s5 = scalar_lea.vmem [#allocation10], %s9134_s18 }
  0x65   : > { %s271_s30 = sld [smem:[%s10471_s13]]   ;;  %s279_s8 = sshll.u32 %s259_s5, 4  ;;  %s280_s8 = int_to_ptr.vmem [resolvable:$true] %s279_s8 }
  0x66   : > { %s11747_s23 = smov 8192   ;;  %s11748_s27 = smov 4096  }
  0x67   : > { %10472 = sst [smem:[#allocation13]] (%p11896_p12), %s11747_s23  ;;  %s11749_s11 = smov 16  }
  0x68   : > { %10473 = sst [smem:[#allocation13 + $0x1]] (%p11896_p12), %s11748_s27  ;;  %s11750_s6 = smov 256  }
  0x69   : > { %10474 = sst [smem:[#allocation13 + $0x2]] (%p11896_p12), %s11749_s11  ;;  %s11751_s21 = smov [#allocation12]  }
  0x6a   : > { %10475 = sst [smem:[#allocation13 + $0x3]] (%p11896_p12), %s11750_s6 }
  0x6b   : > { %10476 = sst [smem:[#allocation13 + $0x4]] (%p11896_p12), %s11750_s6  ;;  %s9138_s14 = sshll.u32 %s271_s30, 26 }
  0x6c   : > { %10477 = sst [smem:[#allocation13 + $0x5]] (%p11896_p12), %s11749_s11  ;;  %s9139_s18 = sadd.s32 134217728, %s9138_s14 }
  0x6d   : > { %10478 = dma.general (%p11896_p12), %s266_s7, 16384, %s280_s8, %s11967_s9, %s11751_s21, [#allocation13], %s9139_s18, 0  }
  0x6e PF: > { %p9140_p7 = scmp.ge.s32.totalorder %s11738_s28, 1  ;;  %p300_p10 = scmp.lt.s32.totalorder %s11738_s28, 5 }
  0x70   : > { %p301_p9 = pnand %p9140_p7, %p300_p10 }
  0x72   : > { %304 = sbr.rel (%p301_p9) target bundleno = 1542 (0x606), region = 40 }
  0x79   : > { %s12017_s13 = sand.u32 1, %s11714_s22   ;;  %p16385_p5 = scmp.ne.s32.totalorder %s16375_s12, 0 }
  0x7a   : > { %s9141_s15 = sshll.u32 %s12017_s13, 9  ;;  %s307_s0 = scalar_lea.sflag [#allocation6], %s12017_s13 }
  0x7b   : > { %s12021_s30 = scalar_lea.vmem [#allocation5], %s9141_s15 }
  0x7c   : > { %11685 = dma.done.wait (%p16385_p5), %s307_s0, 8192  }
  0x7d   : > { %11687 = vsyncadd (%p16385_p5), %s307_s0, 4294959104  ;;  %s315_s16 = sand.u32 1, %s11844_s29   ;;  %s317_s9 = sand.u32 1, %s11702_s19  }
  0x7e   : > { %s9142_s7 = sshll.u32 %s317_s9, 8  ;;  %s316_s5 = scalar_lea.sflag [#allocation9], %s315_s16 }
  0x7f   : > { %s12029_s8 = scalar_lea.vmem [#allocation8], %s9142_s7  ;;  %p16386_p12 = scmp.ne.s32.totalorder %s16379_s17, 0 }
  0x81   : > { %11689 = dma.done.wait (%p16386_p12), %s316_s5, 20480  }
  0x82   : > { %11691 = vsyncadd (%p16386_p12), %s316_s5, 4294946816  ;;  %s9143_s23 = sshll.u32 %s317_s9, 10  ;;  %s9144_s12 = sshll.u32 %s12017_s13, 10 }
  0x83   : > { %p368_p8 = scmp.lt.s32.totalorder %s11722_s24, 1  ;;  %s12043_s14 = scalar_lea.vmem [#allocation10], %s9143_s23 }
  0x84   : > { %s12045_s18 = scalar_lea.vmem [#allocation11], %s9144_s12  ;;  %p9145_p2 = scmp.ne.s32.totalorder %s11722_s24, 0 }
  0x85   : > { %s369_s27 = scalar_select %p368_p8, %s11722_s24, 1 }
  0x86   : > { %376 = sbr.rel (%p9145_p2) target bundleno = 211 (0xd3), region = 56  ;;  %v11752_v0 = vmov (!%p9145_p2), 0.0   ;;  %v11753_v1 = vmov (!%p9145_p2), -3.4028235e+38  }
  0x87   : > { %s12041_s29 = scalar_lea.vmem %s16349_s2, %s369_s27  ;;  %377 = vst [vmem:[#allocation2] sm:$0xff] (!%p9145_p2), %v11752_v0  ;;  %378 = vst [vmem:[#allocation2 + $0x8] sm:$0xff] (!%p9145_p2), %v11752_v0 }
  0x88   : > { %379 = vst [vmem:[#allocation2 + $0x10] sm:$0xff] (!%p9145_p2), %v11752_v0  ;;  %380 = vst [vmem:[#allocation2 + $0x18] sm:$0xff] (!%p9145_p2), %v11752_v0 }
  0x89   : > { %381 = vst [vmem:[#allocation2 + $0x20] sm:$0xff] (!%p9145_p2), %v11752_v0  ;;  %382 = vst [vmem:[#allocation2 + $0x28] sm:$0xff] (!%p9145_p2), %v11752_v0 }
  0x8a   : > { %383 = vst [vmem:[#allocation2 + $0x30] sm:$0xff] (!%p9145_p2), %v11752_v0  ;;  %384 = vst [vmem:[#allocation2 + $0x38] sm:$0xff] (!%p9145_p2), %v11752_v0 }
  0x8b   : > { %385 = vst [vmem:[#allocation2 + $0x40] sm:$0xff] (!%p9145_p2), %v11752_v0  ;;  %386 = vst [vmem:[#allocation2 + $0x48] sm:$0xff] (!%p9145_p2), %v11752_v0 }
  0x8c   : > { %387 = vst [vmem:[#allocation2 + $0x50] sm:$0xff] (!%p9145_p2), %v11752_v0  ;;  %388 = vst [vmem:[#allocation2 + $0x58] sm:$0xff] (!%p9145_p2), %v11752_v0 }
  0x8d   : > { %389 = vst [vmem:[#allocation2 + $0x60] sm:$0xff] %v11752_v0  ;;  %390 = vst [vmem:[#allocation2 + $0x68] sm:$0xff] %v11752_v0 }
  0x8e   : > { %391 = vst [vmem:[#allocation2 + $0x70] sm:$0xff] %v11752_v0  ;;  %392 = vst [vmem:[#allocation2 + $0x78] sm:$0xff] %v11752_v0 }
  0x8f   : > { %393 = vst [vmem:[#allocation2 + $0x80] sm:$0xff] %v11752_v0  ;;  %394 = vst [vmem:[#allocation2 + $0x88] sm:$0xff] %v11752_v0 }
  0x90   : > { %395 = vst [vmem:[#allocation2 + $0x90] sm:$0xff] %v11752_v0  ;;  %396 = vst [vmem:[#allocation2 + $0x98] sm:$0xff] %v11752_v0 }
  0x91   : > { %397 = vst [vmem:[#allocation2 + $0xa0] sm:$0xff] %v11752_v0  ;;  %398 = vst [vmem:[#allocation2 + $0xa8] sm:$0xff] %v11752_v0 }
  0x92   : > { %399 = vst [vmem:[#allocation2 + $0xb0] sm:$0xff] %v11752_v0  ;;  %400 = vst [vmem:[#allocation2 + $0xb8] sm:$0xff] %v11752_v0 }
  0x93   : > { %401 = vst [vmem:[#allocation2 + $0xc0] sm:$0xff] %v11752_v0  ;;  %402 = vst [vmem:[#allocation2 + $0xc8] sm:$0xff] %v11752_v0 }
  0x94   : > { %403 = vst [vmem:[#allocation2 + $0xd0] sm:$0xff] %v11752_v0  ;;  %404 = vst [vmem:[#allocation2 + $0xd8] sm:$0xff] %v11752_v0 }
  0x95   : > { %405 = vst [vmem:[#allocation2 + $0xe0] sm:$0xff] %v11752_v0  ;;  %406 = vst [vmem:[#allocation2 + $0xe8] sm:$0xff] %v11752_v0 }
  0x96   : > { %407 = vst [vmem:[#allocation2 + $0xf0] sm:$0xff] %v11752_v0  ;;  %408 = vst [vmem:[#allocation2 + $0xf8] sm:$0xff] %v11752_v0 }
  0x97   : > { %409 = vst [vmem:[#allocation2 + $0x100] sm:$0xff] %v11752_v0  ;;  %410 = vst [vmem:[#allocation2 + $0x108] sm:$0xff] %v11752_v0 }
  0x98   : > { %411 = vst [vmem:[#allocation2 + $0x110] sm:$0xff] %v11752_v0  ;;  %412 = vst [vmem:[#allocation2 + $0x118] sm:$0xff] %v11752_v0 }
  0x99   : > { %413 = vst [vmem:[#allocation2 + $0x120] sm:$0xff] %v11752_v0  ;;  %414 = vst [vmem:[#allocation2 + $0x128] sm:$0xff] %v11752_v0 }
  0x9a   : > { %415 = vst [vmem:[#allocation2 + $0x130] sm:$0xff] %v11752_v0  ;;  %416 = vst [vmem:[#allocation2 + $0x138] sm:$0xff] %v11752_v0 }
  0x9b   : > { %417 = vst [vmem:[#allocation2 + $0x140] sm:$0xff] %v11752_v0  ;;  %418 = vst [vmem:[#allocation2 + $0x148] sm:$0xff] %v11752_v0 }
  0x9c   : > { %419 = vst [vmem:[#allocation2 + $0x150] sm:$0xff] %v11752_v0  ;;  %420 = vst [vmem:[#allocation2 + $0x158] sm:$0xff] %v11752_v0 }
  0x9d   : > { %421 = vst [vmem:[#allocation2 + $0x160] sm:$0xff] %v11752_v0  ;;  %422 = vst [vmem:[#allocation2 + $0x168] sm:$0xff] %v11752_v0 }
  0x9e   : > { %423 = vst [vmem:[#allocation2 + $0x170] sm:$0xff] %v11752_v0  ;;  %424 = vst [vmem:[#allocation2 + $0x178] sm:$0xff] %v11752_v0 }
  0x9f   : > { %425 = vst [vmem:[#allocation2 + $0x180] sm:$0xff] %v11752_v0  ;;  %426 = vst [vmem:[#allocation2 + $0x188] sm:$0xff] %v11752_v0 }
  0xa0   : > { %427 = vst [vmem:[#allocation2 + $0x190] sm:$0xff] %v11752_v0  ;;  %428 = vst [vmem:[#allocation2 + $0x198] sm:$0xff] %v11752_v0 }
  0xa1   : > { %429 = vst [vmem:[#allocation2 + $0x1a0] sm:$0xff] %v11752_v0  ;;  %430 = vst [vmem:[#allocation2 + $0x1a8] sm:$0xff] %v11752_v0 }
  0xa2   : > { %431 = vst [vmem:[#allocation2 + $0x1b0] sm:$0xff] %v11752_v0  ;;  %432 = vst [vmem:[#allocation2 + $0x1b8] sm:$0xff] %v11752_v0 }
  0xa3   : > { %433 = vst [vmem:[#allocation2 + $0x1c0] sm:$0xff] %v11752_v0  ;;  %434 = vst [vmem:[#allocation2 + $0x1c8] sm:$0xff] %v11752_v0 }
  0xa4   : > { %435 = vst [vmem:[#allocation2 + $0x1d0] sm:$0xff] %v11752_v0  ;;  %436 = vst [vmem:[#allocation2 + $0x1d8] sm:$0xff] %v11752_v0 }
  0xa5   : > { %437 = vst [vmem:[#allocation2 + $0x1e0] sm:$0xff] %v11752_v0  ;;  %438 = vst [vmem:[#allocation2 + $0x1e8] sm:$0xff] %v11752_v0 }
  0xa6   : > { %439 = vst [vmem:[#allocation2 + $0x1f0] sm:$0xff] %v11752_v0  ;;  %440 = vst [vmem:[#allocation2 + $0x1f8] sm:$0xff] %v11752_v0 }
  0xa7   : > { %441 = vst [vmem:[#allocation2 + $0x200] sm:$0xff] %v11752_v0  ;;  %442 = vst [vmem:[#allocation2 + $0x208] sm:$0xff] %v11752_v0 }
  0xa8   : > { %443 = vst [vmem:[#allocation2 + $0x210] sm:$0xff] %v11752_v0  ;;  %444 = vst [vmem:[#allocation2 + $0x218] sm:$0xff] %v11752_v0 }
  0xa9   : > { %445 = vst [vmem:[#allocation2 + $0x220] sm:$0xff] %v11752_v0  ;;  %446 = vst [vmem:[#allocation2 + $0x228] sm:$0xff] %v11752_v0 }
  0xaa   : > { %447 = vst [vmem:[#allocation2 + $0x230] sm:$0xff] %v11752_v0  ;;  %448 = vst [vmem:[#allocation2 + $0x238] sm:$0xff] %v11752_v0 }
  0xab   : > { %449 = vst [vmem:[#allocation2 + $0x240] sm:$0xff] %v11752_v0  ;;  %450 = vst [vmem:[#allocation2 + $0x248] sm:$0xff] %v11752_v0 }
  0xac   : > { %451 = vst [vmem:[#allocation2 + $0x250] sm:$0xff] %v11752_v0  ;;  %452 = vst [vmem:[#allocation2 + $0x258] sm:$0xff] %v11752_v0 }
  0xad   : > { %453 = vst [vmem:[#allocation2 + $0x260] sm:$0xff] %v11752_v0  ;;  %454 = vst [vmem:[#allocation2 + $0x268] sm:$0xff] %v11752_v0 }
  0xae   : > { %455 = vst [vmem:[#allocation2 + $0x270] sm:$0xff] %v11752_v0  ;;  %456 = vst [vmem:[#allocation2 + $0x278] sm:$0xff] %v11752_v0 }
  0xaf   : > { %457 = vst [vmem:[#allocation2 + $0x280] sm:$0xff] %v11752_v0  ;;  %458 = vst [vmem:[#allocation2 + $0x288] sm:$0xff] %v11752_v0 }
  0xb0   : > { %459 = vst [vmem:[#allocation2 + $0x290] sm:$0xff] %v11752_v0  ;;  %460 = vst [vmem:[#allocation2 + $0x298] sm:$0xff] %v11752_v0 }
  0xb1   : > { %461 = vst [vmem:[#allocation2 + $0x2a0] sm:$0xff] %v11752_v0  ;;  %462 = vst [vmem:[#allocation2 + $0x2a8] sm:$0xff] %v11752_v0 }
  0xb2   : > { %463 = vst [vmem:[#allocation2 + $0x2b0] sm:$0xff] %v11752_v0  ;;  %464 = vst [vmem:[#allocation2 + $0x2b8] sm:$0xff] %v11752_v0 }
  0xb3   : > { %465 = vst [vmem:[#allocation2 + $0x2c0] sm:$0xff] %v11752_v0  ;;  %466 = vst [vmem:[#allocation2 + $0x2c8] sm:$0xff] %v11752_v0 }
  0xb4   : > { %467 = vst [vmem:[#allocation2 + $0x2d0] sm:$0xff] %v11752_v0  ;;  %468 = vst [vmem:[#allocation2 + $0x2d8] sm:$0xff] %v11752_v0 }
  0xb5   : > { %469 = vst [vmem:[#allocation2 + $0x2e0] sm:$0xff] %v11752_v0  ;;  %470 = vst [vmem:[#allocation2 + $0x2e8] sm:$0xff] %v11752_v0 }
  0xb6   : > { %471 = vst [vmem:[#allocation2 + $0x2f0] sm:$0xff] %v11752_v0  ;;  %472 = vst [vmem:[#allocation2 + $0x2f8] sm:$0xff] %v11752_v0 }
  0xb7   : > { %473 = vst [vmem:[#allocation2 + $0x300] sm:$0xff] %v11752_v0  ;;  %474 = vst [vmem:[#allocation2 + $0x308] sm:$0xff] %v11752_v0 }
  0xb8   : > { %475 = vst [vmem:[#allocation2 + $0x310] sm:$0xff] %v11752_v0  ;;  %476 = vst [vmem:[#allocation2 + $0x318] sm:$0xff] %v11752_v0 }
  0xb9   : > { %477 = vst [vmem:[#allocation2 + $0x320] sm:$0xff] %v11752_v0  ;;  %478 = vst [vmem:[#allocation2 + $0x328] sm:$0xff] %v11752_v0 }
  0xba   : > { %479 = vst [vmem:[#allocation2 + $0x330] sm:$0xff] %v11752_v0  ;;  %480 = vst [vmem:[#allocation2 + $0x338] sm:$0xff] %v11752_v0 }
  0xbb   : > { %481 = vst [vmem:[#allocation2 + $0x340] sm:$0xff] %v11752_v0  ;;  %482 = vst [vmem:[#allocation2 + $0x348] sm:$0xff] %v11752_v0 }
  0xbc   : > { %483 = vst [vmem:[#allocation2 + $0x350] sm:$0xff] %v11752_v0  ;;  %484 = vst [vmem:[#allocation2 + $0x358] sm:$0xff] %v11752_v0 }
  0xbd   : > { %485 = vst [vmem:[#allocation2 + $0x360] sm:$0xff] %v11752_v0  ;;  %486 = vst [vmem:[#allocation2 + $0x368] sm:$0xff] %v11752_v0 }
  0xbe   : > { %487 = vst [vmem:[#allocation2 + $0x370] sm:$0xff] %v11752_v0  ;;  %488 = vst [vmem:[#allocation2 + $0x378] sm:$0xff] %v11752_v0 }
  0xbf   : > { %489 = vst [vmem:[#allocation2 + $0x380] sm:$0xff] %v11752_v0  ;;  %490 = vst [vmem:[#allocation2 + $0x388] sm:$0xff] %v11752_v0 }
  0xc0   : > { %491 = vst [vmem:[#allocation2 + $0x390] sm:$0xff] %v11752_v0  ;;  %492 = vst [vmem:[#allocation2 + $0x398] sm:$0xff] %v11752_v0 }
  0xc1   : > { %493 = vst [vmem:[#allocation2 + $0x3a0] sm:$0xff] %v11752_v0  ;;  %494 = vst [vmem:[#allocation2 + $0x3a8] sm:$0xff] %v11752_v0 }
  0xc2   : > { %495 = vst [vmem:[#allocation2 + $0x3b0] sm:$0xff] %v11752_v0  ;;  %496 = vst [vmem:[#allocation2 + $0x3b8] sm:$0xff] %v11752_v0 }
  0xc3   : > { %497 = vst [vmem:[#allocation2 + $0x3c0] sm:$0xff] %v11752_v0  ;;  %498 = vst [vmem:[#allocation2 + $0x3c8] sm:$0xff] %v11752_v0 }
  0xc4   : > { %499 = vst [vmem:[#allocation2 + $0x3d0] sm:$0xff] %v11752_v0  ;;  %500 = vst [vmem:[#allocation2 + $0x3d8] sm:$0xff] %v11752_v0 }
  0xc5   : > { %501 = vst [vmem:[#allocation2 + $0x3e0] sm:$0xff] %v11752_v0  ;;  %502 = vst [vmem:[#allocation2 + $0x3e8] sm:$0xff] %v11752_v0 }
  0xc6   : > { %503 = vst [vmem:[#allocation2 + $0x3f0] sm:$0xff] %v11752_v0  ;;  %504 = vst [vmem:[#allocation2 + $0x3f8] sm:$0xff] %v11752_v0 }
  0xc7   : > { %505 = vst [vmem:[#allocation3] sm:$0xff] %v11753_v1  ;;  %506 = vst [vmem:[#allocation3 + $0x8] sm:$0xff] %v11753_v1 }
  0xc8   : > { %507 = vst [vmem:[#allocation3 + $0x10] sm:$0xff] %v11753_v1  ;;  %508 = vst [vmem:[#allocation3 + $0x18] sm:$0xff] %v11753_v1 }
  0xc9   : > { %510 = vst [vmem:[#allocation3 + $0x120] sm:$0xff] %v11753_v1  ;;  %511 = vst [vmem:[#allocation3 + $0x128] sm:$0xff] %v11753_v1 }
  0xca   : > { %512 = vst [vmem:[#allocation3 + $0x130] sm:$0xff] %v11753_v1  ;;  %513 = vst [vmem:[#allocation3 + $0x138] sm:$0xff] %v11753_v1 }
  0xcb   : > { %514 = vst [vmem:[#allocation4 + $0x10] sm:$0xff] %v11753_v1  ;;  %515 = vst [vmem:[#allocation4 + $0x28] sm:$0xff] %v11753_v1 }
  0xcc   : > { %516 = vst [vmem:[#allocation4 + $0x40] sm:$0xff] %v11753_v1  ;;  %517 = vst [vmem:[#allocation4 + $0x58] sm:$0xff] %v11753_v1 }
  0xcd   : > { %518 = vst [vmem:[#allocation4 + $0x70] sm:$0xff] %v11753_v1  ;;  %519 = vst [vmem:[#allocation4 + $0x88] sm:$0xff] %v11753_v1 }
  0xce   : > { %520 = vst [vmem:[#allocation4 + $0xa0] sm:$0xff] %v11753_v1  ;;  %521 = vst [vmem:[#allocation4 + $0xb8] sm:$0xff] %v11753_v1 }
  0xcf   : > { %522 = vst [vmem:[#allocation4 + $0xd0] sm:$0xff] %v11753_v1  ;;  %523 = vst [vmem:[#allocation4 + $0xe8] sm:$0xff] %v11753_v1 }
  0xd0   : > { %524 = vst [vmem:[#allocation4 + $0x100] sm:$0xff] %v11753_v1  ;;  %525 = vst [vmem:[#allocation4 + $0x118] sm:$0xff] %v11753_v1 }
  0xd1   : > { %526 = vst [vmem:[#allocation4 + $0x130] sm:$0xff] %v11753_v1  ;;  %527 = vst [vmem:[#allocation4 + $0x148] sm:$0xff] %v11753_v1 }
  0xd2   : > { %528 = vst [vmem:[#allocation4 + $0x160] sm:$0xff] %v11753_v1  ;;  %529 = vst [vmem:[#allocation4 + $0x178] sm:$0xff] %v11753_v1 }
  0xd3 PF: > { %v10592_v2 = vld [vmem:[%s12029_s8 + $0x40] sm:$0xff]   ;;  %v10596_v6 = vld [vmem:[%s12029_s8 + $0x48] sm:$0xff]   ;;  %v10600_v10 = vld [vmem:[%s12029_s8 + $0x50] sm:$0xff]   ;;  %p9467_p1 = scmp.ne.s32.totalorder %s11722_s24, 1 }
  0xd4   : > { %v10593_v3 = vld [vmem:[%s12029_s8 + $0xc0] sm:$0xff]   ;;  %9477 = vmatprep.subr.bf16.mxu0 %v10592_v2  ;;  %v10597_v7 = vld [vmem:[%s12029_s8 + $0xc8] sm:$0xff]   ;;  %v10601_v11 = vld [vmem:[%s12029_s8 + $0xd0] sm:$0xff]  }
  0xd5   : > { %v10594_v4 = vld [vmem:[%s12029_s8] sm:$0xff]   ;;  %9589 = vmatprep.subr.bf16.mxu1 %v10593_v3  ;;  %v10598_v8 = vld [vmem:[%s12029_s8 + $0x8] sm:$0xff]   ;;  %v10602_v12 = vld [vmem:[%s12029_s8 + $0x10] sm:$0xff]  }
  0xd6   : > { %v10595_v5 = vld [vmem:[%s12029_s8 + $0x80] sm:$0xff]   ;;  %9478 = vmatpush3.bf16.msra.mxu0 %v10594_v4  ;;  %v10599_v9 = vld [vmem:[%s12029_s8 + $0x88] sm:$0xff]   ;;  %v10603_v13 = vld [vmem:[%s12029_s8 + $0x90] sm:$0xff]  }
  0xd7   : > { %9590 = vmatpush3.bf16.msra.mxu1 %v10595_v5  ;;  %9479 = vmatprep.subr.bf16.mxu0 %v10596_v6  ;;  %v10604_v14 = vld [vmem:[%s12029_s8 + $0x58] sm:$0xff]   ;;  %v10608_v18 = vld [vmem:[%s12029_s8 + $0x60] sm:$0xff]   ;;  %v10612_v22 = vld [vmem:[%s12029_s8 + $0x68] sm:$0xff]  }
  0xd8   : > { %9591 = vmatprep.subr.bf16.mxu1 %v10597_v7  ;;  %v10605_v15 = vld [vmem:[%s12029_s8 + $0xd8] sm:$0xff]   ;;  %v10609_v19 = vld [vmem:[%s12029_s8 + $0xe0] sm:$0xff]   ;;  %v10613_v23 = vld [vmem:[%s12029_s8 + $0xe8] sm:$0xff]  }
  0xd9   : > { %v10606_v16 = vld [vmem:[%s12029_s8 + $0x18] sm:$0xff]   ;;  %v10610_v20 = vld [vmem:[%s12029_s8 + $0x20] sm:$0xff]   ;;  %v10614_v24 = vld [vmem:[%s12029_s8 + $0x28] sm:$0xff]  }
  0xda   : > { %9480 = vmatpush3.bf16.msra.mxu0 %v10598_v8  ;;  %v10607_v17 = vld [vmem:[%s12029_s8 + $0x98] sm:$0xff]   ;;  %v10611_v21 = vld [vmem:[%s12029_s8 + $0xa0] sm:$0xff]   ;;  %v10615_v25 = vld [vmem:[%s12029_s8 + $0xa8] sm:$0xff]  }
  0xdb   : > { %9592 = vmatpush3.bf16.msra.mxu1 %v10599_v9  ;;  %9481 = vmatprep.subr.bf16.mxu0 %v10600_v10  ;;  %v10616_v26 = vld [vmem:[%s12029_s8 + $0x70] sm:$0xff]   ;;  %v10620_v30 = vld [vmem:[%s12029_s8 + $0x78] sm:$0xff]  }
  0xdc   : > { %9593 = vmatprep.subr.bf16.mxu1 %v10601_v11  ;;  %v10617_v27 = vld [vmem:[%s12029_s8 + $0xf0] sm:$0xff]   ;;  %v10621_v31 = vld [vmem:[%s12029_s8 + $0xf8] sm:$0xff]  }
  0xdd   : > { %v10618_v28 = vld [vmem:[%s12029_s8 + $0x30] sm:$0xff]   ;;  %v10622_v32 = vld [vmem:[%s12029_s8 + $0x38] sm:$0xff]  }
  0xde   : > { %9482 = vmatpush3.bf16.msra.mxu0 %v10602_v12  ;;  %v10619_v29 = vld [vmem:[%s12029_s8 + $0xb0] sm:$0xff]   ;;  %v10623_v33 = vld [vmem:[%s12029_s8 + $0xb8] sm:$0xff]  }
  0xdf   : > { %9594 = vmatpush3.bf16.msra.mxu1 %v10603_v13  ;;  %9483 = vmatprep.subr.bf16.mxu0 %v10604_v14  ;;  %v10624_v34 = vld [vmem:[%s12021_s30] ss:$16 sps:$4 sm:$0xff]   ;;  %v10626_v35 = vld [vmem:[%s12021_s30 + $0x4] ss:$16 sps:$4 sm:$0xff]   ;;  %v10627_v36 = vld [vmem:[%s12021_s30 + $0x8] ss:$16 sps:$4 sm:$0xff]  }
  0xe0   : > { %9595 = vmatprep.subr.bf16.mxu1 %v10605_v15  ;;  %v10629_v37 = vld [vmem:[%s12021_s30 + $0xc] ss:$16 sps:$4 sm:$0xff]   ;;  %1209 = vmatprep.mubr.bf16.mxu0 %v10626_v35  ;;  %v10630_v38 = vld [vmem:[%s12021_s30 + $0x24] ss:$16 sps:$4 sm:$0xff]   ;;  %v10634_v40 = vld [vmem:[%s12021_s30 + $0x20] ss:$16 sps:$4 sm:$0xff]  }
  0xe1   : > { %1370 = vmatprep.mubr.bf16.mxu1 %v10629_v37  ;;  %v10632_v39 = vld [vmem:[%s12021_s30 + $0x2c] ss:$16 sps:$4 sm:$0xff]   ;;  %v10635_v41 = vld [vmem:[%s12021_s30 + $0x28] ss:$16 sps:$4 sm:$0xff]   ;;  %v10636_v42 = vld [vmem:[%s12021_s30 + $0x44] ss:$16 sps:$4 sm:$0xff]  }
  0xe2   : > { %9484 = vmatpush3.bf16.msra.mxu0 %v10606_v16  ;;  %v10638_v43 = vld [vmem:[%s12021_s30 + $0x4c] ss:$16 sps:$4 sm:$0xff]   ;;  %v10640_v44 = vld [vmem:[%s12021_s30 + $0x40] ss:$16 sps:$4 sm:$0xff]   ;;  %v10641_v45 = vld [vmem:[%s12021_s30 + $0x48] ss:$16 sps:$4 sm:$0xff]  }
  0xe3   : > { %9596 = vmatpush3.bf16.msra.mxu1 %v10607_v17  ;;  %9485 = vmatprep.subr.bf16.mxu0 %v10608_v18  ;;  %v10642_v46 = vld [vmem:[%s12021_s30 + $0x64] ss:$16 sps:$4 sm:$0xff]   ;;  %v10644_v47 = vld [vmem:[%s12021_s30 + $0x6c] ss:$16 sps:$4 sm:$0xff]   ;;  %v10646_v48 = vld [vmem:[%s12021_s30 + $0x60] ss:$16 sps:$4 sm:$0xff]  }
  0xe4   : > { %9597 = vmatprep.subr.bf16.mxu1 %v10609_v19  ;;  %v10647_v49 = vld [vmem:[%s12021_s30 + $0x68] ss:$16 sps:$4 sm:$0xff]   ;;  %v10648_v50 = vld [vmem:[%s12021_s30 + $0x84] ss:$16 sps:$4 sm:$0xff]   ;;  %v10650_v51 = vld [vmem:[%s12021_s30 + $0x8c] ss:$16 sps:$4 sm:$0xff]  }
  0xe5   : > { %v10652_v52 = vld [vmem:[%s12021_s30 + $0x80] ss:$16 sps:$4 sm:$0xff]   ;;  %v10653_v53 = vld [vmem:[%s12021_s30 + $0x88] ss:$16 sps:$4 sm:$0xff]   ;;  %v10654_v54 = vld [vmem:[%s12021_s30 + $0xa4] ss:$16 sps:$4 sm:$0xff]  }
  0xe6   : > { %9486 = vmatpush3.bf16.msra.mxu0 %v10610_v20  ;;  %v10656_v55 = vld [vmem:[%s12021_s30 + $0xac] ss:$16 sps:$4 sm:$0xff]   ;;  %v10658_v56 = vld [vmem:[%s12021_s30 + $0xa0] ss:$16 sps:$4 sm:$0xff]   ;;  %v10659_v57 = vld [vmem:[%s12021_s30 + $0xa8] ss:$16 sps:$4 sm:$0xff]  }
  0xe7   : > { %9598 = vmatpush3.bf16.msra.mxu1 %v10611_v21  ;;  %9487 = vmatprep.subr.bf16.mxu0 %v10612_v22  ;;  %v10660_v58 = vld [vmem:[%s12021_s30 + $0xc4] ss:$16 sps:$4 sm:$0xff]   ;;  %v10662_v59 = vld [vmem:[%s12021_s30 + $0xcc] ss:$16 sps:$4 sm:$0xff]   ;;  %v10720_v60 = vld [vmem:[%s12043_s14] ss:$16 sps:$4 sm:$0xff]  }
  0xe8   : > { %9599 = vmatprep.subr.bf16.mxu1 %v10613_v23  ;;  %v10722_v61 = vld [vmem:[%s12043_s14 + $0x4] ss:$16 sps:$4 sm:$0xff]   ;;  %v10723_v62 = vld [vmem:[%s12043_s14 + $0x8] ss:$16 sps:$4 sm:$0xff]   ;;  %v10725_v63 = vld [vmem:[%s12043_s14 + $0xc] ss:$16 sps:$4 sm:$0xff]  }
  0xe9   : > { %v10664_v0 = vld [vmem:[%s12021_s30 + $0xc0] ss:$16 sps:$4 sm:$0xff]   ;;  %v10728_v1 = vld [vmem:[%s12043_s14 + $0x24] ss:$16 sps:$4 sm:$0xff]   ;;  %v10665_v2 = vld [vmem:[%s12021_s30 + $0xc8] ss:$16 sps:$4 sm:$0xff]  }
  0xea   : > { %9488 = vmatpush3.bf16.msra.mxu0 %v10614_v24  ;;  %v10666_v3 = vld [vmem:[%s12021_s30 + $0xe4] ss:$16 sps:$4 sm:$0xff]   ;;  %v10726_v4 = vld [vmem:[%s12043_s14 + $0x20] ss:$16 sps:$4 sm:$0xff]   ;;  %v10731_v5 = vld [vmem:[%s12043_s14 + $0x2c] ss:$16 sps:$4 sm:$0xff]  }
  0xeb   : > { %9600 = vmatpush3.bf16.msra.mxu1 %v10615_v25  ;;  %9489 = vmatprep.subr.bf16.mxu0 %v10616_v26  ;;  %v10729_v6 = vld [vmem:[%s12043_s14 + $0x28] ss:$16 sps:$4 sm:$0xff]   ;;  %v10668_v7 = vld [vmem:[%s12021_s30 + $0xec] ss:$16 sps:$4 sm:$0xff]   ;;  %v10732_v8 = vld [vmem:[%s12043_s14 + $0x40] ss:$16 sps:$4 sm:$0xff]  }
  0xec   : > { %9601 = vmatprep.subr.bf16.mxu1 %v10617_v27  ;;  %v10734_v9 = vld [vmem:[%s12043_s14 + $0x44] ss:$16 sps:$4 sm:$0xff]   ;;  %v10735_v10 = vld [vmem:[%s12043_s14 + $0x48] ss:$16 sps:$4 sm:$0xff]   ;;  %v10737_v11 = vld [vmem:[%s12043_s14 + $0x4c] ss:$16 sps:$4 sm:$0xff]  }
  0xed   : > { %v10740_v12 = vld [vmem:[%s12043_s14 + $0x64] ss:$16 sps:$4 sm:$0xff]   ;;  %v10743_v13 = vld [vmem:[%s12043_s14 + $0x6c] ss:$16 sps:$4 sm:$0xff]   ;;  %v10670_v14 = vld [vmem:[%s12021_s30 + $0xe0] ss:$16 sps:$4 sm:$0xff]  }
  0xee   : > { %9490 = vmatpush3.bf16.msra.mxu0 %v10618_v28  ;;  %v10671_v15 = vld [vmem:[%s12021_s30 + $0xe8] ss:$16 sps:$4 sm:$0xff]   ;;  %v10672_v16 = vld [vmem:[%s12021_s30 + $0x104] ss:$16 sps:$4 sm:$0xff]   ;;  %v10738_v17 = vld [vmem:[%s12043_s14 + $0x60] ss:$16 sps:$4 sm:$0xff]  }
  0xef   : > { %9602 = vmatpush3.bf16.msra.mxu1 %v10619_v29  ;;  %9491 = vmatprep.subr.bf16.mxu0 %v10620_v30  ;;  %v10674_v18 = vld [vmem:[%s12021_s30 + $0x10c] ss:$16 sps:$4 sm:$0xff]   ;;  %v10741_v19 = vld [vmem:[%s12043_s14 + $0x68] ss:$16 sps:$4 sm:$0xff]   ;;  %v10744_v20 = vld [vmem:[%s12043_s14 + $0x80] ss:$16 sps:$4 sm:$0xff]  }
  0xf0   : > { %9603 = vmatprep.subr.bf16.mxu1 %v10621_v31  ;;  %v10746_v21 = vld [vmem:[%s12043_s14 + $0x84] ss:$16 sps:$4 sm:$0xff]   ;;  %v10747_v22 = vld [vmem:[%s12043_s14 + $0x88] ss:$16 sps:$4 sm:$0xff]   ;;  %v10749_v23 = vld [vmem:[%s12043_s14 + $0x8c] ss:$16 sps:$4 sm:$0xff]  }
  0xf1   : > { %v10752_v24 = vld [vmem:[%s12043_s14 + $0xa4] ss:$16 sps:$4 sm:$0xff]   ;;  %v10755_v25 = vld [vmem:[%s12043_s14 + $0xac] ss:$16 sps:$4 sm:$0xff]   ;;  %v10750_v26 = vld [vmem:[%s12043_s14 + $0xa0] ss:$16 sps:$4 sm:$0xff]  }
  0xf2   : > { %9492 = vmatpush3.bf16.msra.mxu0 %v10622_v32  ;;  %v10676_v27 = vld [vmem:[%s12021_s30 + $0x100] ss:$16 sps:$4 sm:$0xff]   ;;  %v10753_v28 = vld [vmem:[%s12043_s14 + $0xa8] ss:$16 sps:$4 sm:$0xff]   ;;  %v10678_v30 = vld [vmem:[%s12021_s30 + $0x124] ss:$16 sps:$4 sm:$0xff]  }
  0xf3   : > { %9604 = vmatpush3.bf16.msra.mxu1 %v10623_v33  ;;  %4218 = vmatprep.subr.bf16.mxu0 %v10722_v61  ;;  %v10677_v29 = vld [vmem:[%s12021_s30 + $0x108] ss:$16 sps:$4 sm:$0xff]   ;;  %v10680_v31 = vld [vmem:[%s12021_s30 + $0x12c] ss:$16 sps:$4 sm:$0xff]   ;;  %v10682_v32 = vld [vmem:[%s12021_s30 + $0x120] ss:$16 sps:$4 sm:$0xff]  }
  0xf4   : > { %4411 = vmatprep.subr.bf16.mxu1 %v10725_v63  ;;  %v10683_v33 = vld [vmem:[%s12021_s30 + $0x128] ss:$16 sps:$4 sm:$0xff]   ;;  %v10686_v35 = vld [vmem:[%s12021_s30 + $0x14c] ss:$16 sps:$4 sm:$0xff]  }
  0xf5   : > { %1210 = vmatmul.mubr.bf16.vlgmr.msra.gmra.mrb[0].mxu0 %v10624_v34  ;;  %v10684_v34 = vld [vmem:[%s12021_s30 + $0x144] ss:$16 sps:$4 sm:$0xff]   ;;  %v10689_v37 = vld [vmem:[%s12021_s30 + $0x148] ss:$16 sps:$4 sm:$0xff]   ;;  %v10767_v63 = vld [vmem:[%s12043_s14 + $0xec] ss:$16 sps:$4 sm:$0xff]  }
  0xf6   : > { %1371 = vmatmul.mubr.bf16.vlgmr.msra.gmra.mrb[0].mxu1 %v10627_v36  ;;  %1217 = vmatprep.mubr.bf16.mxu0 %v10630_v38  ;;  %v10688_v36 = vld [vmem:[%s12021_s30 + $0x140] ss:$16 sps:$4 sm:$0xff]   ;;  %v10690_v38 = vld [vmem:[%s12021_s30 + $0x164] ss:$16 sps:$4 sm:$0xff]   ;;  %v10759_v61 = vld [vmem:[%s12043_s14 + $0xc8] ss:$16 sps:$4 sm:$0xff]  }
  0xf7   : > { %1378 = vmatprep.mubr.bf16.mxu1 %v10632_v39  ;;  %4219 = vmatpush1.bf16.msra.mxu0 %v10720_v60  ;;  %v10692_v39 = vld [vmem:[%s12021_s30 + $0x16c] ss:$16 sps:$4 sm:$0xff]   ;;  %v10756_v60 = vld [vmem:[%s12043_s14 + $0xc0] ss:$16 sps:$4 sm:$0xff]  }
  0xf8   : > { %4412 = vmatpush1.bf16.msra.mxu1 %v10723_v62  ;;  %4220 = vmatprep.subr.bf16.mxu0 %v10728_v1  ;;  %v10764_v62 = vld [vmem:[%s12043_s14 + $0xe4] ss:$16 sps:$4 sm:$0xff]   ;;  %v10765_v1 = vld [vmem:[%s12043_s14 + $0xe8] ss:$16 sps:$4 sm:$0xff]  }
  0xf9   : > { %4413 = vmatprep.subr.bf16.mxu1 %v10731_v5 }
  0xfb   : > { %4221 = vmatpush1.bf16.msra.mxu0 %v10726_v4  ;;  %v10773_v4 = vld [vmem:[%s12043_s14 + $0x10c] ss:$16 sps:$4 sm:$0xff]  }
  0xfc   : > { %4414 = vmatpush1.bf16.msra.mxu1 %v10729_v6  ;;  %4222 = vmatprep.subr.bf16.mxu0 %v10734_v9 }
  0xfd   : > { %1218 = vmatmul.mubr.bf16.gmra.mrb[4].mxu0 %v10634_v40  ;;  %4415 = vmatprep.subr.bf16.mxu1 %v10737_v11  ;;  %v10694_v40 = vld [vmem:[%s12021_s30 + $0x160] ss:$16 sps:$4 sm:$0xff]  }
  0xfe   : > { %1379 = vmatmul.mubr.bf16.gmra.mrb[4].mxu1 %v10635_v41  ;;  %1225 = vmatprep.mubr.bf16.mxu0 %v10636_v42  ;;  %v10695_v41 = vld [vmem:[%s12021_s30 + $0x168] ss:$16 sps:$4 sm:$0xff]   ;;  %v10696_v42 = vld [vmem:[%s12021_s30 + $0x184] ss:$16 sps:$4 sm:$0xff]  }
  0xff   : > { %1386 = vmatprep.mubr.bf16.mxu1 %v10638_v43  ;;  %4223 = vmatpush1.bf16.msra.mxu0 %v10732_v8  ;;  %v10698_v43 = vld [vmem:[%s12021_s30 + $0x18c] ss:$16 sps:$4 sm:$0xff]  }
 0x100   : > { %4416 = vmatpush1.bf16.msra.mxu1 %v10735_v10  ;;  %4224 = vmatprep.subr.bf16.mxu0 %v10740_v12 }
 0x101   : > { %4417 = vmatprep.subr.bf16.mxu1 %v10743_v13 }
 0x103   : > { %4225 = vmatpush1.bf16.msra.mxu0 %v10738_v17 }
 0x104   : > { %4418 = vmatpush1.bf16.msra.mxu1 %v10741_v19  ;;  %4226 = vmatprep.subr.bf16.mxu0 %v10746_v21 }
 0x105   : > { %1226 = vmatmul.mubr.bf16.gmra.mrb[8].mxu0 %v10640_v44  ;;  %4419 = vmatprep.subr.bf16.mxu1 %v10749_v23  ;;  %v10700_v44 = vld [vmem:[%s12021_s30 + $0x180] ss:$16 sps:$4 sm:$0xff]  }
 0x106   : > { %1387 = vmatmul.mubr.bf16.gmra.mrb[8].mxu1 %v10641_v45  ;;  %1233 = vmatprep.mubr.bf16.mxu0 %v10642_v46  ;;  %v10701_v45 = vld [vmem:[%s12021_s30 + $0x188] ss:$16 sps:$4 sm:$0xff]   ;;  %v10702_v46 = vld [vmem:[%s12021_s30 + $0x1a4] ss:$16 sps:$4 sm:$0xff]  }
 0x107   : > { %1394 = vmatprep.mubr.bf16.mxu1 %v10644_v47  ;;  %4227 = vmatpush1.bf16.msra.mxu0 %v10744_v20  ;;  %v10704_v47 = vld [vmem:[%s12021_s30 + $0x1ac] ss:$16 sps:$4 sm:$0xff]  }
 0x108   : > { %4420 = vmatpush1.bf16.msra.mxu1 %v10747_v22  ;;  %4228 = vmatprep.subr.bf16.mxu0 %v10752_v24 }
 0x109   : > { %4421 = vmatprep.subr.bf16.mxu1 %v10755_v25 }
 0x10b   : > { %4229 = vmatpush1.bf16.msra.mxu0 %v10750_v26 }
 0x10c   : > { %4422 = vmatpush1.bf16.msra.mxu1 %v10753_v28 }
 0x10d   : > { %1234 = vmatmul.mubr.bf16.gmra.mrb[12].mxu0 %v10646_v48  ;;  %v10706_v48 = vld [vmem:[%s12021_s30 + $0x1a0] ss:$16 sps:$4 sm:$0xff]  }
 0x10e   : > { %1395 = vmatmul.mubr.bf16.gmra.mrb[12].mxu1 %v10647_v49  ;;  %1241 = vmatprep.mubr.bf16.mxu0 %v10648_v50  ;;  %v10707_v49 = vld [vmem:[%s12021_s30 + $0x1a8] ss:$16 sps:$4 sm:$0xff]   ;;  %v10708_v50 = vld [vmem:[%s12021_s30 + $0x1c4] ss:$16 sps:$4 sm:$0xff]  }
 0x10f   : > { %1402 = vmatprep.mubr.bf16.mxu1 %v10650_v51  ;;  %v10710_v51 = vld [vmem:[%s12021_s30 + $0x1cc] ss:$16 sps:$4 sm:$0xff]  }
 0x115   : > { %1242 = vmatmul.mubr.bf16.gmra.mrb[16].mxu0 %v10652_v52  ;;  %v10712_v52 = vld [vmem:[%s12021_s30 + $0x1c0] ss:$16 sps:$4 sm:$0xff]  }
 0x116   : > { %1403 = vmatmul.mubr.bf16.gmra.mrb[16].mxu1 %v10653_v53  ;;  %1249 = vmatprep.mubr.bf16.mxu0 %v10654_v54  ;;  %v10713_v53 = vld [vmem:[%s12021_s30 + $0x1c8] ss:$16 sps:$4 sm:$0xff]   ;;  %v10714_v54 = vld [vmem:[%s12021_s30 + $0x1e4] ss:$16 sps:$4 sm:$0xff]  }
 0x117   : > { %1410 = vmatprep.mubr.bf16.mxu1 %v10656_v55  ;;  %v10716_v55 = vld [vmem:[%s12021_s30 + $0x1ec] ss:$16 sps:$4 sm:$0xff]  }
 0x11d   : > { %1250 = vmatmul.mubr.bf16.gmra.mrb[20].mxu0 %v10658_v56  ;;  %v10718_v56 = vld [vmem:[%s12021_s30 + $0x1e0] ss:$16 sps:$4 sm:$0xff]  }
 0x11e   : > { %1411 = vmatmul.mubr.bf16.gmra.mrb[20].mxu1 %v10659_v57  ;;  %1257 = vmatprep.mubr.bf16.mxu0 %v10660_v58  ;;  %v10758_v57 = vld [vmem:[%s12043_s14 + $0xc4] ss:$16 sps:$4 sm:$0xff]   ;;  %v10761_v58 = vld [vmem:[%s12043_s14 + $0xcc] ss:$16 sps:$4 sm:$0xff]  }
 0x11f   : > { %1418 = vmatprep.mubr.bf16.mxu1 %v10662_v59  ;;  %v10719_v59 = vld [vmem:[%s12021_s30 + $0x1e8] ss:$16 sps:$4 sm:$0xff]   ;;  %4230 = vmatprep.subr.bf16.mxu0 %v10758_v57 }
 0x120   : > { %4423 = vmatprep.subr.bf16.mxu1 %v10761_v58  ;;  %4231 = vmatpush1.bf16.msra.mxu0 %v10756_v60 }
 0x121   : > { %4424 = vmatpush1.bf16.msra.mxu1 %v10759_v61  ;;  %4232 = vmatprep.subr.bf16.mxu0 %v10764_v62 }
 0x122   : > { %4425 = vmatprep.subr.bf16.mxu1 %v10767_v63 }
 0x125   : > { %1258 = vmatmul.mubr.bf16.gmra.mrb[24].mxu0 %v10664_v0  ;;  %v10762_v0 = vld [vmem:[%s12043_s14 + $0xe0] ss:$16 sps:$4 sm:$0xff]   ;;  %4426 = vmatpush1.bf16.msra.mxu1 %v10765_v1 }
 0x126   : > { %1419 = vmatmul.mubr.bf16.gmra.mrb[24].mxu1 %v10665_v2  ;;  %1265 = vmatprep.mubr.bf16.mxu0 %v10666_v3  ;;  %v16364_v2 = vmov 0   ;;  %v10770_v3 = vld [vmem:[%s12043_s14 + $0x104] ss:$16 sps:$4 sm:$0xff]  }
 0x127   : > { %1426 = vmatprep.mubr.bf16.mxu1 %v10668_v7  ;;  %4233 = vmatpush1.bf16.msra.mxu0 %v10762_v0  ;;  %v12309_v7 = vld [vmem:[%s12041_s29] ss:$0 sm:$0xff] }
 0x128   : > { %5197 = vmatprep.subr.bf16.mxu0 %v10770_v3  ;;  %5390 = vmatprep.subr.bf16.mxu1 %v10773_v4 }
 0x12d   : > { %1266 = vmatmul.mubr.bf16.gmra.mrb[28].mxu0 %v10670_v14 }
 0x12e   : > { %1427 = vmatmul.mubr.bf16.gmra.mrb[28].mxu1 %v10671_v15  ;;  %1273 = vmatprep.mubr.bf16.mxu0 %v10672_v16 }
 0x12f   : > { %1434 = vmatprep.mubr.bf16.mxu1 %v10674_v18 }
 0x135   : > { %1274 = vmatmul.mubr.bf16.gmra.mrb[32].mxu0 %v10676_v27 }
 0x136   : > { %1435 = vmatmul.mubr.bf16.gmra.mrb[32].mxu1 %v10677_v29  ;;  %1281 = vmatprep.mubr.bf16.mxu0 %v10678_v30 }
 0x137   : > { %1442 = vmatprep.mubr.bf16.mxu1 %v10680_v31 }
 0x13d   : > { %1282 = vmatmul.mubr.bf16.gmra.mrb[36].mxu0 %v10682_v32 }
 0x13e   : > { %1443 = vmatmul.mubr.bf16.gmra.mrb[36].mxu1 %v10683_v33  ;;  %1289 = vmatprep.mubr.bf16.mxu0 %v10684_v34 }
 0x13f   : > { %1450 = vmatprep.mubr.bf16.mxu1 %v10686_v35 }
 0x145   : > { %1290 = vmatmul.mubr.bf16.gmra.mrb[40].mxu0 %v10688_v36 }
 0x146   : > { %1451 = vmatmul.mubr.bf16.gmra.mrb[40].mxu1 %v10689_v37  ;;  %1297 = vmatprep.mubr.bf16.mxu0 %v10690_v38 }
 0x147   : > { %1458 = vmatprep.mubr.bf16.mxu1 %v10692_v39 }
 0x14d   : > { %1298 = vmatmul.mubr.bf16.gmra.mrb[44].mxu0 %v10694_v40 }
 0x14e   : > { %1459 = vmatmul.mubr.bf16.gmra.mrb[44].mxu1 %v10695_v41  ;;  %1305 = vmatprep.mubr.bf16.mxu0 %v10696_v42 }
 0x14f   : > { %1466 = vmatprep.mubr.bf16.mxu1 %v10698_v43 }
 0x155   : > { %1306 = vmatmul.mubr.bf16.gmra.mrb[48].mxu0 %v10700_v44 }
 0x156   : > { %1467 = vmatmul.mubr.bf16.gmra.mrb[48].mxu1 %v10701_v45  ;;  %1313 = vmatprep.mubr.bf16.mxu0 %v10702_v46 }
 0x157   : > { %1474 = vmatprep.mubr.bf16.mxu1 %v10704_v47 }
 0x15d   : > { %1314 = vmatmul.mubr.bf16.gmra.mrb[52].mxu0 %v10706_v48 }
 0x15e   : > { %1475 = vmatmul.mubr.bf16.gmra.mrb[52].mxu1 %v10707_v49  ;;  %1321 = vmatprep.mubr.bf16.mxu0 %v10708_v50 }
 0x15f   : > { %1482 = vmatprep.mubr.bf16.mxu1 %v10710_v51 }
 0x165   : > { %1322 = vmatmul.mubr.bf16.gmra.mrb[56].mxu0 %v10712_v52 }
 0x166   : > { %1483 = vmatmul.mubr.bf16.gmra.mrb[56].mxu1 %v10713_v53  ;;  %1329 = vmatprep.mubr.bf16.mxu0 %v10714_v54 }
 0x167   : > { %1490 = vmatprep.mubr.bf16.mxu1 %v10716_v55 }
 0x16d   : > { %1330 = vmatmul.mubr.bf16.gmra.mrb[60].mxu0 %v10718_v56 }
 0x16e   : > { %1491 = vmatmul.mubr.bf16.gmra.mrb[60].mxu1 %v10719_v59  ;;  %4250 = vmatprep.mubr.bf16.mxu0 %v16364_v2 }
 0x16f   : > { %4443 = vmatprep.mubr.bf16.mxu1 %v16364_v2 }
 0x1c8   : > { %v9493_v5 = vpop.f32.mrb[0].mxu0 }
 0x1c9   : > { %v9605_v6 = vpop.f32.mrb[0].mxu1  ;;  %v9494_v8 = vpop.f32.mrb[1].mxu0 }
 0x1ca   : > { %v9495_v9 = vadd.f32 %v9494_v8, %v9493_v5  ;;  %v9606_v10 = vpop.f32.mrb[1].mxu1  ;;  %v9496_v11 = vpop.f32.mrb[2].mxu0 }
 0x1cb   : > { %v9607_v12 = vadd.f32 %v9606_v10, %v9605_v6  ;;  %v9608_v13 = vpop.f32.mrb[2].mxu1  ;;  %v9497_v14 = vpop.f32.mrb[3].mxu0 }
 0x1cc   : > { %v1212_v15 = vadd.f32 %v9495_v9, %v12309_v7  ;;  %v9498_v16 = vadd.f32 %v9497_v14, %v9496_v11  ;;  %v9609_v17 = vpop.f32.mrb[3].mxu1 }
 0x1cd   : > { %v9610_v18 = vadd.f32 %v9609_v17, %v9608_v13 }
 0x1ce   : > { %v12312_v19 = vadd.f32 %v9607_v12, %v1212_v15  ;;  %v1215_v20 = vadd.f32 %v9498_v16, %v12309_v7 }
 0x1d0   : > { %v1499_v21 = vsub.f32 0.0, %v12312_v19  ;;  %v12316_v22 = vadd.f32 %v9610_v18, %v1215_v20  ;;  %v9499_v23 = vpop.f32.mrb[4].mxu0 }
 0x1d1   : > { %v9611_v24 = vpop.f32.mrb[4].mxu1  ;;  %v9500_v25 = vpop.f32.mrb[5].mxu0 }
 0x1d2   : > { %v1531_v26 = vmul.f32 1.442695, %v1499_v21  ;;  %v1500_v27 = vsub.f32 0.0, %v12316_v22  ;;  %v9501_v28 = vadd.f32 %v9500_v25, %v9499_v23  ;;  %v9612_v29 = vpop.f32.mrb[5].mxu1  ;;  %v9502_v30 = vpop.f32.mrb[6].mxu0 }
 0x1d3   : > { %v9613_v31 = vadd.f32 %v9612_v29, %v9611_v24  ;;  %v9614_v32 = vpop.f32.mrb[6].mxu1  ;;  %v9503_v33 = vpop.f32.mrb[7].mxu0 }
 0x1d4   : > { %10912 = vpow2.f32 %v1531_v26  ;;  %v1533_v34 = vmul.f32 1.442695, %v1500_v27  ;;  %v1220_v35 = vadd.f32 %v9501_v28, %v12309_v7  ;;  %v9504_v36 = vadd.f32 %v9503_v33, %v9502_v30  ;;  %v9615_v37 = vpop.f32.mrb[7].mxu1 }
 0x1d5   : > { %v9616_v38 = vadd.f32 %v9615_v37, %v9614_v32  ;;  %v12344_v32 = vld [vmem:[#allocation3 + $0x10] sm:$0xff]  ;;  %v2020_v37 = vlaneseq }
 0x1d6   : > { %10914 = vpow2.f32 %v1533_v34  ;;  %v12320_v39 = vadd.f32 %v9613_v31, %v1220_v35  ;;  %v1223_v40 = vadd.f32 %v9504_v36, %v12309_v7  ;;  %v12342_v31 = vld [vmem:[#allocation3] sm:$0xff]  ;;  %v12346_v36 = vld [vmem:[#allocation3 + $0x8] sm:$0xff] }
 0x1d8   : > { %v1501_v41 = vsub.f32 0.0, %v12320_v39  ;;  %v12324_v42 = vadd.f32 %v9616_v38, %v1223_v40  ;;  %v9505_v43 = vpop.f32.mrb[8].mxu0 }
 0x1d9   : > { %v9617_v44 = vpop.f32.mrb[8].mxu1  ;;  %v9506_v45 = vpop.f32.mrb[9].mxu0 }
 0x1da   : > { %v1535_v46 = vmul.f32 1.442695, %v1501_v41  ;;  %v1502_v47 = vsub.f32 0.0, %v12324_v42  ;;  %v9507_v48 = vadd.f32 %v9506_v45, %v9505_v43  ;;  %v9618_v49 = vpop.f32.mrb[9].mxu1  ;;  %v9508_v50 = vpop.f32.mrb[10].mxu0  ;;  %v12349_v45 = vld [vmem:[#allocation3 + $0x18] sm:$0xff] }
 0x1db   : > { %v9619_v51 = vadd.f32 %v9618_v49, %v9617_v44  ;;  %v9620_v52 = vpop.f32.mrb[10].mxu1  ;;  %v9509_v53 = vpop.f32.mrb[11].mxu0 }
 0x1dc   : > { %10916 = vpow2.f32 %v1535_v46  ;;  %v1537_v54 = vmul.f32 1.442695, %v1502_v47  ;;  %v1228_v55 = vadd.f32 %v9507_v48, %v12309_v7  ;;  %v9510_v56 = vadd.f32 %v9509_v53, %v9508_v50  ;;  %v9621_v57 = vpop.f32.mrb[11].mxu1 }
 0x1dd   : > { %v9622_v58 = vadd.f32 %v9621_v57, %v9620_v52  ;;  %v1764_v50 = vmax.f32 %v12342_v31, %v12344_v32 }
 0x1de   : > { %v10913_v59 = vpop.eup %10912  ;;  %10918 = vpow2.f32 %v1537_v54  ;;  %v12328_v60 = vadd.f32 %v9619_v51, %v1228_v55  ;;  %v1231_v61 = vadd.f32 %v9510_v56, %v12309_v7  ;;  %v12353_v51 = vld [vmem:[#allocation4 + $0x10] sm:$0xff] }
 0x1df   : > { %v1595_v62 = vadd.f32 1.0, %v10913_v59  ;;  %v1765_v59 = vmax.f32 %v12346_v36, %v12349_v45 }
 0x1e0   : > { %v10915_v63 = vpop.eup %10914  ;;  %v1503_v0 = vsub.f32 0.0, %v12328_v60  ;;  %v12332_v1 = vadd.f32 %v9622_v58, %v1231_v61  ;;  %v9511_v3 = vpop.f32.mrb[12].mxu0  ;;  %v12359_v61 = vshrl.u32 %v2020_v37, 7 }
 0x1e1   : > { %10920 = vrcp.f32 %v1595_v62  ;;  %v1596_v4 = vadd.f32 1.0, %v10915_v63  ;;  %v9623_v5 = vpop.f32.mrb[12].mxu1  ;;  %v9512_v6 = vpop.f32.mrb[13].mxu0  ;;  %v12361_v62 = vld [vmem:[#allocation4 + $0x28] sm:$0xff] }
 0x1e2   : > { %v1539_v8 = vmul.f32 1.442695, %v1503_v0  ;;  %v1504_v9 = vsub.f32 0.0, %v12332_v1  ;;  %v9513_v10 = vadd.f32 %v9512_v6, %v9511_v3  ;;  %v9624_v11 = vpop.f32.mrb[13].mxu1  ;;  %v9514_v12 = vpop.f32.mrb[14].mxu0  ;;  %vm2022_vm0 = vcmp.lt.s32.totalorder %v12359_v61, 1 }
 0x1e3   : > { %10922 = vrcp.f32 %v1596_v4  ;;  %v9625_v13 = vadd.f32 %v9624_v11, %v9623_v5  ;;  %v9626_v14 = vpop.f32.mrb[14].mxu1  ;;  %v9515_v15 = vpop.f32.mrb[15].mxu0  ;;  %v10768_v3 = vld [vmem:[%s12043_s14 + $0x100] ss:$16 sps:$4 sm:$0xff]   ;;  %v10771_v4 = vld [vmem:[%s12043_s14 + $0x108] ss:$16 sps:$4 sm:$0xff]  }
 0x1e4   : > { %10924 = vpow2.f32 %v1539_v8  ;;  %v1541_v16 = vmul.f32 1.442695, %v1504_v9  ;;  %v1236_v17 = vadd.f32 %v9513_v10, %v12309_v7  ;;  %v9516_v18 = vadd.f32 %v9515_v15, %v9514_v12  ;;  %v9627_v20 = vpop.f32.mrb[15].mxu1  ;;  %v10776_v9 = vld [vmem:[%s12043_s14 + $0x124] ss:$16 sps:$4 sm:$0xff]  }
 0x1e5   : > { %v9628_v21 = vadd.f32 %v9627_v20, %v9626_v14  ;;  %v2004_v5 = vrot.slane %v12353_v51, 7  ;;  %vm2135_vm1 = vcmp.lt.s32.totalorder %v12359_v61, 2  ;;  %vm2248_vm2 = vcmp.lt.s32.totalorder %v12359_v61, 6 }
 0x1e6   : > { %v10917_v23 = vpop.eup %10916  ;;  %10926 = vpow2.f32 %v1541_v16  ;;  %v12336_v24 = vadd.f32 %v9625_v13, %v1236_v17  ;;  %v1239_v25 = vadd.f32 %v9516_v18, %v12309_v7  ;;  %v12376_v17 = vld [vmem:[#allocation4 + $0x40] sm:$0xff]  ;;  %vm2361_vm3 = vcmp.lt.s32.totalorder %v12359_v61, 7 }
 0x1e7   : > { %v1597_v26 = vadd.f32 1.0, %v10917_v23 }
 0x1e8   : > { %v10919_v27 = vpop.eup %10918  ;;  %v1505_v28 = vsub.f32 0.0, %v12336_v24  ;;  %v12340_v29 = vadd.f32 %v9628_v21, %v1239_v25  ;;  %v9517_v30 = vpop.f32.mrb[16].mxu0  ;;  %v10774_v25 = vld [vmem:[%s12043_s14 + $0x120] ss:$16 sps:$4 sm:$0xff]  }
 0x1e9   : > { %10928 = vrcp.f32 %v1597_v26  ;;  %v1598_v33 = vadd.f32 1.0, %v10919_v27  ;;  %v9629_v34 = vpop.f32.mrb[16].mxu1  ;;  %v9518_v35 = vpop.f32.mrb[17].mxu0  ;;  %v10779_v26 = vld [vmem:[%s12043_s14 + $0x12c] ss:$16 sps:$4 sm:$0xff]  }
 0x1ea   : > { %v1543_v38 = vmul.f32 1.442695, %v1505_v28  ;;  %v1506_v40 = vsub.f32 0.0, %v12340_v29  ;;  %v9519_v41 = vadd.f32 %v9518_v35, %v9517_v30  ;;  %v9630_v43 = vpop.f32.mrb[17].mxu1  ;;  %v9520_v44 = vpop.f32.mrb[18].mxu0 }
 0x1eb   : > { %v10921_v46 = vpop.eup %10920  ;;  %10930 = vrcp.f32 %v1598_v33  ;;  %v9631_v47 = vadd.f32 %v9630_v43, %v9629_v34  ;;  %v9632_v48 = vpop.f32.mrb[18].mxu1  ;;  %v10821_v35 = vld [vmem:[%s12043_s14 + $0x20c] ss:$16 sps:$4 sm:$0xff]  }
 0x1ec   : > { %v9521_v49 = vpop.f32.mrb[19].mxu0  ;;  %v1659_v52 = vmul.f32 %v10921_v46, %v12312_v19  ;;  %10932 = vpow2.f32 %v1543_v38  ;;  %v1545_v53 = vmul.f32 1.442695, %v1506_v40  ;;  %v1244_v54 = vadd.f32 %v9519_v41, %v12309_v7  ;;  %v9633_v55 = vpop.f32.mrb[19].mxu1  ;;  %v10777_v46 = vld [vmem:[%s12043_s14 + $0x128] ss:$16 sps:$4 sm:$0xff]  }
 0x1ed   : > { %v10923_v56 = vpop.eup %10922  ;;  %v9522_v57 = vadd.f32 %v9521_v49, %v9520_v44  ;;  %v9634_v58 = vadd.f32 %v9633_v55, %v9632_v48  ;;  %v10785_v55 = vld [vmem:[%s12043_s14 + $0x14c] ss:$16 sps:$4 sm:$0xff]  }
 0x1ee   : > { %v10925_v63 = vpop.eup %10924  ;;  %1692 = vst [vmem:[#allocation3 + $0x20] sm:$0xff] %v1659_v52  ;;  %v1660_v19 = vmul.f32 %v10923_v56, %v12316_v22  ;;  %10934 = vpow2.f32 %v1545_v53  ;;  %v12364_v0 = vadd.f32 %v9631_v47, %v1244_v54  ;;  %v10782_v54 = vld [vmem:[%s12043_s14 + $0x144] ss:$16 sps:$4 sm:$0xff]   ;;  %v12394_v56 = vld [vmem:[#allocation4 + $0x58] sm:$0xff] }
 0x1ef   : > { %v1599_v6 = vadd.f32 1.0, %v10925_v63  ;;  %v1247_v8 = vadd.f32 %v9522_v57, %v12309_v7 }
 0x1f0   : > { %v10927_v12 = vpop.eup %10926  ;;  %1693 = vst [vmem:[#allocation3 + $0x28] sm:$0xff] %v1660_v19  ;;  %v4010_v22 = vpack.c.bf16 %v1660_v19, %v1659_v52  ;;  %v1507_v13 = vsub.f32 0.0, %v12364_v0  ;;  %v9523_v14 = vpop.f32.mrb[20].mxu0 }
 0x1f1   : > { %10936 = vrcp.f32 %v1599_v6  ;;  %v1600_v18 = vadd.f32 1.0, %v10927_v12  ;;  %v12378_v20 = vadd.f32 %v9634_v58, %v1247_v8  ;;  %v9635_v21 = vpop.f32.mrb[20].mxu1  ;;  %v9524_v23 = vpop.f32.mrb[21].mxu0  ;;  %v10780_v12 = vld [vmem:[%s12043_s14 + $0x140] ss:$16 sps:$4 sm:$0xff]  }
 0x1f2   : > { %v1547_v28 = vmul.f32 1.442695, %v1507_v13  ;;  %v9525_v30 = vadd.f32 %v9524_v23, %v9523_v14  ;;  %v9636_v33 = vpop.f32.mrb[21].mxu1  ;;  %v9526_v34 = vpop.f32.mrb[22].mxu0  ;;  %4251 = vmatmul.mubr.bf16.vlgmr.msra.gmra.mrb[64].mxu0 %v4010_v22  ;;  %4444 = vmatmul.mubr.bf16.vlgmr.msra.gmra.mrb[64].mxu1 %v4010_v22  ;;  %v10783_v22 = vld [vmem:[%s12043_s14 + $0x148] ss:$16 sps:$4 sm:$0xff]  }
 0x1f3   : > { %v10929_v38 = vpop.eup %10928  ;;  %10938 = vrcp.f32 %v1600_v18  ;;  %v1508_v40 = vsub.f32 0.0, %v12378_v20  ;;  %v9637_v41 = vadd.f32 %v9636_v33, %v9635_v21  ;;  %v9638_v43 = vpop.f32.mrb[22].mxu1  ;;  %5198 = vmatpush1.bf16.msra.mxu0 %v10768_v3  ;;  %5391 = vmatpush1.bf16.msra.mxu1 %v10771_v4  ;;  %v12405_v14 = vld [vmem:[#allocation4 + $0x70] sm:$0xff] }
 0x1f4   : > { %v9527_v44 = vpop.f32.mrb[23].mxu0  ;;  %v1661_v48 = vmul.f32 %v10929_v38, %v12320_v39  ;;  %10940 = vpow2.f32 %v1547_v28  ;;  %v1252_v49 = vadd.f32 %v9525_v30, %v12309_v7  ;;  %v9639_v53 = vpop.f32.mrb[23].mxu1  ;;  %4260 = vmatprep.mubr.bf16.mxu0 %v16364_v2  ;;  %4453 = vmatprep.mubr.bf16.mxu1 %v16364_v2  ;;  %v10788_v18 = vld [vmem:[%s12043_s14 + $0x164] ss:$16 sps:$4 sm:$0xff]  }
 0x1f5   : > { %v9528_v52 = vadd.f32 %v9527_v44, %v9526_v34  ;;  %v10931_v57 = vpop.eup %10930  ;;  %v1549_v58 = vmul.f32 1.442695, %v1508_v40  ;;  %v9640_v63 = vadd.f32 %v9639_v53, %v9638_v43  ;;  %5199 = vmatprep.subr.bf16.mxu0 %v10776_v9  ;;  %5392 = vmatprep.subr.bf16.mxu1 %v10779_v26  ;;  %v10791_v34 = vld [vmem:[%s12043_s14 + $0x16c] ss:$16 sps:$4 sm:$0xff]   ;;  %v12414_v38 = vld [vmem:[#allocation3 + $0x20] sm:$0xff] }
 0x1f6   : > { %v10933_v3 = vpop.eup %10932  ;;  %1694 = vst [vmem:[#allocation3 + $0x30] sm:$0xff] %v1661_v48  ;;  %v1662_v4 = vmul.f32 %v10931_v57, %v12324_v42  ;;  %v12399_v6 = vadd.f32 %v9637_v41, %v1252_v49  ;;  %v10797_v44 = vld [vmem:[%s12043_s14 + $0x18c] ss:$16 sps:$4 sm:$0xff]  }
 0x1f7   : > { %v1255_v8 = vadd.f32 %v9528_v52, %v12309_v7  ;;  %v1601_v9 = vadd.f32 1.0, %v10933_v3  ;;  %10942 = vpow2.f32 %v1549_v58  ;;  %5200 = vmatpush1.bf16.msra.mxu0 %v10774_v25  ;;  %5393 = vmatpush1.bf16.msra.mxu1 %v10777_v46  ;;  %v10794_v46 = vld [vmem:[%s12043_s14 + $0x184] ss:$16 sps:$4 sm:$0xff]  }
 0x1f8   : > { %v10935_v23 = vpop.eup %10934  ;;  %1695 = vst [vmem:[#allocation3 + $0x38] sm:$0xff] %v1662_v4  ;;  %v1509_v26 = vsub.f32 0.0, %v12399_v6  ;;  %v9529_v30 = vpop.f32.mrb[24].mxu0  ;;  %v4011_v33 = vpack.c.bf16 %v1662_v4, %v1661_v48  ;;  %5201 = vmatprep.subr.bf16.mxu0 %v10782_v54  ;;  %5394 = vmatprep.subr.bf16.mxu1 %v10785_v55  ;;  %v10786_v4 = vld [vmem:[%s12043_s14 + $0x160] ss:$16 sps:$4 sm:$0xff]  }
 0x1f9   : > { %v12411_v28 = vadd.f32 %v9640_v63, %v1255_v8  ;;  %10944 = vrcp.f32 %v1601_v9  ;;  %v1602_v40 = vadd.f32 1.0, %v10935_v23  ;;  %v9641_v41 = vpop.f32.mrb[24].mxu1  ;;  %v9530_v43 = vpop.f32.mrb[25].mxu0  ;;  %v12424_v8 = vld [vmem:[#allocation3 + $0x28] sm:$0xff]  ;;  %v1766_v9 = vmax.f32 %v12344_v32, %v12414_v38 }
 0x1fa   : > { %v1551_v49 = vmul.f32 1.442695, %v1509_v26  ;;  %v9531_v48 = vadd.f32 %v9530_v43, %v9529_v30  ;;  %v9642_v53 = vpop.f32.mrb[25].mxu1  ;;  %v9532_v54 = vpop.f32.mrb[26].mxu0  ;;  %4261 = vmatmul.mubr.bf16.gmra.mrb[68].mxu0 %v4011_v33  ;;  %4454 = vmatmul.mubr.bf16.gmra.mrb[68].mxu1 %v4011_v33 }
 0x1fb   : > { %v1510_v52 = vsub.f32 0.0, %v12411_v28  ;;  %v10937_v57 = vpop.eup %10936  ;;  %10946 = vrcp.f32 %v1602_v40  ;;  %v9643_v58 = vadd.f32 %v9642_v53, %v9641_v41  ;;  %v9644_v63 = vpop.f32.mrb[26].mxu1  ;;  %4270 = vmatprep.mubr.bf16.mxu0 %v16364_v2  ;;  %4463 = vmatprep.mubr.bf16.mxu1 %v16364_v2  ;;  %v10789_v41 = vld [vmem:[%s12043_s14 + $0x168] ss:$16 sps:$4 sm:$0xff]  }
 0x1fc   : > { %v9533_v3 = vpop.f32.mrb[27].mxu0  ;;  %v1663_v26 = vmul.f32 %v10937_v57, %v12328_v60  ;;  %10948 = vpow2.f32 %v1551_v49  ;;  %v1260_v33 = vadd.f32 %v9531_v48, %v12309_v7  ;;  %v9645_v40 = vpop.f32.mrb[27].mxu1  ;;  %5202 = vmatpush1.bf16.msra.mxu0 %v10780_v12  ;;  %5395 = vmatpush1.bf16.msra.mxu1 %v10783_v22  ;;  %v12440_v60 = vmax.f32 %v1764_v50, %v12414_v38 }
 0x1fd   : > { %v1553_v30 = vmul.f32 1.442695, %v1510_v52  ;;  %v10939_v43 = vpop.eup %10938  ;;  %v9534_v53 = vadd.f32 %v9533_v3, %v9532_v54  ;;  %v9646_v55 = vadd.f32 %v9645_v40, %v9644_v63  ;;  %5203 = vmatprep.subr.bf16.mxu0 %v10788_v18  ;;  %5396 = vmatprep.subr.bf16.mxu1 %v10791_v34  ;;  %v12434_v25 = vld [vmem:[#allocation3 + $0x30] sm:$0xff]  ;;  %v1767_v34 = vmax.f32 %v12349_v45, %v12424_v8  ;;  %v10795_v63 = vld [vmem:[%s12043_s14 + $0x188] ss:$16 sps:$4 sm:$0xff]  }
 0x1fe   : > { %v10941_v22 = vpop.eup %10940  ;;  %1696 = vst [vmem:[#allocation3 + $0x40] sm:$0xff] %v1663_v26  ;;  %v1664_v49 = vmul.f32 %v10939_v43, %v12332_v1  ;;  %v12444_v18 = vadd.f32 %v9643_v58, %v1260_v33  ;;  %v10792_v54 = vld [vmem:[%s12043_s14 + $0x180] ss:$16 sps:$4 sm:$0xff]   ;;  %v1768_v32 = vmax.f32 %v12414_v38, %v12434_v25  ;;  %v12458_v1 = vmax.f32 %v1765_v59, %v12424_v8  ;;  %v12467_v33 = vld [vmem:[#allocation4 + $0x88] sm:$0xff] }
 0x1ff   : > { %10950 = vpow2.f32 %v1553_v30  ;;  %v1603_v52 = vadd.f32 1.0, %v10941_v22  ;;  %v1263_v48 = vadd.f32 %v9534_v53, %v12309_v7  ;;  %v12450_v31 = vld [vmem:[#allocation3 + $0x38] sm:$0xff]  ;;  %v12463_v3 = vmax.f32 %v1766_v9, %v12434_v25 }
 0x200   : > { %1697 = vst [vmem:[#allocation3 + $0x48] sm:$0xff] %v1664_v49  ;;  %v1511_v50 = vsub.f32 0.0, %v12444_v18  ;;  %v9535_v57 = vpop.f32.mrb[28].mxu0  ;;  %v4012_v58 = vpack.c.bf16 %v1664_v49, %v1663_v26  ;;  %5204 = vmatpush1.bf16.msra.mxu0 %v10786_v4  ;;  %5397 = vmatpush1.bf16.msra.mxu1 %v10789_v41  ;;  %v1828_v30 = vmax.f32 %v12440_v60, %v12434_v25  ;;  %v10800_v4 = vld [vmem:[%s12043_s14 + $0x1a4] ss:$16 sps:$4 sm:$0xff]  }
 0x201   : > { %v10943_v36 = vpop.eup %10942  ;;  %10952 = vrcp.f32 %v1603_v52  ;;  %v12469_v45 = vadd.f32 %v9646_v55, %v1263_v48  ;;  %v9647_v59 = vpop.f32.mrb[28].mxu1  ;;  %5205 = vmatprep.subr.bf16.mxu0 %v10794_v46  ;;  %5398 = vmatprep.subr.bf16.mxu1 %v10797_v44  ;;  %v10803_v26 = vld [vmem:[%s12043_s14 + $0x1ac] ss:$16 sps:$4 sm:$0xff]   ;;  %v1769_v9 = vmax.f32 %v12424_v8, %v12450_v31  ;;  %v12476_v41 = vmax.f32 %v1767_v34, %v12450_v31  ;;  %v10798_v55 = vld [vmem:[%s12043_s14 + $0x1a0] ss:$16 sps:$4 sm:$0xff]  }
 0x202   : > { %v9536_v40 = vpop.f32.mrb[29].mxu0  ;;  %v1604_v43 = vadd.f32 1.0, %v10943_v36  ;;  %v1555_v53 = vmul.f32 1.442695, %v1511_v50  ;;  %v9648_v49 = vpop.f32.mrb[29].mxu1  ;;  %4271 = vmatmul.mubr.bf16.gmra.mrb[72].mxu0 %v4012_v58  ;;  %4464 = vmatmul.mubr.bf16.gmra.mrb[72].mxu1 %v4012_v58  ;;  %v1829_v46 = vmax.f32 %v12458_v1, %v12450_v31 }
 0x203   : > { %v9537_v22 = vadd.f32 %v9536_v40, %v9535_v57  ;;  %v9538_v52 = vpop.f32.mrb[30].mxu0  ;;  %v10945_v44 = vpop.eup %10944  ;;  %v1512_v48 = vsub.f32 0.0, %v12469_v45  ;;  %v9649_v12 = vadd.f32 %v9648_v49, %v9647_v59  ;;  %4280 = vmatprep.mubr.bf16.mxu0 %v16364_v2  ;;  %4473 = vmatprep.mubr.bf16.mxu1 %v16364_v2  ;;  %v10801_v59 = vld [vmem:[%s12043_s14 + $0x1a8] ss:$16 sps:$4 sm:$0xff]   ;;  %v10806_v49 = vld [vmem:[%s12043_s14 + $0x1c4] ss:$16 sps:$4 sm:$0xff]  }
 0x204   : > { %v9650_v23 = vpop.f32.mrb[30].mxu1  ;;  %v9539_v34 = vpop.f32.mrb[31].mxu0  ;;  %v12487_v58 = vmul.f32 %v10945_v44, %v12336_v24  ;;  %10954 = vrcp.f32 %v1604_v43  ;;  %5206 = vmatpush1.bf16.msra.mxu0 %v10792_v54  ;;  %5399 = vmatpush1.bf16.msra.mxu1 %v10795_v63  ;;  %v10809_v57 = vld [vmem:[%s12043_s14 + $0x1cc] ss:$16 sps:$4 sm:$0xff]  }
 0x205   : > { %v1268_v36 = vadd.f32 %v9537_v22, %v12309_v7  ;;  %v9540_v40 = vadd.f32 %v9539_v34, %v9538_v52  ;;  %v9651_v42 = vpop.f32.mrb[31].mxu1  ;;  %v10947_v21 = vpop.eup %10946  ;;  %10956 = vpow2.f32 %v1555_v53  ;;  %v1557_v13 = vmul.f32 1.442695, %v1512_v48  ;;  %5207 = vmatprep.subr.bf16.mxu0 %v10800_v4  ;;  %5400 = vmatprep.subr.bf16.mxu1 %v10803_v26  ;;  %v12493_v19 = vld [vmem:[#allocation3 + $0x40] sm:$0xff]  ;;  %v10807_v48 = vld [vmem:[%s12043_s14 + $0x1c8] ss:$16 sps:$4 sm:$0xff]  }
 0x206   : > { %v9652_v50 = vadd.f32 %v9651_v42, %v9650_v23  ;;  %v10949_v43 = vpop.eup %10948  ;;  %v12497_v22 = vmul.f32 %v10947_v21, %v12340_v29  ;;  %v1770_v42 = vmax.f32 %v12434_v25, %v12493_v19  ;;  %v10804_v4 = vld [vmem:[%s12043_s14 + $0x1c0] ss:$16 sps:$4 sm:$0xff]   ;;  %v1772_v53 = vmax.f32 %v12493_v19, %v12487_v58  ;;  %v10812_v34 = vld [vmem:[%s12043_s14 + $0x1e4] ss:$16 sps:$4 sm:$0xff]  }
 0x207   : > { %v12499_v54 = vadd.f32 %v9649_v12, %v1268_v36  ;;  %v1271_v63 = vadd.f32 %v9540_v40, %v12309_v7  ;;  %v1605_v23 = vadd.f32 1.0, %v10949_v43  ;;  %10958 = vpow2.f32 %v1557_v13  ;;  %v12505_v26 = vld [vmem:[#allocation3 + $0x48] sm:$0xff] }
 0x208   : > { %v12513_v29 = vmax.f32 %v1768_v32, %v12493_v19  ;;  %v9541_v44 = vpop.f32.mrb[32].mxu0  ;;  %v4013_v13 = vpack.c.bf16 %v12497_v22, %v12487_v58  ;;  %5208 = vmatpush1.bf16.msra.mxu0 %v10798_v55  ;;  %5401 = vmatpush1.bf16.msra.mxu1 %v10801_v59  ;;  %v1771_v36 = vmax.f32 %v12450_v31, %v12505_v26  ;;  %v10815_v43 = vld [vmem:[%s12043_s14 + $0x1ec] ss:$16 sps:$4 sm:$0xff]  }
 0x209   : > { %v10951_v21 = vpop.eup %10950  ;;  %v1513_v12 = vsub.f32 0.0, %v12499_v54  ;;  %v12516_v52 = vadd.f32 %v9652_v50, %v1271_v63  ;;  %10960 = vrcp.f32 %v1605_v23  ;;  %v9653_v32 = vpop.f32.mrb[32].mxu1  ;;  %5209 = vmatprep.subr.bf16.mxu0 %v10806_v49  ;;  %5402 = vmatprep.subr.bf16.mxu1 %v10809_v57  ;;  %v1773_v50 = vmax.f32 %v12505_v26, %v12497_v22 }
 0x20a   : > { %v1606_v38 = vadd.f32 1.0, %v10951_v21  ;;  %v9542_v40 = vpop.f32.mrb[33].mxu0  ;;  %v12531_v55 = vmax.f32 %v1769_v9, %v12505_v26  ;;  %v9654_v21 = vpop.f32.mrb[33].mxu1  ;;  %4281 = vmatmul.mubr.bf16.gmra.mrb[76].mxu0 %v4013_v13  ;;  %4474 = vmatmul.mubr.bf16.gmra.mrb[76].mxu1 %v4013_v13  ;;  %v12535_v57 = vmax.f32 %v1770_v42, %v12487_v58  ;;  %v10810_v9 = vld [vmem:[%s12043_s14 + $0x1e0] ss:$16 sps:$4 sm:$0xff]   ;;  %v1830_v42 = vmax.f32 %v12463_v3, %v12493_v19 }
 0x20b   : > { %v1559_v59 = vmul.f32 1.442695, %v1513_v12  ;;  %v1514_v63 = vsub.f32 0.0, %v12516_v52  ;;  %v9543_v23 = vadd.f32 %v9542_v40, %v9541_v44  ;;  %v9544_v24 = vpop.f32.mrb[34].mxu0  ;;  %v10953_v49 = vpop.eup %10952  ;;  %v9655_v39 = vadd.f32 %v9654_v21, %v9653_v32  ;;  %4290 = vmatprep.mubr.bf16.mxu0 %v16364_v2  ;;  %4483 = vmatprep.mubr.bf16.mxu1 %v16364_v2  ;;  %v10813_v40 = vld [vmem:[%s12043_s14 + $0x1e8] ss:$16 sps:$4 sm:$0xff]  }
 0x20c   : > { %10962 = vrcp.f32 %v1606_v38  ;;  %v9656_v47 = vpop.f32.mrb[34].mxu1  ;;  %v9545_v8 = vpop.f32.mrb[35].mxu0  ;;  %v12541_v12 = vmax.f32 %v1771_v36, %v12497_v22  ;;  %v12546_v44 = vmul.f32 %v10953_v49, %v12364_v0  ;;  %5210 = vmatpush1.bf16.msra.mxu0 %v10804_v4  ;;  %5403 = vmatpush1.bf16.msra.mxu1 %v10807_v48  ;;  %v10818_v36 = vld [vmem:[%s12043_s14 + $0x204] ss:$16 sps:$4 sm:$0xff]   ;;  %v1831_v27 = vmax.f32 %v12476_v41, %v12505_v26 }
 0x20d   : > { %10964 = vpow2.f32 %v1559_v59  ;;  %v1561_v13 = vmul.f32 1.442695, %v1514_v63  ;;  %v1276_v38 = vadd.f32 %v9543_v23, %v12309_v7  ;;  %v9657_v32 = vpop.f32.mrb[35].mxu1  ;;  %v9546_v21 = vadd.f32 %v9545_v8, %v9544_v24  ;;  %5211 = vmatprep.subr.bf16.mxu0 %v10812_v34  ;;  %5404 = vmatprep.subr.bf16.mxu1 %v10815_v43 }
 0x20e   : > { %v9658_v37 = vadd.f32 %v9657_v32, %v9656_v47  ;;  %v10955_v49 = vpop.eup %10954  ;;  %v1774_v59 = vmax.f32 %v12487_v58, %v12546_v44  ;;  %v12560_v4 = vmax.f32 %v1772_v53, %v12546_v44  ;;  %v12562_v47 = vld [vmem:[#allocation4 + $0xa0] sm:$0xff]  ;;  %v1832_v43 = vmax.f32 %v12513_v29, %v12487_v58 }
 0x20f   : > { %10966 = vpow2.f32 %v1561_v13  ;;  %v12557_v63 = vadd.f32 %v9655_v39, %v1276_v38  ;;  %v10957_v24 = vpop.eup %10956  ;;  %v12565_v48 = vmul.f32 %v10955_v49, %v12378_v20  ;;  %v1279_v34 = vadd.f32 %v9546_v21, %v12309_v7 }
 0x210   : > { %v1833_v23 = vmax.f32 %v12531_v55, %v12497_v22  ;;  %v1607_v8 = vadd.f32 1.0, %v10957_v24  ;;  %v9547_v13 = vpop.f32.mrb[36].mxu0  ;;  %5212 = vmatpush1.bf16.msra.mxu0 %v10810_v9  ;;  %5405 = vmatpush1.bf16.msra.mxu1 %v10813_v40  ;;  %v1834_v53 = vmax.f32 %v12535_v57, %v12546_v44  ;;  %v12579_v20 = vmax.f32 %v1828_v30, %v12493_v19 }
 0x211   : > { %v1515_v39 = vsub.f32 0.0, %v12557_v63  ;;  %v10959_v38 = vpop.eup %10958  ;;  %v1775_v32 = vmax.f32 %v12497_v22, %v12565_v48  ;;  %v12583_v21 = vadd.f32 %v9658_v37, %v1279_v34  ;;  %v9659_v49 = vpop.f32.mrb[36].mxu1  ;;  %v4014_v9 = vpack.c.bf16 %v12565_v48, %v12546_v44  ;;  %6176 = vmatprep.subr.bf16.mxu0 %v10818_v36  ;;  %6369 = vmatprep.subr.bf16.mxu1 %v10821_v35 }
 0x212   : > { %v9548_v24 = vpop.f32.mrb[37].mxu0  ;;  %10968 = vrcp.f32 %v1607_v8  ;;  %v1608_v0 = vadd.f32 1.0, %v10959_v38  ;;  %v9660_v30 = vpop.f32.mrb[37].mxu1  ;;  %v12593_v35 = vmax.f32 %v1773_v50, %v12565_v48  ;;  %v1835_v36 = vmax.f32 %v12541_v12, %v12565_v48 }
 0x213   : > { %v1563_v25 = vmul.f32 1.442695, %v1515_v39  ;;  %v9549_v60 = vadd.f32 %v9548_v24, %v9547_v13  ;;  %v9550_v16 = vpop.f32.mrb[38].mxu0  ;;  %v10961_v15 = vpop.eup %10960  ;;  %v1516_v11 = vsub.f32 0.0, %v12583_v21  ;;  %v9661_v37 = vadd.f32 %v9660_v30, %v9659_v49  ;;  %4291 = vmatmul.mubr.bf16.gmra.mrb[80].mxu0 %v4014_v9  ;;  %4484 = vmatmul.mubr.bf16.gmra.mrb[80].mxu1 %v4014_v9 }
 0x214   : > { %v9662_v34 = vpop.f32.mrb[38].mxu1  ;;  %v9551_v10 = vpop.f32.mrb[39].mxu0  ;;  %v12598_v8 = vmul.f32 %v10961_v15, %v12399_v6  ;;  %10970 = vrcp.f32 %v1608_v0  ;;  %4300 = vmatprep.mubr.bf16.mxu0 %v16364_v2  ;;  %4493 = vmatprep.mubr.bf16.mxu1 %v16364_v2  ;;  %v12607_v9 = vmax.f32 %v1829_v46, %v12505_v26  ;;  %v12638_v40 = vmax.f32 %v1830_v42, %v12487_v58 }
 0x215   : > { %v1284_v39 = vadd.f32 %v9549_v60, %v12309_v7  ;;  %v9552_v13 = vadd.f32 %v9551_v10, %v9550_v16  ;;  %v9663_v38 = vpop.f32.mrb[39].mxu1  ;;  %10972 = vpow2.f32 %v1563_v25  ;;  %v1565_v24 = vmul.f32 1.442695, %v1516_v11 }
 0x216   : > { %v10963_v49 = vpop.eup %10962  ;;  %v9664_v50 = vadd.f32 %v9663_v38, %v9662_v34  ;;  %v1776_v6 = vmax.f32 %v12546_v44, %v12598_v8  ;;  %v12612_v10 = vmax.f32 %v1774_v59, %v12598_v8  ;;  %v1836_v31 = vmax.f32 %v12560_v4, %v12598_v8 }
 0x217   : > { %v10965_v15 = vpop.eup %10964  ;;  %v12615_v16 = vmul.f32 %v10963_v49, %v12411_v28  ;;  %v12617_v0 = vadd.f32 %v9661_v37, %v1284_v39  ;;  %10974 = vpow2.f32 %v1565_v24  ;;  %v1287_v25 = vadd.f32 %v9552_v13, %v12309_v7 }
 0x218   : > { %v1609_v11 = vadd.f32 1.0, %v10965_v15  ;;  %v9553_v28 = vpop.f32.mrb[40].mxu0  ;;  %v12651_v19 = vmax.f32 %v1832_v43, %v12546_v44  ;;  %v12660_v42 = vmax.f32 %v1833_v23, %v12565_v48  ;;  %v1972_v55 = vrot.slane %v12579_v20, 7 }
 0x219   : > { %v10967_v1 = vpop.eup %10966  ;;  %v1777_v46 = vmax.f32 %v12565_v48, %v12615_v16  ;;  %v12625_v60 = vmax.f32 %v1775_v32, %v12615_v16  ;;  %v1517_v59 = vsub.f32 0.0, %v12617_v0  ;;  %v4015_v30 = vpack.c.bf16 %v12615_v16, %v12598_v8  ;;  %v9665_v39 = vpop.f32.mrb[40].mxu1 }
 0x21a   : > { %10976 = vrcp.f32 %v1609_v11  ;;  %v1610_v37 = vadd.f32 1.0, %v10967_v1  ;;  %v12630_v34 = vadd.f32 %v9664_v50, %v1287_v25  ;;  %v9554_v13 = vpop.f32.mrb[41].mxu0  ;;  %v1837_v38 = vmax.f32 %v12593_v35, %v12615_v16  ;;  %v9666_v15 = vpop.f32.mrb[41].mxu1 }
 0x21b   : > { %v1567_v49 = vmul.f32 1.442695, %v1517_v59  ;;  %v9555_v24 = vadd.f32 %v9554_v13, %v9553_v28  ;;  %v9556_v32 = vpop.f32.mrb[42].mxu0  ;;  %v12644_v50 = vmax.f32 %v1831_v27, %v12497_v22  ;;  %v9667_v25 = vadd.f32 %v9666_v15, %v9665_v39  ;;  %v9668_v1 = vpop.f32.mrb[42].mxu1  ;;  %4301 = vmatmul.mubr.bf16.gmra.mrb[84].mxu0 %v4015_v30  ;;  %4494 = vmatmul.mubr.bf16.gmra.mrb[84].mxu1 %v4015_v30 }
 0x21c   : > { %10978 = vrcp.f32 %v1610_v37  ;;  %v1518_v11 = vsub.f32 0.0, %v12630_v34  ;;  %v9557_v59 = vpop.f32.mrb[43].mxu0  ;;  %v10969_v3 = vpop.eup %10968  ;;  %4310 = vmatprep.mubr.bf16.mxu0 %v16364_v2  ;;  %4503 = vmatprep.mubr.bf16.mxu1 %v16364_v2  ;;  %v12669_v28 = vmax.f32 %v1834_v53, %v12598_v8 }
 0x21d   : > { %10980 = vpow2.f32 %v1567_v49  ;;  %v1292_v41 = vadd.f32 %v9555_v24, %v12309_v7  ;;  %v9558_v27 = vadd.f32 %v9557_v59, %v9556_v32  ;;  %v9669_v26 = vpop.f32.mrb[43].mxu1  ;;  %v12663_v58 = vmul.f32 %v10969_v3, %v12444_v18 }
 0x21e   : > { %v1569_v29 = vmul.f32 1.442695, %v1518_v11  ;;  %v9670_v43 = vadd.f32 %v9669_v26, %v9668_v1  ;;  %v10971_v30 = vpop.eup %10970  ;;  %v12679_v18 = vmax.f32 %v1835_v36, %v12615_v16 }
 0x21f   : > { %v12672_v37 = vadd.f32 %v9667_v25, %v1292_v41  ;;  %v1295_v22 = vadd.f32 %v9558_v27, %v12309_v7  ;;  %v10973_v23 = vpop.eup %10972  ;;  %v1778_v57 = vmax.f32 %v12598_v8, %v12663_v58  ;;  %v12685_v44 = vmax.f32 %v1776_v6, %v12663_v58 }
 0x220   : > { %v1838_v53 = vmax.f32 %v12612_v10, %v12663_v58  ;;  %v12690_v7 = vmul.f32 %v10971_v30, %v12469_v45  ;;  %v1611_v39 = vadd.f32 1.0, %v10973_v23  ;;  %10982 = vpow2.f32 %v1569_v29  ;;  %v9559_v36 = vpop.f32.mrb[44].mxu0 }
 0x221   : > { %v1519_v12 = vsub.f32 0.0, %v12672_v37  ;;  %v12693_v48 = vadd.f32 %v9670_v43, %v1295_v22  ;;  %v10975_v13 = vpop.eup %10974  ;;  %v9671_v24 = vpop.f32.mrb[44].mxu1  ;;  %v12709_v26 = vmax.f32 %v1836_v31, %v12663_v58  ;;  %v1988_v29 = vrot.slane %v12607_v9, 7 }
 0x222   : > { %v1779_v49 = vmax.f32 %v12615_v16, %v12690_v7  ;;  %v12698_v6 = vmax.f32 %v1777_v46, %v12690_v7  ;;  %v1839_v10 = vmax.f32 %v12625_v60, %v12690_v7  ;;  %v9560_v45 = vpop.f32.mrb[45].mxu0  ;;  %v4016_v15 = vpack.c.bf16 %v12690_v7, %v12663_v58  ;;  %v9672_v1 = vpop.f32.mrb[45].mxu1 }
 0x223   : > { %10984 = vrcp.f32 %v1611_v39  ;;  %v1612_v32 = vadd.f32 1.0, %v10975_v13  ;;  %v1571_v11 = vmul.f32 1.442695, %v1519_v12  ;;  %v1520_v25 = vsub.f32 0.0, %v12693_v48  ;;  %v9562_v59 = vpop.f32.mrb[46].mxu0  ;;  %v9674_v46 = vpop.f32.mrb[46].mxu1 }
 0x224   : > { %v10977_v3 = vpop.eup %10976  ;;  %v9561_v41 = vadd.f32 %v9560_v45, %v9559_v36  ;;  %v9673_v27 = vadd.f32 %v9672_v1, %v9671_v24  ;;  %4311 = vmatmul.mubr.bf16.gmra.mrb[88].mxu0 %v4016_v15  ;;  %4504 = vmatmul.mubr.bf16.gmra.mrb[88].mxu1 %v4016_v15  ;;  %v9563_v60 = vpop.f32.mrb[47].mxu0  ;;  %v12718_v12 = vld [vmem:[%s12041_s29] ss:$0 sm:$0xff] }
 0x225   : > { %v12713_v43 = vmul.f32 %v10977_v3, %v12499_v54  ;;  %10986 = vrcp.f32 %v1612_v32  ;;  %v1573_v30 = vmul.f32 1.442695, %v1520_v25  ;;  %v9564_v22 = vadd.f32 %v9563_v60, %v9562_v59  ;;  %v9675_v23 = vpop.f32.mrb[47].mxu1  ;;  %4320 = vmatprep.mubr.bf16.mxu0 %v16364_v2  ;;  %4513 = vmatprep.mubr.bf16.mxu1 %v16364_v2 }
 0x226   : > { %v10979_v39 = vpop.eup %10978  ;;  %10988 = vpow2.f32 %v1571_v11  ;;  %v1300_v4 = vadd.f32 %v12718_v12, %v9561_v41  ;;  %v9676_v8 = vadd.f32 %v9675_v23, %v9674_v46  ;;  %v12725_v54 = vmax.f32 %v1837_v38, %v12690_v7 }
 0x227   : > { %v10981_v31 = vpop.eup %10980  ;;  %v1780_v36 = vmax.f32 %v12663_v58, %v12713_v43  ;;  %v12730_v13 = vmax.f32 %v1778_v57, %v12713_v43  ;;  %v1840_v24 = vmax.f32 %v12685_v44, %v12713_v43  ;;  %v1870_v45 = vmax.f32 %v1838_v53, %v12713_v43 }
 0x228   : > { %v12737_v15 = vmul.f32 %v10979_v39, %v12516_v52  ;;  %v1613_v35 = vadd.f32 1.0, %v10981_v31  ;;  %10990 = vpow2.f32 %v1573_v30  ;;  %v12739_v16 = vadd.f32 %v9673_v27, %v1300_v4  ;;  %v9565_v58 = vpop.f32.mrb[48].mxu0 }
 0x229   : > { %1902 = vst [vmem:[#allocation4 + $0x78] sm:$0xff] %v1870_v45  ;;  %v1303_v38 = vadd.f32 %v12718_v12, %v9564_v22  ;;  %v12744_v57 = vsel %vm2022_vm0, %v1972_v55, %v1988_v29  ;;  %v12750_v44 = vsel %vm2022_vm0, %v2004_v5, %v1972_v55  ;;  %v2087_v52 = vrot.slane %v12579_v20, 6  ;;  %v9677_v1 = vpop.f32.mrb[48].mxu1  ;;  %v9566_v59 = vpop.f32.mrb[49].mxu0 }
 0x22a   : > { %v1781_v53 = vmax.f32 %v12690_v7, %v12737_v15  ;;  %v12756_v32 = vmax.f32 %v1779_v49, %v12737_v15  ;;  %v1841_v11 = vmax.f32 %v12698_v6, %v12737_v15  ;;  %v1871_v25 = vmax.f32 %v1839_v10, %v12737_v15  ;;  %v10983_v3 = vpop.eup %10982  ;;  %v9678_v27 = vpop.f32.mrb[49].mxu1 }
 0x22b   : > { %10992 = vrcp.f32 %v1613_v35  ;;  %v1521_v5 = vsub.f32 0.0, %v12739_v16  ;;  %v12762_v55 = vadd.f32 %v9676_v8, %v1303_v38  ;;  %v9567_v41 = vadd.f32 %v9566_v59, %v9565_v58  ;;  %v9568_v46 = vpop.f32.mrb[50].mxu0  ;;  %v9680_v60 = vpop.f32.mrb[50].mxu1 }
 0x22c   : > { %1903 = vst [vmem:[#allocation4 + $0x80] sm:$0xff] %v1871_v25  ;;  %v1614_v7 = vadd.f32 1.0, %v10983_v3  ;;  %v9679_v49 = vadd.f32 %v9678_v27, %v9677_v1  ;;  %v4017_v6 = vpack.c.bf16 %v12737_v15, %v12713_v43  ;;  %v9569_v29 = vpop.f32.mrb[51].mxu0  ;;  %v2055_v10 = vmax.f32 %v12579_v20, %v12750_v44  ;;  %v9681_v8 = vpop.f32.mrb[51].mxu1 }
 0x22d   : > { %v10985_v30 = vpop.eup %10984  ;;  %v1575_v22 = vmul.f32 1.442695, %v1521_v5  ;;  %v1522_v23 = vsub.f32 0.0, %v12762_v55  ;;  %v1308_v39 = vadd.f32 %v12718_v12, %v9567_v41  ;;  %v9570_v4 = vadd.f32 %v9569_v29, %v9568_v46 }
 0x22e   : > { %v12771_v31 = vmul.f32 %v10985_v30, %v12557_v63  ;;  %10994 = vrcp.f32 %v1614_v7  ;;  %4321 = vmatmul.mubr.bf16.gmra.mrb[92].mxu0 %v4017_v6  ;;  %4514 = vmatmul.mubr.bf16.gmra.mrb[92].mxu1 %v4017_v6  ;;  %v9682_v45 = vadd.f32 %v9681_v8, %v9680_v60  ;;  %v2056_v35 = vmax.f32 %v12607_v9, %v12744_v57 }
 0x22f   : > { %v10987_v38 = vpop.eup %10986  ;;  %10996 = vpow2.f32 %v1575_v22  ;;  %v1577_v58 = vmul.f32 1.442695, %v1522_v23  ;;  %v12775_v25 = vadd.f32 %v9679_v49, %v1308_v39  ;;  %v1311_v1 = vadd.f32 %v12718_v12, %v9570_v4  ;;  %4330 = vmatprep.mubr.bf16.mxu0 %v16364_v2  ;;  %4523 = vmatprep.mubr.bf16.mxu1 %v16364_v2 }
 0x230   : > { %v10989_v63 = vpop.eup %10988  ;;  %v1782_v59 = vmax.f32 %v12713_v43, %v12771_v31  ;;  %v12783_v3 = vmax.f32 %v1780_v36, %v12771_v31  ;;  %v1842_v5 = vmax.f32 %v12730_v13, %v12771_v31  ;;  %v1872_v41 = vmax.f32 %v1840_v24, %v12771_v31  ;;  %v9571_v49 = vpop.f32.mrb[52].mxu0 }
 0x231   : > { %v12789_v27 = vmul.f32 %v10987_v38, %v12583_v21  ;;  %v1615_v46 = vadd.f32 1.0, %v10989_v63  ;;  %10998 = vpow2.f32 %v1577_v58  ;;  %v1523_v7 = vsub.f32 0.0, %v12775_v25  ;;  %v9683_v43 = vpop.f32.mrb[52].mxu1  ;;  %v9572_v36 = vpop.f32.mrb[53].mxu0 }
 0x232   : > { %v10991_v60 = vpop.eup %10990  ;;  %1904 = vst [vmem:[#allocation4 + $0x90] sm:$0xff] %v1872_v41  ;;  %v12792_v6 = vadd.f32 %v9682_v45, %v1311_v1  ;;  %v2103_v29 = vrot.slane %v12607_v9, 6  ;;  %v16387_v13 = vrot.slane %v12353_v51, 6  ;;  %v9684_v4 = vpop.f32.mrb[53].mxu1 }
 0x233   : > { %v1783_v30 = vmax.f32 %v12737_v15, %v12789_v27  ;;  %v12805_v22 = vmax.f32 %v1781_v53, %v12789_v27  ;;  %v1843_v23 = vmax.f32 %v12756_v32, %v12789_v27  ;;  %v1873_v39 = vmax.f32 %v1841_v11, %v12789_v27  ;;  %v9574_v8 = vpop.f32.mrb[54].mxu0  ;;  %v9686_v1 = vpop.f32.mrb[54].mxu1 }
 0x234   : > { %v2152_v21 = vsel %vm2135_vm1, %v16387_v13, %v2087_v52  ;;  %11000 = vrcp.f32 %v1615_v46  ;;  %v1616_v45 = vadd.f32 1.0, %v10991_v60  ;;  %v1579_v38 = vmul.f32 1.442695, %v1523_v7  ;;  %v9575_v63 = vpop.f32.mrb[55].mxu0  ;;  %v9687_v32 = vpop.f32.mrb[55].mxu1 }
 0x235   : > { %v1524_v58 = vsub.f32 0.0, %v12792_v6  ;;  %v10993_v41 = vpop.eup %10992  ;;  %1905 = vst [vmem:[#allocation4 + $0x98] sm:$0xff] %v1873_v39  ;;  %v9573_v15 = vadd.f32 %v9572_v36, %v9571_v49  ;;  %v9685_v13 = vadd.f32 %v9684_v4, %v9683_v43  ;;  %v4018_v53 = vpack.c.bf16 %v12789_v27, %v12771_v31 }
 0x236   : > { %v9576_v24 = vadd.f32 %v9575_v63, %v9574_v8  ;;  %v12815_v11 = vmul.f32 %v10993_v41, %v12617_v0  ;;  %11002 = vrcp.f32 %v1616_v45  ;;  %v9688_v7 = vadd.f32 %v9687_v32, %v9686_v1 }
 0x237   : > { %v1581_v46 = vmul.f32 1.442695, %v1524_v58  ;;  %11004 = vpow2.f32 %v1579_v38  ;;  %v1316_v60 = vadd.f32 %v12718_v12, %v9573_v15  ;;  %4331 = vmatmul.mubr.bf16.gmra.mrb[96].mxu0 %v4018_v53  ;;  %4524 = vmatmul.mubr.bf16.gmra.mrb[96].mxu1 %v4018_v53  ;;  %v2136_v43 = vsel %vm2135_vm1, %v2087_v52, %v2103_v29 }
 0x238   : > { %v1319_v49 = vadd.f32 %v12718_v12, %v9576_v24  ;;  %v10995_v36 = vpop.eup %10994  ;;  %v1784_v0 = vmax.f32 %v12771_v31, %v12815_v11  ;;  %v12826_v39 = vmax.f32 %v1782_v59, %v12815_v11  ;;  %v1844_v4 = vmax.f32 %v12783_v3, %v12815_v11  ;;  %4340 = vmatprep.mubr.bf16.mxu0 %v16364_v2  ;;  %v9577_v31 = vpop.f32.mrb[56].mxu0 }
 0x239   : > { %v1874_v8 = vmax.f32 %v1842_v5, %v12815_v11  ;;  %v10997_v24 = vpop.eup %10996  ;;  %v12833_v45 = vmul.f32 %v10995_v36, %v12630_v34  ;;  %11006 = vpow2.f32 %v1581_v46  ;;  %v12835_v52 = vadd.f32 %v9685_v13, %v1316_v60  ;;  %4533 = vmatprep.mubr.bf16.mxu1 %v16364_v2  ;;  %v9689_v38 = vpop.f32.mrb[56].mxu1 }
 0x23a   : > { %v12837_v29 = vadd.f32 %v9688_v7, %v1319_v49  ;;  %v1617_v59 = vadd.f32 1.0, %v10997_v24  ;;  %v9578_v3 = vpop.f32.mrb[57].mxu0  ;;  %v12843_v5 = vmax.f32 %v2055_v10, %v2152_v21  ;;  %v12848_v34 = vmax.f32 %v2056_v35, %v2136_v43  ;;  %v9690_v10 = vpop.f32.mrb[57].mxu1 }
 0x23b   : > { %1906 = vst [vmem:[#allocation4 + $0xa8] sm:$0xff] %v1874_v8  ;;  %v2216_v58 = vrot.slane %v12607_v9, 2  ;;  %v10999_v1 = vpop.eup %10998  ;;  %v1785_v63 = vmax.f32 %v12789_v27, %v12833_v45  ;;  %v12854_v41 = vmax.f32 %v1783_v30, %v12833_v45  ;;  %v1845_v15 = vmax.f32 %v12805_v22, %v12833_v45  ;;  %v9580_v21 = vpop.f32.mrb[58].mxu0 }
 0x23c   : > { %v1875_v44 = vmax.f32 %v1843_v23, %v12833_v45  ;;  %11008 = vrcp.f32 %v1617_v59  ;;  %v1618_v57 = vadd.f32 1.0, %v10999_v1  ;;  %v1525_v35 = vsub.f32 0.0, %v12835_v52  ;;  %v9692_v53 = vpop.f32.mrb[58].mxu1  ;;  %v9581_v32 = vpop.f32.mrb[59].mxu0 }
 0x23d   : > { %v1526_v13 = vsub.f32 0.0, %v12837_v29  ;;  %v9579_v27 = vadd.f32 %v9578_v3, %v9577_v31  ;;  %v9691_v46 = vadd.f32 %v9690_v10, %v9689_v38  ;;  %v4019_v30 = vpack.c.bf16 %v12833_v45, %v12815_v11  ;;  %v9693_v22 = vpop.f32.mrb[59].mxu1 }
 0x23e   : > { %1907 = vst [vmem:[#allocation4 + $0xb0] sm:$0xff] %v1875_v44  ;;  %v9582_v7 = vadd.f32 %v9581_v32, %v9580_v21  ;;  %v11001_v60 = vpop.eup %11000  ;;  %11010 = vrcp.f32 %v1618_v57  ;;  %v1583_v23 = vmul.f32 1.442695, %v1525_v35  ;;  %v9694_v43 = vadd.f32 %v9693_v22, %v9692_v53 }
 0x23f   : > { %v1585_v49 = vmul.f32 1.442695, %v1526_v13  ;;  %v12864_v36 = vmul.f32 %v11001_v60, %v12672_v37  ;;  %v1324_v8 = vadd.f32 %v12718_v12, %v9579_v27  ;;  %4341 = vmatmul.mubr.bf16.gmra.mrb[100].mxu0 %v4019_v30  ;;  %4534 = vmatmul.mubr.bf16.gmra.mrb[100].mxu1 %v4019_v30  ;;  %v2313_v31 = vrot.slane %v12579_v20, 1 }
 0x240   : > { %v1327_v24 = vadd.f32 %v12718_v12, %v9582_v7  ;;  %v11003_v59 = vpop.eup %11002  ;;  %11012 = vpow2.f32 %v1583_v23  ;;  %4350 = vmatprep.mubr.bf16.mxu0 %v16364_v2  ;;  %4543 = vmatprep.mubr.bf16.mxu1 %v16364_v2  ;;  %v16388_v38 = vrot.slane %v12353_v51, 2  ;;  %v16389_v3 = vrot.slane %v12579_v20, 2  ;;  %v9583_v53 = vpop.f32.mrb[60].mxu0 }
 0x241   : > { %v2329_v44 = vrot.slane %v12607_v9, 1  ;;  %v11005_v10 = vpop.eup %11004  ;;  %v1786_v21 = vmax.f32 %v12815_v11, %v12864_v36  ;;  %v12888_v57 = vmax.f32 %v1784_v0, %v12864_v36  ;;  %v1846_v35 = vmax.f32 %v12826_v39, %v12864_v36  ;;  %v9695_v30 = vpop.f32.mrb[60].mxu1 }
 0x242   : > { %v12875_v37 = vsel %vm2248_vm2, %v2216_v58, %v16388_v38  ;;  %v12881_v1 = vsel %vm2248_vm2, %v16389_v3, %v2216_v58  ;;  %v1876_v13 = vmax.f32 %v1844_v4, %v12864_v36  ;;  %v12894_v58 = vmul.f32 %v11003_v59, %v12693_v48  ;;  %v9584_v7 = vpop.f32.mrb[61].mxu0  ;;  %v9696_v60 = vpop.f32.mrb[61].mxu1 }
 0x243   : > { %v1619_v32 = vadd.f32 1.0, %v11005_v10  ;;  %11014 = vpow2.f32 %v1585_v49  ;;  %v12896_v27 = vadd.f32 %v9691_v46, %v1324_v8  ;;  %v11007_v22 = vpop.eup %11006  ;;  %v12898_v11 = vadd.f32 %v9694_v43, %v1327_v24  ;;  %v9586_v23 = vpop.f32.mrb[62].mxu0 }
 0x244   : > { %1908 = vst [vmem:[#allocation4 + $0xc0] sm:$0xff] %v1876_v13  ;;  %v9585_v0 = vadd.f32 %v9584_v7, %v9583_v53  ;;  %v2281_v39 = vmax.f32 %v12843_v5, %v12881_v1  ;;  %v2282_v48 = vmax.f32 %v12848_v34, %v12875_v37  ;;  %v1787_v4 = vmax.f32 %v12833_v45, %v12894_v58  ;;  %v9698_v8 = vpop.f32.mrb[62].mxu1  ;;  %v9587_v24 = vpop.f32.mrb[63].mxu0 }
 0x245   : > { %v12907_v46 = vmax.f32 %v1785_v63, %v12894_v58  ;;  %v1847_v49 = vmax.f32 %v12854_v41, %v12894_v58  ;;  %v1877_v43 = vmax.f32 %v1845_v15, %v12894_v58  ;;  %11016 = vrcp.f32 %v1619_v32  ;;  %v9699_v34 = vpop.f32.mrb[63].mxu1 }
 0x246   : > { %v1620_v59 = vadd.f32 1.0, %v11007_v22  ;;  %v1527_v5 = vsub.f32 0.0, %v12896_v27  ;;  %v1528_v38 = vsub.f32 0.0, %v12898_v11  ;;  %v11009_v37 = vpop.eup %11008  ;;  %v1332_v45 = vadd.f32 %v12718_v12, %v9585_v0 }
 0x247   : > { %1909 = vst [vmem:[#allocation4 + $0xc8] sm:$0xff] %v1877_v43  ;;  %v9697_v63 = vadd.f32 %v9696_v60, %v9695_v30  ;;  %v4020_v3 = vpack.c.bf16 %v12894_v58, %v12864_v36  ;;  %v9588_v41 = vadd.f32 %v9587_v24, %v9586_v23  ;;  %v12918_v15 = vmul.f32 %v11009_v37, %v12739_v16 }
 0x248   : > { %11018 = vrcp.f32 %v1620_v59  ;;  %v1587_v1 = vmul.f32 1.442695, %v1527_v5  ;;  %v1589_v10 = vmul.f32 1.442695, %v1528_v38  ;;  %v11011_v13 = vpop.eup %11010  ;;  %v9700_v7 = vadd.f32 %v9699_v34, %v9698_v8 }
 0x249   : > { %v12920_v53 = vadd.f32 %v9697_v63, %v1332_v45  ;;  %4351 = vmatmul.mubr.bf16.gmra.mrb[104].mxu0 %v4020_v3  ;;  %4544 = vmatmul.mubr.bf16.gmra.mrb[104].mxu1 %v4020_v3  ;;  %v1335_v32 = vadd.f32 %v12718_v12, %v9588_v41  ;;  %v1973_v30 = vrot.slane %v12638_v40, 7  ;;  %v1788_v22 = vmax.f32 %v12864_v36, %v12918_v15 }
 0x24a   : > { %v12927_v0 = vmax.f32 %v1786_v21, %v12918_v15  ;;  %v1848_v16 = vmax.f32 %v12888_v57, %v12918_v15  ;;  %v1878_v60 = vmax.f32 %v1846_v35, %v12918_v15  ;;  %4360 = vmatprep.mubr.bf16.mxu0 %v16364_v2  ;;  %v11013_v23 = vpop.eup %11012  ;;  %v12934_v43 = vmul.f32 %v11011_v13, %v12762_v55 }
 0x24b   : > { %11020 = vpow2.f32 %v1587_v1  ;;  %v1529_v12 = vsub.f32 0.0, %v12920_v53  ;;  %v12937_v8 = vadd.f32 %v9700_v7, %v1335_v32  ;;  %4553 = vmatprep.mubr.bf16.mxu1 %v16364_v2  ;;  %v1621_v36 = vadd.f32 1.0, %v11013_v23 }
 0x24c   : > { %1910 = vst [vmem:[#allocation4 + $0xd8] sm:$0xff] %v1878_v60  ;;  %11022 = vpow2.f32 %v1589_v10  ;;  %v16390_v21 = vrot.slane %v12353_v51, 1  ;;  %v2378_v55 = vsel %vm2361_vm3, %v2313_v31, %v2329_v44  ;;  %v1789_v24 = vmax.f32 %v12894_v58, %v12934_v43 }
 0x24d   : > { %v11015_v35 = vpop.eup %11014  ;;  %v12955_v59 = vmax.f32 %v1787_v4, %v12934_v43  ;;  %v1849_v51 = vmax.f32 %v12907_v46, %v12934_v43  ;;  %v1879_v5 = vmax.f32 %v1847_v49, %v12934_v43  ;;  %11024 = vrcp.f32 %v1621_v36 }
 0x24e   : > { %v2362_v57 = vsel %vm2361_vm3, %v2329_v44, %v16390_v21  ;;  %v1622_v38 = vadd.f32 1.0, %v11015_v35  ;;  %v1591_v9 = vmul.f32 1.442695, %v1529_v12  ;;  %v1530_v20 = vsub.f32 0.0, %v12937_v8 }
 0x24f   : > { %1911 = vst [vmem:[#allocation4 + $0xe0] sm:$0xff] %v1879_v5  ;;  %v4021_v31 = vpack.c.bf16 %v12934_v43, %v12918_v15  ;;  %v2394_v44 = vmax.f32 %v2281_v39, %v2378_v55  ;;  %v2395_v34 = vmax.f32 %v2282_v48, %v2362_v57  ;;  %v1989_v58 = vrot.slane %v12644_v50, 7  ;;  %v11017_v4 = vpop.eup %11016 }
 0x250   : > { %11026 = vrcp.f32 %v1622_v38  ;;  %v1593_v37 = vmul.f32 1.442695, %v1530_v20  ;;  %v16391_v46 = vrot.slane %v12361_v62, 7  ;;  %v2088_v45 = vrot.slane %v12638_v40, 6 }
 0x251   : > { %v12970_v63 = vmul.f32 %v11017_v4, %v12775_v25  ;;  %11028 = vpow2.f32 %v1591_v9  ;;  %4361 = vmatmul.mubr.bf16.gmra.mrb[108].mxu0 %v4021_v31  ;;  %4554 = vmatmul.mubr.bf16.gmra.mrb[108].mxu1 %v4021_v31  ;;  %2426 = vst [vmem:[#allocation3 + $0x20] sm:$0xff] %v2394_v44  ;;  %2427 = vst [vmem:[#allocation3 + $0x28] sm:$0xff] %v2395_v34  ;;  %v12972_v39 = vpack.c.bf16 %v2395_v34, %v2394_v44 }
 0x252   : > { %v2040_v49 = vsel %vm2022_vm0, %v16391_v46, %v1973_v30  ;;  %v2024_v48 = vsel %vm2022_vm0, %v1973_v30, %v1989_v58  ;;  %v11019_v3 = vpop.eup %11018  ;;  %11030 = vpow2.f32 %v1593_v37  ;;  %4370 = vmatprep.mubr.bf16.mxu0 %v16364_v2  ;;  %4563 = vmatprep.mubr.bf16.mxu1 %v16364_v2  ;;  %v2104_v1 = vrot.slane %v12644_v50, 6 }
 0x253   : > { %v2057_v41 = vmax.f32 %v12638_v40, %v2040_v49  ;;  %v2058_v25 = vmax.f32 %v12644_v50, %v2024_v48  ;;  %v1790_v10 = vmax.f32 %v12918_v15, %v12970_v63  ;;  %v12984_v13 = vmax.f32 %v1788_v22, %v12970_v63 }
 0x254   : > { %v1850_v32 = vmax.f32 %v12927_v0, %v12970_v63  ;;  %v1880_v7 = vmax.f32 %v1848_v16, %v12970_v63  ;;  %v12990_v30 = vmul.f32 %v11019_v3, %v12792_v6  ;;  %v2137_v60 = vsel %vm2135_vm1, %v2088_v45, %v2104_v1 }
 0x255   : > { %v16392_v23 = vrot.slane %v12361_v62, 6  ;;  %v2201_v15 = vrot.slane %v12638_v40, 2  ;;  %v11021_v22 = vpop.eup %11020  ;;  %v2171_v21 = vmax.f32 %v2058_v25, %v2137_v60  ;;  %v2217_v0 = vrot.slane %v12644_v50, 2 }
 0x256   : > { %1912 = vst [vmem:[#allocation4 + $0xf0] sm:$0xff] %v1880_v7  ;;  %v2314_v16 = vrot.slane %v12638_v40, 1  ;;  %v11023_v6 = vpop.eup %11022  ;;  %v1791_v57 = vmax.f32 %v12934_v43, %v12990_v30  ;;  %v13004_v55 = vmax.f32 %v1789_v24, %v12990_v30  ;;  %v1851_v35 = vmax.f32 %v12955_v59, %v12990_v30 }
 0x257   : > { %v2153_v12 = vsel %vm2135_vm1, %v16392_v23, %v2088_v45  ;;  %v1881_v5 = vmax.f32 %v1849_v51, %v12990_v30  ;;  %v1623_v38 = vadd.f32 1.0, %v11021_v22  ;;  %v1624_v9 = vadd.f32 1.0, %v11023_v6  ;;  %v11025_v44 = vpop.eup %11024 }
 0x258   : > { %v2170_v36 = vmax.f32 %v2057_v41, %v2153_v12  ;;  %v4022_v20 = vpack.c.bf16 %v12990_v30, %v12970_v63  ;;  %v16393_v31 = vrot.slane %v12361_v62, 2  ;;  %v2266_v43 = vsel %vm2248_vm2, %v2201_v15, %v2217_v0 }
 0x259   : > { %1913 = vst [vmem:[#allocation4 + $0xf8] sm:$0xff] %v1881_v5  ;;  %v2330_v59 = vrot.slane %v12644_v50, 1  ;;  %v1974_v51 = vrot.slane %v12651_v19, 7  ;;  %v13020_v34 = vmul.f32 %v11025_v44, %v12835_v52  ;;  %11032 = vrcp.f32 %v1623_v38 }
 0x25a   : > { %v2250_v40 = vsel %vm2248_vm2, %v2217_v0, %v16393_v31  ;;  %4371 = vmatmul.mubr.bf16.gmra.mrb[112].mxu0 %v4022_v20  ;;  %4564 = vmatmul.mubr.bf16.gmra.mrb[112].mxu1 %v4022_v20  ;;  %v2283_v58 = vmax.f32 %v2170_v36, %v2266_v43  ;;  %v1990_v4 = vrot.slane %v12660_v42, 7  ;;  %v11027_v37 = vpop.eup %11026  ;;  %11034 = vrcp.f32 %v1624_v9 }
 0x25b   : > { %v2284_v24 = vmax.f32 %v2171_v21, %v2250_v40  ;;  %4380 = vmatprep.mubr.bf16.mxu0 %v16364_v2  ;;  %4573 = vmatprep.mubr.bf16.mxu1 %v16364_v2  ;;  %v16394_v46 = vrot.slane %v12361_v62, 1  ;;  %v2379_v52 = vsel %vm2361_vm3, %v2314_v16, %v2330_v59  ;;  %v16395_v49 = vrot.slane %v12376_v17, 7  ;;  %v11029_v48 = vpop.eup %11028 }
 0x25c   : > { %v1882_v3 = vmax.f32 %v1850_v32, %v13020_v34  ;;  %v13037_v41 = vmul.f32 %v11027_v37, %v12837_v29  ;;  %v1852_v62 = vmax.f32 %v12984_v13, %v13020_v34  ;;  %v1792_v25 = vmax.f32 %v12970_v63, %v13020_v34  ;;  %v11031_v1 = vpop.eup %11030 }
 0x25d   : > { %v2363_v50 = vsel %vm2361_vm3, %v2330_v59, %v16394_v46  ;;  %v2041_v45 = vsel %vm2022_vm0, %v16395_v49, %v1974_v51  ;;  %v1625_v7 = vadd.f32 1.0, %v11029_v48  ;;  %v13044_v60 = vmax.f32 %v1790_v10, %v13020_v34 }
 0x25e   : > { %v2396_v23 = vmax.f32 %v2283_v58, %v2379_v52  ;;  %v2397_v12 = vmax.f32 %v2284_v24, %v2363_v50  ;;  %1914 = vst [vmem:[#allocation4 + $0x108] sm:$0xff] %v1882_v3  ;;  %v1883_v15 = vmax.f32 %v1851_v35, %v13037_v41  ;;  %v1853_v29 = vmax.f32 %v13004_v55, %v13037_v41 }
 0x25f   : > { %v1626_v32 = vadd.f32 1.0, %v11031_v1  ;;  %v1793_v13 = vmax.f32 %v12990_v30, %v13037_v41  ;;  %11036 = vrcp.f32 %v1625_v7  ;;  %v13052_v63 = vmax.f32 %v1791_v57, %v13037_v41 }
 0x260   : > { %v4023_v10 = vpack.c.bf16 %v13037_v41, %v13020_v34  ;;  %2428 = vst [vmem:[#allocation3 + $0x30] sm:$0xff] %v2396_v23  ;;  %2429 = vst [vmem:[#allocation3 + $0x38] sm:$0xff] %v2397_v12  ;;  %v13056_v22 = vpack.c.bf16 %v2397_v12, %v2396_v23  ;;  %v2025_v36 = vsel %vm2022_vm0, %v1974_v51, %v1990_v4  ;;  %v2089_v30 = vrot.slane %v12651_v19, 6 }
 0x261   : > { %1915 = vst [vmem:[#allocation4 + $0x110] sm:$0xff] %v1883_v15  ;;  %11038 = vrcp.f32 %v1626_v32  ;;  %v2059_v21 = vmax.f32 %v12651_v19, %v2041_v45  ;;  %v2060_v0 = vmax.f32 %v12660_v42, %v2025_v36  ;;  %v2105_v16 = vrot.slane %v12660_v42, 6 }
 0x262   : > { %v2202_v6 = vrot.slane %v12651_v19, 2  ;;  %v2218_v57 = vrot.slane %v12660_v42, 2  ;;  %4381 = vmatmul.mubr.bf16.gmra.mrb[116].mxu0 %v4023_v10  ;;  %4574 = vmatmul.mubr.bf16.gmra.mrb[116].mxu1 %v4023_v10  ;;  %v16396_v55 = vrot.slane %v12376_v17, 6  ;;  %v2315_v5 = vrot.slane %v12651_v19, 1 }
 0x263   : > { %v2331_v38 = vrot.slane %v12660_v42, 1  ;;  %v1975_v9 = vrot.slane %v12669_v28, 7  ;;  %4390 = vmatprep.mubr.bf16.mxu0 %v16364_v2  ;;  %4583 = vmatprep.mubr.bf16.mxu1 %v16364_v2  ;;  %v2138_v20 = vsel %vm2135_vm1, %v2089_v30, %v2105_v16  ;;  %v16397_v40 = vrot.slane %v12376_v17, 2  ;;  %v11033_v19 = vpop.eup %11032 }
 0x264   : > { %v2154_v35 = vsel %vm2135_vm1, %v16396_v55, %v2089_v30  ;;  %v1991_v43 = vrot.slane %v12679_v18, 7  ;;  %v2173_v24 = vmax.f32 %v2060_v0, %v2138_v20  ;;  %v2267_v42 = vsel %vm2248_vm2, %v2202_v6, %v2218_v57  ;;  %v11035_v4 = vpop.eup %11034  ;;  %v1760_v0 = vld [vmem:[#allocation3 + $0x120] sm:$0xff]  ;;  %v1761_v55 = vld [vmem:[#allocation3 + $0x128] sm:$0xff] }
 0x265   : > { %v2172_v31 = vmax.f32 %v2059_v21, %v2154_v35  ;;  %v2251_v44 = vsel %vm2248_vm2, %v2218_v57, %v16397_v40  ;;  %v16398_v59 = vrot.slane %v12376_v17, 1  ;;  %v2380_v58 = vsel %vm2361_vm3, %v2315_v5, %v2331_v38 }
 0x266   : > { %v13091_v37 = vmul.f32 %v11033_v19, %v12896_v27  ;;  %v2026_v50 = vsel %vm2022_vm0, %v1975_v9, %v1991_v43  ;;  %v16399_v52 = vrot.slane %v12394_v56, 7  ;;  %v13100_v17 = vmul.f32 %v11035_v4, %v12898_v11 }
 0x267   : > { %v2364_v51 = vsel %vm2361_vm3, %v2331_v38, %v16398_v59  ;;  %v2285_v46 = vmax.f32 %v2172_v31, %v2267_v42  ;;  %v2286_v45 = vmax.f32 %v2173_v24, %v2251_v44  ;;  %v2062_v3 = vmax.f32 %v12679_v18, %v2026_v50 }
 0x268   : > { %v2042_v49 = vsel %vm2022_vm0, %v16399_v52, %v1975_v9  ;;  %v1884_v27 = vmax.f32 %v1852_v62, %v13091_v37  ;;  %v1824_v1 = vmax.f32 %v1792_v25, %v13091_v37  ;;  %v1854_v7 = vmax.f32 %v13044_v60, %v13091_v37 }
 0x269   : > { %v2061_v48 = vmax.f32 %v12669_v28, %v2042_v49  ;;  %v2398_v23 = vmax.f32 %v2285_v46, %v2380_v58  ;;  %v1885_v12 = vmax.f32 %v1853_v29, %v13100_v17  ;;  %v1825_v15 = vmax.f32 %v1793_v13, %v13100_v17  ;;  %v11037_v10 = vpop.eup %11036 }
 0x26a   : > { %v1855_v11 = vmax.f32 %v13052_v63, %v13100_v17  ;;  %v4024_v32 = vpack.c.bf16 %v13100_v17, %v13091_v37  ;;  %1916 = vst [vmem:[#allocation4 + $0x120] sm:$0xff] %v1884_v27  ;;  %v2399_v36 = vmax.f32 %v2286_v45, %v2364_v51  ;;  %v2090_v62 = vrot.slane %v12669_v28, 6 }
 0x26b   : > { %2430 = vst [vmem:[#allocation3 + $0x40] sm:$0xff] %v2398_v23  ;;  %v2106_v25 = vrot.slane %v12679_v18, 6  ;;  %v2203_v60 = vrot.slane %v12669_v28, 2  ;;  %v11039_v21 = vpop.eup %11038  ;;  %1917 = vst [vmem:[#allocation4 + $0x128] sm:$0xff] %v1885_v12  ;;  %v13118_v29 = vmul.f32 %v11037_v10, %v12920_v53  ;;  %v2219_v13 = vrot.slane %v12679_v18, 2 }
 0x26c   : > { %4391 = vmatmul.mubr.bf16.gmra.mrb[120].mxu0 %v4024_v32  ;;  %4584 = vmatmul.mubr.bf16.gmra.mrb[120].mxu1 %v4024_v32  ;;  %v2316_v63 = vrot.slane %v12669_v28, 1  ;;  %v2332_v30 = vrot.slane %v12679_v18, 1  ;;  %v13124_v16 = vmul.f32 %v11039_v21, %v12937_v8  ;;  %2431 = vst [vmem:[#allocation3 + $0x48] sm:$0xff] %v2399_v36  ;;  %v13128_v6 = vpack.c.bf16 %v2399_v36, %v2398_v23  ;;  %v13175_v32 = vld [vmem:[#allocation4 + $0x80] sm:$0xff] }
 0x26d   : > { %4400 = vmatprep.mubr.bf16.mxu0 %v16364_v2  ;;  %4593 = vmatprep.mubr.bf16.mxu1 %v16364_v2  ;;  %v2139_v53 = vsel %vm2135_vm1, %v2090_v62, %v2106_v25  ;;  %v1976_v57 = vrot.slane %v12709_v26, 7  ;;  %v1856_v28 = vmax.f32 %v1824_v1, %v13118_v29  ;;  %v1886_v18 = vmax.f32 %v1854_v7, %v13118_v29  ;;  %v13164_v1 = vld [vmem:[#allocation4 + $0x78] sm:$0xff] }
 0x26e   : > { %v16400_v8 = vrot.slane %v12394_v56, 6  ;;  %v2175_v5 = vmax.f32 %v2062_v3, %v2139_v53  ;;  %v1857_v38 = vmax.f32 %v1825_v15, %v13124_v16  ;;  %v1887_v9 = vmax.f32 %v1855_v11, %v13124_v16 }
 0x26f   : > { %v4025_v20 = vpack.c.bf16 %v13124_v16, %v13118_v29  ;;  %v1888_v40 = vmax.f32 %v1856_v28, %v1760_v0  ;;  %1918 = vst [vmem:[#allocation4 + $0x138] sm:$0xff] %v1886_v18  ;;  %v16401_v44 = vrot.slane %v12394_v56, 2  ;;  %v2268_v19 = vsel %vm2248_vm2, %v2203_v60, %v2219_v13  ;;  %v10816_v18 = vld [vmem:[%s12043_s14 + $0x200] ss:$16 sps:$4 sm:$0xff]  }
 0x270   : > { %v2155_v35 = vsel %vm2135_vm1, %v16400_v8, %v2090_v62  ;;  %v16402_v24 = vrot.slane %v12394_v56, 1  ;;  %v1889_v59 = vmax.f32 %v1857_v38, %v1761_v55  ;;  %1919 = vst [vmem:[#allocation4 + $0x140] sm:$0xff] %v1887_v9  ;;  %v2381_v4 = vsel %vm2361_vm3, %v2316_v63, %v2332_v30  ;;  %v10819_v38 = vld [vmem:[%s12043_s14 + $0x208] ss:$16 sps:$4 sm:$0xff]  }
 0x271   : > { %v2174_v31 = vmax.f32 %v2061_v48, %v2155_v35  ;;  %v2252_v43 = vsel %vm2248_vm2, %v2219_v13, %v16401_v44  ;;  %1920 = vst [vmem:[#allocation4 + $0x150] sm:$0xff] %v1888_v40  ;;  %v1992_v46 = vrot.slane %v12725_v54, 7  ;;  %v16403_v50 = vrot.slane %v12405_v14, 7  ;;  %v13209_v40 = vld [vmem:[#allocation4 + $0x90] sm:$0xff]  ;;  %v13211_v44 = vld [vmem:[#allocation4 + $0x98] sm:$0xff] }
 0x272   : > { %v2365_v42 = vsel %vm2361_vm3, %v2332_v30, %v16402_v24  ;;  %v2288_v58 = vmax.f32 %v2175_v5, %v2252_v43  ;;  %v2091_v56 = vrot.slane %v12709_v26, 6  ;;  %v2107_v49 = vrot.slane %v12725_v54, 6  ;;  %1921 = vst [vmem:[#allocation4 + $0x158] sm:$0xff] %v1889_v59 }
 0x273   : > { %v2287_v51 = vmax.f32 %v2174_v31, %v2268_v19  ;;  %v2043_v52 = vsel %vm2022_vm0, %v16403_v50, %v1976_v57  ;;  %v2204_v27 = vrot.slane %v12709_v26, 2  ;;  %v2027_v7 = vsel %vm2022_vm0, %v1976_v57, %v1992_v46 }
 0x274   : > { %v2401_v48 = vmax.f32 %v2288_v58, %v2365_v42  ;;  %v2063_v3 = vmax.f32 %v12709_v26, %v2043_v52  ;;  %4401 = vmatmul.mubr.bf16.gmra.mrb[124].mxu0 %v4025_v20  ;;  %4594 = vmatmul.mubr.bf16.gmra.mrb[124].mxu1 %v4025_v20  ;;  %v2140_v23 = vsel %vm2135_vm1, %v2091_v56, %v2107_v49  ;;  %v16404_v12 = vrot.slane %v12405_v14, 6  ;;  %v10827_v58 = vld [vmem:[%s12043_s14 + $0x22c] ss:$16 sps:$4 sm:$0xff]  }
 0x275   : > { %v2400_v45 = vmax.f32 %v2287_v51, %v2381_v4  ;;  %v2220_v11 = vrot.slane %v12725_v54, 2  ;;  %5229 = vmatprep.mubr.bf16.mxu0 %v16364_v2  ;;  %5422 = vmatprep.mubr.bf16.mxu1 %v16364_v2  ;;  %v2064_v36 = vmax.f32 %v12725_v54, %v2027_v7  ;;  %v2317_v25 = vrot.slane %v12709_v26, 1  ;;  %v10824_v51 = vld [vmem:[%s12043_s14 + $0x224] ss:$16 sps:$4 sm:$0xff]  }
 0x276   : > { %v2156_v15 = vsel %vm2135_vm1, %v16404_v12, %v2091_v56  ;;  %2433 = vst [vmem:[#allocation3 + $0x58] sm:$0xff] %v2401_v48  ;;  %v16405_v60 = vrot.slane %v12405_v14, 2  ;;  %v2333_v63 = vrot.slane %v12725_v54, 1  ;;  %v1977_v30 = vrot.slane %v13164_v1, 7 }
 0x277   : > { %2432 = vst [vmem:[#allocation3 + $0x50] sm:$0xff] %v2400_v45  ;;  %v13179_v10 = vpack.c.bf16 %v2401_v48, %v2400_v45  ;;  %v2176_v62 = vmax.f32 %v2063_v3, %v2156_v15  ;;  %v2269_v13 = vsel %vm2248_vm2, %v2204_v27, %v2220_v11  ;;  %v2177_v0 = vmax.f32 %v2064_v36, %v2140_v23  ;;  %v10822_v3 = vld [vmem:[%s12043_s14 + $0x220] ss:$16 sps:$4 sm:$0xff]   ;;  %v10825_v27 = vld [vmem:[%s12043_s14 + $0x228] ss:$16 sps:$4 sm:$0xff]  }
 0x278   : > { %v2253_v21 = vsel %vm2248_vm2, %v2220_v11, %v16405_v60  ;;  %v1993_v57 = vrot.slane %v13175_v32, 7  ;;  %v2092_v28 = vrot.slane %v13164_v1, 6  ;;  %v16406_v26 = vrot.slane %v12405_v14, 1  ;;  %v10830_v15 = vld [vmem:[%s12043_s14 + $0x244] ss:$16 sps:$4 sm:$0xff]  }
 0x279   : > { %v2289_v53 = vmax.f32 %v2176_v62, %v2269_v13  ;;  %v2382_v8 = vsel %vm2361_vm3, %v2317_v25, %v2333_v63  ;;  %v16407_v54 = vrot.slane %v12467_v33, 7  ;;  %v2108_v5 = vrot.slane %v13175_v32, 6  ;;  %v10833_v11 = vld [vmem:[%s12043_s14 + $0x24c] ss:$16 sps:$4 sm:$0xff]  }
 0x27a   : > { %v2366_v55 = vsel %vm2361_vm3, %v2333_v63, %v16406_v26  ;;  %v2290_v9 = vmax.f32 %v2177_v0, %v2253_v21  ;;  %v2028_v14 = vsel %vm2022_vm0, %v1977_v30, %v1993_v57  ;;  %v16408_v24 = vrot.slane %v12467_v33, 6  ;;  %v10828_v26 = vld [vmem:[%s12043_s14 + $0x240] ss:$16 sps:$4 sm:$0xff]  }
 0x27b   : > { %v2044_v35 = vsel %vm2022_vm0, %v16407_v54, %v1977_v30  ;;  %v2402_v20 = vmax.f32 %v2289_v53, %v2382_v8  ;;  %v2066_v43 = vmax.f32 %v13175_v32, %v2028_v14  ;;  %v2141_v19 = vsel %vm2135_vm1, %v2092_v28, %v2108_v5  ;;  %v13273_v5 = vld [vmem:[#allocation4 + $0xb0] sm:$0xff] }
 0x27c   : > { %v2065_v31 = vmax.f32 %v13164_v1, %v2044_v35  ;;  %v2157_v42 = vsel %vm2135_vm1, %v16408_v24, %v2092_v28  ;;  %v2205_v59 = vrot.slane %v13164_v1, 2  ;;  %v2403_v4 = vmax.f32 %v2290_v9, %v2366_v55  ;;  %5230 = vmatmul.mubr.bf16.vlgmr.msra.gmra.mrb[64].mxu0 %v12972_v39  ;;  %5423 = vmatmul.mubr.bf16.vlgmr.msra.gmra.mrb[64].mxu1 %v12972_v39  ;;  %v13271_v35 = vld [vmem:[#allocation4 + $0xa8] sm:$0xff] }
 0x27d   : > { %2434 = vst [vmem:[#allocation3 + $0x60] sm:$0xff] %v2402_v20  ;;  %v2221_v50 = vrot.slane %v13175_v32, 2  ;;  %v2318_v52 = vrot.slane %v13164_v1, 1  ;;  %v2179_v56 = vmax.f32 %v2066_v43, %v2141_v19  ;;  %v2334_v49 = vrot.slane %v13175_v32, 1  ;;  %6177 = vmatpush1.bf16.msra.mxu0 %v10816_v18  ;;  %6370 = vmatpush1.bf16.msra.mxu1 %v10819_v38  ;;  %v10831_v38 = vld [vmem:[%s12043_s14 + $0x248] ss:$16 sps:$4 sm:$0xff]  }
 0x27e   : > { %v2178_v46 = vmax.f32 %v2065_v31, %v2157_v42  ;;  %v1978_v45 = vrot.slane %v13209_v40, 7  ;;  %v1994_v48 = vrot.slane %v13211_v44, 7  ;;  %2435 = vst [vmem:[#allocation3 + $0x68] sm:$0xff] %v2403_v4  ;;  %v13232_v7 = vpack.c.bf16 %v2403_v4, %v2402_v20  ;;  %5239 = vmatprep.mubr.bf16.mxu0 %v16364_v2  ;;  %5432 = vmatprep.mubr.bf16.mxu1 %v16364_v2  ;;  %v10836_v20 = vld [vmem:[%s12043_s14 + $0x264] ss:$16 sps:$4 sm:$0xff]   ;;  %v13281_v19 = vld [vmem:[#allocation4 + $0xb8] sm:$0xff] }
 0x27f   : > { %v16409_v1 = vrot.slane %v12467_v33, 2  ;;  %v2270_v23 = vsel %vm2248_vm2, %v2205_v59, %v2221_v50  ;;  %v2093_v12 = vrot.slane %v13209_v40, 6  ;;  %v16410_v62 = vrot.slane %v12467_v33, 1  ;;  %6178 = vmatprep.subr.bf16.mxu0 %v10824_v51  ;;  %6371 = vmatprep.subr.bf16.mxu1 %v10827_v58  ;;  %v11041_v33 = vld [vmem:[#allocation4 + $0xa0] sm:$0xff]  ;;  %v10839_v24 = vld [vmem:[%s12043_s14 + $0x26c] ss:$16 sps:$4 sm:$0xff]  }
 0x280   : > { %v2291_v32 = vmax.f32 %v2178_v46, %v2270_v23  ;;  %v2109_v60 = vrot.slane %v13211_v44, 6  ;;  %v2383_v21 = vsel %vm2361_vm3, %v2318_v52, %v2334_v49  ;;  %v2029_v13 = vsel %vm2022_vm0, %v1978_v45, %v1994_v48 }
 0x281   : > { %v2254_v39 = vsel %vm2248_vm2, %v2221_v50, %v16409_v1  ;;  %v2367_v25 = vsel %vm2361_vm3, %v2334_v49, %v16410_v62  ;;  %v16411_v63 = vrot.slane %v12562_v47, 7  ;;  %v2125_v0 = vrot.slane %v11041_v33, 6  ;;  %6179 = vmatpush1.bf16.msra.mxu0 %v10822_v3  ;;  %6372 = vmatpush1.bf16.msra.mxu1 %v10825_v27  ;;  %v10834_v49 = vld [vmem:[%s12043_s14 + $0x260] ss:$16 sps:$4 sm:$0xff]  }
 0x282   : > { %v2292_v36 = vmax.f32 %v2179_v56, %v2254_v39  ;;  %v13258_v53 = vmax.f32 %v2291_v32, %v2383_v21  ;;  %v2068_v18 = vmax.f32 %v13211_v44, %v2029_v13  ;;  %v2142_v47 = vsel %vm2135_vm1, %v2093_v12, %v2109_v60  ;;  %6180 = vmatprep.subr.bf16.mxu0 %v10830_v15  ;;  %v10845_v32 = vld [vmem:[%s12043_s14 + $0x28c] ss:$16 sps:$4 sm:$0xff]   ;;  %v13323_v21 = vld [vmem:[#allocation4 + $0xc0] sm:$0xff] }
 0x283   : > { %v2045_v30 = vsel %vm2022_vm0, %v16411_v63, %v1978_v45  ;;  %v2158_v55 = vsel %vm2135_vm1, %v2125_v0, %v2093_v12  ;;  %v2206_v8 = vrot.slane %v13209_v40, 2  ;;  %v2222_v54 = vrot.slane %v13211_v44, 2  ;;  %6373 = vmatprep.subr.bf16.mxu1 %v10833_v11  ;;  %v10837_v45 = vld [vmem:[%s12043_s14 + $0x268] ss:$16 sps:$4 sm:$0xff]   ;;  %v10842_v11 = vld [vmem:[%s12043_s14 + $0x284] ss:$16 sps:$4 sm:$0xff]  }
 0x284   : > { %v13260_v57 = vmax.f32 %v2292_v36, %v2367_v25  ;;  %v2067_v28 = vmax.f32 %v13209_v40, %v2045_v30  ;;  %v2181_v31 = vmax.f32 %v2068_v18, %v2142_v47  ;;  %v2238_v43 = vrot.slane %v11041_v33, 2  ;;  %5240 = vmatmul.mubr.bf16.gmra.mrb[68].mxu0 %v13056_v22  ;;  %5433 = vmatmul.mubr.bf16.gmra.mrb[68].mxu1 %v13056_v22  ;;  %v13325_v13 = vld [vmem:[#allocation4 + $0xc8] sm:$0xff]  ;;  %v13336_v18 = vld [vmem:[#allocation4 + $0xd0] sm:$0xff] }
 0x285   : > { %v2271_v42 = vsel %vm2248_vm2, %v2206_v8, %v2222_v54  ;;  %v2319_v59 = vrot.slane %v13209_v40, 1  ;;  %v2335_v51 = vrot.slane %v13211_v44, 1  ;;  %v2351_v58 = vrot.slane %v11041_v33, 1  ;;  %5249 = vmatprep.mubr.bf16.mxu0 %v16364_v2  ;;  %5442 = vmatprep.mubr.bf16.mxu1 %v16364_v2 }
 0x286   : > { %v13278_v9 = vpack.c.bf16 %v13260_v57, %v13258_v53  ;;  %v2180_v14 = vmax.f32 %v2067_v28, %v2158_v55  ;;  %v2255_v4 = vsel %vm2248_vm2, %v2222_v54, %v2238_v43  ;;  %v1979_v50 = vrot.slane %v13271_v35, 7  ;;  %6181 = vmatpush1.bf16.msra.mxu0 %v10828_v26  ;;  %6374 = vmatpush1.bf16.msra.mxu1 %v10831_v38  ;;  %v10840_v28 = vld [vmem:[%s12043_s14 + $0x280] ss:$16 sps:$4 sm:$0xff]   ;;  %v10843_v54 = vld [vmem:[%s12043_s14 + $0x288] ss:$16 sps:$4 sm:$0xff]  }
 0x287   : > { %v1995_v52 = vrot.slane %v13273_v5, 7  ;;  %v2294_v40 = vmax.f32 %v2181_v31, %v2255_v4  ;;  %v2368_v44 = vsel %vm2361_vm3, %v2335_v51, %v2351_v58  ;;  %v2384_v56 = vsel %vm2361_vm3, %v2319_v59, %v2335_v51  ;;  %6182 = vmatprep.subr.bf16.mxu0 %v10836_v20  ;;  %6375 = vmatprep.subr.bf16.mxu1 %v10839_v24  ;;  %v10848_v43 = vld [vmem:[%s12043_s14 + $0x2a4] ss:$16 sps:$4 sm:$0xff]  }
 0x288   : > { %v2293_v46 = vmax.f32 %v2180_v14, %v2271_v42  ;;  %v2011_v22 = vrot.slane %v13281_v19, 7  ;;  %v2094_v27 = vrot.slane %v13271_v35, 6  ;;  %v2110_v1 = vrot.slane %v13273_v5, 6  ;;  %v10851_v42 = vld [vmem:[%s12043_s14 + $0x2ac] ss:$16 sps:$4 sm:$0xff]  }
 0x289   : > { %v2030_v3 = vsel %vm2022_vm0, %v1979_v50, %v1995_v52  ;;  %v13309_v39 = vmax.f32 %v2294_v40, %v2368_v44  ;;  %v2126_v15 = vrot.slane %v13281_v19, 6  ;;  %v2207_v60 = vrot.slane %v13271_v35, 2  ;;  %v10846_v40 = vld [vmem:[%s12043_s14 + $0x2a0] ss:$16 sps:$4 sm:$0xff]   ;;  %v10849_v44 = vld [vmem:[%s12043_s14 + $0x2a8] ss:$16 sps:$4 sm:$0xff]  }
 0x28a   : > { %v13303_v48 = vmax.f32 %v2293_v46, %v2384_v56  ;;  %v2046_v23 = vsel %vm2022_vm0, %v2011_v22, %v1979_v50  ;;  %v2070_v12 = vmax.f32 %v13273_v5, %v2030_v3  ;;  %v2143_v25 = vsel %vm2135_vm1, %v2094_v27, %v2110_v1  ;;  %6183 = vmatpush1.bf16.msra.mxu0 %v10834_v49  ;;  %v10854_v3 = vld [vmem:[%s12043_s14 + $0x2c4] ss:$16 sps:$4 sm:$0xff]  }
 0x28b   : > { %v2069_v62 = vmax.f32 %v13271_v35, %v2046_v23  ;;  %v2513_v63 = vmax.f32 %v13260_v57, %v13309_v39  ;;  %v2159_v33 = vsel %vm2135_vm1, %v2126_v15, %v2094_v27  ;;  %6376 = vmatpush1.bf16.msra.mxu1 %v10837_v45  ;;  %v2223_v47 = vrot.slane %v13273_v5, 2  ;;  %6184 = vmatprep.subr.bf16.mxu0 %v10842_v11  ;;  %v10857_v27 = vld [vmem:[%s12043_s14 + $0x2cc] ss:$16 sps:$4 sm:$0xff]  }
 0x28c   : > { %v2512_v36 = vmax.f32 %v13258_v53, %v13303_v48  ;;  %v13331_v30 = vpack.c.bf16 %v13309_v39, %v13303_v48  ;;  %v2183_v0 = vmax.f32 %v2070_v12, %v2143_v25  ;;  %v2239_v55 = vrot.slane %v13281_v19, 2  ;;  %6377 = vmatprep.subr.bf16.mxu1 %v10845_v32  ;;  %5250 = vmatmul.mubr.bf16.gmra.mrb[72].mxu0 %v13128_v6 }
 0x28d   : > { %v2182_v26 = vmax.f32 %v2069_v62, %v2159_v33  ;;  %v2320_v8 = vrot.slane %v13271_v35, 1  ;;  %v2336_v38 = vrot.slane %v13273_v5, 1  ;;  %v2352_v20 = vrot.slane %v13281_v19, 1  ;;  %5443 = vmatmul.mubr.bf16.gmra.mrb[72].mxu1 %v13128_v6  ;;  %5259 = vmatprep.mubr.bf16.mxu0 %v16364_v2  ;;  %v13396_v33 = vld [vmem:[#allocation4 + $0xe0] sm:$0xff] }
 0x28e   : > { %v1980_v14 = vrot.slane %v13323_v21, 7  ;;  %v1996_v31 = vrot.slane %v13325_v13, 7  ;;  %v2256_v24 = vsel %vm2248_vm2, %v2223_v47, %v2239_v55  ;;  %v2272_v35 = vsel %vm2248_vm2, %v2207_v60, %v2223_v47  ;;  %5452 = vmatprep.mubr.bf16.mxu1 %v16364_v2  ;;  %6185 = vmatpush1.bf16.msra.mxu0 %v10840_v28  ;;  %v13394_v60 = vld [vmem:[#allocation4 + $0xd8] sm:$0xff] }
 0x28f   : > { %v2012_v5 = vrot.slane %v13336_v18, 7  ;;  %v2095_v19 = vrot.slane %v13323_v21, 6  ;;  %v2295_v59 = vmax.f32 %v2182_v26, %v2272_v35  ;;  %v2296_v51 = vmax.f32 %v2183_v0, %v2256_v24  ;;  %6378 = vmatpush1.bf16.msra.mxu1 %v10843_v54  ;;  %6186 = vmatprep.subr.bf16.mxu0 %v10848_v43  ;;  %v10852_v0 = vld [vmem:[%s12043_s14 + $0x2c0] ss:$16 sps:$4 sm:$0xff]  }
 0x290   : > { %v2369_v6 = vsel %vm2361_vm3, %v2336_v38, %v2352_v20  ;;  %v2111_v58 = vrot.slane %v13325_v13, 6  ;;  %v2385_v4 = vsel %vm2361_vm3, %v2320_v8, %v2336_v38  ;;  %v2031_v46 = vsel %vm2022_vm0, %v1980_v14, %v1996_v31  ;;  %6379 = vmatprep.subr.bf16.mxu1 %v10851_v42  ;;  %v13404_v8 = vld [vmem:[#allocation4 + $0xe8] sm:$0xff] }
 0x291   : > { %v2047_v50 = vsel %vm2022_vm0, %v2012_v5, %v1980_v14  ;;  %v2127_v52 = vrot.slane %v13336_v18, 6  ;;  %v13370_v56 = vmax.f32 %v2295_v59, %v2385_v4  ;;  %v13372_v22 = vmax.f32 %v2296_v51, %v2369_v6  ;;  %v10863_v31 = vld [vmem:[%s12043_s14 + $0x2ec] ss:$16 sps:$4 sm:$0xff]   ;;  %v10858_v6 = vld [vmem:[%s12043_s14 + $0x2e0] ss:$16 sps:$4 sm:$0xff]  }
 0x292   : > { %v2071_v49 = vmax.f32 %v13323_v21, %v2047_v50  ;;  %v2072_v45 = vmax.f32 %v13325_v13, %v2031_v46  ;;  %v2144_v1 = vsel %vm2135_vm1, %v2095_v19, %v2111_v58  ;;  %v2208_v12 = vrot.slane %v13323_v21, 2  ;;  %6187 = vmatpush1.bf16.msra.mxu0 %v10846_v40  ;;  %v10861_v58 = vld [vmem:[%s12043_s14 + $0x2e8] ss:$16 sps:$4 sm:$0xff]   ;;  %v10866_v40 = vld [vmem:[%s12043_s14 + $0x304] ss:$16 sps:$4 sm:$0xff]  }
 0x293   : > { %v2160_v23 = vsel %vm2135_vm1, %v2127_v52, %v2095_v19  ;;  %v2224_v15 = vrot.slane %v13325_v13, 2  ;;  %v2514_v11 = vmax.f32 %v13303_v48, %v13370_v56  ;;  %v2515_v32 = vmax.f32 %v13309_v39, %v13372_v22  ;;  %6380 = vmatpush1.bf16.msra.mxu1 %v10849_v44  ;;  %6188 = vmatprep.subr.bf16.mxu0 %v10854_v3  ;;  %v10869_v44 = vld [vmem:[%s12043_s14 + $0x30c] ss:$16 sps:$4 sm:$0xff]  }
 0x294   : > { %v13389_v62 = vmax.f32 %v2512_v36, %v13370_v56  ;;  %v13392_v25 = vmax.f32 %v2513_v63, %v13372_v22  ;;  %v13401_v28 = vpack.c.bf16 %v13372_v22, %v13370_v56  ;;  %v2184_v26 = vmax.f32 %v2071_v49, %v2160_v23  ;;  %v10855_v36 = vld [vmem:[%s12043_s14 + $0x2c8] ss:$16 sps:$4 sm:$0xff]   ;;  %v10860_v63 = vld [vmem:[%s12043_s14 + $0x2e4] ss:$16 sps:$4 sm:$0xff]   ;;  %6381 = vmatprep.subr.bf16.mxu1 %v10857_v27 }
 0x295   : > { %v2185_v47 = vmax.f32 %v2072_v45, %v2144_v1  ;;  %v2240_v55 = vrot.slane %v13336_v18, 2  ;;  %v2273_v54 = vsel %vm2248_vm2, %v2208_v12, %v2224_v15  ;;  %v2321_v38 = vrot.slane %v13323_v21, 1  ;;  %5260 = vmatmul.mubr.bf16.gmra.mrb[76].mxu0 %v13179_v10  ;;  %5453 = vmatmul.mubr.bf16.gmra.mrb[76].mxu1 %v13179_v10 }
 0x296   : > { %v2337_v20 = vrot.slane %v13325_v13, 1  ;;  %v2353_v14 = vrot.slane %v13336_v18, 1  ;;  %v2297_v24 = vmax.f32 %v2184_v26, %v2273_v54  ;;  %v1981_v35 = vrot.slane %v13394_v60, 7  ;;  %5269 = vmatprep.mubr.bf16.mxu0 %v16364_v2  ;;  %5462 = vmatprep.mubr.bf16.mxu1 %v16364_v2 }
 0x297   : > { %v2257_v43 = vsel %vm2248_vm2, %v2224_v15, %v2240_v55  ;;  %v1997_v21 = vrot.slane %v13396_v33, 7  ;;  %v2013_v5 = vrot.slane %v13404_v8, 7  ;;  %v2096_v59 = vrot.slane %v13394_v60, 6  ;;  %6189 = vmatpush1.bf16.msra.mxu0 %v10852_v0  ;;  %6382 = vmatpush1.bf16.msra.mxu1 %v10855_v36  ;;  %v13472_v55 = vld [vmem:[#allocation4 + $0x100] sm:$0xff] }
 0x298   : > { %v2298_v13 = vmax.f32 %v2185_v47, %v2257_v43  ;;  %v2370_v18 = vsel %vm2361_vm3, %v2337_v20, %v2353_v14  ;;  %v2386_v10 = vsel %vm2361_vm3, %v2321_v38, %v2337_v20  ;;  %v2112_v51 = vrot.slane %v13396_v33, 6  ;;  %6190 = vmatprep.subr.bf16.mxu0 %v10860_v63  ;;  %6383 = vmatprep.subr.bf16.mxu1 %v10863_v31  ;;  %v13470_v47 = vld [vmem:[#allocation4 + $0xf8] sm:$0xff] }
 0x299   : > { %v13427_v19 = vmax.f32 %v2297_v24, %v2386_v10  ;;  %v2032_v42 = vsel %vm2022_vm0, %v1981_v35, %v1997_v21  ;;  %v2048_v46 = vsel %vm2022_vm0, %v2013_v5, %v1981_v35  ;;  %v2128_v52 = vrot.slane %v13404_v8, 6 }
 0x29a   : > { %v13435_v4 = vmax.f32 %v2298_v13, %v2370_v18  ;;  %v2074_v50 = vmax.f32 %v13396_v33, %v2032_v42  ;;  %v2073_v27 = vmax.f32 %v13394_v60, %v2048_v46  ;;  %v2209_v26 = vrot.slane %v13394_v60, 2 }
 0x29b   : > { %v2516_v49 = vmax.f32 %v13370_v56, %v13427_v19  ;;  %v13446_v45 = vmax.f32 %v2514_v11, %v13427_v19  ;;  %v2576_v3 = vmax.f32 %v13389_v62, %v13427_v19  ;;  %v13462_v11 = vld [vmem:[#allocation4 + $0xf0] sm:$0xff]  ;;  %v2145_v62 = vsel %vm2135_vm1, %v2096_v59, %v2112_v51  ;;  %6191 = vmatpush1.bf16.msra.mxu0 %v10858_v6 }
 0x29c   : > { %v2517_v1 = vmax.f32 %v13372_v22, %v13435_v4  ;;  %v13454_v23 = vmax.f32 %v2515_v32, %v13435_v4  ;;  %v2577_v12 = vmax.f32 %v13392_v25, %v13435_v4  ;;  %v13460_v15 = vpack.c.bf16 %v13435_v4, %v13427_v19  ;;  %6384 = vmatpush1.bf16.msra.mxu1 %v10861_v58 }
 0x29d   : > { %v2161_v0 = vsel %vm2135_vm1, %v2128_v52, %v2096_v59  ;;  %v2225_v32 = vrot.slane %v13396_v33, 2  ;;  %v2187_v36 = vmax.f32 %v2074_v50, %v2145_v62  ;;  %v2241_v63 = vrot.slane %v13404_v8, 2  ;;  %7155 = vmatprep.subr.bf16.mxu0 %v10866_v40  ;;  %7348 = vmatprep.subr.bf16.mxu1 %v10869_v44 }
 0x29e   : > { %v2186_v25 = vmax.f32 %v2073_v27, %v2161_v0  ;;  %v2322_v54 = vrot.slane %v13394_v60, 1  ;;  %5270 = vmatmul.mubr.bf16.gmra.mrb[80].mxu0 %v13232_v7  ;;  %5463 = vmatmul.mubr.bf16.gmra.mrb[80].mxu1 %v13232_v7  ;;  %v2338_v20 = vrot.slane %v13396_v33, 1  ;;  %v2354_v14 = vrot.slane %v13404_v8, 1  ;;  %v13522_v0 = vld [vmem:[#allocation4 + $0x108] sm:$0xff] }
 0x29f   : > { %v2274_v38 = vsel %vm2248_vm2, %v2209_v26, %v2225_v32  ;;  %v1982_v31 = vrot.slane %v13462_v11, 7  ;;  %5279 = vmatprep.mubr.bf16.mxu0 %v16364_v2  ;;  %5472 = vmatprep.mubr.bf16.mxu1 %v16364_v2  ;;  %v2258_v60 = vsel %vm2248_vm2, %v2225_v32, %v2241_v63  ;;  %v1998_v24 = vrot.slane %v13470_v47, 7  ;;  %v13533_v26 = vld [vmem:[#allocation4 + $0x110] sm:$0xff] }
 0x2a0   : > { %v2299_v43 = vmax.f32 %v2186_v25, %v2274_v38  ;;  %v2014_v7 = vrot.slane %v13472_v55, 7  ;;  %v2300_v35 = vmax.f32 %v2187_v36, %v2258_v60  ;;  %v2371_v33 = vsel %vm2361_vm3, %v2338_v20, %v2354_v14 }
 0x2a1   : > { %v2387_v8 = vsel %vm2361_vm3, %v2322_v54, %v2338_v20  ;;  %v2097_v21 = vrot.slane %v13462_v11, 6  ;;  %v2033_v18 = vsel %vm2022_vm0, %v1982_v31, %v1998_v24  ;;  %v2113_v5 = vrot.slane %v13470_v47, 6 }
 0x2a2   : > { %v13494_v13 = vmax.f32 %v2299_v43, %v2387_v8  ;;  %v2049_v10 = vsel %vm2022_vm0, %v2014_v7, %v1982_v31  ;;  %v13501_v42 = vmax.f32 %v2300_v35, %v2371_v33  ;;  %v2076_v51 = vmax.f32 %v13470_v47, %v2033_v18 }
 0x2a3   : > { %v2075_v59 = vmax.f32 %v13462_v11, %v2049_v10  ;;  %v2129_v6 = vrot.slane %v13472_v55, 6  ;;  %v2226_v25 = vrot.slane %v13470_v47, 2  ;;  %v2242_v36 = vrot.slane %v13472_v55, 2 }
 0x2a4   : > { %v2518_v58 = vmax.f32 %v13427_v19, %v13494_v13  ;;  %v13509_v46 = vmax.f32 %v2516_v49, %v13494_v13  ;;  %v2578_v50 = vmax.f32 %v13446_v45, %v13494_v13  ;;  %v2608_v52 = vmax.f32 %v2576_v3, %v13494_v13 }
 0x2a5   : > { %v2519_v40 = vmax.f32 %v13435_v4, %v13501_v42  ;;  %v13517_v44 = vmax.f32 %v2517_v1, %v13501_v42  ;;  %v2579_v27 = vmax.f32 %v13454_v23, %v13501_v42  ;;  %v2609_v62 = vmax.f32 %v2577_v12, %v13501_v42  ;;  %v13535_v23 = vld [vmem:[#allocation4 + $0x118] sm:$0xff] }
 0x2a6   : > { %v13526_v49 = vpack.c.bf16 %v13501_v42, %v13494_v13  ;;  %2640 = vst [vmem:[#allocation4 + $0xa8] sm:$0xff] %v2608_v52  ;;  %v2146_v45 = vsel %vm2135_vm1, %v2097_v21, %v2113_v5  ;;  %v2162_v3 = vsel %vm2135_vm1, %v2129_v6, %v2097_v21  ;;  %v2210_v1 = vrot.slane %v13462_v11, 2  ;;  %5280 = vmatmul.mubr.bf16.gmra.mrb[84].mxu0 %v13278_v9 }
 0x2a7   : > { %5473 = vmatmul.mubr.bf16.gmra.mrb[84].mxu1 %v13278_v9  ;;  %2641 = vst [vmem:[#allocation4 + $0xb0] sm:$0xff] %v2609_v62  ;;  %v2188_v12 = vmax.f32 %v2075_v59, %v2162_v3  ;;  %v2189_v32 = vmax.f32 %v2076_v51, %v2146_v45  ;;  %5289 = vmatprep.mubr.bf16.mxu0 %v16364_v2  ;;  %v2323_v63 = vrot.slane %v13462_v11, 1  ;;  %v2339_v54 = vrot.slane %v13470_v47, 1 }
 0x2a8   : > { %5482 = vmatprep.mubr.bf16.mxu1 %v16364_v2  ;;  %v2355_v38 = vrot.slane %v13472_v55, 1  ;;  %v1983_v20 = vrot.slane %v13522_v0, 7  ;;  %v2259_v9 = vsel %vm2248_vm2, %v2226_v25, %v2242_v36  ;;  %v2275_v14 = vsel %vm2248_vm2, %v2210_v1, %v2226_v25 }
 0x2a9   : > { %v1999_v31 = vrot.slane %v13533_v26, 7  ;;  %v2015_v60 = vrot.slane %v13535_v23, 7  ;;  %v2301_v43 = vmax.f32 %v2188_v12, %v2275_v14  ;;  %v2302_v24 = vmax.f32 %v2189_v32, %v2259_v9  ;;  %v13592_v32 = vld [vmem:[#allocation4 + $0x120] sm:$0xff] }
 0x2aa   : > { %v2372_v11 = vsel %vm2361_vm3, %v2339_v54, %v2355_v38  ;;  %v2388_v47 = vsel %vm2361_vm3, %v2323_v63, %v2339_v54  ;;  %v2098_v35 = vrot.slane %v13522_v0, 6  ;;  %v2114_v33 = vrot.slane %v13533_v26, 6 }
 0x2ab   : > { %v2034_v55 = vsel %vm2022_vm0, %v1983_v20, %v1999_v31  ;;  %v2050_v7 = vsel %vm2022_vm0, %v2015_v60, %v1983_v20  ;;  %v13563_v8 = vmax.f32 %v2301_v43, %v2388_v47  ;;  %v13565_v21 = vmax.f32 %v2302_v24, %v2372_v11 }
 0x2ac   : > { %v2077_v18 = vmax.f32 %v13522_v0, %v2050_v7  ;;  %v2078_v10 = vmax.f32 %v13533_v26, %v2034_v55  ;;  %v2130_v5 = vrot.slane %v13535_v23, 6  ;;  %v2147_v59 = vsel %vm2135_vm1, %v2098_v35, %v2114_v33 }
 0x2ad   : > { %v2211_v51 = vrot.slane %v13522_v0, 2  ;;  %v2227_v6 = vrot.slane %v13533_v26, 2  ;;  %v2520_v52 = vmax.f32 %v13494_v13, %v13563_v8  ;;  %v2521_v62 = vmax.f32 %v13501_v42, %v13565_v21 }
 0x2ae   : > { %v13579_v45 = vmax.f32 %v2518_v58, %v13563_v8  ;;  %v13582_v3 = vmax.f32 %v2519_v40, %v13565_v21  ;;  %5290 = vmatmul.mubr.bf16.gmra.mrb[88].mxu0 %v13331_v30  ;;  %v2580_v1 = vmax.f32 %v13509_v46, %v13563_v8  ;;  %v2581_v12 = vmax.f32 %v13517_v44, %v13565_v21  ;;  %v13594_v58 = vld [vmem:[#allocation4 + $0x128] sm:$0xff]  ;;  %v1962_v44 = vld [vmem:[#allocation4 + $0x130] sm:$0xff] }
 0x2af   : > { %5483 = vmatmul.mubr.bf16.gmra.mrb[88].mxu1 %v13331_v30  ;;  %v2610_v13 = vmax.f32 %v2578_v50, %v13563_v8  ;;  %v2243_v42 = vrot.slane %v13535_v23, 2  ;;  %5299 = vmatprep.mubr.bf16.mxu0 %v16364_v2  ;;  %v2611_v30 = vmax.f32 %v2579_v27, %v13565_v21  ;;  %v13601_v46 = vpack.c.bf16 %v13565_v21, %v13563_v8 }
 0x2b0   : > { %5492 = vmatprep.mubr.bf16.mxu1 %v16364_v2  ;;  %v2163_v40 = vsel %vm2135_vm1, %v2130_v5, %v2098_v35  ;;  %v2324_v50 = vrot.slane %v13522_v0, 1  ;;  %v2191_v36 = vmax.f32 %v2078_v10, %v2147_v59  ;;  %v2276_v54 = vsel %vm2248_vm2, %v2211_v51, %v2227_v6 }
 0x2b1   : > { %2642 = vst [vmem:[#allocation4 + $0xc0] sm:$0xff] %v2610_v13  ;;  %v2190_v25 = vmax.f32 %v2077_v18, %v2163_v40  ;;  %v2260_v63 = vsel %vm2248_vm2, %v2227_v6, %v2243_v42  ;;  %2643 = vst [vmem:[#allocation4 + $0xc8] sm:$0xff] %v2611_v30  ;;  %v2340_v27 = vrot.slane %v13533_v26, 1  ;;  %v2356_v38 = vrot.slane %v13535_v23, 1 }
 0x2b2   : > { %v1984_v20 = vrot.slane %v13592_v32, 7  ;;  %v2000_v9 = vrot.slane %v13594_v58, 7  ;;  %v2304_v14 = vmax.f32 %v2191_v36, %v2260_v63  ;;  %v2016_v31 = vrot.slane %v1962_v44, 7 }
 0x2b3   : > { %v2303_v0 = vmax.f32 %v2190_v25, %v2276_v54  ;;  %v2099_v60 = vrot.slane %v13592_v32, 6  ;;  %v2373_v43 = vsel %vm2361_vm3, %v2340_v27, %v2356_v38  ;;  %v2389_v24 = vsel %vm2361_vm3, %v2324_v50, %v2340_v27  ;;  %v13662_v50 = vld [vmem:[#allocation4 + $0x140] sm:$0xff] }
 0x2b4   : > { %v2035_v26 = vsel %vm2022_vm0, %v1984_v20, %v2000_v9  ;;  %v2115_v23 = vrot.slane %v13594_v58, 6  ;;  %v13624_v47 = vmax.f32 %v2304_v14, %v2373_v43  ;;  %v2051_v55 = vsel %vm2022_vm0, %v2016_v31, %v1984_v20 }
 0x2b5   : > { %v13622_v11 = vmax.f32 %v2303_v0, %v2389_v24  ;;  %v2080_v7 = vmax.f32 %v13594_v58, %v2035_v26  ;;  %v2079_v35 = vmax.f32 %v13592_v32, %v2051_v55  ;;  %v2131_v33 = vrot.slane %v1962_v44, 6 }
 0x2b6   : > { %v2148_v18 = vsel %vm2135_vm1, %v2099_v60, %v2115_v23  ;;  %v2212_v10 = vrot.slane %v13592_v32, 2  ;;  %5300 = vmatmul.mubr.bf16.gmra.mrb[92].mxu0 %v13401_v28  ;;  %v2523_v59 = vmax.f32 %v13565_v21, %v13624_v47  ;;  %v2228_v6 = vrot.slane %v13594_v58, 2  ;;  %v13652_v21 = vld [vmem:[#allocation4 + $0x138] sm:$0xff] }
 0x2b7   : > { %5493 = vmatmul.mubr.bf16.gmra.mrb[92].mxu1 %v13401_v28  ;;  %v2522_v5 = vmax.f32 %v13563_v8, %v13622_v11  ;;  %v13640_v51 = vmax.f32 %v2520_v52, %v13622_v11  ;;  %5309 = vmatprep.mubr.bf16.mxu0 %v16364_v2  ;;  %v13646_v13 = vmax.f32 %v2521_v62, %v13624_v47  ;;  %v2244_v42 = vrot.slane %v1962_v44, 2 }
 0x2b8   : > { %5502 = vmatprep.mubr.bf16.mxu1 %v16364_v2  ;;  %v2582_v28 = vmax.f32 %v13579_v45, %v13622_v11  ;;  %v2583_v8 = vmax.f32 %v13582_v3, %v13624_v47  ;;  %v2612_v52 = vmax.f32 %v2580_v1, %v13622_v11  ;;  %v2613_v30 = vmax.f32 %v2581_v12, %v13624_v47  ;;  %v13664_v45 = vld [vmem:[#allocation4 + $0x148] sm:$0xff] }
 0x2b9   : > { %v13658_v40 = vpack.c.bf16 %v13624_v47, %v13622_v11  ;;  %v2164_v62 = vsel %vm2135_vm1, %v2131_v33, %v2099_v60  ;;  %v2193_v3 = vmax.f32 %v2080_v7, %v2148_v18  ;;  %v2261_v36 = vsel %vm2248_vm2, %v2228_v6, %v2244_v42 }
 0x2ba   : > { %v2192_v25 = vmax.f32 %v2079_v35, %v2164_v62  ;;  %v2277_v1 = vsel %vm2248_vm2, %v2212_v10, %v2228_v6  ;;  %2644 = vst [vmem:[#allocation4 + $0xd8] sm:$0xff] %v2612_v52  ;;  %2645 = vst [vmem:[#allocation4 + $0xe0] sm:$0xff] %v2613_v30  ;;  %v2325_v12 = vrot.slane %v13592_v32, 1  ;;  %v2341_v63 = vrot.slane %v13594_v58, 1  ;;  %v13714_v30 = vld [vmem:[#allocation4 + $0x150] sm:$0xff]  ;;  %v13716_v62 = vld [vmem:[#allocation4 + $0x158] sm:$0xff] }
 0x2bb   : > { %v2357_v54 = vrot.slane %v1962_v44, 1  ;;  %v1985_v27 = vrot.slane %v13652_v21, 7  ;;  %v2306_v20 = vmax.f32 %v2193_v3, %v2261_v36  ;;  %v2001_v9 = vrot.slane %v13662_v50, 7 }
 0x2bc   : > { %v2305_v38 = vmax.f32 %v2192_v25, %v2277_v1  ;;  %v2017_v0 = vrot.slane %v13664_v45, 7  ;;  %v2390_v31 = vsel %vm2361_vm3, %v2325_v12, %v2341_v63  ;;  %v2100_v60 = vrot.slane %v13652_v21, 6 }
 0x2bd   : > { %v2374_v14 = vsel %vm2361_vm3, %v2341_v63, %v2357_v54  ;;  %v2116_v32 = vrot.slane %v13662_v50, 6  ;;  %v2036_v43 = vsel %vm2022_vm0, %v1985_v27, %v2001_v9  ;;  %v2132_v55 = vrot.slane %v13664_v45, 6 }
 0x2be   : > { %v13681_v58 = vmax.f32 %v2305_v38, %v2390_v31  ;;  %v13683_v44 = vmax.f32 %v2306_v20, %v2374_v14  ;;  %v2052_v24 = vsel %vm2022_vm0, %v2017_v0, %v1985_v27  ;;  %5310 = vmatmul.mubr.bf16.gmra.mrb[96].mxu0 %v13460_v15  ;;  %v2082_v23 = vmax.f32 %v13662_v50, %v2036_v43 }
 0x2bf   : > { %5503 = vmatmul.mubr.bf16.gmra.mrb[96].mxu1 %v13460_v15  ;;  %v2081_v26 = vmax.f32 %v13652_v21, %v2052_v24  ;;  %v2149_v7 = vsel %vm2135_vm1, %v2100_v60, %v2116_v32  ;;  %5319 = vmatprep.mubr.bf16.mxu0 %v16364_v2  ;;  %v2213_v18 = vrot.slane %v13652_v21, 2  ;;  %v2326_v1 = vrot.slane %v13652_v21, 1 }
 0x2c0   : > { %5512 = vmatprep.mubr.bf16.mxu1 %v16364_v2  ;;  %v2524_v35 = vmax.f32 %v13622_v11, %v13681_v58  ;;  %v2525_v33 = vmax.f32 %v13624_v47, %v13683_v44  ;;  %v13703_v15 = vmax.f32 %v2522_v5, %v13681_v58  ;;  %v13707_v10 = vmax.f32 %v2523_v59, %v13683_v44 }
 0x2c1   : > { %v2584_v6 = vmax.f32 %v13640_v51, %v13681_v58  ;;  %v2585_v42 = vmax.f32 %v13646_v13, %v13683_v44  ;;  %v2614_v52 = vmax.f32 %v2582_v28, %v13681_v58  ;;  %v2615_v5 = vmax.f32 %v2583_v8, %v13683_v44  ;;  %v1968_v51 = vld [vmem:[#allocation4 + $0x160] sm:$0xff] }
 0x2c2   : > { %v13721_v25 = vpack.c.bf16 %v13683_v44, %v13681_v58  ;;  %v2165_v59 = vsel %vm2135_vm1, %v2132_v55, %v2100_v60  ;;  %v2195_v3 = vmax.f32 %v2082_v23, %v2149_v7  ;;  %v2229_v13 = vrot.slane %v13662_v50, 2 }
 0x2c3   : > { %2646 = vst [vmem:[#allocation4 + $0xf0] sm:$0xff] %v2614_v52  ;;  %v2194_v36 = vmax.f32 %v2081_v26, %v2165_v59  ;;  %v2245_v28 = vrot.slane %v13664_v45, 2  ;;  %2647 = vst [vmem:[#allocation4 + $0xf8] sm:$0xff] %v2615_v5  ;;  %v2342_v8 = vrot.slane %v13662_v50, 1  ;;  %v2358_v12 = vrot.slane %v13664_v45, 1 }
 0x2c4   : > { %v1986_v63 = vrot.slane %v13714_v30, 7  ;;  %v2002_v54 = vrot.slane %v13716_v62, 7  ;;  %v2278_v38 = vsel %vm2248_vm2, %v2213_v18, %v2229_v13  ;;  %v2018_v20 = vrot.slane %v1968_v51, 7 }
 0x2c5   : > { %v2262_v27 = vsel %vm2248_vm2, %v2229_v13, %v2245_v28  ;;  %v2101_v9 = vrot.slane %v13714_v30, 6  ;;  %v2307_v0 = vmax.f32 %v2194_v36, %v2278_v38  ;;  %v2375_v50 = vsel %vm2361_vm3, %v2342_v8, %v2358_v12 }
 0x2c6   : > { %v2308_v21 = vmax.f32 %v2195_v3, %v2262_v27  ;;  %v2391_v45 = vsel %vm2361_vm3, %v2326_v1, %v2342_v8  ;;  %5320 = vmatmul.mubr.bf16.gmra.mrb[100].mxu0 %v13526_v49  ;;  %v2037_v14 = vsel %vm2022_vm0, %v1986_v63, %v2002_v54  ;;  %v2053_v31 = vsel %vm2022_vm0, %v2018_v20, %v1986_v63  ;;  %v13771_v8 = vld [vmem:[#allocation4 + $0x178] sm:$0xff] }
 0x2c7   : > { %5513 = vmatmul.mubr.bf16.gmra.mrb[100].mxu1 %v13526_v49  ;;  %v2117_v60 = vrot.slane %v13716_v62, 6  ;;  %v2133_v32 = vrot.slane %v1968_v51, 6  ;;  %5329 = vmatprep.mubr.bf16.mxu0 %v16364_v2  ;;  %v13750_v43 = vmax.f32 %v2307_v0, %v2391_v45  ;;  %v2083_v26 = vmax.f32 %v13714_v30, %v2053_v31  ;;  %v13802_v0 = vld [vmem:[#allocation3 + $0x138] sm:$0xff]  ;;  %v11042_v45 = vld [vmem:[#allocation3 + $0x120] sm:$0xff]  ;;  %v11043_v31 = vld [vmem:[#allocation3 + $0x128] sm:$0xff] }
 0x2c8   : > { %5522 = vmatprep.mubr.bf16.mxu1 %v16364_v2  ;;  %v13752_v24 = vmax.f32 %v2308_v21, %v2375_v50  ;;  %v2214_v49 = vrot.slane %v13714_v30, 2  ;;  %v2084_v23 = vmax.f32 %v13716_v62, %v2037_v14  ;;  %v2230_v18 = vrot.slane %v13716_v62, 2 }
 0x2c9   : > { %v2150_v55 = vsel %vm2135_vm1, %v2101_v9, %v2117_v60  ;;  %v2166_v7 = vsel %vm2135_vm1, %v2133_v32, %v2101_v9  ;;  %v2616_v52 = vmax.f32 %v2584_v6, %v13750_v43  ;;  %v2246_v13 = vrot.slane %v1968_v51, 2  ;;  %v13800_v9 = vld [vmem:[#allocation3 + $0x130] sm:$0xff] }
 0x2ca   : > { %v2617_v5 = vmax.f32 %v2585_v42, %v13752_v24  ;;  %v13766_v59 = vpack.c.bf16 %v13752_v24, %v13750_v43  ;;  %v2196_v3 = vmax.f32 %v2083_v26, %v2166_v7  ;;  %v2197_v36 = vmax.f32 %v2084_v23, %v2150_v55  ;;  %v2459_v26 = vld [vmem:[#allocation3 + $0x8] sm:$0xff]  ;;  %v13813_v23 = vld [vmem:[#allocation3 + $0x18] sm:$0xff] }
 0x2cb   : > { %v2279_v28 = vsel %vm2248_vm2, %v2214_v49, %v2230_v18  ;;  %v2327_v1 = vrot.slane %v13714_v30, 1  ;;  %2648 = vst [vmem:[#allocation4 + $0x108] sm:$0xff] %v2616_v52  ;;  %v2343_v6 = vrot.slane %v13716_v62, 1  ;;  %v2359_v42 = vrot.slane %v1968_v51, 1  ;;  %v13811_v49 = vld [vmem:[#allocation3 + $0x10] sm:$0xff] }
 0x2cc   : > { %2649 = vst [vmem:[#allocation4 + $0x110] sm:$0xff] %v2617_v5  ;;  %v2309_v12 = vmax.f32 %v2196_v3, %v2279_v28  ;;  %v2586_v63 = vmax.f32 %v13703_v15, %v13750_v43  ;;  %v2263_v54 = vsel %vm2248_vm2, %v2230_v18, %v2246_v13  ;;  %v2587_v27 = vmax.f32 %v13707_v10, %v13752_v24 }
 0x2cd   : > { %v1794_v30 = vmax.f32 %v13020_v34, %v13091_v37  ;;  %v1795_v38 = vmax.f32 %v13037_v41, %v13100_v17  ;;  %v2310_v20 = vmax.f32 %v2197_v36, %v2263_v54  ;;  %v2376_v62 = vsel %vm2361_vm3, %v2343_v6, %v2359_v42 }
 0x2ce   : > { %v2392_v51 = vsel %vm2361_vm3, %v2327_v1, %v2343_v6  ;;  %v2019_v15 = vrot.slane %v13771_v8, 7  ;;  %5330 = vmatmul.mubr.bf16.gmra.mrb[104].mxu0 %v13601_v46  ;;  %v2134_v41 = vrot.slane %v13771_v8, 6  ;;  %v2360_v21 = vrot.slane %v13771_v8, 1 }
 0x2cf   : > { %5523 = vmatmul.mubr.bf16.gmra.mrb[104].mxu1 %v13601_v46  ;;  %v13791_v10 = vmax.f32 %v2309_v12, %v2392_v51  ;;  %v1826_v34 = vmax.f32 %v1794_v30, %v13118_v29  ;;  %v1827_v37 = vmax.f32 %v1795_v38, %v13124_v16  ;;  %5339 = vmatprep.mubr.bf16.mxu0 %v16364_v2  ;;  %v2247_v46 = vrot.slane %v13771_v8, 2  ;;  %v2458_v16 = vld [vmem:[#allocation3] sm:$0xff] }
 0x2d0   : > { %5532 = vmatprep.mubr.bf16.mxu1 %v16364_v2  ;;  %v13798_v17 = vmax.f32 %v2310_v20, %v2376_v62  ;;  %v2526_v29 = vmax.f32 %v13681_v58, %v13750_v43  ;;  %v2527_v32 = vmax.f32 %v13683_v44, %v13752_v24  ;;  %v13830_v36 = vmax.f32 %v2524_v35, %v13750_v43  ;;  %v13850_v58 = vld [vmem:[#allocation4 + $0x10] sm:$0xff]  ;;  %v13860_v38 = vld [vmem:[#allocation3 + $0x20] sm:$0xff] }
 0x2d1   : > { %v2618_v50 = vmax.f32 %v2586_v63, %v13791_v10  ;;  %v1858_v14 = vmax.f32 %v1826_v34, %v11042_v45  ;;  %v1859_v60 = vmax.f32 %v1827_v37, %v11043_v31  ;;  %v2528_v18 = vmax.f32 %v13750_v43, %v13791_v10  ;;  %v13867_v34 = vld [vmem:[#allocation3 + $0x28] sm:$0xff]  ;;  %v13869_v37 = vld [vmem:[#allocation3 + $0x30] sm:$0xff] }
 0x2d2   : > { %v2619_v55 = vmax.f32 %v2587_v27, %v13798_v17  ;;  %v13818_v7 = vpack.c.bf16 %v13798_v17, %v13791_v10  ;;  %v2529_v52 = vmax.f32 %v13752_v24, %v13798_v17  ;;  %v13836_v13 = vmax.f32 %v2525_v33, %v13752_v24  ;;  %v13884_v31 = vld [vmem:[#allocation3 + $0x48] sm:$0xff] }
 0x2d3   : > { %2650 = vst [vmem:[#allocation4 + $0x120] sm:$0xff] %v2618_v50  ;;  %v1890_v5 = vmax.f32 %v1858_v14, %v13800_v9  ;;  %v1891_v3 = vmax.f32 %v1859_v60, %v13802_v0  ;;  %v13839_v28 = vmax.f32 %v2526_v29, %v13791_v10  ;;  %v13842_v1 = vmax.f32 %v2527_v32, %v13798_v17  ;;  %v13882_v14 = vld [vmem:[#allocation3 + $0x40] sm:$0xff]  ;;  %v13886_v60 = vld [vmem:[#allocation3 + $0x50] sm:$0xff] }
 0x2d4   : > { %2651 = vst [vmem:[#allocation4 + $0x128] sm:$0xff] %v2619_v55  ;;  %v13845_v8 = vmax.f32 %v2458_v16, %v13811_v49  ;;  %v13848_v11 = vmax.f32 %v2459_v26, %v13813_v23  ;;  %v2589_v55 = vmax.f32 %v13836_v13, %v13798_v17 }
 0x2d5   : > { %v1987_v35 = vrot.slane %v1890_v5, 7  ;;  %v2003_v12 = vrot.slane %v1891_v3, 7  ;;  %v2102_v47 = vrot.slane %v1890_v5, 6  ;;  %v2118_v44 = vrot.slane %v1891_v3, 6 }
 0x2d6   : > { %16412 = vst [vmem:[#allocation26_spill] sm:$0xff] %v13848_v11  ;;  %v2215_v33 = vrot.slane %v1890_v5, 2  ;;  %v2231_v6 = vrot.slane %v1891_v3, 2  ;;  %v2328_v42 = vrot.slane %v1890_v5, 1  ;;  %v2344_v63 = vrot.slane %v1891_v3, 1  ;;  %5340 = vmatmul.mubr.bf16.gmra.mrb[108].mxu0 %v13658_v40 }
 0x2d7   : > { %5533 = vmatmul.mubr.bf16.gmra.mrb[108].mxu1 %v13658_v40  ;;  %v2038_v54 = vsel %vm2022_vm0, %v1987_v35, %v2003_v12  ;;  %v2054_v27 = vsel %vm2022_vm0, %v2019_v15, %v1987_v35  ;;  %v2151_v30 = vsel %vm2135_vm1, %v2102_v47, %v2118_v44  ;;  %5349 = vmatprep.mubr.bf16.mxu0 %v16364_v2  ;;  %v13871_v15 = vld [vmem:[#allocation3 + $0x38] sm:$0xff] }
 0x2d8   : > { %5542 = vmatprep.mubr.bf16.mxu1 %v16364_v2  ;;  %v2085_v62 = vmax.f32 %v1890_v5, %v2054_v27  ;;  %v2086_v51 = vmax.f32 %v1891_v3, %v2038_v54  ;;  %v2167_v40 = vsel %vm2135_vm1, %v2134_v41, %v2102_v47  ;;  %v2264_v16 = vsel %vm2248_vm2, %v2231_v6, %v2247_v46  ;;  %v13892_v5 = vld [vmem:[#allocation3 + $0x58] sm:$0xff]  ;;  %v13896_v3 = vld [vmem:[#allocation3 + $0x68] sm:$0xff] }
 0x2d9   : > { %v2280_v50 = vsel %vm2248_vm2, %v2215_v33, %v2231_v6  ;;  %v2377_v45 = vsel %vm2361_vm3, %v2344_v63, %v2360_v21  ;;  %v2393_v41 = vsel %vm2361_vm3, %v2328_v42, %v2344_v63  ;;  %v2588_v46 = vmax.f32 %v13830_v36, %v13791_v10  ;;  %v13894_v21 = vld [vmem:[#allocation3 + $0x60] sm:$0xff] }
 0x2da   : > { %v2198_v32 = vmax.f32 %v2085_v62, %v2167_v40  ;;  %v2199_v26 = vmax.f32 %v2086_v51, %v2151_v30  ;;  %v2500_v35 = vmax.f32 %v13811_v49, %v13860_v38  ;;  %v2501_v12 = vmax.f32 %v13813_v23, %v13867_v34 }
 0x2db   : > { %v2502_v47 = vmax.f32 %v13860_v38, %v13869_v37  ;;  %v2503_v36 = vmax.f32 %v13867_v34, %v13871_v15  ;;  %v2504_v33 = vmax.f32 %v13869_v37, %v13882_v14  ;;  %v2505_v6 = vmax.f32 %v13871_v15, %v13884_v31 }
 0x2dc   : > { %v2311_v44 = vmax.f32 %v2198_v32, %v2280_v50  ;;  %v2312_v13 = vmax.f32 %v2199_v26, %v2264_v16  ;;  %v2506_v42 = vmax.f32 %v13882_v14, %v13886_v60  ;;  %v2507_v63 = vmax.f32 %v13884_v31, %v13892_v5  ;;  %v2494_v16 = vld [vmem:[#allocation3 + $0x120] sm:$0xff]  ;;  %v2495_v50 = vld [vmem:[#allocation3 + $0x128] sm:$0xff] }
 0x2dd   : > { %v2508_v54 = vmax.f32 %v13886_v60, %v13894_v21  ;;  %v2509_v27 = vmax.f32 %v13892_v5, %v13896_v3  ;;  %v2510_v51 = vmax.f32 %v13894_v21, %v13258_v53  ;;  %v2511_v40 = vmax.f32 %v13896_v3, %v13260_v57 }
 0x2de   : > { %v2424_v30 = vmax.f32 %v2311_v44, %v2393_v41  ;;  %v2425_v62 = vmax.f32 %v2312_v13, %v2377_v45  ;;  %5350 = vmatmul.mubr.bf16.gmra.mrb[112].mxu0 %v13721_v25  ;;  %v2530_v32 = vmax.f32 %v13845_v8, %v13860_v38  ;;  %v2531_v26 = vmax.f32 %v13848_v11, %v13867_v34 }
 0x2df   : > { %5543 = vmatmul.mubr.bf16.gmra.mrb[112].mxu1 %v13721_v25  ;;  %v2532_v45 = vmax.f32 %v2500_v35, %v13869_v37  ;;  %5359 = vmatprep.mubr.bf16.mxu0 %v16364_v2  ;;  %v3074_v34 = vrot.slane %v13850_v58, 1  ;;  %v2533_v43 = vmax.f32 %v2501_v12, %v13871_v15  ;;  %v2534_v24 = vmax.f32 %v2502_v47, %v13882_v14 }
 0x2e0   : > { %5552 = vmatprep.mubr.bf16.mxu1 %v16364_v2  ;;  %v2560_v25 = vmax.f32 %v2528_v18, %v2424_v30  ;;  %v2561_v44 = vmax.f32 %v2529_v52, %v2425_v62  ;;  %v2590_v38 = vmax.f32 %v13839_v28, %v2424_v30  ;;  %v2591_v35 = vmax.f32 %v13842_v1, %v2425_v62 }
 0x2e1   : > { %v2620_v13 = vmax.f32 %v2588_v46, %v2424_v30  ;;  %v2621_v41 = vmax.f32 %v2589_v55, %v2425_v62  ;;  %v13941_v29 = vpack.c.bf16 %v2425_v62, %v2424_v30  ;;  %v2535_v17 = vmax.f32 %v2503_v36, %v13884_v31  ;;  %v13951_v55 = vld [vmem:[#allocation4 + $0x28] sm:$0xff] }
 0x2e2   : > { %v2592_v20 = vmax.f32 %v2560_v25, %v2494_v16  ;;  %v2593_v2 = vmax.f32 %v2561_v44, %v2495_v50  ;;  %v2622_v11 = vmax.f32 %v2590_v38, %v2494_v16  ;;  %v2623_v10 = vmax.f32 %v2591_v35, %v2495_v50 }
 0x2e3   : > { %2652 = vst [vmem:[#allocation4 + $0x138] sm:$0xff] %v2620_v13  ;;  %2653 = vst [vmem:[#allocation4 + $0x140] sm:$0xff] %v2621_v41  ;;  %v2536_v18 = vmax.f32 %v2504_v33, %v13886_v60  ;;  %v2537_v1 = vmax.f32 %v2505_v6, %v13892_v5  ;;  %v2538_v46 = vmax.f32 %v2506_v42, %v13894_v21 }
 0x2e4   : > { %v2624_v52 = vmax.f32 %v2592_v20, %v13800_v9  ;;  %v2625_v28 = vmax.f32 %v2593_v2, %v13802_v0  ;;  %2654 = vst [vmem:[#allocation4 + $0x150] sm:$0xff] %v2622_v11  ;;  %2655 = vst [vmem:[#allocation4 + $0x158] sm:$0xff] %v2623_v10  ;;  %v2539_v12 = vmax.f32 %v2507_v63, %v13896_v3  ;;  %v2739_v63 = vrot.slane %v13951_v55, 7 }
 0x2e5   : > { %v2540_v47 = vmax.f32 %v2508_v54, %v13258_v53  ;;  %v2541_v36 = vmax.f32 %v2509_v27, %v13260_v57  ;;  %v2542_v33 = vmax.f32 %v2510_v51, %v13303_v48  ;;  %v2543_v2 = vmax.f32 %v2511_v40, %v13309_v39 }
 0x2e6   : > { %2656 = vst [vmem:[#allocation4 + $0x168] sm:$0xff] %v2624_v52  ;;  %2657 = vst [vmem:[#allocation4 + $0x170] sm:$0xff] %v2625_v28  ;;  %v2562_v9 = vmax.f32 %v2530_v32, %v13869_v37  ;;  %v2563_v0 = vmax.f32 %v2531_v26, %v13871_v15  ;;  %v2564_v11 = vmax.f32 %v2532_v45, %v13882_v14  ;;  %5360 = vmatmul.mubr.bf16.gmra.mrb[116].mxu0 %v13766_v59  ;;  %v16413_v54 = vmov 0  }
 0x2e7   : > { %5553 = vmatmul.mubr.bf16.gmra.mrb[116].mxu1 %v13766_v59  ;;  %v2565_v20 = vmax.f32 %v2533_v43, %v13884_v31  ;;  %v2566_v6 = vmax.f32 %v2534_v24, %v13886_v60  ;;  %v2567_v42 = vmax.f32 %v2535_v17, %v13892_v5  ;;  %5369 = vmatprep.mubr.bf16.mxu0 %v16413_v54  ;;  %v2851_v59 = vrot.slane %v13951_v55, 6 }
 0x2e8   : > { %5562 = vmatprep.mubr.bf16.mxu1 %v16413_v54  ;;  %v2568_v37 = vmax.f32 %v2536_v18, %v13894_v21  ;;  %v2569_v15 = vmax.f32 %v2537_v1, %v13896_v3  ;;  %v2570_v27 = vmax.f32 %v2538_v46, %v13258_v53  ;;  %v2571_v30 = vmax.f32 %v2539_v12, %v13260_v57 }
 0x2e9   : > { %v2572_v62 = vmax.f32 %v2540_v47, %v13303_v48  ;;  %v2573_v51 = vmax.f32 %v2541_v36, %v13309_v39  ;;  %v2574_v40 = vmax.f32 %v2542_v33, %v13370_v56  ;;  %v2575_v16 = vmax.f32 %v2543_v2, %v13372_v22 }
 0x2ea   : > { %v2594_v50 = vmax.f32 %v2562_v9, %v13882_v14  ;;  %v2595_v32 = vmax.f32 %v2563_v0, %v13884_v31  ;;  %v13981_v26 = vmax.f32 %v2564_v11, %v13886_v60  ;;  %v13984_v45 = vmax.f32 %v2565_v20, %v13892_v5 }
 0x2eb   : > { %v13987_v41 = vmax.f32 %v2566_v6, %v13894_v21  ;;  %v13990_v25 = vmax.f32 %v2567_v42, %v13896_v3  ;;  %v13993_v44 = vmax.f32 %v2568_v37, %v13258_v53  ;;  %v13996_v38 = vmax.f32 %v2569_v15, %v13260_v57 }
 0x2ec   : > { %v13999_v14 = vmax.f32 %v2570_v27, %v13303_v48  ;;  %v14002_v31 = vmax.f32 %v2571_v30, %v13309_v39  ;;  %v14005_v60 = vmax.f32 %v2572_v62, %v13370_v56  ;;  %v14008_v5 = vmax.f32 %v2573_v51, %v13372_v22 }
 0x2ed   : > { %v14011_v21 = vmax.f32 %v2574_v40, %v13427_v19  ;;  %v14014_v53 = vmax.f32 %v2575_v16, %v13435_v4  ;;  %v2706_v57 = vrot.slane %v2594_v50, 7  ;;  %v2722_v3 = vrot.slane %v2595_v32, 7 }
 0x2ee   : > { %v2818_v35 = vrot.slane %v2594_v50, 6  ;;  %v2834_v48 = vrot.slane %v2595_v32, 6  ;;  %v2930_v13 = vrot.slane %v2594_v50, 2  ;;  %5370 = vmatmul.mubr.bf16.gmra.mrb[120].mxu0 %v13818_v7  ;;  %v16414_v39 = vrot.slane %v13850_v58, 7 }
 0x2ef   : > { %5563 = vmatmul.mubr.bf16.gmra.mrb[120].mxu1 %v13818_v7  ;;  %v2946_v22 = vrot.slane %v2595_v32, 2  ;;  %v3042_v19 = vrot.slane %v2594_v50, 1  ;;  %v3058_v43 = vrot.slane %v2595_v32, 1  ;;  %5379 = vmatprep.mubr.bf16.mxu0 %v16413_v54  ;;  %v2754_v4 = vsel %vm2022_vm0, %v2706_v57, %v2722_v3 }
 0x2f0   : > { %v2770_v56 = vsel %vm2022_vm0, %v16414_v39, %v2706_v57  ;;  %5572 = vmatprep.mubr.bf16.mxu1 %v16413_v54  ;;  %v2866_v24 = vsel %vm2135_vm1, %v2818_v35, %v2834_v48  ;;  %v2707_v7 = vrot.slane %v13981_v26, 7  ;;  %v2787_v17 = vmax.f32 %v2595_v32, %v2754_v4 }
 0x2f1   : > { %v2786_v10 = vmax.f32 %v2594_v50, %v2770_v56  ;;  %v16415_v18 = vrot.slane %v13850_v58, 6  ;;  %v16416_v28 = vrot.slane %v13850_v58, 2  ;;  %v2994_v46 = vsel %vm2248_vm2, %v2930_v13, %v2946_v22  ;;  %v2666_v13 = vld [vmem:[#allocation4 + $0x40] sm:$0xff] }
 0x2f2   : > { %v3090_v47 = vsel %vm2361_vm3, %v3058_v43, %v3074_v34  ;;  %v3106_v36 = vsel %vm2361_vm3, %v3042_v19, %v3058_v43  ;;  %v2723_v33 = vrot.slane %v13984_v45, 7  ;;  %v2899_v2 = vmax.f32 %v2787_v17, %v2866_v24  ;;  %v16417_v56 = vld [vmem:[#allocation26_spill] sm:$0xff] }
 0x2f3   : > { %v2882_v52 = vsel %vm2135_vm1, %v16415_v18, %v2818_v35  ;;  %v2978_v1 = vsel %vm2248_vm2, %v2946_v22, %v16416_v28  ;;  %v2771_v9 = vsel %vm2022_vm0, %v2739_v63, %v2707_v7  ;;  %v2819_v0 = vrot.slane %v13981_v26, 6  ;;  %v10864_v19 = vld [vmem:[%s12043_s14 + $0x300] ss:$16 sps:$4 sm:$0xff]  }
 0x2f4   : > { %v2898_v12 = vmax.f32 %v2786_v10, %v2882_v52  ;;  %v2835_v11 = vrot.slane %v13984_v45, 6  ;;  %v2755_v58 = vsel %vm2022_vm0, %v2707_v7, %v2723_v33  ;;  %v2788_v6 = vmax.f32 %v13981_v26, %v2771_v9  ;;  %v10867_v7 = vld [vmem:[%s12043_s14 + $0x308] ss:$16 sps:$4 sm:$0xff]   ;;  %v10872_v33 = vld [vmem:[%s12043_s14 + $0x324] ss:$16 sps:$4 sm:$0xff]  }
 0x2f5   : > { %v2931_v34 = vrot.slane %v13981_v26, 2  ;;  %v3011_v42 = vmax.f32 %v2899_v2, %v2978_v1  ;;  %v2789_v37 = vmax.f32 %v13984_v45, %v2755_v58  ;;  %v2883_v63 = vsel %vm2135_vm1, %v2851_v59, %v2819_v0  ;;  %v10875_v2 = vld [vmem:[%s12043_s14 + $0x32c] ss:$16 sps:$4 sm:$0xff]  }
 0x2f6   : > { %v3010_v20 = vmax.f32 %v2898_v12, %v2994_v46  ;;  %v2867_v15 = vsel %vm2135_vm1, %v2819_v0, %v2835_v11  ;;  %v2900_v30 = vmax.f32 %v2788_v6, %v2883_v63  ;;  %v2947_v62 = vrot.slane %v13984_v45, 2  ;;  %5380 = vmatmul.mubr.bf16.gmra.mrb[124].mxu0 %v13941_v29  ;;  %v10870_v0 = vld [vmem:[%s12043_s14 + $0x320] ss:$16 sps:$4 sm:$0xff]  }
 0x2f7   : > { %v2963_v51 = vrot.slane %v13951_v55, 2  ;;  %5573 = vmatmul.mubr.bf16.gmra.mrb[124].mxu1 %v13941_v29  ;;  %v14065_v40 = vmax.f32 %v3011_v42, %v3090_v47  ;;  %v2901_v16 = vmax.f32 %v2789_v37, %v2867_v15  ;;  %v3043_v50 = vrot.slane %v13981_v26, 1  ;;  %6208 = vmatprep.mubr.bf16.mxu0 %v16413_v54 }
 0x2f8   : > { %v14059_v27 = vmax.f32 %v3010_v20, %v3106_v36  ;;  %v3059_v32 = vrot.slane %v13984_v45, 1  ;;  %6401 = vmatprep.mubr.bf16.mxu1 %v16413_v54  ;;  %v2995_v29 = vsel %vm2248_vm2, %v2931_v34, %v2947_v62  ;;  %v3075_v57 = vrot.slane %v13951_v55, 1  ;;  %v10873_v34 = vld [vmem:[%s12043_s14 + $0x328] ss:$16 sps:$4 sm:$0xff]  }
 0x2f9   : > { %v2979_v59 = vsel %vm2248_vm2, %v2947_v62, %v2963_v51  ;;  %3155 = vst [vmem:[#allocation3 + $0x28] sm:$0xff] %v14065_v40  ;;  %v3012_v3 = vmax.f32 %v2900_v30, %v2995_v29  ;;  %v3229_v55 = vmax.f32 %v13813_v23, %v14065_v40  ;;  %v3259_v22 = vmax.f32 %v16417_v56, %v14065_v40  ;;  %v10878_v30 = vld [vmem:[%s12043_s14 + $0x344] ss:$16 sps:$4 sm:$0xff]  }
 0x2fa   : > { %3154 = vst [vmem:[#allocation3 + $0x20] sm:$0xff] %v14059_v27  ;;  %v3228_v26 = vmax.f32 %v13811_v49, %v14059_v27  ;;  %v5967_v45 = vpack.c.bf16 %v14065_v40, %v14059_v27  ;;  %v3013_v35 = vmax.f32 %v2901_v16, %v2979_v59  ;;  %v3107_v48 = vsel %vm2361_vm3, %v3043_v50, %v3059_v32  ;;  %v10881_v59 = vld [vmem:[%s12043_s14 + $0x34c] ss:$16 sps:$4 sm:$0xff]  }
 0x2fb   : > { %v3091_v39 = vsel %vm2361_vm3, %v3059_v32, %v3075_v57  ;;  %v3258_v49 = vmax.f32 %v13845_v8, %v14059_v27  ;;  %v14093_v43 = vmax.f32 %v3012_v3, %v3107_v48  ;;  %v2708_v10 = vrot.slane %v13987_v41, 7  ;;  %v14143_v32 = vld [vmem:[#allocation4 + $0x58] sm:$0xff] }
 0x2fc   : > { %v14095_v4 = vmax.f32 %v3013_v35, %v3091_v39  ;;  %v2724_v24 = vrot.slane %v13990_v25, 7  ;;  %v2740_v17 = vrot.slane %v2666_v13, 7  ;;  %v2820_v23 = vrot.slane %v13987_v41, 6 }
 0x2fd   : > { %v2836_v8 = vrot.slane %v13990_v25, 6  ;;  %v2852_v18 = vrot.slane %v2666_v13, 6  ;;  %3156 = vst [vmem:[#allocation3 + $0x30] sm:$0xff] %v14093_v43  ;;  %v3230_v52 = vmax.f32 %v14059_v27, %v14093_v43  ;;  %v14109_v1 = vmax.f32 %v3228_v26, %v14093_v43 }
 0x2fe   : > { %3157 = vst [vmem:[#allocation3 + $0x38] sm:$0xff] %v14095_v4  ;;  %v3231_v28 = vmax.f32 %v14065_v40, %v14095_v4  ;;  %v14112_v46 = vmax.f32 %v3229_v55, %v14095_v4  ;;  %v14115_v12 = vmax.f32 %v3258_v49, %v14093_v43  ;;  %v14118_v47 = vmax.f32 %v3259_v22, %v14095_v4 }
 0x2ff   : > { %v5968_v36 = vpack.c.bf16 %v14095_v4, %v14093_v43  ;;  %v2756_v9 = vsel %vm2022_vm0, %v2708_v10, %v2724_v24  ;;  %6209 = vmatmul.mubr.bf16.vlgmr.msra.gmra.mrb[64].mxu0 %v5967_v45  ;;  %6402 = vmatmul.mubr.bf16.vlgmr.msra.gmra.mrb[64].mxu1 %v5967_v45  ;;  %v2772_v11 = vsel %vm2022_vm0, %v2740_v17, %v2708_v10  ;;  %v2932_v6 = vrot.slane %v13987_v41, 2  ;;  %v10876_v10 = vld [vmem:[%s12043_s14 + $0x340] ss:$16 sps:$4 sm:$0xff]  }
 0x300   : > { %v2791_v20 = vmax.f32 %v13990_v25, %v2756_v9  ;;  %v2868_v58 = vsel %vm2135_vm1, %v2820_v23, %v2836_v8  ;;  %7156 = vmatpush1.bf16.msra.mxu0 %v10864_v19  ;;  %7349 = vmatpush1.bf16.msra.mxu1 %v10867_v7  ;;  %v2790_v42 = vmax.f32 %v13987_v41, %v2772_v11  ;;  %v2948_v15 = vrot.slane %v13990_v25, 2  ;;  %v10879_v8 = vld [vmem:[%s12043_s14 + $0x348] ss:$16 sps:$4 sm:$0xff]   ;;  %v10887_v11 = vld [vmem:[%s12043_s14 + $0x36c] ss:$16 sps:$4 sm:$0xff]  }
 0x301   : > { %v2884_v37 = vsel %vm2135_vm1, %v2852_v18, %v2820_v23  ;;  %v2964_v63 = vrot.slane %v2666_v13, 2  ;;  %6218 = vmatprep.mubr.bf16.mxu0 %v16413_v54  ;;  %6411 = vmatprep.mubr.bf16.mxu1 %v16413_v54  ;;  %v3044_v51 = vrot.slane %v13987_v41, 1  ;;  %v3060_v16 = vrot.slane %v13990_v25, 1 }
 0x302   : > { %v2903_v62 = vmax.f32 %v2791_v20, %v2868_v58  ;;  %v3076_v50 = vrot.slane %v2666_v13, 1  ;;  %7157 = vmatprep.subr.bf16.mxu0 %v10872_v33  ;;  %7350 = vmatprep.subr.bf16.mxu1 %v10875_v2  ;;  %v2902_v29 = vmax.f32 %v2790_v42, %v2884_v37  ;;  %v2996_v26 = vsel %vm2248_vm2, %v2932_v6, %v2948_v15 }
 0x303   : > { %v2980_v57 = vsel %vm2248_vm2, %v2948_v15, %v2964_v63  ;;  %v2709_v45 = vrot.slane %v13993_v44, 7  ;;  %v3108_v25 = vsel %vm2361_vm3, %v3044_v51, %v3060_v16  ;;  %v2725_v35 = vrot.slane %v13996_v38, 7  ;;  %v10890_v15 = vld [vmem:[%s12043_s14 + $0x384] ss:$16 sps:$4 sm:$0xff]  }
 0x304   : > { %v3015_v3 = vmax.f32 %v2903_v62, %v2980_v57  ;;  %v3092_v41 = vsel %vm2361_vm3, %v3060_v16, %v3076_v50  ;;  %v3014_v48 = vmax.f32 %v2902_v29, %v2996_v26  ;;  %7158 = vmatpush1.bf16.msra.mxu0 %v10870_v0  ;;  %7351 = vmatpush1.bf16.msra.mxu1 %v10873_v34  ;;  %v2741_v13 = vrot.slane %v14143_v32, 7  ;;  %v10884_v0 = vld [vmem:[%s12043_s14 + $0x364] ss:$16 sps:$4 sm:$0xff]  }
 0x305   : > { %v2821_v39 = vrot.slane %v13993_v44, 6  ;;  %v2837_v55 = vrot.slane %v13996_v38, 6  ;;  %v2757_v56 = vsel %vm2022_vm0, %v2709_v45, %v2725_v35  ;;  %v2853_v22 = vrot.slane %v14143_v32, 6  ;;  %7159 = vmatprep.subr.bf16.mxu0 %v10878_v30  ;;  %7352 = vmatprep.subr.bf16.mxu1 %v10881_v59  ;;  %v10888_v35 = vld [vmem:[%s12043_s14 + $0x380] ss:$16 sps:$4 sm:$0xff]  }
 0x306   : > { %v14159_v49 = vmax.f32 %v3015_v3, %v3092_v41  ;;  %v2933_v19 = vrot.slane %v13993_v44, 2  ;;  %v14166_v24 = vmax.f32 %v3014_v48, %v3108_v25  ;;  %v2773_v7 = vsel %vm2022_vm0, %v2741_v13, %v2709_v45 }
 0x307   : > { %v2793_v17 = vmax.f32 %v13996_v38, %v2757_v56  ;;  %v2869_v23 = vsel %vm2135_vm1, %v2821_v39, %v2837_v55  ;;  %6219 = vmatmul.mubr.bf16.gmra.mrb[68].mxu0 %v5968_v36  ;;  %6412 = vmatmul.mubr.bf16.gmra.mrb[68].mxu1 %v5968_v36  ;;  %v2949_v9 = vrot.slane %v13996_v38, 2  ;;  %v2965_v20 = vrot.slane %v14143_v32, 2  ;;  %v10891_v56 = vld [vmem:[%s12043_s14 + $0x388] ss:$16 sps:$4 sm:$0xff]  }
 0x308   : > { %3159 = vst [vmem:[#allocation3 + $0x48] sm:$0xff] %v14159_v49  ;;  %v3233_v18 = vmax.f32 %v14095_v4, %v14159_v49  ;;  %v14181_v33 = vmax.f32 %v3231_v28, %v14159_v49  ;;  %v3293_v2 = vmax.f32 %v14112_v46, %v14159_v49  ;;  %6228 = vmatprep.mubr.bf16.mxu0 %v16413_v54  ;;  %3158 = vst [vmem:[#allocation3 + $0x40] sm:$0xff] %v14166_v24 }
 0x309   : > { %6421 = vmatprep.mubr.bf16.mxu1 %v16413_v54  ;;  %v3232_v36 = vmax.f32 %v14093_v43, %v14166_v24  ;;  %v14197_v40 = vmax.f32 %v3230_v52, %v14166_v24  ;;  %v3292_v28 = vmax.f32 %v14109_v1, %v14166_v24  ;;  %v3322_v58 = vmax.f32 %v14115_v12, %v14166_v24  ;;  %v14209_v43 = vld [vmem:[#allocation4 + $0x70] sm:$0xff] }
 0x30a   : > { %v3323_v6 = vmax.f32 %v14118_v47, %v14159_v49  ;;  %v5969_v34 = vpack.c.bf16 %v14159_v49, %v14166_v24  ;;  %v2792_v27 = vmax.f32 %v13993_v44, %v2773_v7  ;;  %7160 = vmatpush1.bf16.msra.mxu0 %v10876_v10  ;;  %v10882_v52 = vld [vmem:[%s12043_s14 + $0x360] ss:$16 sps:$4 sm:$0xff]   ;;  %v2885_v1 = vsel %vm2135_vm1, %v2853_v22, %v2821_v39  ;;  %v10885_v47 = vld [vmem:[%s12043_s14 + $0x368] ss:$16 sps:$4 sm:$0xff]   ;;  %v10896_v22 = vld [vmem:[%s12043_s14 + $0x3a4] ss:$16 sps:$4 sm:$0xff]  }
 0x30b   : > { %v2905_v42 = vmax.f32 %v2793_v17, %v2869_v23  ;;  %v2981_v37 = vsel %vm2248_vm2, %v2949_v9, %v2965_v20  ;;  %v2997_v12 = vsel %vm2248_vm2, %v2933_v19, %v2949_v9  ;;  %7353 = vmatpush1.bf16.msra.mxu1 %v10879_v8  ;;  %3354 = vst [vmem:[#allocation4] sm:$0xff] %v3322_v58  ;;  %v3045_v30 = vrot.slane %v13993_v44, 1  ;;  %v10899_v23 = vld [vmem:[%s12043_s14 + $0x3ac] ss:$16 sps:$4 sm:$0xff]   ;;  %v10894_v58 = vld [vmem:[%s12043_s14 + $0x3a0] ss:$16 sps:$4 sm:$0xff]  }
 0x30c   : > { %3355 = vst [vmem:[#allocation4 + $0x8] sm:$0xff] %v3323_v6  ;;  %v2904_v63 = vmax.f32 %v2792_v27, %v2885_v1  ;;  %v3061_v62 = vrot.slane %v13996_v38, 1  ;;  %v3077_v51 = vrot.slane %v14143_v32, 1  ;;  %7161 = vmatprep.subr.bf16.mxu0 %v10884_v0  ;;  %7354 = vmatprep.subr.bf16.mxu1 %v10887_v11  ;;  %v2710_v50 = vrot.slane %v13999_v14, 7  ;;  %v10893_v32 = vld [vmem:[%s12043_s14 + $0x38c] ss:$16 sps:$4 sm:$0xff]  }
 0x30d   : > { %v3017_v16 = vmax.f32 %v2905_v42, %v2981_v37  ;;  %v2726_v59 = vrot.slane %v14002_v31, 7  ;;  %v2742_v29 = vrot.slane %v14209_v43, 7  ;;  %v2822_v38 = vrot.slane %v13999_v14, 6  ;;  %v14281_v20 = vld [vmem:[#allocation4 + $0x88] sm:$0xff] }
 0x30e   : > { %v3016_v57 = vmax.f32 %v2904_v63, %v2997_v12  ;;  %v3093_v26 = vsel %vm2361_vm3, %v3061_v62, %v3077_v51  ;;  %v3109_v44 = vsel %vm2361_vm3, %v3045_v30, %v3061_v62  ;;  %7162 = vmatpush1.bf16.msra.mxu0 %v10882_v52  ;;  %v2838_v25 = vrot.slane %v14002_v31, 6  ;;  %v10905_v62 = vld [vmem:[%s12043_s14 + $0x3cc] ss:$16 sps:$4 sm:$0xff]  }
 0x30f   : > { %v14232_v45 = vmax.f32 %v3017_v16, %v3093_v26  ;;  %v2758_v3 = vsel %vm2022_vm0, %v2710_v50, %v2726_v59  ;;  %v2774_v41 = vsel %vm2022_vm0, %v2742_v29, %v2710_v50  ;;  %7355 = vmatpush1.bf16.msra.mxu1 %v10885_v47  ;;  %7163 = vmatprep.subr.bf16.mxu0 %v10890_v15  ;;  %v2854_v55 = vrot.slane %v14209_v43, 6  ;;  %v10902_v15 = vld [vmem:[%s12043_s14 + $0x3c4] ss:$16 sps:$4 sm:$0xff]   ;;  %v10900_v29 = vld [vmem:[%s12043_s14 + $0x3c0] ss:$16 sps:$4 sm:$0xff]  }
 0x310   : > { %6229 = vmatmul.mubr.bf16.gmra.mrb[72].mxu0 %v5969_v34  ;;  %6422 = vmatmul.mubr.bf16.gmra.mrb[72].mxu1 %v5969_v34  ;;  %v14240_v48 = vmax.f32 %v3016_v57, %v3109_v44  ;;  %v2794_v13 = vmax.f32 %v13999_v14, %v2774_v41  ;;  %v2795_v39 = vmax.f32 %v14002_v31, %v2758_v3  ;;  %v2934_v17 = vrot.slane %v13999_v14, 2 }
 0x311   : > { %6238 = vmatprep.mubr.bf16.mxu0 %v16413_v54  ;;  %6431 = vmatprep.mubr.bf16.mxu1 %v16413_v54  ;;  %3161 = vst [vmem:[#allocation3 + $0x58] sm:$0xff] %v14232_v45  ;;  %v3235_v19 = vmax.f32 %v14159_v49, %v14232_v45  ;;  %v14256_v10 = vmax.f32 %v3233_v18, %v14232_v45  ;;  %v2950_v46 = vrot.slane %v14002_v31, 2  ;;  %v3046_v34 = vrot.slane %v13999_v14, 1  ;;  %v10897_v14 = vld [vmem:[%s12043_s14 + $0x3a8] ss:$16 sps:$4 sm:$0xff]  }
 0x312   : > { %v3295_v7 = vmax.f32 %v14181_v33, %v14232_v45  ;;  %3160 = vst [vmem:[#allocation3 + $0x50] sm:$0xff] %v14240_v48  ;;  %v3234_v8 = vmax.f32 %v14166_v24, %v14240_v48  ;;  %v14266_v9 = vmax.f32 %v3232_v36, %v14240_v48  ;;  %v3294_v4 = vmax.f32 %v14197_v40, %v14240_v48 }
 0x313   : > { %v3324_v18 = vmax.f32 %v3292_v28, %v14240_v48  ;;  %7356 = vmatprep.subr.bf16.mxu1 %v10893_v32  ;;  %v3325_v0 = vmax.f32 %v3293_v2, %v14232_v45  ;;  %v5970_v11 = vpack.c.bf16 %v14232_v45, %v14240_v48  ;;  %v2870_v24 = vsel %vm2135_vm1, %v2822_v38, %v2838_v25  ;;  %v10908_v32 = vld [vmem:[%s12043_s14 + $0x3e4] ss:$16 sps:$4 sm:$0xff]  }
 0x314   : > { %v2886_v36 = vsel %vm2135_vm1, %v2854_v55, %v2822_v38  ;;  %7164 = vmatpush1.bf16.msra.mxu0 %v10888_v35  ;;  %v2907_v6 = vmax.f32 %v2795_v39, %v2870_v24  ;;  %v2966_v2 = vrot.slane %v14209_v43, 2  ;;  %7357 = vmatpush1.bf16.msra.mxu1 %v10891_v56  ;;  %v3062_v27 = vrot.slane %v14002_v31, 1 }
 0x315   : > { %3356 = vst [vmem:[#allocation4 + $0x18] sm:$0xff] %v3324_v18  ;;  %v2906_v28 = vmax.f32 %v2794_v13, %v2886_v36  ;;  %7165 = vmatprep.subr.bf16.mxu0 %v10896_v22  ;;  %3357 = vst [vmem:[#allocation4 + $0x20] sm:$0xff] %v3325_v0  ;;  %v3078_v52 = vrot.slane %v14209_v43, 1  ;;  %v2711_v1 = vrot.slane %v14005_v60, 7  ;;  %7358 = vmatprep.subr.bf16.mxu1 %v10899_v23  ;;  %v2727_v12 = vrot.slane %v14008_v5, 7 }
 0x316   : > { %v2982_v42 = vsel %vm2248_vm2, %v2950_v46, %v2966_v2  ;;  %v2998_v37 = vsel %vm2248_vm2, %v2934_v17, %v2950_v46  ;;  %v2743_v47 = vrot.slane %v14281_v20, 7  ;;  %v3110_v30 = vsel %vm2361_vm3, %v3046_v34, %v3062_v27  ;;  %v10903_v13 = vld [vmem:[%s12043_s14 + $0x3c8] ss:$16 sps:$4 sm:$0xff]   ;;  %v10911_v17 = vld [vmem:[%s12043_s14 + $0x3ec] ss:$16 sps:$4 sm:$0xff]  }
 0x317   : > { %v3018_v63 = vmax.f32 %v2906_v28, %v2998_v37  ;;  %v3019_v31 = vmax.f32 %v2907_v6, %v2982_v42  ;;  %v3094_v43 = vsel %vm2361_vm3, %v3062_v27, %v3078_v52  ;;  %v2759_v51 = vsel %vm2022_vm0, %v2711_v1, %v2727_v12  ;;  %v10909_v28 = vld [vmem:[%s12043_s14 + $0x3e8] ss:$16 sps:$4 sm:$0xff]  }
 0x318   : > { %7166 = vmatpush1.bf16.msra.mxu0 %v10894_v58  ;;  %6432 = vmatmul.mubr.bf16.gmra.mrb[76].mxu1 %v5970_v11  ;;  %v2775_v16 = vsel %vm2022_vm0, %v2743_v47, %v2711_v1  ;;  %v2823_v50 = vrot.slane %v14005_v60, 6  ;;  %v2839_v59 = vrot.slane %v14008_v5, 6  ;;  %v2855_v38 = vrot.slane %v14281_v20, 6 }
 0x319   : > { %6239 = vmatmul.mubr.bf16.gmra.mrb[76].mxu0 %v5970_v11  ;;  %6441 = vmatprep.mubr.bf16.mxu1 %v16413_v54  ;;  %v14312_v57 = vmax.f32 %v3018_v63, %v3110_v30  ;;  %v14314_v26 = vmax.f32 %v3019_v31, %v3094_v43  ;;  %v2796_v44 = vmax.f32 %v14005_v60, %v2775_v16  ;;  %v2935_v25 = vrot.slane %v14005_v60, 2  ;;  %v14358_v11 = vld [vmem:[#allocation4 + $0xa0] sm:$0xff] }
 0x31a   : > { %6248 = vmatprep.mubr.bf16.mxu0 %v16413_v54  ;;  %v2797_v3 = vmax.f32 %v14008_v5, %v2759_v51  ;;  %v2871_v41 = vsel %vm2135_vm1, %v2823_v50, %v2839_v59  ;;  %v2951_v35 = vrot.slane %v14008_v5, 2  ;;  %7359 = vmatpush1.bf16.msra.mxu1 %v10897_v14  ;;  %v3079_v24 = vrot.slane %v14281_v20, 1  ;;  %v14410_v59 = vld [vmem:[#allocation4 + $0xa8] sm:$0xff] }
 0x31b   : > { %7167 = vmatprep.subr.bf16.mxu0 %v10902_v15  ;;  %3162 = vst [vmem:[#allocation3 + $0x60] sm:$0xff] %v14312_v57  ;;  %3163 = vst [vmem:[#allocation3 + $0x68] sm:$0xff] %v14314_v26  ;;  %v3236_v39 = vmax.f32 %v14240_v48, %v14312_v57  ;;  %v3237_v55 = vmax.f32 %v14232_v45, %v14314_v26  ;;  %v14332_v56 = vmax.f32 %v3234_v8, %v14312_v57 }
 0x31c   : > { %v14338_v22 = vmax.f32 %v3235_v19, %v14314_v26  ;;  %7360 = vmatprep.subr.bf16.mxu1 %v10905_v62  ;;  %v3296_v23 = vmax.f32 %v14266_v9, %v14312_v57  ;;  %v3297_v18 = vmax.f32 %v14256_v10, %v14314_v26  ;;  %v3326_v8 = vmax.f32 %v3294_v4, %v14312_v57 }
 0x31d   : > { %v3327_v49 = vmax.f32 %v3295_v7, %v14314_v26  ;;  %7168 = vmatpush1.bf16.msra.mxu0 %v10900_v29  ;;  %v5971_v19 = vpack.c.bf16 %v14314_v26, %v14312_v57  ;;  %v2887_v9 = vsel %vm2135_vm1, %v2855_v38, %v2823_v50  ;;  %v2909_v0 = vmax.f32 %v2797_v3, %v2871_v41  ;;  %v10906_v7 = vld [vmem:[%s12043_s14 + $0x3e0] ss:$16 sps:$4 sm:$0xff]  }
 0x31e   : > { %v2967_v10 = vrot.slane %v14281_v20, 2  ;;  %7169 = vmatprep.subr.bf16.mxu0 %v10908_v32  ;;  %3358 = vst [vmem:[#allocation4 + $0x30] sm:$0xff] %v3326_v8  ;;  %v2908_v40 = vmax.f32 %v2796_v44, %v2887_v9  ;;  %v2999_v33 = vsel %vm2248_vm2, %v2935_v25, %v2951_v35  ;;  %v3047_v45 = vrot.slane %v14005_v60, 1  ;;  %7361 = vmatpush1.bf16.msra.mxu1 %v10903_v13  ;;  %v14412_v29 = vld [vmem:[#allocation4 + $0xb0] sm:$0xff]  ;;  %v14419_v32 = vld [vmem:[#allocation4 + $0xb8] sm:$0xff] }
 0x31f   : > { %3359 = vst [vmem:[#allocation4 + $0x38] sm:$0xff] %v3327_v49  ;;  %v3063_v48 = vrot.slane %v14008_v5, 1  ;;  %v2712_v36 = vrot.slane %v14011_v21, 7  ;;  %v2728_v58 = vrot.slane %v14014_v53, 7  ;;  %7362 = vmatprep.subr.bf16.mxu1 %v10911_v17  ;;  %v2744_v5 = vrot.slane %v14358_v11, 7 }
 0x320   : > { %v2983_v4 = vsel %vm2248_vm2, %v2951_v35, %v2967_v10  ;;  %6442 = vmatmul.mubr.bf16.gmra.mrb[80].mxu1 %v5971_v19  ;;  %v3020_v6 = vmax.f32 %v2908_v40, %v2999_v33  ;;  %v2824_v34 = vrot.slane %v14011_v21, 6  ;;  %v2840_v27 = vrot.slane %v14014_v53, 6 }
 0x321   : > { %6249 = vmatmul.mubr.bf16.gmra.mrb[80].mxu0 %v5971_v19  ;;  %v3021_v46 = vmax.f32 %v2909_v0, %v2983_v4  ;;  %v3111_v60 = vsel %vm2361_vm3, %v3047_v45, %v3063_v48  ;;  %6451 = vmatprep.mubr.bf16.mxu1 %v16413_v54  ;;  %v3095_v20 = vsel %vm2361_vm3, %v3063_v48, %v3079_v24  ;;  %v2856_v47 = vrot.slane %v14358_v11, 6 }
 0x322   : > { %6258 = vmatprep.mubr.bf16.mxu0 %v16413_v54  ;;  %v2760_v2 = vsel %vm2022_vm0, %v2712_v36, %v2728_v58  ;;  %v14382_v52 = vmax.f32 %v3020_v6, %v3111_v60  ;;  %v2776_v42 = vsel %vm2022_vm0, %v2744_v5, %v2712_v36  ;;  %7170 = vmatpush1.bf16.msra.mxu0 %v10906_v7  ;;  %v2936_v15 = vrot.slane %v14011_v21, 2 }
 0x323   : > { %v14384_v1 = vmax.f32 %v3021_v46, %v3095_v20  ;;  %v2799_v37 = vmax.f32 %v14014_v53, %v2760_v2  ;;  %v2798_v12 = vmax.f32 %v14011_v21, %v2776_v42  ;;  %v2872_v14 = vsel %vm2135_vm1, %v2824_v34, %v2840_v27  ;;  %7363 = vmatpush1.bf16.msra.mxu1 %v10909_v28  ;;  %v14468_v46 = vld [vmem:[#allocation4 + $0xc0] sm:$0xff]  ;;  %v14479_v27 = vld [vmem:[#allocation4 + $0xd0] sm:$0xff] }
 0x324   : > { %v3238_v63 = vmax.f32 %v14312_v57, %v14382_v52  ;;  %v14399_v43 = vmax.f32 %v3236_v39, %v14382_v52  ;;  %v3298_v62 = vmax.f32 %v14332_v56, %v14382_v52  ;;  %v3328_v16 = vmax.f32 %v3296_v23, %v14382_v52 }
 0x325   : > { %v3239_v31 = vmax.f32 %v14314_v26, %v14384_v1  ;;  %v14402_v30 = vmax.f32 %v3237_v55, %v14384_v1  ;;  %v3299_v51 = vmax.f32 %v14338_v22, %v14384_v1  ;;  %v3329_v50 = vmax.f32 %v3297_v18, %v14384_v1 }
 0x326   : > { %v5972_v57 = vpack.c.bf16 %v14384_v1, %v14382_v52  ;;  %v2888_v26 = vsel %vm2135_vm1, %v2856_v47, %v2824_v34  ;;  %v2911_v44 = vmax.f32 %v2799_v37, %v2872_v14  ;;  %v2952_v38 = vrot.slane %v14014_v53, 2  ;;  %3360 = vst [vmem:[#allocation4 + $0x48] sm:$0xff] %v3328_v16  ;;  %v14477_v34 = vld [vmem:[#allocation4 + $0xc8] sm:$0xff] }
 0x327   : > { %3361 = vst [vmem:[#allocation4 + $0x50] sm:$0xff] %v3329_v50  ;;  %v2910_v3 = vmax.f32 %v2798_v12, %v2888_v26  ;;  %v2968_v41 = vrot.slane %v14358_v11, 2  ;;  %v3048_v25 = vrot.slane %v14011_v21, 1  ;;  %v3064_v35 = vrot.slane %v14014_v53, 1 }
 0x328   : > { %6452 = vmatmul.mubr.bf16.gmra.mrb[84].mxu1 %v5972_v57  ;;  %v3000_v13 = vsel %vm2248_vm2, %v2936_v15, %v2952_v38  ;;  %v3080_v39 = vrot.slane %v14358_v11, 1  ;;  %v2713_v55 = vrot.slane %v14410_v59, 7  ;;  %v2729_v56 = vrot.slane %v14412_v29, 7 }
 0x329   : > { %6259 = vmatmul.mubr.bf16.gmra.mrb[84].mxu0 %v5972_v57  ;;  %6461 = vmatprep.mubr.bf16.mxu1 %v16413_v54  ;;  %v2984_v21 = vsel %vm2248_vm2, %v2952_v38, %v2968_v41  ;;  %v3022_v22 = vmax.f32 %v2910_v3, %v3000_v13  ;;  %v3112_v53 = vsel %vm2361_vm3, %v3048_v25, %v3064_v35  ;;  %v2745_v17 = vrot.slane %v14419_v32, 7 }
 0x32a   : > { %6268 = vmatprep.mubr.bf16.mxu0 %v16413_v54  ;;  %v3023_v23 = vmax.f32 %v2911_v44, %v2984_v21  ;;  %v3096_v18 = vsel %vm2361_vm3, %v3064_v35, %v3080_v39  ;;  %v2761_v8 = vsel %vm2022_vm0, %v2713_v55, %v2729_v56  ;;  %v2825_v49 = vrot.slane %v14410_v59, 6 }
 0x32b   : > { %v14441_v19 = vmax.f32 %v3022_v22, %v3112_v53  ;;  %v2777_v9 = vsel %vm2022_vm0, %v2745_v17, %v2713_v55  ;;  %v2801_v0 = vmax.f32 %v14412_v29, %v2761_v8  ;;  %v2841_v10 = vrot.slane %v14412_v29, 6  ;;  %v14527_v22 = vld [vmem:[#allocation4 + $0xd8] sm:$0xff]  ;;  %v14536_v8 = vld [vmem:[#allocation4 + $0xe0] sm:$0xff] }
 0x32c   : > { %v14447_v11 = vmax.f32 %v3023_v23, %v3096_v18  ;;  %v2800_v40 = vmax.f32 %v14410_v59, %v2777_v9  ;;  %v2857_v33 = vrot.slane %v14419_v32, 6  ;;  %v2937_v45 = vrot.slane %v14410_v59, 2 }
 0x32d   : > { %v3240_v48 = vmax.f32 %v14382_v52, %v14441_v19  ;;  %v14455_v7 = vmax.f32 %v3238_v63, %v14441_v19  ;;  %v3300_v4 = vmax.f32 %v14399_v43, %v14441_v19  ;;  %v3330_v24 = vmax.f32 %v3298_v62, %v14441_v19 }
 0x32e   : > { %v3241_v36 = vmax.f32 %v14384_v1, %v14447_v11  ;;  %v14463_v58 = vmax.f32 %v3239_v31, %v14447_v11  ;;  %v3301_v28 = vmax.f32 %v14402_v30, %v14447_v11  ;;  %v3331_v6 = vmax.f32 %v3299_v51, %v14447_v11 }
 0x32f   : > { %v5973_v60 = vpack.c.bf16 %v14447_v11, %v14441_v19  ;;  %3362 = vst [vmem:[#allocation4 + $0x60] sm:$0xff] %v3330_v24  ;;  %v2873_v5 = vsel %vm2135_vm1, %v2825_v49, %v2841_v10  ;;  %v2889_v20 = vsel %vm2135_vm1, %v2857_v33, %v2825_v49  ;;  %v2953_v2 = vrot.slane %v14412_v29, 2  ;;  %v14538_v49 = vld [vmem:[#allocation4 + $0xe8] sm:$0xff] }
 0x330   : > { %3363 = vst [vmem:[#allocation4 + $0x68] sm:$0xff] %v3331_v6  ;;  %v2912_v52 = vmax.f32 %v2800_v40, %v2889_v20  ;;  %v2913_v1 = vmax.f32 %v2801_v0, %v2873_v5  ;;  %v2969_v42 = vrot.slane %v14419_v32, 2  ;;  %v3049_v37 = vrot.slane %v14410_v59, 1 }
 0x331   : > { %6269 = vmatmul.mubr.bf16.gmra.mrb[88].mxu0 %v5973_v60  ;;  %6462 = vmatmul.mubr.bf16.gmra.mrb[88].mxu1 %v5973_v60  ;;  %v3001_v12 = vsel %vm2248_vm2, %v2937_v45, %v2953_v2  ;;  %v3065_v47 = vrot.slane %v14412_v29, 1  ;;  %v3081_v14 = vrot.slane %v14419_v32, 1  ;;  %v2714_v15 = vrot.slane %v14468_v46, 7 }
 0x332   : > { %6278 = vmatprep.mubr.bf16.mxu0 %v16413_v54  ;;  %6471 = vmatprep.mubr.bf16.mxu1 %v16413_v54  ;;  %v2985_v63 = vsel %vm2248_vm2, %v2953_v2, %v2969_v42  ;;  %v3024_v31 = vmax.f32 %v2912_v52, %v3001_v12  ;;  %v2730_v43 = vrot.slane %v14477_v34, 7  ;;  %v2746_v30 = vrot.slane %v14479_v27, 7 }
 0x333   : > { %v3025_v62 = vmax.f32 %v2913_v1, %v2985_v63  ;;  %v3097_v51 = vsel %vm2361_vm3, %v3065_v47, %v3081_v14  ;;  %v3113_v16 = vsel %vm2361_vm3, %v3049_v37, %v3065_v47  ;;  %v2826_v50 = vrot.slane %v14468_v46, 6 }
 0x334   : > { %v14499_v59 = vmax.f32 %v3024_v31, %v3113_v16  ;;  %v2762_v29 = vsel %vm2022_vm0, %v2714_v15, %v2730_v43  ;;  %v2778_v57 = vsel %vm2022_vm0, %v2746_v30, %v2714_v15  ;;  %v2842_v26 = vrot.slane %v14477_v34, 6  ;;  %v14593_v16 = vld [vmem:[#allocation4 + $0xf8] sm:$0xff] }
 0x335   : > { %v14506_v44 = vmax.f32 %v3025_v62, %v3097_v51  ;;  %v2802_v38 = vmax.f32 %v14468_v46, %v2778_v57  ;;  %v2803_v32 = vmax.f32 %v14477_v34, %v2762_v29  ;;  %v2858_v3 = vrot.slane %v14479_v27, 6  ;;  %v14591_v51 = vld [vmem:[#allocation4 + $0xf0] sm:$0xff] }
 0x336   : > { %v3242_v41 = vmax.f32 %v14441_v19, %v14499_v59  ;;  %v14514_v25 = vmax.f32 %v3240_v48, %v14499_v59  ;;  %v3302_v35 = vmax.f32 %v14455_v7, %v14499_v59  ;;  %v3332_v13 = vmax.f32 %v3300_v4, %v14499_v59 }
 0x337   : > { %v3243_v39 = vmax.f32 %v14447_v11, %v14506_v44  ;;  %v14522_v55 = vmax.f32 %v3241_v36, %v14506_v44  ;;  %v3303_v56 = vmax.f32 %v14463_v58, %v14506_v44  ;;  %v3333_v21 = vmax.f32 %v3301_v28, %v14506_v44 }
 0x338   : > { %v5974_v53 = vpack.c.bf16 %v14506_v44, %v14499_v59  ;;  %3364 = vst [vmem:[#allocation4 + $0x78] sm:$0xff] %v3332_v13  ;;  %v2874_v17 = vsel %vm2135_vm1, %v2826_v50, %v2842_v26  ;;  %v2890_v23 = vsel %vm2135_vm1, %v2858_v3, %v2826_v50  ;;  %v2938_v18 = vrot.slane %v14468_v46, 2  ;;  %v14600_v26 = vld [vmem:[#allocation4 + $0x100] sm:$0xff] }
 0x339   : > { %3365 = vst [vmem:[#allocation4 + $0x80] sm:$0xff] %v3333_v21  ;;  %v2914_v19 = vmax.f32 %v2802_v38, %v2890_v23  ;;  %v2915_v9 = vmax.f32 %v2803_v32, %v2874_v17  ;;  %v2954_v0 = vrot.slane %v14477_v34, 2  ;;  %v2970_v10 = vrot.slane %v14479_v27, 2 }
 0x33a   : > { %6279 = vmatmul.mubr.bf16.gmra.mrb[92].mxu0 %v5974_v53  ;;  %6472 = vmatmul.mubr.bf16.gmra.mrb[92].mxu1 %v5974_v53  ;;  %v3050_v11 = vrot.slane %v14468_v46, 1  ;;  %v3066_v40 = vrot.slane %v14477_v34, 1  ;;  %v3082_v33 = vrot.slane %v14479_v27, 1  ;;  %v2715_v45 = vrot.slane %v14527_v22, 7 }
 0x33b   : > { %6288 = vmatprep.mubr.bf16.mxu0 %v16413_v54  ;;  %6481 = vmatprep.mubr.bf16.mxu1 %v16413_v54  ;;  %v2986_v48 = vsel %vm2248_vm2, %v2954_v0, %v2970_v10  ;;  %v3002_v7 = vsel %vm2248_vm2, %v2938_v18, %v2954_v0  ;;  %v2731_v4 = vrot.slane %v14536_v8, 7  ;;  %v2747_v24 = vrot.slane %v14538_v49, 7 }
 0x33c   : > { %v3026_v36 = vmax.f32 %v2914_v19, %v3002_v7  ;;  %v3027_v58 = vmax.f32 %v2915_v9, %v2986_v48  ;;  %v3098_v28 = vsel %vm2361_vm3, %v3066_v40, %v3082_v33  ;;  %v3114_v6 = vsel %vm2361_vm3, %v3050_v11, %v3066_v40 }
 0x33d   : > { %v2763_v46 = vsel %vm2022_vm0, %v2715_v45, %v2731_v4  ;;  %v2779_v60 = vsel %vm2022_vm0, %v2747_v24, %v2715_v45  ;;  %v2827_v5 = vrot.slane %v14527_v22, 6  ;;  %v2843_v20 = vrot.slane %v14536_v8, 6 }
 0x33e   : > { %v14564_v2 = vmax.f32 %v3026_v36, %v3114_v6  ;;  %v14566_v34 = vmax.f32 %v3027_v58, %v3098_v28  ;;  %v2804_v27 = vmax.f32 %v14527_v22, %v2779_v60  ;;  %v2805_v52 = vmax.f32 %v14536_v8, %v2763_v46  ;;  %v14650_v58 = vld [vmem:[#allocation4 + $0x108] sm:$0xff]  ;;  %v14652_v28 = vld [vmem:[#allocation4 + $0x110] sm:$0xff] }
 0x33f   : > { %v2859_v1 = vrot.slane %v14538_v49, 6  ;;  %v2875_v42 = vsel %vm2135_vm1, %v2827_v5, %v2843_v20  ;;  %v2939_v37 = vrot.slane %v14527_v22, 2  ;;  %v2955_v12 = vrot.slane %v14536_v8, 2  ;;  %v14659_v20 = vld [vmem:[#allocation4 + $0x118] sm:$0xff] }
 0x340   : > { %v3244_v47 = vmax.f32 %v14499_v59, %v14564_v2  ;;  %v3245_v14 = vmax.f32 %v14506_v44, %v14566_v34  ;;  %v14580_v15 = vmax.f32 %v3242_v41, %v14564_v2  ;;  %v14583_v63 = vmax.f32 %v3243_v39, %v14566_v34 }
 0x341   : > { %v3304_v31 = vmax.f32 %v14514_v25, %v14564_v2  ;;  %v3305_v43 = vmax.f32 %v14522_v55, %v14566_v34  ;;  %v3334_v30 = vmax.f32 %v3302_v35, %v14564_v2  ;;  %v3335_v62 = vmax.f32 %v3303_v56, %v14566_v34 }
 0x342   : > { %v5975_v50 = vpack.c.bf16 %v14566_v34, %v14564_v2  ;;  %v2891_v59 = vsel %vm2135_vm1, %v2859_v1, %v2827_v5  ;;  %v2917_v29 = vmax.f32 %v2805_v52, %v2875_v42  ;;  %v2971_v57 = vrot.slane %v14538_v49, 2 }
 0x343   : > { %3366 = vst [vmem:[#allocation4 + $0x90] sm:$0xff] %v3334_v30  ;;  %3367 = vst [vmem:[#allocation4 + $0x98] sm:$0xff] %v3335_v62  ;;  %v2916_v44 = vmax.f32 %v2804_v27, %v2891_v59  ;;  %v3003_v38 = vsel %vm2248_vm2, %v2939_v37, %v2955_v12  ;;  %v3051_v32 = vrot.slane %v14527_v22, 1  ;;  %v3067_v3 = vrot.slane %v14536_v8, 1 }
 0x344   : > { %6289 = vmatmul.mubr.bf16.gmra.mrb[96].mxu0 %v5975_v50  ;;  %6482 = vmatmul.mubr.bf16.gmra.mrb[96].mxu1 %v5975_v50  ;;  %v2987_v41 = vsel %vm2248_vm2, %v2955_v12, %v2971_v57  ;;  %v3083_v25 = vrot.slane %v14538_v49, 1  ;;  %v2716_v35 = vrot.slane %v14591_v51, 7  ;;  %v2732_v13 = vrot.slane %v14593_v16, 7 }
 0x345   : > { %6298 = vmatprep.mubr.bf16.mxu0 %v16413_v54  ;;  %6491 = vmatprep.mubr.bf16.mxu1 %v16413_v54  ;;  %v3028_v39 = vmax.f32 %v2916_v44, %v3003_v38  ;;  %v3029_v55 = vmax.f32 %v2917_v29, %v2987_v41  ;;  %v3115_v56 = vsel %vm2361_vm3, %v3051_v32, %v3067_v3  ;;  %v2748_v21 = vrot.slane %v14600_v26, 7 }
 0x346   : > { %v3099_v22 = vsel %vm2361_vm3, %v3067_v3, %v3083_v25  ;;  %v2764_v53 = vsel %vm2022_vm0, %v2716_v35, %v2732_v13  ;;  %v2828_v17 = vrot.slane %v14591_v51, 6  ;;  %v2844_v23 = vrot.slane %v14593_v16, 6 }
 0x347   : > { %v14622_v18 = vmax.f32 %v3028_v39, %v3115_v56  ;;  %v14624_v8 = vmax.f32 %v3029_v55, %v3099_v22  ;;  %v2780_v49 = vsel %vm2022_vm0, %v2748_v21, %v2716_v35  ;;  %v2807_v19 = vmax.f32 %v14593_v16, %v2764_v53  ;;  %v14708_v55 = vld [vmem:[#allocation4 + $0x120] sm:$0xff] }
 0x348   : > { %v2806_v9 = vmax.f32 %v14591_v51, %v2780_v49  ;;  %v2860_v0 = vrot.slane %v14600_v26, 6  ;;  %v2876_v10 = vsel %vm2135_vm1, %v2828_v17, %v2844_v23  ;;  %v2940_v11 = vrot.slane %v14591_v51, 2  ;;  %v14719_v23 = vld [vmem:[#allocation4 + $0x130] sm:$0xff] }
 0x349   : > { %v3246_v40 = vmax.f32 %v14564_v2, %v14622_v18  ;;  %v3247_v33 = vmax.f32 %v14566_v34, %v14624_v8  ;;  %v14639_v45 = vmax.f32 %v3244_v47, %v14622_v18  ;;  %v14642_v48 = vmax.f32 %v3245_v14, %v14624_v8 }
 0x34a   : > { %v3306_v7 = vmax.f32 %v14580_v15, %v14622_v18  ;;  %v3307_v4 = vmax.f32 %v14583_v63, %v14624_v8  ;;  %v3336_v24 = vmax.f32 %v3304_v31, %v14622_v18  ;;  %v3337_v36 = vmax.f32 %v3305_v43, %v14624_v8 }
 0x34b   : > { %v5976_v6 = vpack.c.bf16 %v14624_v8, %v14622_v18  ;;  %v2892_v46 = vsel %vm2135_vm1, %v2860_v0, %v2828_v17  ;;  %v2919_v60 = vmax.f32 %v2807_v19, %v2876_v10  ;;  %v2956_v5 = vrot.slane %v14593_v16, 2  ;;  %v14717_v17 = vld [vmem:[#allocation4 + $0x128] sm:$0xff] }
 0x34c   : > { %3368 = vst [vmem:[#allocation4 + $0xa8] sm:$0xff] %v3336_v24  ;;  %3369 = vst [vmem:[#allocation4 + $0xb0] sm:$0xff] %v3337_v36  ;;  %v2918_v2 = vmax.f32 %v2806_v9, %v2892_v46  ;;  %v2972_v34 = vrot.slane %v14600_v26, 2  ;;  %v3052_v27 = vrot.slane %v14591_v51, 1  ;;  %v3068_v52 = vrot.slane %v14593_v16, 1 }
 0x34d   : > { %6299 = vmatmul.mubr.bf16.gmra.mrb[100].mxu0 %v5976_v6  ;;  %6492 = vmatmul.mubr.bf16.gmra.mrb[100].mxu1 %v5976_v6  ;;  %v3004_v1 = vsel %vm2248_vm2, %v2940_v11, %v2956_v5  ;;  %v3084_v42 = vrot.slane %v14600_v26, 1  ;;  %v2717_v37 = vrot.slane %v14650_v58, 7  ;;  %v2733_v12 = vrot.slane %v14652_v28, 7 }
 0x34e   : > { %6308 = vmatprep.mubr.bf16.mxu0 %v16413_v54  ;;  %6501 = vmatprep.mubr.bf16.mxu1 %v16413_v54  ;;  %v2988_v47 = vsel %vm2248_vm2, %v2956_v5, %v2972_v34  ;;  %v3030_v14 = vmax.f32 %v2918_v2, %v3004_v1  ;;  %v3116_v15 = vsel %vm2361_vm3, %v3052_v27, %v3068_v52  ;;  %v2749_v63 = vrot.slane %v14659_v20, 7 }
 0x34f   : > { %v3031_v31 = vmax.f32 %v2919_v60, %v2988_v47  ;;  %v3100_v43 = vsel %vm2361_vm3, %v3068_v52, %v3084_v42  ;;  %v2765_v30 = vsel %vm2022_vm0, %v2717_v37, %v2733_v12  ;;  %v2829_v62 = vrot.slane %v14650_v58, 6 }
 0x350   : > { %v14681_v51 = vmax.f32 %v3030_v14, %v3116_v15  ;;  %v2781_v16 = vsel %vm2022_vm0, %v2749_v63, %v2717_v37  ;;  %v2809_v50 = vmax.f32 %v14652_v28, %v2765_v30  ;;  %v2845_v59 = vrot.slane %v14652_v28, 6  ;;  %v14767_v14 = vld [vmem:[#allocation4 + $0x138] sm:$0xff]  ;;  %v14776_v30 = vld [vmem:[#allocation4 + $0x140] sm:$0xff] }
 0x351   : > { %v14687_v29 = vmax.f32 %v3031_v31, %v3100_v43  ;;  %v2808_v57 = vmax.f32 %v14650_v58, %v2781_v16  ;;  %v2861_v26 = vrot.slane %v14659_v20, 6  ;;  %v2941_v44 = vrot.slane %v14650_v58, 2 }
 0x352   : > { %v3248_v38 = vmax.f32 %v14622_v18, %v14681_v51  ;;  %v14695_v32 = vmax.f32 %v3246_v40, %v14681_v51  ;;  %v3308_v3 = vmax.f32 %v14639_v45, %v14681_v51  ;;  %v3338_v41 = vmax.f32 %v3306_v7, %v14681_v51 }
 0x353   : > { %v3249_v25 = vmax.f32 %v14624_v8, %v14687_v29  ;;  %v14703_v35 = vmax.f32 %v3247_v33, %v14687_v29  ;;  %v3309_v13 = vmax.f32 %v14642_v48, %v14687_v29  ;;  %v3339_v39 = vmax.f32 %v3307_v4, %v14687_v29 }
 0x354   : > { %v5977_v56 = vpack.c.bf16 %v14687_v29, %v14681_v51  ;;  %3370 = vst [vmem:[#allocation4 + $0xc0] sm:$0xff] %v3338_v41  ;;  %v2877_v21 = vsel %vm2135_vm1, %v2829_v62, %v2845_v59  ;;  %v2893_v22 = vsel %vm2135_vm1, %v2861_v26, %v2829_v62  ;;  %v2957_v53 = vrot.slane %v14652_v28, 2  ;;  %v14778_v62 = vld [vmem:[#allocation4 + $0x148] sm:$0xff] }
 0x355   : > { %3371 = vst [vmem:[#allocation4 + $0xc8] sm:$0xff] %v3339_v39  ;;  %v2920_v18 = vmax.f32 %v2808_v57, %v2893_v22  ;;  %v2921_v8 = vmax.f32 %v2809_v50, %v2877_v21  ;;  %v2973_v49 = vrot.slane %v14659_v20, 2  ;;  %v3053_v19 = vrot.slane %v14650_v58, 1 }
 0x356   : > { %6309 = vmatmul.mubr.bf16.gmra.mrb[104].mxu0 %v5977_v56  ;;  %6502 = vmatmul.mubr.bf16.gmra.mrb[104].mxu1 %v5977_v56  ;;  %v3005_v9 = vsel %vm2248_vm2, %v2941_v44, %v2957_v53  ;;  %v3069_v0 = vrot.slane %v14652_v28, 1  ;;  %v3085_v10 = vrot.slane %v14659_v20, 1  ;;  %v2718_v11 = vrot.slane %v14708_v55, 7 }
 0x357   : > { %6318 = vmatprep.mubr.bf16.mxu0 %v16413_v54  ;;  %6511 = vmatprep.mubr.bf16.mxu1 %v16413_v54  ;;  %v2989_v40 = vsel %vm2248_vm2, %v2957_v53, %v2973_v49  ;;  %v3032_v33 = vmax.f32 %v2920_v18, %v3005_v9  ;;  %v2734_v45 = vrot.slane %v14717_v17, 7  ;;  %v2750_v48 = vrot.slane %v14719_v23, 7 }
 0x358   : > { %v3033_v7 = vmax.f32 %v2921_v8, %v2989_v40  ;;  %v3101_v4 = vsel %vm2361_vm3, %v3069_v0, %v3085_v10  ;;  %v3117_v24 = vsel %vm2361_vm3, %v3053_v19, %v3069_v0  ;;  %v2830_v36 = vrot.slane %v14708_v55, 6 }
 0x359   : > { %v14739_v58 = vmax.f32 %v3032_v33, %v3117_v24  ;;  %v2766_v28 = vsel %vm2022_vm0, %v2718_v11, %v2734_v45  ;;  %v2782_v6 = vsel %vm2022_vm0, %v2750_v48, %v2718_v11  ;;  %v2846_v46 = vrot.slane %v14717_v17, 6  ;;  %v14825_v33 = vld [vmem:[#allocation4 + $0x150] sm:$0xff]  ;;  %v14833_v24 = vld [vmem:[#allocation4 + $0x158] sm:$0xff] }
 0x35a   : > { %v14746_v60 = vmax.f32 %v3033_v7, %v3101_v4  ;;  %v2810_v5 = vmax.f32 %v14708_v55, %v2782_v6  ;;  %v2811_v20 = vmax.f32 %v14717_v17, %v2766_v28  ;;  %v2862_v2 = vrot.slane %v14719_v23, 6 }
 0x35b   : > { %v3250_v34 = vmax.f32 %v14681_v51, %v14739_v58  ;;  %v14754_v27 = vmax.f32 %v3248_v38, %v14739_v58  ;;  %v3310_v52 = vmax.f32 %v14695_v32, %v14739_v58  ;;  %v3340_v1 = vmax.f32 %v3308_v3, %v14739_v58 }
 0x35c   : > { %v3251_v42 = vmax.f32 %v14687_v29, %v14746_v60  ;;  %v14762_v37 = vmax.f32 %v3249_v25, %v14746_v60  ;;  %v3311_v12 = vmax.f32 %v14703_v35, %v14746_v60  ;;  %v3341_v47 = vmax.f32 %v3309_v13, %v14746_v60 }
 0x35d   : > { %v5978_v15 = vpack.c.bf16 %v14746_v60, %v14739_v58  ;;  %3372 = vst [vmem:[#allocation4 + $0xd8] sm:$0xff] %v3340_v1  ;;  %v2878_v63 = vsel %vm2135_vm1, %v2830_v36, %v2846_v46  ;;  %v2894_v31 = vsel %vm2135_vm1, %v2862_v2, %v2830_v36  ;;  %v2942_v43 = vrot.slane %v14708_v55, 2  ;;  %v14835_v36 = vld [vmem:[#allocation4 + $0x160] sm:$0xff] }
 0x35e   : > { %3373 = vst [vmem:[#allocation4 + $0xe0] sm:$0xff] %v3341_v47  ;;  %v2922_v51 = vmax.f32 %v2810_v5, %v2894_v31  ;;  %v2923_v16 = vmax.f32 %v2811_v20, %v2878_v63  ;;  %v2958_v50 = vrot.slane %v14717_v17, 2  ;;  %v2974_v59 = vrot.slane %v14719_v23, 2 }
 0x35f   : > { %6319 = vmatmul.mubr.bf16.gmra.mrb[108].mxu0 %v5978_v15  ;;  %6512 = vmatmul.mubr.bf16.gmra.mrb[108].mxu1 %v5978_v15  ;;  %v3054_v29 = vrot.slane %v14708_v55, 1  ;;  %v3070_v57 = vrot.slane %v14717_v17, 1  ;;  %v3086_v26 = vrot.slane %v14719_v23, 1  ;;  %v2719_v44 = vrot.slane %v14767_v14, 7 }
 0x360   : > { %6328 = vmatprep.mubr.bf16.mxu0 %v16413_v54  ;;  %6521 = vmatprep.mubr.bf16.mxu1 %v16413_v54  ;;  %v2990_v38 = vsel %vm2248_vm2, %v2958_v50, %v2974_v59  ;;  %v3006_v32 = vsel %vm2248_vm2, %v2942_v43, %v2958_v50  ;;  %v2735_v3 = vrot.slane %v14776_v30, 7  ;;  %v2751_v41 = vrot.slane %v14778_v62, 7 }
 0x361   : > { %v3034_v25 = vmax.f32 %v2922_v51, %v3006_v32  ;;  %v3035_v35 = vmax.f32 %v2923_v16, %v2990_v38  ;;  %v3102_v13 = vsel %vm2361_vm3, %v3070_v57, %v3086_v26  ;;  %v3118_v39 = vsel %vm2361_vm3, %v3054_v29, %v3070_v57 }
 0x362   : > { %v2767_v55 = vsel %vm2022_vm0, %v2719_v44, %v2735_v3  ;;  %v2783_v56 = vsel %vm2022_vm0, %v2751_v41, %v2719_v44  ;;  %v2831_v21 = vrot.slane %v14767_v14, 6  ;;  %v2847_v22 = vrot.slane %v14776_v30, 6  ;;  %v14877_v41 = vld [vmem:[#allocation4 + $0x168] sm:$0xff] }
 0x363   : > { %v14804_v53 = vmax.f32 %v3034_v25, %v3118_v39  ;;  %v14806_v17 = vmax.f32 %v3035_v35, %v3102_v13  ;;  %v2812_v23 = vmax.f32 %v14767_v14, %v2783_v56  ;;  %v2813_v18 = vmax.f32 %v14776_v30, %v2767_v55  ;;  %v14879_v25 = vld [vmem:[#allocation4 + $0x170] sm:$0xff]  ;;  %v2705_v56 = vld [vmem:[#allocation4 + $0x178] sm:$0xff] }
 0x364   : > { %v2863_v8 = vrot.slane %v14778_v62, 6  ;;  %v2879_v49 = vsel %vm2135_vm1, %v2831_v21, %v2847_v22  ;;  %v2943_v19 = vrot.slane %v14767_v14, 2  ;;  %v2959_v9 = vrot.slane %v14776_v30, 2 }
 0x365   : > { %v14816_v0 = vmax.f32 %v3250_v34, %v14804_v53  ;;  %v14819_v10 = vmax.f32 %v3251_v42, %v14806_v17  ;;  %v3312_v11 = vmax.f32 %v14754_v27, %v14804_v53  ;;  %v3313_v40 = vmax.f32 %v14762_v37, %v14806_v17 }
 0x366   : > { %v3342_v45 = vmax.f32 %v3310_v52, %v14804_v53  ;;  %v3343_v48 = vmax.f32 %v3311_v12, %v14806_v17  ;;  %v5979_v7 = vpack.c.bf16 %v14806_v17, %v14804_v53  ;;  %v2895_v4 = vsel %vm2135_vm1, %v2863_v8, %v2831_v21 }
 0x367   : > { %v2924_v28 = vmax.f32 %v2812_v23, %v2895_v4  ;;  %v2925_v6 = vmax.f32 %v2813_v18, %v2879_v49  ;;  %v2975_v46 = vrot.slane %v14778_v62, 2  ;;  %v3007_v5 = vsel %vm2248_vm2, %v2943_v19, %v2959_v9 }
 0x368   : > { %6329 = vmatmul.mubr.bf16.gmra.mrb[112].mxu0 %v5979_v7  ;;  %3374 = vst [vmem:[#allocation4 + $0xf0] sm:$0xff] %v3342_v45  ;;  %3375 = vst [vmem:[#allocation4 + $0xf8] sm:$0xff] %v3343_v48  ;;  %6522 = vmatmul.mubr.bf16.gmra.mrb[112].mxu1 %v5979_v7  ;;  %v3055_v20 = vrot.slane %v14767_v14, 1  ;;  %v3071_v2 = vrot.slane %v14776_v30, 1  ;;  %v3087_v34 = vrot.slane %v14778_v62, 1  ;;  %v2720_v27 = vrot.slane %v14825_v33, 7 }
 0x369   : > { %6338 = vmatprep.mubr.bf16.mxu0 %v16413_v54  ;;  %6531 = vmatprep.mubr.bf16.mxu1 %v16413_v54  ;;  %v2991_v52 = vsel %vm2248_vm2, %v2959_v9, %v2975_v46  ;;  %v3036_v1 = vmax.f32 %v2924_v28, %v3007_v5  ;;  %v2736_v42 = vrot.slane %v14833_v24, 7  ;;  %v2752_v37 = vrot.slane %v14835_v36, 7 }
 0x36a   : > { %v3037_v12 = vmax.f32 %v2925_v6, %v2991_v52  ;;  %v3103_v47 = vsel %vm2361_vm3, %v3071_v2, %v3087_v34  ;;  %v3119_v14 = vsel %vm2361_vm3, %v3055_v20, %v3071_v2  ;;  %v2832_v15 = vrot.slane %v14825_v33, 6 }
 0x36b   : > { %v14855_v63 = vmax.f32 %v3036_v1, %v3119_v14  ;;  %v2768_v31 = vsel %vm2022_vm0, %v2720_v27, %v2736_v42  ;;  %v2784_v43 = vsel %vm2022_vm0, %v2752_v37, %v2720_v27  ;;  %v2848_v30 = vrot.slane %v14833_v24, 6  ;;  %v14922_v1 = vld [vmem:[#allocation4] sm:$0xff] }
 0x36c   : > { %v14862_v62 = vmax.f32 %v3037_v12, %v3103_v47  ;;  %v2814_v51 = vmax.f32 %v14825_v33, %v2784_v43  ;;  %v2815_v16 = vmax.f32 %v14833_v24, %v2768_v31  ;;  %v2864_v50 = vrot.slane %v14835_v36, 6 }
 0x36d   : > { %v3344_v59 = vmax.f32 %v3312_v11, %v14855_v63  ;;  %v2880_v29 = vsel %vm2135_vm1, %v2832_v15, %v2848_v30  ;;  %v2944_v57 = vrot.slane %v14825_v33, 2  ;;  %v2960_v26 = vrot.slane %v14833_v24, 2 }
 0x36e   : > { %v3345_v44 = vmax.f32 %v3313_v40, %v14862_v62  ;;  %v5980_v38 = vpack.c.bf16 %v14862_v62, %v14855_v63  ;;  %v2896_v32 = vsel %vm2135_vm1, %v2864_v50, %v2832_v15  ;;  %v2927_v3 = vmax.f32 %v2815_v16, %v2880_v29 }
 0x36f   : > { %3376 = vst [vmem:[#allocation4 + $0x108] sm:$0xff] %v3344_v59  ;;  %v2926_v35 = vmax.f32 %v2814_v51, %v2896_v32  ;;  %v2976_v13 = vrot.slane %v14835_v36, 2  ;;  %v3008_v39 = vsel %vm2248_vm2, %v2944_v57, %v2960_v26  ;;  %v3056_v55 = vrot.slane %v14825_v33, 1  ;;  %v14944_v57 = vld [vmem:[#allocation4 + $0x8] sm:$0xff] }
 0x370   : > { %6339 = vmatmul.mubr.bf16.gmra.mrb[116].mxu0 %v5980_v38  ;;  %3377 = vst [vmem:[#allocation4 + $0x110] sm:$0xff] %v3345_v44  ;;  %6532 = vmatmul.mubr.bf16.gmra.mrb[116].mxu1 %v5980_v38  ;;  %v3072_v21 = vrot.slane %v14833_v24, 1  ;;  %v3088_v22 = vrot.slane %v14835_v36, 1  ;;  %v3314_v23 = vmax.f32 %v14816_v0, %v14855_v63  ;;  %v3315_v18 = vmax.f32 %v14819_v10, %v14862_v62 }
 0x371   : > { %6348 = vmatprep.mubr.bf16.mxu0 %v16413_v54  ;;  %6541 = vmatprep.mubr.bf16.mxu1 %v16413_v54  ;;  %v2992_v8 = vsel %vm2248_vm2, %v2960_v26, %v2976_v13  ;;  %v3038_v49 = vmax.f32 %v2926_v35, %v3008_v39  ;;  %v2721_v19 = vrot.slane %v14877_v41, 7  ;;  %v2737_v9 = vrot.slane %v14879_v25, 7  ;;  %v14946_v26 = vld [vmem:[#allocation4 + $0x10] sm:$0xff]  ;;  %v3222_v13 = vld [vmem:[#allocation3 + $0x120] sm:$0xff]  ;;  %v3223_v39 = vld [vmem:[#allocation3 + $0x128] sm:$0xff] }
 0x372   : > { %v3039_v11 = vmax.f32 %v2927_v3, %v2992_v8  ;;  %v3104_v40 = vsel %vm2361_vm3, %v3072_v21, %v3088_v22  ;;  %v3120_v0 = vsel %vm2361_vm3, %v3056_v55, %v3072_v21  ;;  %v2753_v10 = vrot.slane %v2705_v56, 7  ;;  %v3224_v8 = vld [vmem:[#allocation3 + $0x130] sm:$0xff] }
 0x373   : > { %v14901_v33 = vmax.f32 %v3038_v49, %v3120_v0  ;;  %v2769_v45 = vsel %vm2022_vm0, %v2721_v19, %v2737_v9  ;;  %v2833_v48 = vrot.slane %v14877_v41, 6  ;;  %v2849_v7 = vrot.slane %v14879_v25, 6  ;;  %v3225_v49 = vld [vmem:[#allocation3 + $0x138] sm:$0xff] }
 0x374   : > { %v14907_v4 = vmax.f32 %v3039_v11, %v3104_v40  ;;  %v2785_v24 = vsel %vm2022_vm0, %v2753_v10, %v2721_v19  ;;  %v2817_v36 = vmax.f32 %v14879_v25, %v2769_v45  ;;  %v2865_v28 = vrot.slane %v2705_v56, 6 }
 0x375   : > { %v3346_v6 = vmax.f32 %v3314_v23, %v14901_v33  ;;  %v2816_v46 = vmax.f32 %v14877_v41, %v2785_v24  ;;  %v2881_v5 = vsel %vm2135_vm1, %v2833_v48, %v2849_v7  ;;  %v2945_v20 = vrot.slane %v14877_v41, 2 }
 0x376   : > { %v3347_v2 = vmax.f32 %v3315_v18, %v14907_v4  ;;  %v5981_v34 = vpack.c.bf16 %v14907_v4, %v14901_v33  ;;  %v2897_v27 = vsel %vm2135_vm1, %v2865_v28, %v2833_v48  ;;  %v2929_v52 = vmax.f32 %v2817_v36, %v2881_v5 }
 0x377   : > { %3378 = vst [vmem:[#allocation4 + $0x120] sm:$0xff] %v3346_v6  ;;  %v2928_v42 = vmax.f32 %v2816_v46, %v2897_v27  ;;  %v2961_v37 = vrot.slane %v14879_v25, 2  ;;  %v2977_v12 = vrot.slane %v2705_v56, 2  ;;  %v3057_v47 = vrot.slane %v14877_v41, 1 }
 0x378   : > { %6349 = vmatmul.mubr.bf16.gmra.mrb[120].mxu0 %v5981_v34  ;;  %3379 = vst [vmem:[#allocation4 + $0x128] sm:$0xff] %v3347_v2  ;;  %6542 = vmatmul.mubr.bf16.gmra.mrb[120].mxu1 %v5981_v34  ;;  %v3073_v14 = vrot.slane %v14879_v25, 1  ;;  %v3089_v15 = vrot.slane %v2705_v56, 1  ;;  %v3252_v31 = vmax.f32 %v14739_v58, %v14804_v53  ;;  %v3253_v43 = vmax.f32 %v14746_v60, %v14806_v17  ;;  %v3389_v34 = vld [vmem:[#allocation4 + $0x18] sm:$0xff] }
 0x379   : > { %6358 = vmatprep.mubr.bf16.mxu0 %v16413_v54  ;;  %6551 = vmatprep.mubr.bf16.mxu1 %v16413_v54  ;;  %v2993_v30 = vsel %vm2248_vm2, %v2961_v37, %v2977_v12  ;;  %v3009_v51 = vsel %vm2248_vm2, %v2945_v20, %v2961_v37  ;;  %v3254_v16 = vmax.f32 %v14804_v53, %v14855_v63  ;;  %v3434_v50 = vrot.slane %v14922_v1, 7  ;;  %v3390_v12 = vld [vmem:[#allocation4 + $0x20] sm:$0xff] }
 0x37a   : > { %v3040_v59 = vmax.f32 %v2928_v42, %v3009_v51  ;;  %v3041_v58 = vmax.f32 %v2929_v52, %v2993_v30  ;;  %v3105_v60 = vsel %vm2361_vm3, %v3073_v14, %v3089_v15  ;;  %v3121_v29 = vsel %vm2361_vm3, %v3057_v47, %v3073_v14  ;;  %v3391_v47 = vld [vmem:[#allocation4 + $0x28] sm:$0xff] }
 0x37b   : > { %v3255_v44 = vmax.f32 %v14806_v17, %v14862_v62  ;;  %v3256_v53 = vmax.f32 %v14855_v63, %v14901_v33  ;;  %v3257_v38 = vmax.f32 %v14862_v62, %v14907_v4  ;;  %v3284_v32 = vmax.f32 %v3252_v31, %v14855_v63 }
 0x37c   : > { %v3152_v3 = vmax.f32 %v3040_v59, %v3121_v29  ;;  %v3153_v41 = vmax.f32 %v3041_v58, %v3105_v60  ;;  %v3285_v25 = vmax.f32 %v3253_v43, %v14862_v62  ;;  %v3286_v35 = vmax.f32 %v3254_v16, %v14901_v33 }
 0x37d   : > { %v3287_v55 = vmax.f32 %v3255_v44, %v14907_v4  ;;  %v3316_v17 = vmax.f32 %v3284_v32, %v14901_v33  ;;  %v3450_v56 = vrot.slane %v14944_v57, 7  ;;  %v3466_v21 = vrot.slane %v14946_v26, 7 }
 0x37e   : > { %v3288_v22 = vmax.f32 %v3256_v53, %v3152_v3  ;;  %v3289_v23 = vmax.f32 %v3257_v38, %v3153_v41  ;;  %v3317_v63 = vmax.f32 %v3285_v25, %v14907_v4  ;;  %v3318_v18 = vmax.f32 %v3286_v35, %v3152_v3 }
 0x37f   : > { %v3319_v62 = vmax.f32 %v3287_v55, %v3153_v41  ;;  %v14962_v19 = vmax.f32 %v3316_v17, %v3152_v3  ;;  %v5982_v9 = vpack.c.bf16 %v3153_v41, %v3152_v3  ;;  %v3482_v11 = vsel %vm2022_vm0, %v3434_v50, %v3450_v56 }
 0x380   : > { %v3320_v40 = vmax.f32 %v3288_v22, %v3222_v13  ;;  %v3321_v0 = vmax.f32 %v3289_v23, %v3223_v39  ;;  %v14966_v10 = vmax.f32 %v3317_v63, %v3153_v41  ;;  %v3350_v33 = vmax.f32 %v3318_v18, %v3222_v13  ;;  %v15001_v13 = vld [vmem:[#allocation4 + $0x30] sm:$0xff]  ;;  %v3394_v22 = vld [vmem:[#allocation4 + $0x40] sm:$0xff] }
 0x381   : > { %v3351_v45 = vmax.f32 %v3319_v62, %v3223_v39  ;;  %3380 = vst [vmem:[#allocation4 + $0x138] sm:$0xff] %v14962_v19  ;;  %6359 = vmatmul.mubr.bf16.gmra.mrb[124].mxu0 %v5982_v9  ;;  %6552 = vmatmul.mubr.bf16.gmra.mrb[124].mxu1 %v5982_v9  ;;  %v3498_v48 = vsel %vm2022_vm0, %v3466_v21, %v3434_v50  ;;  %v3546_v4 = vrot.slane %v14922_v1, 6  ;;  %v3562_v6 = vrot.slane %v14944_v57, 6  ;;  %v15003_v39 = vld [vmem:[#allocation4 + $0x38] sm:$0xff] }
 0x382   : > { %v3515_v7 = vmax.f32 %v14944_v57, %v3482_v11  ;;  %v3352_v24 = vmax.f32 %v3320_v40, %v3224_v8  ;;  %v3353_v36 = vmax.f32 %v3321_v0, %v3225_v49  ;;  %3381 = vst [vmem:[#allocation4 + $0x140] sm:$0xff] %v14966_v10  ;;  %3382 = vst [vmem:[#allocation4 + $0x150] sm:$0xff] %v3350_v33  ;;  %7187 = vmatprep.mubr.bf16.mxu0 %v16413_v54 }
 0x383   : > { %7380 = vmatprep.mubr.bf16.mxu1 %v16413_v54  ;;  %v3514_v28 = vmax.f32 %v14922_v1, %v3498_v48  ;;  %3383 = vst [vmem:[#allocation4 + $0x158] sm:$0xff] %v3351_v45  ;;  %v3578_v46 = vrot.slane %v14946_v26, 6  ;;  %v3658_v5 = vrot.slane %v14922_v1, 2  ;;  %v3674_v20 = vrot.slane %v14944_v57, 2 }
 0x384   : > { %v3690_v2 = vrot.slane %v14946_v26, 2  ;;  %3384 = vst [vmem:[#allocation4 + $0x168] sm:$0xff] %v3352_v24  ;;  %3385 = vst [vmem:[#allocation4 + $0x170] sm:$0xff] %v3353_v36  ;;  %v3594_v27 = vsel %vm2135_vm1, %v3546_v4, %v3562_v6  ;;  %v3770_v52 = vrot.slane %v14922_v1, 1  ;;  %v3786_v42 = vrot.slane %v14944_v57, 1 }
 0x385   : > { %v3802_v37 = vrot.slane %v14946_v26, 1  ;;  %v3610_v14 = vsel %vm2135_vm1, %v3578_v46, %v3546_v4  ;;  %v3627_v15 = vmax.f32 %v3515_v7, %v3594_v27  ;;  %v3722_v43 = vsel %vm2248_vm2, %v3658_v5, %v3674_v20  ;;  %v3395_v27 = vld [vmem:[#allocation4 + $0x48] sm:$0xff] }
 0x386   : > { %v3706_v31 = vsel %vm2248_vm2, %v3674_v20, %v3690_v2  ;;  %v3626_v30 = vmax.f32 %v3514_v28, %v3610_v14  ;;  %v3834_v51 = vsel %vm2361_vm3, %v3770_v52, %v3786_v42  ;;  %v3435_v16 = vrot.slane %v3389_v34, 7 }
 0x387   : > { %v3818_v1 = vsel %vm2361_vm3, %v3786_v42, %v3802_v37  ;;  %v3739_v50 = vmax.f32 %v3627_v15, %v3706_v31  ;;  %v3451_v59 = vrot.slane %v3390_v12, 7  ;;  %v3467_v58 = vrot.slane %v3391_v47, 7 }
 0x388   : > { %v3547_v60 = vrot.slane %v3389_v34, 6  ;;  %v3738_v29 = vmax.f32 %v3626_v30, %v3722_v43  ;;  %v3563_v57 = vrot.slane %v3390_v12, 6  ;;  %v3579_v26 = vrot.slane %v3391_v47, 6  ;;  %v3397_v30 = vld [vmem:[#allocation4 + $0x58] sm:$0xff] }
 0x389   : > { %v3659_v44 = vrot.slane %v3389_v34, 2  ;;  %v3851_v53 = vmax.f32 %v3739_v50, %v3818_v1  ;;  %v3483_v38 = vsel %vm2022_vm0, %v3435_v16, %v3451_v59  ;;  %v3499_v32 = vsel %vm2022_vm0, %v3467_v58, %v3435_v16 }
 0x38a   : > { %v3675_v3 = vrot.slane %v3390_v12, 2  ;;  %v3850_v41 = vmax.f32 %v3738_v29, %v3834_v51  ;;  %v3516_v25 = vmax.f32 %v3389_v34, %v3499_v32  ;;  %v3517_v35 = vmax.f32 %v3390_v12, %v3483_v38 }
 0x38b   : > { %v3595_v55 = vsel %vm2135_vm1, %v3547_v60, %v3563_v57  ;;  %v3611_v17 = vsel %vm2135_vm1, %v3579_v26, %v3547_v60  ;;  %v3691_v56 = vrot.slane %v3391_v47, 2  ;;  %v3787_v8 = vrot.slane %v3390_v12, 1 }
 0x38c   : > { %v3723_v21 = vsel %vm2248_vm2, %v3659_v44, %v3675_v3  ;;  %v6946_v23 = vpack.c.bf16 %v3851_v53, %v3850_v41  ;;  %v3628_v63 = vmax.f32 %v3516_v25, %v3611_v17  ;;  %v3629_v18 = vmax.f32 %v3517_v35, %v3595_v55 }
 0x38d   : > { %v3707_v49 = vsel %vm2248_vm2, %v3675_v3, %v3691_v56  ;;  %v3803_v62 = vrot.slane %v3391_v47, 1  ;;  %v3436_v9 = vrot.slane %v15001_v13, 7  ;;  %v3452_v11 = vrot.slane %v15003_v39, 7  ;;  %v3396_v47 = vld [vmem:[#allocation4 + $0x50] sm:$0xff] }
 0x38e   : > { %7188 = vmatmul.mubr.bf16.vlgmr.msra.gmra.mrb[64].mxu0 %v6946_v23  ;;  %7381 = vmatmul.mubr.bf16.vlgmr.msra.gmra.mrb[64].mxu1 %v6946_v23  ;;  %v3740_v40 = vmax.f32 %v3628_v63, %v3723_v21  ;;  %v3741_v0 = vmax.f32 %v3629_v18, %v3707_v49  ;;  %v3771_v33 = vrot.slane %v3389_v34, 1  ;;  %v3468_v45 = vrot.slane %v3394_v22, 7  ;;  %v15055_v23 = vld [vmem:[#allocation4 + $0x68] sm:$0xff] }
 0x38f   : > { %7197 = vmatprep.mubr.bf16.mxu0 %v16413_v54  ;;  %7390 = vmatprep.mubr.bf16.mxu1 %v16413_v54  ;;  %v3819_v48 = vsel %vm2361_vm3, %v3787_v8, %v3803_v62  ;;  %v3484_v7 = vsel %vm2022_vm0, %v3436_v9, %v3452_v11  ;;  %v3548_v4 = vrot.slane %v15001_v13, 6  ;;  %v3564_v24 = vrot.slane %v15003_v39, 6  ;;  %v3400_v62 = vld [vmem:[#allocation4 + $0x70] sm:$0xff] }
 0x390   : > { %v3835_v36 = vsel %vm2361_vm3, %v3771_v33, %v3787_v8  ;;  %v3853_v28 = vmax.f32 %v3741_v0, %v3819_v48  ;;  %v3500_v6 = vsel %vm2022_vm0, %v3468_v45, %v3436_v9  ;;  %v3519_v46 = vmax.f32 %v15003_v39, %v3484_v7 }
 0x391   : > { %v3852_v5 = vmax.f32 %v3740_v40, %v3835_v36  ;;  %v3518_v20 = vmax.f32 %v15001_v13, %v3500_v6  ;;  %v3580_v2 = vrot.slane %v3394_v22, 6  ;;  %v3596_v34 = vsel %vm2135_vm1, %v3548_v4, %v3564_v24 }
 0x392   : > { %v3631_v52 = vmax.f32 %v3519_v46, %v3596_v34  ;;  %v3660_v42 = vrot.slane %v15001_v13, 2  ;;  %v3676_v37 = vrot.slane %v15003_v39, 2  ;;  %v3692_v12 = vrot.slane %v3394_v22, 2 }
 0x393   : > { %v6947_v14 = vpack.c.bf16 %v3853_v28, %v3852_v5  ;;  %v3612_v15 = vsel %vm2135_vm1, %v3580_v2, %v3548_v4  ;;  %v3788_v31 = vrot.slane %v15003_v39, 1  ;;  %v3804_v43 = vrot.slane %v3394_v22, 1  ;;  %v15053_v22 = vld [vmem:[#allocation4 + $0x60] sm:$0xff] }
 0x394   : > { %v3630_v1 = vmax.f32 %v3518_v20, %v3612_v15  ;;  %v3708_v51 = vsel %vm2248_vm2, %v3676_v37, %v3692_v12  ;;  %v3772_v16 = vrot.slane %v15001_v13, 1  ;;  %v3437_v50 = vrot.slane %v3395_v27, 7  ;;  %v3403_v15 = vld [vmem:[#allocation4 + $0x88] sm:$0xff] }
 0x395   : > { %v3724_v59 = vsel %vm2248_vm2, %v3660_v42, %v3676_v37  ;;  %v3743_v58 = vmax.f32 %v3631_v52, %v3708_v51  ;;  %v3820_v60 = vsel %vm2361_vm3, %v3788_v31, %v3804_v43  ;;  %v3453_v29 = vrot.slane %v3396_v47, 7 }
 0x396   : > { %7198 = vmatmul.mubr.bf16.gmra.mrb[68].mxu0 %v6947_v14  ;;  %7391 = vmatmul.mubr.bf16.gmra.mrb[68].mxu1 %v6947_v14  ;;  %v3742_v57 = vmax.f32 %v3630_v1, %v3724_v59  ;;  %v3469_v26 = vrot.slane %v3397_v30, 7  ;;  %v3549_v44 = vrot.slane %v3395_v27, 6  ;;  %v3565_v53 = vrot.slane %v3396_v47, 6  ;;  %v15085_v14 = vld [vmem:[#allocation4 + $0x80] sm:$0xff] }
 0x397   : > { %7207 = vmatprep.mubr.bf16.mxu0 %v16413_v54  ;;  %7400 = vmatprep.mubr.bf16.mxu1 %v16413_v54  ;;  %v3836_v38 = vsel %vm2361_vm3, %v3772_v16, %v3788_v31  ;;  %v3855_v32 = vmax.f32 %v3743_v58, %v3820_v60  ;;  %v3485_v3 = vsel %vm2022_vm0, %v3437_v50, %v3453_v29  ;;  %v3581_v41 = vrot.slane %v3397_v30, 6 }
 0x398   : > { %v3854_v25 = vmax.f32 %v3742_v57, %v3836_v38  ;;  %v3501_v35 = vsel %vm2022_vm0, %v3469_v26, %v3437_v50  ;;  %v3521_v13 = vmax.f32 %v3396_v47, %v3485_v3  ;;  %v3661_v39 = vrot.slane %v3395_v27, 2 }
 0x399   : > { %v3520_v55 = vmax.f32 %v3395_v27, %v3501_v35  ;;  %v3597_v17 = vsel %vm2135_vm1, %v3549_v44, %v3565_v53  ;;  %v3677_v56 = vrot.slane %v3396_v47, 2  ;;  %v3693_v21 = vrot.slane %v3397_v30, 2 }
 0x39a   : > { %v6948_v63 = vpack.c.bf16 %v3855_v32, %v3854_v25  ;;  %v3613_v18 = vsel %vm2135_vm1, %v3581_v41, %v3549_v44  ;;  %v3633_v8 = vmax.f32 %v3521_v13, %v3597_v17  ;;  %v3789_v49 = vrot.slane %v3396_v47, 1  ;;  %v15083_v47 = vld [vmem:[#allocation4 + $0x78] sm:$0xff] }
 0x39b   : > { %v3632_v9 = vmax.f32 %v3520_v55, %v3613_v18  ;;  %v3709_v11 = vsel %vm2248_vm2, %v3677_v56, %v3693_v21  ;;  %v3773_v40 = vrot.slane %v3395_v27, 1  ;;  %v3805_v0 = vrot.slane %v3397_v30, 1 }
 0x39c   : > { %v3725_v33 = vsel %vm2248_vm2, %v3661_v39, %v3677_v56  ;;  %v3745_v45 = vmax.f32 %v3633_v8, %v3709_v11  ;;  %v3438_v48 = vrot.slane %v15053_v22, 7  ;;  %v3454_v7 = vrot.slane %v15055_v23, 7 }
 0x39d   : > { %v3744_v4 = vmax.f32 %v3632_v9, %v3725_v33  ;;  %v3837_v24 = vsel %vm2361_vm3, %v3773_v40, %v3789_v49  ;;  %v3470_v36 = vrot.slane %v3400_v62, 7  ;;  %v3550_v28 = vrot.slane %v15053_v22, 6 }
 0x39e   : > { %7208 = vmatmul.mubr.bf16.gmra.mrb[72].mxu0 %v6948_v63  ;;  %7401 = vmatmul.mubr.bf16.gmra.mrb[72].mxu1 %v6948_v63  ;;  %v3821_v6 = vsel %vm2361_vm3, %v3789_v49, %v3805_v0  ;;  %v3486_v46 = vsel %vm2022_vm0, %v3438_v48, %v3454_v7  ;;  %v3566_v5 = vrot.slane %v15055_v23, 6  ;;  %v3582_v20 = vrot.slane %v3400_v62, 6 }
 0x39f   : > { %7217 = vmatprep.mubr.bf16.mxu0 %v16413_v54  ;;  %7410 = vmatprep.mubr.bf16.mxu1 %v16413_v54  ;;  %v3857_v2 = vmax.f32 %v3745_v45, %v3821_v6  ;;  %v3502_v34 = vsel %vm2022_vm0, %v3470_v36, %v3438_v48  ;;  %v3523_v27 = vmax.f32 %v15055_v23, %v3486_v46  ;;  %v3662_v37 = vrot.slane %v15053_v22, 2 }
 0x3a0   : > { %v3522_v52 = vmax.f32 %v15053_v22, %v3502_v34  ;;  %v3598_v42 = vsel %vm2135_vm1, %v3550_v28, %v3566_v5  ;;  %v3678_v12 = vrot.slane %v15055_v23, 2  ;;  %v3856_v31 = vmax.f32 %v3744_v4, %v3837_v24 }
 0x3a1   : > { %v3614_v43 = vsel %vm2135_vm1, %v3582_v20, %v3550_v28  ;;  %v3635_v30 = vmax.f32 %v3523_v27, %v3598_v42  ;;  %v3694_v1 = vrot.slane %v3400_v62, 2  ;;  %v3790_v50 = vrot.slane %v15055_v23, 1  ;;  %v15114_v23 = vld [vmem:[#allocation4 + $0x98] sm:$0xff] }
 0x3a2   : > { %v3634_v51 = vmax.f32 %v3522_v52, %v3614_v43  ;;  %v3726_v16 = vsel %vm2248_vm2, %v3662_v37, %v3678_v12  ;;  %v3806_v59 = vrot.slane %v3400_v62, 1  ;;  %v3439_v60 = vrot.slane %v15083_v47, 7  ;;  %v3406_v62 = vld [vmem:[#allocation4 + $0xa0] sm:$0xff] }
 0x3a3   : > { %v3710_v58 = vsel %vm2248_vm2, %v3678_v12, %v3694_v1  ;;  %v3455_v29 = vrot.slane %v15085_v14, 7  ;;  %v3471_v57 = vrot.slane %v3403_v15, 7  ;;  %v6949_v26 = vpack.c.bf16 %v3857_v2, %v3856_v31 }
 0x3a4   : > { %v3746_v44 = vmax.f32 %v3634_v51, %v3726_v16  ;;  %v3747_v53 = vmax.f32 %v3635_v30, %v3710_v58  ;;  %v3774_v38 = vrot.slane %v15053_v22, 1  ;;  %v3551_v41 = vrot.slane %v15083_v47, 6  ;;  %v15112_v22 = vld [vmem:[#allocation4 + $0x90] sm:$0xff] }
 0x3a5   : > { %v3487_v32 = vsel %vm2022_vm0, %v3439_v60, %v3455_v29  ;;  %v3503_v3 = vsel %vm2022_vm0, %v3471_v57, %v3439_v60  ;;  %v3567_v25 = vrot.slane %v15085_v14, 6  ;;  %v3822_v35 = vsel %vm2361_vm3, %v3790_v50, %v3806_v59  ;;  %v15148_v30 = vld [vmem:[#allocation4 + $0xb0] sm:$0xff]  ;;  %v15153_v59 = vld [vmem:[#allocation4 + $0xb8] sm:$0xff] }
 0x3a6   : > { %7218 = vmatmul.mubr.bf16.gmra.mrb[76].mxu0 %v6949_v26  ;;  %7411 = vmatmul.mubr.bf16.gmra.mrb[76].mxu1 %v6949_v26  ;;  %v3524_v13 = vmax.f32 %v15083_v47, %v3503_v3  ;;  %v3583_v39 = vrot.slane %v3403_v15, 6  ;;  %v3838_v55 = vsel %vm2361_vm3, %v3774_v38, %v3790_v50  ;;  %v3859_v17 = vmax.f32 %v3747_v53, %v3822_v35 }
 0x3a7   : > { %7227 = vmatprep.mubr.bf16.mxu0 %v16413_v54  ;;  %7420 = vmatprep.mubr.bf16.mxu1 %v16413_v54  ;;  %v3525_v56 = vmax.f32 %v15085_v14, %v3487_v32  ;;  %v3679_v21 = vrot.slane %v15085_v14, 2  ;;  %v3858_v63 = vmax.f32 %v3746_v44, %v3838_v55  ;;  %v3599_v18 = vsel %vm2135_vm1, %v3551_v41, %v3567_v25 }
 0x3a8   : > { %v3615_v8 = vsel %vm2135_vm1, %v3583_v39, %v3551_v41  ;;  %v3695_v49 = vrot.slane %v3403_v15, 2  ;;  %v3663_v40 = vrot.slane %v15083_v47, 2  ;;  %v3791_v0 = vrot.slane %v15085_v14, 1  ;;  %v15139_v14 = vld [vmem:[#allocation4 + $0xa8] sm:$0xff] }
 0x3a9   : > { %v3636_v9 = vmax.f32 %v3524_v13, %v3615_v8  ;;  %v3637_v11 = vmax.f32 %v3525_v56, %v3599_v18  ;;  %v3807_v45 = vrot.slane %v3403_v15, 1  ;;  %v3440_v48 = vrot.slane %v15112_v22, 7 }
 0x3aa   : > { %v3711_v33 = vsel %vm2248_vm2, %v3679_v21, %v3695_v49  ;;  %v3456_v7 = vrot.slane %v15114_v23, 7  ;;  %v6950_v4 = vpack.c.bf16 %v3859_v17, %v3858_v63  ;;  %v3727_v24 = vsel %vm2248_vm2, %v3663_v40, %v3679_v21  ;;  %v15181_v49 = vld [vmem:[#allocation4 + $0xc8] sm:$0xff]  ;;  %v3412_v40 = vld [vmem:[#allocation4 + $0xd0] sm:$0xff] }
 0x3ab   : > { %v3749_v36 = vmax.f32 %v3637_v11, %v3711_v33  ;;  %v3472_v28 = vrot.slane %v3406_v62, 7  ;;  %v3748_v6 = vmax.f32 %v3636_v9, %v3727_v24  ;;  %v3552_v5 = vrot.slane %v15112_v22, 6 }
 0x3ac   : > { %v3488_v46 = vsel %vm2022_vm0, %v3440_v48, %v3456_v7  ;;  %v3568_v20 = vrot.slane %v15114_v23, 6  ;;  %v3775_v2 = vrot.slane %v15083_v47, 1  ;;  %v3823_v34 = vsel %vm2361_vm3, %v3791_v0, %v3807_v45 }
 0x3ad   : > { %v3504_v27 = vsel %vm2022_vm0, %v3472_v28, %v3440_v48  ;;  %v3527_v52 = vmax.f32 %v15114_v23, %v3488_v46  ;;  %v3861_v42 = vmax.f32 %v3749_v36, %v3823_v34  ;;  %v3584_v12 = vrot.slane %v3406_v62, 6 }
 0x3ae   : > { %7228 = vmatmul.mubr.bf16.gmra.mrb[80].mxu0 %v6950_v4  ;;  %7421 = vmatmul.mubr.bf16.gmra.mrb[80].mxu1 %v6950_v4  ;;  %v3526_v37 = vmax.f32 %v15112_v22, %v3504_v27  ;;  %v3839_v47 = vsel %vm2361_vm3, %v3775_v2, %v3791_v0  ;;  %v3600_v15 = vsel %vm2135_vm1, %v3552_v5, %v3568_v20  ;;  %v3680_v31 = vrot.slane %v15114_v23, 2 }
 0x3af   : > { %7237 = vmatprep.mubr.bf16.mxu0 %v16413_v54  ;;  %7430 = vmatprep.mubr.bf16.mxu1 %v16413_v54  ;;  %v3696_v43 = vrot.slane %v3406_v62, 2  ;;  %v3860_v1 = vmax.f32 %v3748_v6, %v3839_v47  ;;  %v3616_v51 = vsel %vm2135_vm1, %v3584_v12, %v3552_v5  ;;  %v3639_v16 = vmax.f32 %v3527_v52, %v3600_v15 }
 0x3b0   : > { %v3664_v50 = vrot.slane %v15112_v22, 2  ;;  %v3638_v58 = vmax.f32 %v3526_v37, %v3616_v51  ;;  %v3792_v60 = vrot.slane %v15114_v23, 1  ;;  %v3808_v29 = vrot.slane %v3406_v62, 1  ;;  %v15214_v51 = vld [vmem:[#allocation4 + $0xe8] sm:$0xff] }
 0x3b1   : > { %v3441_v57 = vrot.slane %v15139_v14, 7  ;;  %v6951_v26 = vpack.c.bf16 %v3861_v42, %v3860_v1  ;;  %v3712_v44 = vsel %vm2248_vm2, %v3680_v31, %v3696_v43  ;;  %v3457_v53 = vrot.slane %v15148_v30, 7  ;;  %v15212_v1 = vld [vmem:[#allocation4 + $0xe0] sm:$0xff] }
 0x3b2   : > { %v3728_v38 = vsel %vm2248_vm2, %v3664_v50, %v3680_v31  ;;  %v3473_v32 = vrot.slane %v15153_v59, 7  ;;  %v3553_v3 = vrot.slane %v15139_v14, 6  ;;  %v3569_v41 = vrot.slane %v15148_v30, 6 }
 0x3b3   : > { %v3750_v25 = vmax.f32 %v3638_v58, %v3728_v38  ;;  %v3751_v35 = vmax.f32 %v3639_v16, %v3712_v44  ;;  %v3489_v13 = vsel %vm2022_vm0, %v3441_v57, %v3457_v53  ;;  %v3585_v39 = vrot.slane %v15153_v59, 6 }
 0x3b4   : > { %v3776_v55 = vrot.slane %v15112_v22, 1  ;;  %v3824_v17 = vsel %vm2361_vm3, %v3792_v60, %v3808_v29  ;;  %v3505_v56 = vsel %vm2022_vm0, %v3473_v32, %v3441_v57  ;;  %v3529_v21 = vmax.f32 %v15148_v30, %v3489_v13  ;;  %v15179_v22 = vld [vmem:[#allocation4 + $0xc0] sm:$0xff] }
 0x3b5   : > { %v3528_v23 = vmax.f32 %v15139_v14, %v3505_v56  ;;  %v3601_v63 = vsel %vm2135_vm1, %v3553_v3, %v3569_v41  ;;  %v3681_v18 = vrot.slane %v15148_v30, 2  ;;  %v3697_v8 = vrot.slane %v15153_v59, 2 }
 0x3b6   : > { %7238 = vmatmul.mubr.bf16.gmra.mrb[84].mxu0 %v6951_v26  ;;  %7431 = vmatmul.mubr.bf16.gmra.mrb[84].mxu1 %v6951_v26  ;;  %v3840_v62 = vsel %vm2361_vm3, %v3776_v55, %v3792_v60  ;;  %v3617_v9 = vsel %vm2135_vm1, %v3585_v39, %v3553_v3  ;;  %v3641_v11 = vmax.f32 %v3529_v21, %v3601_v63  ;;  %v3665_v48 = vrot.slane %v15139_v14, 2 }
 0x3b7   : > { %7247 = vmatprep.mubr.bf16.mxu0 %v16413_v54  ;;  %7440 = vmatprep.mubr.bf16.mxu1 %v16413_v54  ;;  %v3862_v0 = vmax.f32 %v3750_v25, %v3840_v62  ;;  %v3863_v33 = vmax.f32 %v3751_v35, %v3824_v17  ;;  %v3640_v45 = vmax.f32 %v3528_v23, %v3617_v9  ;;  %v3793_v4 = vrot.slane %v15148_v30, 1  ;;  %v15210_v30 = vld [vmem:[#allocation4 + $0xd8] sm:$0xff] }
 0x3b8   : > { %v3713_v7 = vsel %vm2248_vm2, %v3681_v18, %v3697_v8  ;;  %v3442_v24 = vrot.slane %v15179_v22, 7  ;;  %v3458_v36 = vrot.slane %v15181_v49, 7  ;;  %v3729_v28 = vsel %vm2248_vm2, %v3665_v48, %v3681_v18  ;;  %v15242_v8 = vld [vmem:[#allocation4 + $0xf0] sm:$0xff] }
 0x3b9   : > { %v3809_v6 = vrot.slane %v15153_v59, 1  ;;  %v3474_v46 = vrot.slane %v3412_v40, 7  ;;  %v3554_v5 = vrot.slane %v15179_v22, 6  ;;  %v3753_v20 = vmax.f32 %v3641_v11, %v3713_v7  ;;  %v15251_v11 = vld [vmem:[#allocation4 + $0x100] sm:$0xff] }
 0x3ba   : > { %v3490_v2 = vsel %vm2022_vm0, %v3442_v24, %v3458_v36  ;;  %v3570_v34 = vrot.slane %v15181_v49, 6  ;;  %v3586_v27 = vrot.slane %v3412_v40, 6  ;;  %v6952_v52 = vpack.c.bf16 %v3863_v33, %v3862_v0 }
 0x3bb   : > { %v3752_v42 = vmax.f32 %v3640_v45, %v3729_v28  ;;  %v3506_v37 = vsel %vm2022_vm0, %v3474_v46, %v3442_v24  ;;  %v3531_v12 = vmax.f32 %v15181_v49, %v3490_v2  ;;  %v3777_v47 = vrot.slane %v15139_v14, 1 }
 0x3bc   : > { %v3530_v15 = vmax.f32 %v15179_v22, %v3506_v37  ;;  %v3602_v31 = vsel %vm2135_vm1, %v3554_v5, %v3570_v34  ;;  %v3682_v43 = vrot.slane %v15181_v49, 2  ;;  %v3825_v16 = vsel %vm2361_vm3, %v3793_v4, %v3809_v6 }
 0x3bd   : > { %v3618_v14 = vsel %vm2135_vm1, %v3586_v27, %v3554_v5  ;;  %v3643_v50 = vmax.f32 %v3531_v12, %v3602_v31  ;;  %v3698_v59 = vrot.slane %v3412_v40, 2  ;;  %v3841_v58 = vsel %vm2361_vm3, %v3777_v47, %v3793_v4  ;;  %v15276_v12 = vld [vmem:[#allocation4 + $0x108] sm:$0xff] }
 0x3be   : > { %7248 = vmatmul.mubr.bf16.gmra.mrb[88].mxu0 %v6952_v52  ;;  %7441 = vmatmul.mubr.bf16.gmra.mrb[88].mxu1 %v6952_v52  ;;  %v3865_v60 = vmax.f32 %v3753_v20, %v3825_v16  ;;  %v3642_v29 = vmax.f32 %v3530_v15, %v3618_v14  ;;  %v3666_v57 = vrot.slane %v15179_v22, 2  ;;  %v3864_v26 = vmax.f32 %v3752_v42, %v3841_v58  ;;  %v15281_v16 = vld [vmem:[#allocation4 + $0x110] sm:$0xff] }
 0x3bf   : > { %7257 = vmatprep.mubr.bf16.mxu0 %v16413_v54  ;;  %7450 = vmatprep.mubr.bf16.mxu1 %v16413_v54  ;;  %v3443_v44 = vrot.slane %v15210_v30, 7  ;;  %v3459_v53 = vrot.slane %v15212_v1, 7  ;;  %v3475_v38 = vrot.slane %v15214_v51, 7  ;;  %v3714_v32 = vsel %vm2248_vm2, %v3682_v43, %v3698_v59  ;;  %v15285_v59 = vld [vmem:[#allocation4 + $0x118] sm:$0xff] }
 0x3c0   : > { %v3730_v3 = vsel %vm2248_vm2, %v3666_v57, %v3682_v43  ;;  %v3794_v41 = vrot.slane %v15181_v49, 1  ;;  %v3810_v25 = vrot.slane %v3412_v40, 1  ;;  %v3755_v13 = vmax.f32 %v3643_v50, %v3714_v32  ;;  %v15244_v49 = vld [vmem:[#allocation4 + $0xf8] sm:$0xff] }
 0x3c1   : > { %v3754_v35 = vmax.f32 %v3642_v29, %v3730_v3  ;;  %v3491_v39 = vsel %vm2022_vm0, %v3443_v44, %v3459_v53  ;;  %v3507_v55 = vsel %vm2022_vm0, %v3475_v38, %v3443_v44  ;;  %v3778_v17 = vrot.slane %v15179_v22, 1 }
 0x3c2   : > { %v3571_v56 = vrot.slane %v15212_v1, 6  ;;  %v6953_v21 = vpack.c.bf16 %v3865_v60, %v3864_v26  ;;  %v3533_v23 = vmax.f32 %v15212_v1, %v3491_v39  ;;  %v3555_v63 = vrot.slane %v15210_v30, 6 }
 0x3c3   : > { %v3587_v18 = vrot.slane %v15214_v51, 6  ;;  %v3826_v62 = vsel %vm2361_vm3, %v3794_v41, %v3810_v25  ;;  %v3842_v9 = vsel %vm2361_vm3, %v3778_v17, %v3794_v41  ;;  %v3532_v22 = vmax.f32 %v15210_v30, %v3507_v55 }
 0x3c4   : > { %v3866_v40 = vmax.f32 %v3754_v35, %v3842_v9  ;;  %v3867_v0 = vmax.f32 %v3755_v13, %v3826_v62  ;;  %v3683_v33 = vrot.slane %v15212_v1, 2  ;;  %v3603_v45 = vsel %vm2135_vm1, %v3555_v63, %v3571_v56  ;;  %v15311_v56 = vld [vmem:[#allocation4 + $0x120] sm:$0xff]  ;;  %v15317_v62 = vld [vmem:[#allocation4 + $0x128] sm:$0xff]  ;;  %v15319_v9 = vld [vmem:[#allocation4 + $0x130] sm:$0xff] }
 0x3c5   : > { %v3699_v48 = vrot.slane %v15214_v51, 2  ;;  %v3444_v7 = vrot.slane %v15242_v8, 7  ;;  %v3460_v4 = vrot.slane %v15244_v49, 7  ;;  %v3619_v24 = vsel %vm2135_vm1, %v3587_v18, %v3555_v63 }
 0x3c6   : > { %7258 = vmatmul.mubr.bf16.gmra.mrb[92].mxu0 %v6953_v21  ;;  %7451 = vmatmul.mubr.bf16.gmra.mrb[92].mxu1 %v6953_v21  ;;  %v3645_v36 = vmax.f32 %v3533_v23, %v3603_v45  ;;  %v3667_v28 = vrot.slane %v15210_v30, 2  ;;  %v3476_v6 = vrot.slane %v15251_v11, 7  ;;  %v3644_v46 = vmax.f32 %v3532_v22, %v3619_v24 }
 0x3c7   : > { %7267 = vmatprep.mubr.bf16.mxu0 %v16413_v54  ;;  %7460 = vmatprep.mubr.bf16.mxu1 %v16413_v54  ;;  %v3492_v5 = vsel %vm2022_vm0, %v3444_v7, %v3460_v4  ;;  %v6954_v20 = vpack.c.bf16 %v3867_v0, %v3866_v40  ;;  %v3715_v27 = vsel %vm2248_vm2, %v3683_v33, %v3699_v48  ;;  %v3795_v52 = vrot.slane %v15212_v1, 1 }
 0x3c8   : > { %v3731_v2 = vsel %vm2248_vm2, %v3667_v28, %v3683_v33  ;;  %v3508_v34 = vsel %vm2022_vm0, %v3476_v6, %v3444_v7  ;;  %v3811_v42 = vrot.slane %v15214_v51, 1  ;;  %v3572_v37 = vrot.slane %v15244_v49, 6 }
 0x3c9   : > { %v3757_v47 = vmax.f32 %v3645_v36, %v3715_v27  ;;  %v3535_v15 = vmax.f32 %v15244_v49, %v3492_v5  ;;  %v3556_v31 = vrot.slane %v15242_v8, 6  ;;  %v3588_v43 = vrot.slane %v15251_v11, 6 }
 0x3ca   : > { %v3756_v14 = vmax.f32 %v3644_v46, %v3731_v2  ;;  %v3779_v50 = vrot.slane %v15210_v30, 1  ;;  %v3534_v1 = vmax.f32 %v15242_v8, %v3508_v34  ;;  %v3684_v51 = vrot.slane %v15244_v49, 2 }
 0x3cb   : > { %v3700_v58 = vrot.slane %v15251_v11, 2  ;;  %v3445_v60 = vrot.slane %v15276_v12, 7  ;;  %v3827_v29 = vsel %vm2361_vm3, %v3795_v52, %v3811_v42  ;;  %v3604_v57 = vsel %vm2135_vm1, %v3556_v31, %v3572_v37 }
 0x3cc   : > { %v3843_v30 = vsel %vm2361_vm3, %v3779_v50, %v3795_v52  ;;  %v3461_v26 = vrot.slane %v15281_v16, 7  ;;  %v3869_v44 = vmax.f32 %v3757_v47, %v3827_v29  ;;  %v3620_v53 = vsel %vm2135_vm1, %v3588_v43, %v3556_v31 }
 0x3cd   : > { %v3647_v38 = vmax.f32 %v3535_v15, %v3604_v57  ;;  %v3477_v32 = vrot.slane %v15285_v59, 7  ;;  %v3868_v3 = vmax.f32 %v3756_v14, %v3843_v30  ;;  %v3646_v41 = vmax.f32 %v3534_v1, %v3620_v53 }
 0x3ce   : > { %7268 = vmatmul.mubr.bf16.gmra.mrb[96].mxu0 %v6954_v20  ;;  %7461 = vmatmul.mubr.bf16.gmra.mrb[96].mxu1 %v6954_v20  ;;  %v3493_v25 = vsel %vm2022_vm0, %v3445_v60, %v3461_v26  ;;  %v3573_v35 = vrot.slane %v15281_v16, 6  ;;  %v3668_v13 = vrot.slane %v15242_v8, 2  ;;  %v3716_v39 = vsel %vm2248_vm2, %v3684_v51, %v3700_v58 }
 0x3cf   : > { %7277 = vmatprep.mubr.bf16.mxu0 %v16413_v54  ;;  %7470 = vmatprep.mubr.bf16.mxu1 %v16413_v54  ;;  %v3796_v55 = vrot.slane %v15244_v49, 1  ;;  %v3509_v17 = vsel %vm2022_vm0, %v3477_v32, %v3445_v60  ;;  %v3812_v21 = vrot.slane %v15251_v11, 1  ;;  %v3537_v23 = vmax.f32 %v15281_v16, %v3493_v25 }
 0x3d0   : > { %v3557_v63 = vrot.slane %v15276_v12, 6  ;;  %v3589_v18 = vrot.slane %v15285_v59, 6  ;;  %v6955_v22 = vpack.c.bf16 %v3869_v44, %v3868_v3  ;;  %v3732_v49 = vsel %vm2248_vm2, %v3668_v13, %v3684_v51  ;;  %v15355_v51 = vld [vmem:[#allocation4 + $0x148] sm:$0xff] }
 0x3d1   : > { %v3759_v40 = vmax.f32 %v3647_v38, %v3716_v39  ;;  %v3536_v0 = vmax.f32 %v15276_v12, %v3509_v17  ;;  %v3758_v33 = vmax.f32 %v3646_v41, %v3732_v49  ;;  %v3780_v11 = vrot.slane %v15242_v8, 1 }
 0x3d2   : > { %v3605_v45 = vsel %vm2135_vm1, %v3557_v63, %v3573_v35  ;;  %v3446_v48 = vrot.slane %v15311_v56, 7  ;;  %v3685_v7 = vrot.slane %v15281_v16, 2  ;;  %v3701_v4 = vrot.slane %v15285_v59, 2 }
 0x3d3   : > { %v3462_v24 = vrot.slane %v15317_v62, 7  ;;  %v3478_v36 = vrot.slane %v15319_v9, 7  ;;  %v3828_v8 = vsel %vm2361_vm3, %v3796_v55, %v3812_v21  ;;  %v3621_v28 = vsel %vm2135_vm1, %v3589_v18, %v3557_v63 }
 0x3d4   : > { %v3649_v6 = vmax.f32 %v3537_v23, %v3605_v45  ;;  %v3844_v46 = vsel %vm2361_vm3, %v3780_v11, %v3796_v55  ;;  %v3871_v5 = vmax.f32 %v3759_v40, %v3828_v8  ;;  %v3648_v20 = vmax.f32 %v3536_v0, %v3621_v28  ;;  %v15393_v11 = vld [vmem:[#allocation4 + $0x160] sm:$0xff] }
 0x3d5   : > { %v3494_v2 = vsel %vm2022_vm0, %v3446_v48, %v3462_v24  ;;  %v3870_v34 = vmax.f32 %v3758_v33, %v3844_v46  ;;  %v3669_v27 = vrot.slane %v15276_v12, 2  ;;  %v3510_v52 = vsel %vm2022_vm0, %v3478_v36, %v3446_v48  ;;  %v15391_v33 = vld [vmem:[#allocation4 + $0x150] sm:$0xff] }
 0x3d6   : > { %7278 = vmatmul.mubr.bf16.gmra.mrb[100].mxu0 %v6955_v22  ;;  %7471 = vmatmul.mubr.bf16.gmra.mrb[100].mxu1 %v6955_v22  ;;  %v3574_v42 = vrot.slane %v15317_v62, 6  ;;  %v3717_v37 = vsel %vm2248_vm2, %v3685_v7, %v3701_v4  ;;  %v3797_v47 = vrot.slane %v15281_v16, 1  ;;  %v3813_v15 = vrot.slane %v15285_v59, 1  ;;  %v15384_v22 = vld [vmem:[#allocation4 + $0x158] sm:$0xff] }
 0x3d7   : > { %7287 = vmatprep.mubr.bf16.mxu0 %v16413_v54  ;;  %7480 = vmatprep.mubr.bf16.mxu1 %v16413_v54  ;;  %v3539_v31 = vmax.f32 %v15317_v62, %v3494_v2  ;;  %v3733_v43 = vsel %vm2248_vm2, %v3669_v27, %v3685_v7  ;;  %v3761_v14 = vmax.f32 %v3649_v6, %v3717_v37  ;;  %v3558_v50 = vrot.slane %v15311_v56, 6 }
 0x3d8   : > { %v3590_v1 = vrot.slane %v15319_v9, 6  ;;  %v6956_v58 = vpack.c.bf16 %v3871_v5, %v3870_v34  ;;  %v3760_v60 = vmax.f32 %v3648_v20, %v3733_v43  ;;  %v3781_v29 = vrot.slane %v15276_v12, 1 }
 0x3d9   : > { %v3538_v16 = vmax.f32 %v15311_v56, %v3510_v52  ;;  %v3606_v59 = vsel %vm2135_vm1, %v3558_v50, %v3574_v42  ;;  %v3686_v30 = vrot.slane %v15317_v62, 2  ;;  %v3702_v57 = vrot.slane %v15319_v9, 2 }
 0x3da   : > { %v3463_v26 = vrot.slane %v14966_v10, 7  ;;  %v3829_v44 = vsel %vm2361_vm3, %v3797_v47, %v3813_v15  ;;  %v3651_v53 = vmax.f32 %v3539_v31, %v3606_v59  ;;  %v3447_v38 = vrot.slane %v14962_v19, 7  ;;  %v15418_v31 = vld [vmem:[#allocation4 + $0x170] sm:$0xff] }
 0x3db   : > { %v3479_v12 = vrot.slane %v15355_v51, 7  ;;  %v3845_v32 = vsel %vm2361_vm3, %v3781_v29, %v3797_v47  ;;  %v3873_v3 = vmax.f32 %v3761_v14, %v3829_v44  ;;  %v3622_v41 = vsel %vm2135_vm1, %v3590_v1, %v3558_v50  ;;  %v15430_v29 = vld [vmem:[#allocation4 + $0x178] sm:$0xff] }
 0x3dc   : > { %v3872_v25 = vmax.f32 %v3760_v60, %v3845_v32  ;;  %v3650_v35 = vmax.f32 %v3538_v16, %v3622_v41  ;;  %v3718_v13 = vsel %vm2248_vm2, %v3686_v30, %v3702_v57  ;;  %v3798_v39 = vrot.slane %v15317_v62, 1 }
 0x3dd   : > { %v3814_v55 = vrot.slane %v15319_v9, 1  ;;  %v3495_v17 = vsel %vm2022_vm0, %v3447_v38, %v3463_v26  ;;  %v3670_v21 = vrot.slane %v15311_v56, 2  ;;  %v3763_v23 = vmax.f32 %v3651_v53, %v3718_v13 }
 0x3de   : > { %7288 = vmatmul.mubr.bf16.gmra.mrb[104].mxu0 %v6956_v58  ;;  %7481 = vmatmul.mubr.bf16.gmra.mrb[104].mxu1 %v6956_v58  ;;  %v3511_v63 = vsel %vm2022_vm0, %v3479_v12, %v3447_v38  ;;  %v3575_v18 = vrot.slane %v14966_v10, 6  ;;  %v6957_v49 = vpack.c.bf16 %v3873_v3, %v3872_v25  ;;  %v3541_v62 = vmax.f32 %v14966_v10, %v3495_v17 }
 0x3df   : > { %7297 = vmatprep.mubr.bf16.mxu0 %v16413_v54  ;;  %7490 = vmatprep.mubr.bf16.mxu1 %v16413_v54  ;;  %v3734_v40 = vsel %vm2248_vm2, %v3670_v21, %v3686_v30  ;;  %v3559_v9 = vrot.slane %v14962_v19, 6  ;;  %v3591_v0 = vrot.slane %v15355_v51, 6  ;;  %v3830_v48 = vsel %vm2361_vm3, %v3798_v39, %v3814_v55 }
 0x3e0   : > { %v3762_v45 = vmax.f32 %v3650_v35, %v3734_v40  ;;  %v3540_v7 = vmax.f32 %v14962_v19, %v3511_v63  ;;  %v3464_v4 = vrot.slane %v15384_v22, 7  ;;  %v3782_v24 = vrot.slane %v15311_v56, 1 }
 0x3e1   : > { %v3875_v36 = vmax.f32 %v3763_v23, %v3830_v48  ;;  %v3607_v8 = vsel %vm2135_vm1, %v3559_v9, %v3575_v18  ;;  %v3687_v28 = vrot.slane %v14966_v10, 2  ;;  %v3703_v6 = vrot.slane %v15355_v51, 2 }
 0x3e2   : > { %v3448_v46 = vrot.slane %v15391_v33, 7  ;;  %v3480_v5 = vrot.slane %v15393_v11, 7  ;;  %v3846_v20 = vsel %vm2361_vm3, %v3782_v24, %v3798_v39  ;;  %v3623_v56 = vsel %vm2135_vm1, %v3591_v0, %v3559_v9 }
 0x3e3   : > { %v3653_v2 = vmax.f32 %v3541_v62, %v3607_v8  ;;  %v3874_v34 = vmax.f32 %v3762_v45, %v3846_v20  ;;  %v3652_v27 = vmax.f32 %v3540_v7, %v3623_v56  ;;  %v3671_v42 = vrot.slane %v14962_v19, 2 }
 0x3e4   : > { %v3496_v52 = vsel %vm2022_vm0, %v3448_v46, %v3464_v4  ;;  %v3799_v37 = vrot.slane %v14966_v10, 1  ;;  %v3815_v47 = vrot.slane %v15355_v51, 1  ;;  %v3576_v15 = vrot.slane %v15384_v22, 6  ;;  %v15428_v51 = vld [vmem:[#allocation4 + $0x168] sm:$0xff] }
 0x3e5   : > { %v6958_v43 = vpack.c.bf16 %v3875_v36, %v3874_v34  ;;  %v3719_v14 = vsel %vm2248_vm2, %v3687_v28, %v3703_v6  ;;  %v3512_v50 = vsel %vm2022_vm0, %v3480_v5, %v3448_v46  ;;  %v3735_v1 = vsel %vm2248_vm2, %v3671_v42, %v3687_v28 }
 0x3e6   : > { %7298 = vmatmul.mubr.bf16.gmra.mrb[108].mxu0 %v6957_v49  ;;  %7491 = vmatmul.mubr.bf16.gmra.mrb[108].mxu1 %v6957_v49  ;;  %v3765_v58 = vmax.f32 %v3653_v2, %v3719_v14  ;;  %v3543_v60 = vmax.f32 %v15384_v22, %v3496_v52  ;;  %v3560_v10 = vrot.slane %v15391_v33, 6  ;;  %v3764_v16 = vmax.f32 %v3652_v27, %v3735_v1 }
 0x3e7   : > { %7307 = vmatprep.mubr.bf16.mxu0 %v16413_v54  ;;  %7500 = vmatprep.mubr.bf16.mxu1 %v16413_v54  ;;  %v3592_v59 = vrot.slane %v15393_v11, 6  ;;  %v3465_v30 = vrot.slane %v15418_v31, 7  ;;  %v3783_v57 = vrot.slane %v14962_v19, 1  ;;  %v3831_v26 = vsel %vm2361_vm3, %v3799_v37, %v3815_v47 }
 0x3e8   : > { %v3542_v44 = vmax.f32 %v15391_v33, %v3512_v50  ;;  %v3608_v53 = vsel %vm2135_vm1, %v3560_v10, %v3576_v15  ;;  %v3688_v38 = vrot.slane %v15384_v22, 2  ;;  %v3704_v12 = vrot.slane %v15393_v11, 2 }
 0x3e9   : > { %v3449_v32 = vrot.slane %v15428_v51, 7  ;;  %v3481_v19 = vrot.slane %v15430_v29, 7  ;;  %v3877_v3 = vmax.f32 %v3765_v58, %v3831_v26  ;;  %v3655_v41 = vmax.f32 %v3543_v60, %v3608_v53  ;;  %v3882_v58 = vld [vmem:[#allocation2] sm:$0xff]  ;;  %v3884_v60 = vld [vmem:[#allocation2 + $0x10] sm:$0xff]  ;;  %v3887_v53 = vld [vmem:[#allocation2 + $0x28] sm:$0xff] }
 0x3ea   : > { %v3847_v25 = vsel %vm2361_vm3, %v3783_v57, %v3799_v37  ;;  %v3624_v35 = vsel %vm2135_vm1, %v3592_v59, %v3560_v10  ;;  %v3672_v17 = vrot.slane %v15391_v33, 2  ;;  %v3800_v21 = vrot.slane %v15384_v22, 1  ;;  %v3883_v10 = vld [vmem:[#allocation2 + $0x8] sm:$0xff] }
 0x3eb   : > { %v3497_v13 = vsel %vm2022_vm0, %v3449_v32, %v3465_v30  ;;  %v3876_v39 = vmax.f32 %v3764_v16, %v3847_v25  ;;  %v3654_v55 = vmax.f32 %v3542_v44, %v3624_v35  ;;  %v3720_v23 = vsel %vm2248_vm2, %v3688_v38, %v3704_v12  ;;  %v3888_v30 = vld [vmem:[#allocation2 + $0x30] sm:$0xff] }
 0x3ec   : > { %v3816_v63 = vrot.slane %v15393_v11, 1  ;;  %v3513_v18 = vsel %vm2022_vm0, %v3481_v19, %v3449_v32  ;;  %v3577_v49 = vrot.slane %v15418_v31, 6  ;;  %v3767_v62 = vmax.f32 %v3655_v41, %v3720_v23  ;;  %v3891_v23 = vld [vmem:[#allocation2 + $0x48] sm:$0xff] }
 0x3ed   : > { %v6959_v40 = vpack.c.bf16 %v3877_v3, %v3876_v39  ;;  %v3545_v9 = vmax.f32 %v15418_v31, %v3497_v13  ;;  %v3736_v0 = vsel %vm2248_vm2, %v3672_v17, %v3688_v38  ;;  %v3561_v45 = vrot.slane %v15428_v51, 6  ;;  %v3889_v38 = vld [vmem:[#allocation2 + $0x38] sm:$0xff]  ;;  %v3890_v17 = vld [vmem:[#allocation2 + $0x40] sm:$0xff] }
 0x3ee   : > { %7308 = vmatmul.mubr.bf16.gmra.mrb[112].mxu0 %v6958_v43  ;;  %7501 = vmatmul.mubr.bf16.gmra.mrb[112].mxu1 %v6958_v43  ;;  %v3593_v22 = vrot.slane %v15430_v29, 6  ;;  %v3766_v48 = vmax.f32 %v3654_v55, %v3736_v0  ;;  %v3784_v11 = vrot.slane %v15391_v33, 1  ;;  %v3544_v7 = vmax.f32 %v15428_v51, %v3513_v18 }
 0x3ef   : > { %7317 = vmatprep.mubr.bf16.mxu0 %v16413_v54  ;;  %7510 = vmatprep.mubr.bf16.mxu1 %v16413_v54  ;;  %v3832_v4 = vsel %vm2361_vm3, %v3800_v21, %v3816_v63  ;;  %v3609_v24 = vsel %vm2135_vm1, %v3561_v45, %v3577_v49  ;;  %v3689_v36 = vrot.slane %v15418_v31, 2  ;;  %v3705_v8 = vrot.slane %v15430_v29, 2  ;;  %v3893_v63 = vld [vmem:[#allocation2 + $0x58] sm:$0xff] }
 0x3f0   : > { %v3879_v28 = vmax.f32 %v3767_v62, %v3832_v4  ;;  %v3657_v6 = vmax.f32 %v3545_v9, %v3609_v24  ;;  %v3848_v33 = vsel %vm2361_vm3, %v3784_v11, %v3800_v21  ;;  %v3625_v46 = vsel %vm2135_vm1, %v3593_v22, %v3561_v45  ;;  %v3892_v21 = vld [vmem:[#allocation2 + $0x50] sm:$0xff]  ;;  %v3897_v11 = vld [vmem:[#allocation2 + $0x78] sm:$0xff] }
 0x3f1   : > { %v3878_v5 = vmax.f32 %v3766_v48, %v3848_v33  ;;  %v3656_v20 = vmax.f32 %v3544_v7, %v3625_v46  ;;  %v3673_v56 = vrot.slane %v15428_v51, 2  ;;  %v3721_v2 = vsel %vm2248_vm2, %v3689_v36, %v3705_v8  ;;  %v3896_v62 = vld [vmem:[#allocation2 + $0x70] sm:$0xff]  ;;  %v3895_v48 = vld [vmem:[#allocation2 + $0x68] sm:$0xff] }
 0x3f2   : > { %v3801_v34 = vrot.slane %v15418_v31, 1  ;;  %v3817_v27 = vrot.slane %v15430_v29, 1  ;;  %v3769_v42 = vmax.f32 %v3657_v6, %v3721_v2  ;;  %v3785_v15 = vrot.slane %v15428_v51, 1  ;;  %v3885_v29 = vld [vmem:[#allocation2 + $0x18] sm:$0xff]  ;;  %v3899_v2 = vld [vmem:[#allocation2 + $0x88] sm:$0xff] }
 0x3f3   : > { %v6960_v52 = vpack.c.bf16 %v3879_v28, %v3878_v5  ;;  %v3737_v37 = vsel %vm2248_vm2, %v3673_v56, %v3689_v36  ;;  %v3900_v56 = vld [vmem:[#allocation2 + $0x90] sm:$0xff] }
 0x3f4   : > { %v3768_v47 = vmax.f32 %v3656_v20, %v3737_v37  ;;  %v3833_v43 = vsel %vm2361_vm3, %v3801_v34, %v3817_v27  ;;  %v3849_v14 = vsel %vm2361_vm3, %v3785_v15, %v3801_v34  ;;  %v3898_v20 = vld [vmem:[#allocation2 + $0x80] sm:$0xff]  ;;  %v3901_v34 = vld [vmem:[#allocation2 + $0x98] sm:$0xff]  ;;  %v3904_v37 = vld [vmem:[#allocation2 + $0xb0] sm:$0xff] }
 0x3f5   : > { %v3881_v31 = vmax.f32 %v3769_v42, %v3833_v43  ;;  %v3902_v42 = vld [vmem:[#allocation2 + $0xa0] sm:$0xff] }
 0x3f6   : > { %7318 = vmatmul.mubr.bf16.gmra.mrb[116].mxu0 %v6959_v40  ;;  %7511 = vmatmul.mubr.bf16.gmra.mrb[116].mxu1 %v6959_v40  ;;  %v3880_v50 = vmax.f32 %v3768_v47, %v3849_v14  ;;  %v3894_v40 = vld [vmem:[#allocation2 + $0x60] sm:$0xff]  ;;  %v3903_v14 = vld [vmem:[#allocation2 + $0xa8] sm:$0xff] }
 0x3f7   : > { %7327 = vmatprep.mubr.bf16.mxu0 %v16413_v54  ;;  %7520 = vmatprep.mubr.bf16.mxu1 %v16413_v54 }
 0x3f8   : > { %v6961_v1 = vpack.c.bf16 %v3881_v31, %v3880_v50  ;;  %v3905_v50 = vld [vmem:[#allocation2 + $0xb8] sm:$0xff] }
 0x3fe   : > { %7328 = vmatmul.mubr.bf16.gmra.mrb[120].mxu0 %v6960_v52  ;;  %7521 = vmatmul.mubr.bf16.gmra.mrb[120].mxu1 %v6960_v52 }
 0x3ff   : > { %7337 = vmatprep.mubr.bf16.mxu0 %v16413_v54  ;;  %7530 = vmatprep.mubr.bf16.mxu1 %v16413_v54  ;;  %v3886_v54 = vld [vmem:[#allocation2 + $0x20] sm:$0xff] }
 0x406   : > { %7338 = vmatmul.mubr.bf16.gmra.mrb[124].mxu0 %v6961_v1  ;;  %7531 = vmatmul.mubr.bf16.gmra.mrb[124].mxu1 %v6961_v1 }
 0x461   : > { %v7189_v16 = vpop.f32.mrb[64].mxu0  ;;  %v7382_v59 = vpop.f32.mrb[64].mxu1 }
 0x462   : > { %v9703_v51 = vadd.f32 %v7189_v16, %v3882_v58  ;;  %v9895_v57 = vadd.f32 %v7382_v59, %v3884_v60  ;;  %v7191_v26 = vpop.f32.mrb[65].mxu0  ;;  %v7384_v44 = vpop.f32.mrb[65].mxu1 }
 0x463   : > { %v9706_v12 = vadd.f32 %v7191_v26, %v3883_v10  ;;  %v9898_v32 = vadd.f32 %v7384_v44, %v3885_v29  ;;  %v7193_v19 = vpop.f32.mrb[66].mxu0  ;;  %v7386_v3 = vpop.f32.mrb[66].mxu1  ;;  %v3908_v26 = vld [vmem:[#allocation2 + $0xd0] sm:$0xff]  ;;  %v3907_v44 = vld [vmem:[#allocation2 + $0xc8] sm:$0xff] }
 0x464   : > { %7669 = vst [vmem:[#allocation2] sm:$0xff] %v9703_v51  ;;  %7671 = vst [vmem:[#allocation2 + $0x10] sm:$0xff] %v9895_v57  ;;  %v9709_v41 = vadd.f32 %v7193_v19, %v3886_v54  ;;  %v9901_v25 = vadd.f32 %v7386_v3, %v3888_v30  ;;  %v7195_v35 = vpop.f32.mrb[67].mxu0  ;;  %v7388_v13 = vpop.f32.mrb[67].mxu1  ;;  %v3906_v57 = vld [vmem:[#allocation2 + $0xc0] sm:$0xff]  ;;  %v3912_v19 = vld [vmem:[#allocation2 + $0xf0] sm:$0xff] }
 0x465   : > { %7670 = vst [vmem:[#allocation2 + $0x8] sm:$0xff] %v9706_v12  ;;  %7672 = vst [vmem:[#allocation2 + $0x18] sm:$0xff] %v9898_v32  ;;  %v9712_v39 = vadd.f32 %v7195_v35, %v3887_v53  ;;  %v9904_v55 = vadd.f32 %v7388_v13, %v3889_v38  ;;  %v3909_v53 = vld [vmem:[#allocation2 + $0xd8] sm:$0xff]  ;;  %v3910_v32 = vld [vmem:[#allocation2 + $0xe0] sm:$0xff] }
 0x466   : > { %7673 = vst [vmem:[#allocation2 + $0x20] sm:$0xff] %v9709_v41  ;;  %7675 = vst [vmem:[#allocation2 + $0x30] sm:$0xff] %v9901_v25  ;;  %v3911_v13 = vld [vmem:[#allocation2 + $0xe8] sm:$0xff] }
 0x467   : > { %7674 = vst [vmem:[#allocation2 + $0x28] sm:$0xff] %v9712_v39  ;;  %7676 = vst [vmem:[#allocation2 + $0x38] sm:$0xff] %v9904_v55  ;;  %v3913_v39 = vld [vmem:[#allocation2 + $0xf8] sm:$0xff] }
 0x469   : > { %v7199_v18 = vpop.f32.mrb[68].mxu0  ;;  %v7392_v49 = vpop.f32.mrb[68].mxu1 }
 0x46a   : > { %v9715_v9 = vadd.f32 %v7199_v18, %v3890_v17  ;;  %v9907_v0 = vadd.f32 %v7392_v49, %v3892_v21  ;;  %v7201_v45 = vpop.f32.mrb[69].mxu0  ;;  %v7394_v22 = vpop.f32.mrb[69].mxu1 }
 0x46b   : > { %v9718_v7 = vadd.f32 %v7201_v45, %v3891_v23  ;;  %v9910_v4 = vadd.f32 %v7394_v22, %v3893_v63  ;;  %v7203_v24 = vpop.f32.mrb[70].mxu0  ;;  %v7396_v36 = vpop.f32.mrb[70].mxu1  ;;  %v3916_v45 = vld [vmem:[#allocation2 + $0x110] sm:$0xff]  ;;  %v3915_v22 = vld [vmem:[#allocation2 + $0x108] sm:$0xff] }
 0x46c   : > { %7677 = vst [vmem:[#allocation2 + $0x40] sm:$0xff] %v9715_v9  ;;  %7679 = vst [vmem:[#allocation2 + $0x50] sm:$0xff] %v9907_v0  ;;  %v9721_v8 = vadd.f32 %v7203_v24, %v3894_v40  ;;  %v9913_v28 = vadd.f32 %v7396_v36, %v3896_v62  ;;  %v7205_v6 = vpop.f32.mrb[71].mxu0  ;;  %v7398_v33 = vpop.f32.mrb[71].mxu1  ;;  %v3914_v0 = vld [vmem:[#allocation2 + $0x100] sm:$0xff]  ;;  %v3920_v24 = vld [vmem:[#allocation2 + $0x130] sm:$0xff] }
 0x46d   : > { %7678 = vst [vmem:[#allocation2 + $0x48] sm:$0xff] %v9718_v7  ;;  %7680 = vst [vmem:[#allocation2 + $0x58] sm:$0xff] %v9910_v4  ;;  %v9724_v46 = vadd.f32 %v7205_v6, %v3895_v48  ;;  %v9916_v5 = vadd.f32 %v7398_v33, %v3897_v11  ;;  %v3917_v48 = vld [vmem:[#allocation2 + $0x118] sm:$0xff]  ;;  %v3918_v4 = vld [vmem:[#allocation2 + $0x120] sm:$0xff] }
 0x46e   : > { %7681 = vst [vmem:[#allocation2 + $0x60] sm:$0xff] %v9721_v8  ;;  %7683 = vst [vmem:[#allocation2 + $0x70] sm:$0xff] %v9913_v28  ;;  %v3919_v33 = vld [vmem:[#allocation2 + $0x128] sm:$0xff] }
 0x46f   : > { %7682 = vst [vmem:[#allocation2 + $0x68] sm:$0xff] %v9724_v46  ;;  %7684 = vst [vmem:[#allocation2 + $0x78] sm:$0xff] %v9916_v5  ;;  %v3921_v46 = vld [vmem:[#allocation2 + $0x138] sm:$0xff] }
 0x471   : > { %v7209_v27 = vpop.f32.mrb[72].mxu0  ;;  %v7402_v52 = vpop.f32.mrb[72].mxu1 }
 0x472   : > { %v9727_v47 = vadd.f32 %v7209_v27, %v3898_v20  ;;  %v9919_v15 = vadd.f32 %v7402_v52, %v3900_v56  ;;  %v7211_v43 = vpop.f32.mrb[73].mxu0  ;;  %v7404_v31 = vpop.f32.mrb[73].mxu1 }
 0x473   : > { %v9730_v1 = vadd.f32 %v7211_v43, %v3899_v2  ;;  %v9922_v58 = vadd.f32 %v7404_v31, %v3901_v34  ;;  %v7213_v60 = vpop.f32.mrb[74].mxu0  ;;  %v7406_v10 = vpop.f32.mrb[74].mxu1  ;;  %v3924_v43 = vld [vmem:[#allocation2 + $0x150] sm:$0xff]  ;;  %v3923_v31 = vld [vmem:[#allocation2 + $0x148] sm:$0xff] }
 0x474   : > { %7685 = vst [vmem:[#allocation2 + $0x80] sm:$0xff] %v9727_v47  ;;  %7687 = vst [vmem:[#allocation2 + $0x90] sm:$0xff] %v9919_v15  ;;  %v9733_v29 = vadd.f32 %v7213_v60, %v3902_v42  ;;  %v9925_v16 = vadd.f32 %v7406_v10, %v3904_v37  ;;  %v7215_v59 = vpop.f32.mrb[75].mxu0  ;;  %v7408_v54 = vpop.f32.mrb[75].mxu1  ;;  %v3922_v15 = vld [vmem:[#allocation2 + $0x140] sm:$0xff]  ;;  %v3928_v60 = vld [vmem:[#allocation2 + $0x170] sm:$0xff] }
 0x475   : > { %7686 = vst [vmem:[#allocation2 + $0x88] sm:$0xff] %v9730_v1  ;;  %7688 = vst [vmem:[#allocation2 + $0x98] sm:$0xff] %v9922_v58  ;;  %v9736_v30 = vadd.f32 %v7215_v59, %v3903_v14  ;;  %v9928_v51 = vadd.f32 %v7408_v54, %v3905_v50  ;;  %v3925_v14 = vld [vmem:[#allocation2 + $0x158] sm:$0xff]  ;;  %v3926_v58 = vld [vmem:[#allocation2 + $0x160] sm:$0xff] }
 0x476   : > { %7689 = vst [vmem:[#allocation2 + $0xa0] sm:$0xff] %v9733_v29  ;;  %7691 = vst [vmem:[#allocation2 + $0xb0] sm:$0xff] %v9925_v16  ;;  %v3927_v54 = vld [vmem:[#allocation2 + $0x168] sm:$0xff] }
 0x477   : > { %7690 = vst [vmem:[#allocation2 + $0xa8] sm:$0xff] %v9736_v30  ;;  %7692 = vst [vmem:[#allocation2 + $0xb8] sm:$0xff] %v9928_v51  ;;  %v3929_v30 = vld [vmem:[#allocation2 + $0x178] sm:$0xff] }
 0x479   : > { %v7219_v38 = vpop.f32.mrb[76].mxu0  ;;  %v7412_v12 = vpop.f32.mrb[76].mxu1 }
 0x47a   : > { %v9739_v3 = vadd.f32 %v7219_v38, %v3906_v57  ;;  %v9931_v41 = vadd.f32 %v7412_v12, %v3908_v26  ;;  %v7221_v25 = vpop.f32.mrb[77].mxu0  ;;  %v7414_v35 = vpop.f32.mrb[77].mxu1 }
 0x47b   : > { %v9742_v55 = vadd.f32 %v7221_v25, %v3907_v44  ;;  %v9934_v17 = vadd.f32 %v7414_v35, %v3909_v53  ;;  %v7223_v21 = vpop.f32.mrb[78].mxu0  ;;  %v7416_v23 = vpop.f32.mrb[78].mxu1  ;;  %v3932_v25 = vld [vmem:[#allocation2 + $0x190] sm:$0xff]  ;;  %v3931_v35 = vld [vmem:[#allocation2 + $0x188] sm:$0xff] }
 0x47c   : > { %7693 = vst [vmem:[#allocation2 + $0xc0] sm:$0xff] %v9739_v3  ;;  %7695 = vst [vmem:[#allocation2 + $0xd0] sm:$0xff] %v9931_v41  ;;  %v9745_v63 = vadd.f32 %v7223_v21, %v3910_v32  ;;  %v9937_v18 = vadd.f32 %v7416_v23, %v3912_v19  ;;  %v7225_v49 = vpop.f32.mrb[79].mxu0  ;;  %v7418_v40 = vpop.f32.mrb[79].mxu1  ;;  %v3930_v41 = vld [vmem:[#allocation2 + $0x180] sm:$0xff]  ;;  %v3936_v21 = vld [vmem:[#allocation2 + $0x1b0] sm:$0xff] }
 0x47d   : > { %7694 = vst [vmem:[#allocation2 + $0xc8] sm:$0xff] %v9742_v55  ;;  %7696 = vst [vmem:[#allocation2 + $0xd8] sm:$0xff] %v9934_v17  ;;  %v9748_v62 = vadd.f32 %v7225_v49, %v3911_v13  ;;  %v9940_v9 = vadd.f32 %v7418_v40, %v3913_v39  ;;  %v3933_v13 = vld [vmem:[#allocation2 + $0x198] sm:$0xff]  ;;  %v3934_v17 = vld [vmem:[#allocation2 + $0x1a0] sm:$0xff] }
 0x47e   : > { %7697 = vst [vmem:[#allocation2 + $0xe0] sm:$0xff] %v9745_v63  ;;  %7699 = vst [vmem:[#allocation2 + $0xf0] sm:$0xff] %v9937_v18  ;;  %v3935_v40 = vld [vmem:[#allocation2 + $0x1a8] sm:$0xff] }
 0x47f   : > { %7698 = vst [vmem:[#allocation2 + $0xe8] sm:$0xff] %v9748_v62  ;;  %7700 = vst [vmem:[#allocation2 + $0xf8] sm:$0xff] %v9940_v9  ;;  %v3937_v62 = vld [vmem:[#allocation2 + $0x1b8] sm:$0xff] }
 0x481   : > { %v7229_v11 = vpop.f32.mrb[80].mxu0  ;;  %v7422_v7 = vpop.f32.mrb[80].mxu1 }
 0x482   : > { %v9751_v36 = vadd.f32 %v7229_v11, %v3914_v0  ;;  %v9943_v8 = vadd.f32 %v7422_v7, %v3916_v45  ;;  %v7231_v28 = vpop.f32.mrb[81].mxu0  ;;  %v7424_v6 = vpop.f32.mrb[81].mxu1 }
 0x483   : > { %v9754_v5 = vadd.f32 %v7231_v28, %v3915_v22  ;;  %v9946_v20 = vadd.f32 %v7424_v6, %v3917_v48  ;;  %v7233_v56 = vpop.f32.mrb[82].mxu0  ;;  %v7426_v2 = vpop.f32.mrb[82].mxu1  ;;  %v3940_v28 = vld [vmem:[#allocation2 + $0x1d0] sm:$0xff]  ;;  %v3939_v6 = vld [vmem:[#allocation2 + $0x1c8] sm:$0xff] }
 0x484   : > { %7701 = vst [vmem:[#allocation2 + $0x100] sm:$0xff] %v9751_v36  ;;  %7703 = vst [vmem:[#allocation2 + $0x110] sm:$0xff] %v9943_v8  ;;  %v9757_v34 = vadd.f32 %v7233_v56, %v3918_v4  ;;  %v9949_v27 = vadd.f32 %v7426_v2, %v3920_v24  ;;  %v7235_v52 = vpop.f32.mrb[83].mxu0  ;;  %v7428_v42 = vpop.f32.mrb[83].mxu1  ;;  %v3938_v8 = vld [vmem:[#allocation2 + $0x1c0] sm:$0xff]  ;;  %v3944_v56 = vld [vmem:[#allocation2 + $0x1f0] sm:$0xff] }
 0x485   : > { %7702 = vst [vmem:[#allocation2 + $0x108] sm:$0xff] %v9754_v5  ;;  %7704 = vst [vmem:[#allocation2 + $0x118] sm:$0xff] %v9946_v20  ;;  %v9760_v37 = vadd.f32 %v7235_v52, %v3919_v33  ;;  %v9952_v47 = vadd.f32 %v7428_v42, %v3921_v46  ;;  %v3941_v33 = vld [vmem:[#allocation2 + $0x1d8] sm:$0xff]  ;;  %v3942_v20 = vld [vmem:[#allocation2 + $0x1e0] sm:$0xff] }
 0x486   : > { %7705 = vst [vmem:[#allocation2 + $0x120] sm:$0xff] %v9757_v34  ;;  %7707 = vst [vmem:[#allocation2 + $0x130] sm:$0xff] %v9949_v27  ;;  %v3943_v42 = vld [vmem:[#allocation2 + $0x1e8] sm:$0xff] }
 0x487   : > { %7706 = vst [vmem:[#allocation2 + $0x128] sm:$0xff] %v9760_v37  ;;  %7708 = vst [vmem:[#allocation2 + $0x138] sm:$0xff] %v9952_v47  ;;  %v3945_v37 = vld [vmem:[#allocation2 + $0x1f8] sm:$0xff] }
 0x489   : > { %v7239_v50 = vpop.f32.mrb[84].mxu0  ;;  %v7432_v1 = vpop.f32.mrb[84].mxu1 }
 0x48a   : > { %v9763_v10 = vadd.f32 %v7239_v50, %v3922_v15  ;;  %v9955_v29 = vadd.f32 %v7432_v1, %v3924_v43  ;;  %v7241_v16 = vpop.f32.mrb[85].mxu0  ;;  %v7434_v59 = vpop.f32.mrb[85].mxu1 }
 0x48b   : > { %v9766_v51 = vadd.f32 %v7241_v16, %v3923_v31  ;;  %v9958_v57 = vadd.f32 %v7434_v59, %v3925_v14  ;;  %v7243_v26 = vpop.f32.mrb[86].mxu0  ;;  %v7436_v44 = vpop.f32.mrb[86].mxu1  ;;  %v3948_v16 = vld [vmem:[#allocation2 + $0x210] sm:$0xff]  ;;  %v3947_v59 = vld [vmem:[#allocation2 + $0x208] sm:$0xff] }
 0x48c   : > { %7709 = vst [vmem:[#allocation2 + $0x140] sm:$0xff] %v9763_v10  ;;  %7711 = vst [vmem:[#allocation2 + $0x150] sm:$0xff] %v9955_v29  ;;  %v9769_v53 = vadd.f32 %v7243_v26, %v3926_v58  ;;  %v9961_v38 = vadd.f32 %v7436_v44, %v3928_v60  ;;  %v7245_v12 = vpop.f32.mrb[87].mxu0  ;;  %v7438_v32 = vpop.f32.mrb[87].mxu1  ;;  %v3946_v29 = vld [vmem:[#allocation2 + $0x200] sm:$0xff]  ;;  %v3952_v26 = vld [vmem:[#allocation2 + $0x230] sm:$0xff] }
 0x48d   : > { %7710 = vst [vmem:[#allocation2 + $0x148] sm:$0xff] %v9766_v51  ;;  %7712 = vst [vmem:[#allocation2 + $0x158] sm:$0xff] %v9958_v57  ;;  %v9772_v19 = vadd.f32 %v7245_v12, %v3927_v54  ;;  %v9964_v3 = vadd.f32 %v7438_v32, %v3929_v30  ;;  %v3949_v54 = vld [vmem:[#allocation2 + $0x218] sm:$0xff]  ;;  %v3950_v57 = vld [vmem:[#allocation2 + $0x220] sm:$0xff] }
 0x48e   : > { %7713 = vst [vmem:[#allocation2 + $0x160] sm:$0xff] %v9769_v53  ;;  %7715 = vst [vmem:[#allocation2 + $0x170] sm:$0xff] %v9961_v38  ;;  %v3951_v32 = vld [vmem:[#allocation2 + $0x228] sm:$0xff] }
 0x48f   : > { %7714 = vst [vmem:[#allocation2 + $0x168] sm:$0xff] %v9772_v19  ;;  %7716 = vst [vmem:[#allocation2 + $0x178] sm:$0xff] %v9964_v3  ;;  %v3953_v19 = vld [vmem:[#allocation2 + $0x238] sm:$0xff] }
 0x491   : > { %v7249_v39 = vpop.f32.mrb[88].mxu0  ;;  %v7442_v55 = vpop.f32.mrb[88].mxu1 }
 0x492   : > { %v9775_v23 = vadd.f32 %v7249_v39, %v3930_v41  ;;  %v9967_v63 = vadd.f32 %v7442_v55, %v3932_v25  ;;  %v7251_v18 = vpop.f32.mrb[89].mxu0  ;;  %v7444_v49 = vpop.f32.mrb[89].mxu1 }
 0x493   : > { %v9778_v9 = vadd.f32 %v7251_v18, %v3931_v35  ;;  %v9970_v0 = vadd.f32 %v7444_v49, %v3933_v13  ;;  %v7253_v45 = vpop.f32.mrb[90].mxu0  ;;  %v7446_v22 = vpop.f32.mrb[90].mxu1  ;;  %v3956_v18 = vld [vmem:[#allocation2 + $0x250] sm:$0xff]  ;;  %v3955_v49 = vld [vmem:[#allocation2 + $0x248] sm:$0xff] }
 0x494   : > { %7717 = vst [vmem:[#allocation2 + $0x180] sm:$0xff] %v9775_v23  ;;  %7719 = vst [vmem:[#allocation2 + $0x190] sm:$0xff] %v9967_v63  ;;  %v9781_v48 = vadd.f32 %v7253_v45, %v3934_v17  ;;  %v9973_v11 = vadd.f32 %v7446_v22, %v3936_v21  ;;  %v7255_v7 = vpop.f32.mrb[91].mxu0  ;;  %v7448_v4 = vpop.f32.mrb[91].mxu1  ;;  %v3954_v63 = vld [vmem:[#allocation2 + $0x240] sm:$0xff]  ;;  %v3960_v45 = vld [vmem:[#allocation2 + $0x270] sm:$0xff] }
 0x495   : > { %7718 = vst [vmem:[#allocation2 + $0x188] sm:$0xff] %v9778_v9  ;;  %7720 = vst [vmem:[#allocation2 + $0x198] sm:$0xff] %v9970_v0  ;;  %v9784_v24 = vadd.f32 %v7255_v7, %v3935_v40  ;;  %v9976_v36 = vadd.f32 %v7448_v4, %v3937_v62  ;;  %v3957_v40 = vld [vmem:[#allocation2 + $0x258] sm:$0xff]  ;;  %v3958_v0 = vld [vmem:[#allocation2 + $0x260] sm:$0xff] }
 0x496   : > { %7721 = vst [vmem:[#allocation2 + $0x1a0] sm:$0xff] %v9781_v48  ;;  %7723 = vst [vmem:[#allocation2 + $0x1b0] sm:$0xff] %v9973_v11  ;;  %v3959_v4 = vld [vmem:[#allocation2 + $0x268] sm:$0xff] }
 0x497   : > { %7722 = vst [vmem:[#allocation2 + $0x1a8] sm:$0xff] %v9784_v24  ;;  %7724 = vst [vmem:[#allocation2 + $0x1b8] sm:$0xff] %v9976_v36  ;;  %v3961_v24 = vld [vmem:[#allocation2 + $0x278] sm:$0xff] }
 0x499   : > { %v7259_v46 = vpop.f32.mrb[92].mxu0  ;;  %v7452_v5 = vpop.f32.mrb[92].mxu1 }
 0x49a   : > { %v9787_v2 = vadd.f32 %v7259_v46, %v3938_v8  ;;  %v9979_v34 = vadd.f32 %v7452_v5, %v3940_v28  ;;  %v7261_v27 = vpop.f32.mrb[93].mxu0  ;;  %v7454_v52 = vpop.f32.mrb[93].mxu1 }
 0x49b   : > { %v9790_v47 = vadd.f32 %v7261_v27, %v3939_v6  ;;  %v9982_v15 = vadd.f32 %v7454_v52, %v3941_v33  ;;  %v7263_v43 = vpop.f32.mrb[94].mxu0  ;;  %v7456_v31 = vpop.f32.mrb[94].mxu1  ;;  %v3964_v27 = vld [vmem:[#allocation2 + $0x290] sm:$0xff]  ;;  %v3963_v52 = vld [vmem:[#allocation2 + $0x288] sm:$0xff] }
 0x49c   : > { %7725 = vst [vmem:[#allocation2 + $0x1c0] sm:$0xff] %v9787_v2  ;;  %7727 = vst [vmem:[#allocation2 + $0x1d0] sm:$0xff] %v9979_v34  ;;  %v9793_v14 = vadd.f32 %v7263_v43, %v3942_v20  ;;  %v9985_v50 = vadd.f32 %v7456_v31, %v3944_v56  ;;  %v7265_v1 = vpop.f32.mrb[95].mxu0  ;;  %v7458_v58 = vpop.f32.mrb[95].mxu1  ;;  %v3962_v34 = vld [vmem:[#allocation2 + $0x280] sm:$0xff]  ;;  %v3968_v43 = vld [vmem:[#allocation2 + $0x2b0] sm:$0xff] }
 0x49d   : > { %7726 = vst [vmem:[#allocation2 + $0x1c8] sm:$0xff] %v9790_v47  ;;  %7728 = vst [vmem:[#allocation2 + $0x1d8] sm:$0xff] %v9982_v15  ;;  %v9796_v60 = vadd.f32 %v7265_v1, %v3943_v42  ;;  %v9988_v10 = vadd.f32 %v7458_v58, %v3945_v37  ;;  %v3965_v42 = vld [vmem:[#allocation2 + $0x298] sm:$0xff]  ;;  %v3966_v15 = vld [vmem:[#allocation2 + $0x2a0] sm:$0xff] }
 0x49e   : > { %7729 = vst [vmem:[#allocation2 + $0x1e0] sm:$0xff] %v9793_v14  ;;  %7731 = vst [vmem:[#allocation2 + $0x1f0] sm:$0xff] %v9985_v50  ;;  %v3967_v58 = vld [vmem:[#allocation2 + $0x2a8] sm:$0xff] }
 0x49f   : > { %7730 = vst [vmem:[#allocation2 + $0x1e8] sm:$0xff] %v9796_v60  ;;  %7732 = vst [vmem:[#allocation2 + $0x1f8] sm:$0xff] %v9988_v10  ;;  %v3969_v60 = vld [vmem:[#allocation2 + $0x2b8] sm:$0xff] }
 0x4a1   : > { %v7269_v30 = vpop.f32.mrb[96].mxu0  ;;  %v7462_v51 = vpop.f32.mrb[96].mxu1 }
 0x4a2   : > { %v9799_v44 = vadd.f32 %v7269_v30, %v3946_v29  ;;  %v9991_v53 = vadd.f32 %v7462_v51, %v3948_v16  ;;  %v7271_v38 = vpop.f32.mrb[97].mxu0  ;;  %v7464_v12 = vpop.f32.mrb[97].mxu1 }
 0x4a3   : > { %v9802_v3 = vadd.f32 %v7271_v38, %v3947_v59  ;;  %v9994_v41 = vadd.f32 %v7464_v12, %v3949_v54  ;;  %v7273_v25 = vpop.f32.mrb[98].mxu0  ;;  %v7466_v35 = vpop.f32.mrb[98].mxu1  ;;  %v3972_v38 = vld [vmem:[#allocation2 + $0x2d0] sm:$0xff]  ;;  %v3971_v12 = vld [vmem:[#allocation2 + $0x2c8] sm:$0xff] }
 0x4a4   : > { %7733 = vst [vmem:[#allocation2 + $0x200] sm:$0xff] %v9799_v44  ;;  %7735 = vst [vmem:[#allocation2 + $0x210] sm:$0xff] %v9991_v53  ;;  %v9805_v13 = vadd.f32 %v7273_v25, %v3950_v57  ;;  %v9997_v39 = vadd.f32 %v7466_v35, %v3952_v26  ;;  %v7275_v55 = vpop.f32.mrb[99].mxu0  ;;  %v7468_v17 = vpop.f32.mrb[99].mxu1  ;;  %v3970_v53 = vld [vmem:[#allocation2 + $0x2c0] sm:$0xff]  ;;  %v3976_v25 = vld [vmem:[#allocation2 + $0x2f0] sm:$0xff] }
 0x4a5   : > { %7734 = vst [vmem:[#allocation2 + $0x208] sm:$0xff] %v9802_v3  ;;  %7736 = vst [vmem:[#allocation2 + $0x218] sm:$0xff] %v9994_v41  ;;  %v9808_v21 = vadd.f32 %v7275_v55, %v3951_v32  ;;  %v10000_v23 = vadd.f32 %v7468_v17, %v3953_v19  ;;  %v3973_v32 = vld [vmem:[#allocation2 + $0x2d8] sm:$0xff]  ;;  %v3974_v41 = vld [vmem:[#allocation2 + $0x2e0] sm:$0xff] }
 0x4a6   : > { %7737 = vst [vmem:[#allocation2 + $0x220] sm:$0xff] %v9805_v13  ;;  %7739 = vst [vmem:[#allocation2 + $0x230] sm:$0xff] %v9997_v39  ;;  %v3975_v17 = vld [vmem:[#allocation2 + $0x2e8] sm:$0xff] }
 0x4a7   : > { %7738 = vst [vmem:[#allocation2 + $0x228] sm:$0xff] %v9808_v21  ;;  %7740 = vst [vmem:[#allocation2 + $0x238] sm:$0xff] %v10000_v23  ;;  %v3977_v21 = vld [vmem:[#allocation2 + $0x2f8] sm:$0xff] }
 0x4a9   : > { %v7279_v62 = vpop.f32.mrb[100].mxu0  ;;  %v7472_v9 = vpop.f32.mrb[100].mxu1 }
 0x4aa   : > { %v9811_v22 = vadd.f32 %v7279_v62, %v3954_v63  ;;  %v10003_v48 = vadd.f32 %v7472_v9, %v3956_v18  ;;  %v7281_v11 = vpop.f32.mrb[101].mxu0  ;;  %v7474_v7 = vpop.f32.mrb[101].mxu1 }
 0x4ab   : > { %v9814_v36 = vadd.f32 %v7281_v11, %v3955_v49  ;;  %v10006_v8 = vadd.f32 %v7474_v7, %v3957_v40  ;;  %v7283_v28 = vpop.f32.mrb[102].mxu0  ;;  %v7476_v6 = vpop.f32.mrb[102].mxu1  ;;  %v3980_v11 = vld [vmem:[#allocation2 + $0x310] sm:$0xff]  ;;  %v3979_v7 = vld [vmem:[#allocation2 + $0x308] sm:$0xff] }
 0x4ac   : > { %7741 = vst [vmem:[#allocation2 + $0x240] sm:$0xff] %v9811_v22  ;;  %7743 = vst [vmem:[#allocation2 + $0x250] sm:$0xff] %v10003_v48  ;;  %v9817_v33 = vadd.f32 %v7283_v28, %v3958_v0  ;;  %v10009_v46 = vadd.f32 %v7476_v6, %v3960_v45  ;;  %v7285_v5 = vpop.f32.mrb[103].mxu0  ;;  %v7478_v20 = vpop.f32.mrb[103].mxu1  ;;  %v3978_v48 = vld [vmem:[#allocation2 + $0x300] sm:$0xff]  ;;  %v3984_v28 = vld [vmem:[#allocation2 + $0x330] sm:$0xff] }
 0x4ad   : > { %7742 = vst [vmem:[#allocation2 + $0x248] sm:$0xff] %v9814_v36  ;;  %7744 = vst [vmem:[#allocation2 + $0x258] sm:$0xff] %v10006_v8  ;;  %v9820_v56 = vadd.f32 %v7285_v5, %v3959_v4  ;;  %v10012_v2 = vadd.f32 %v7478_v20, %v3961_v24  ;;  %v3981_v4 = vld [vmem:[#allocation2 + $0x318] sm:$0xff]  ;;  %v3982_v8 = vld [vmem:[#allocation2 + $0x320] sm:$0xff] }
 0x4ae   : > { %7745 = vst [vmem:[#allocation2 + $0x260] sm:$0xff] %v9817_v33  ;;  %7747 = vst [vmem:[#allocation2 + $0x270] sm:$0xff] %v10009_v46  ;;  %v3983_v20 = vld [vmem:[#allocation2 + $0x328] sm:$0xff] }
 0x4af   : > { %7746 = vst [vmem:[#allocation2 + $0x268] sm:$0xff] %v9820_v56  ;;  %7748 = vst [vmem:[#allocation2 + $0x278] sm:$0xff] %v10012_v2  ;;  %v3985_v56 = vld [vmem:[#allocation2 + $0x338] sm:$0xff] }
 0x4b1   : > { %v7289_v37 = vpop.f32.mrb[104].mxu0  ;;  %v7482_v47 = vpop.f32.mrb[104].mxu1 }
 0x4b2   : > { %v9823_v31 = vadd.f32 %v7289_v37, %v3962_v34  ;;  %v10015_v14 = vadd.f32 %v7482_v47, %v3964_v27  ;;  %v7291_v50 = vpop.f32.mrb[105].mxu0  ;;  %v7484_v1 = vpop.f32.mrb[105].mxu1 }
 0x4b3   : > { %v9826_v10 = vadd.f32 %v7291_v50, %v3963_v52  ;;  %v10018_v29 = vadd.f32 %v7484_v1, %v3965_v42  ;;  %v7293_v16 = vpop.f32.mrb[106].mxu0  ;;  %v7486_v59 = vpop.f32.mrb[106].mxu1  ;;  %v3988_v50 = vld [vmem:[#allocation2 + $0x350] sm:$0xff]  ;;  %v3987_v1 = vld [vmem:[#allocation2 + $0x348] sm:$0xff] }
 0x4b4   : > { %7749 = vst [vmem:[#allocation2 + $0x280] sm:$0xff] %v9823_v31  ;;  %7751 = vst [vmem:[#allocation2 + $0x290] sm:$0xff] %v10015_v14  ;;  %v9829_v54 = vadd.f32 %v7293_v16, %v3966_v15  ;;  %v10021_v30 = vadd.f32 %v7486_v59, %v3968_v43  ;;  %v7295_v51 = vpop.f32.mrb[107].mxu0  ;;  %v7488_v57 = vpop.f32.mrb[107].mxu1  ;;  %v3986_v14 = vld [vmem:[#allocation2 + $0x340] sm:$0xff]  ;;  %v3992_v16 = vld [vmem:[#allocation2 + $0x370] sm:$0xff] }
 0x4b5   : > { %7750 = vst [vmem:[#allocation2 + $0x288] sm:$0xff] %v9826_v10  ;;  %7752 = vst [vmem:[#allocation2 + $0x298] sm:$0xff] %v10018_v29  ;;  %v9832_v26 = vadd.f32 %v7295_v51, %v3967_v58  ;;  %v10024_v44 = vadd.f32 %v7488_v57, %v3969_v60  ;;  %v3989_v58 = vld [vmem:[#allocation2 + $0x358] sm:$0xff]  ;;  %v3990_v29 = vld [vmem:[#allocation2 + $0x360] sm:$0xff] }
 0x4b6   : > { %7753 = vst [vmem:[#allocation2 + $0x2a0] sm:$0xff] %v9829_v54  ;;  %7755 = vst [vmem:[#allocation2 + $0x2b0] sm:$0xff] %v10021_v30  ;;  %v3991_v57 = vld [vmem:[#allocation2 + $0x368] sm:$0xff] }
 0x4b7   : > { %7754 = vst [vmem:[#allocation2 + $0x2a8] sm:$0xff] %v9832_v26  ;;  %7756 = vst [vmem:[#allocation2 + $0x2b8] sm:$0xff] %v10024_v44  ;;  %v3993_v26 = vld [vmem:[#allocation2 + $0x378] sm:$0xff] }
 0x4b9   : > { %v7299_v19 = vpop.f32.mrb[108].mxu0  ;;  %v7492_v3 = vpop.f32.mrb[108].mxu1 }
 0x4ba   : > { %v9835_v35 = vadd.f32 %v7299_v19, %v3970_v53  ;;  %v10027_v13 = vadd.f32 %v7492_v3, %v3972_v38  ;;  %v7301_v39 = vpop.f32.mrb[109].mxu0  ;;  %v7494_v55 = vpop.f32.mrb[109].mxu1 }
 0x4bb   : > { %v9838_v23 = vadd.f32 %v7301_v39, %v3971_v12  ;;  %v10030_v63 = vadd.f32 %v7494_v55, %v3973_v32  ;;  %v7303_v18 = vpop.f32.mrb[110].mxu0  ;;  %v7496_v49 = vpop.f32.mrb[110].mxu1  ;;  %v3996_v39 = vld [vmem:[#allocation2 + $0x390] sm:$0xff]  ;;  %v3995_v55 = vld [vmem:[#allocation2 + $0x388] sm:$0xff] }
 0x4bc   : > { %7757 = vst [vmem:[#allocation2 + $0x2c0] sm:$0xff] %v9835_v35  ;;  %7759 = vst [vmem:[#allocation2 + $0x2d0] sm:$0xff] %v10027_v13  ;;  %v9841_v40 = vadd.f32 %v7303_v18, %v3974_v41  ;;  %v10033_v62 = vadd.f32 %v7496_v49, %v3976_v25  ;;  %v7305_v9 = vpop.f32.mrb[111].mxu0  ;;  %v7498_v0 = vpop.f32.mrb[111].mxu1  ;;  %v3994_v13 = vld [vmem:[#allocation2 + $0x380] sm:$0xff]  ;;  %v4000_v18 = vld [vmem:[#allocation2 + $0x3b0] sm:$0xff] }
 0x4bd   : > { %7758 = vst [vmem:[#allocation2 + $0x2c8] sm:$0xff] %v9838_v23  ;;  %7760 = vst [vmem:[#allocation2 + $0x2d8] sm:$0xff] %v10030_v63  ;;  %v9844_v45 = vadd.f32 %v7305_v9, %v3975_v17  ;;  %v10036_v22 = vadd.f32 %v7498_v0, %v3977_v21  ;;  %v3997_v17 = vld [vmem:[#allocation2 + $0x398] sm:$0xff]  ;;  %v3998_v63 = vld [vmem:[#allocation2 + $0x3a0] sm:$0xff] }
 0x4be   : > { %7761 = vst [vmem:[#allocation2 + $0x2e0] sm:$0xff] %v9841_v40  ;;  %7763 = vst [vmem:[#allocation2 + $0x2f0] sm:$0xff] %v10033_v62  ;;  %v3999_v0 = vld [vmem:[#allocation2 + $0x3a8] sm:$0xff] }
 0x4bf   : > { %7762 = vst [vmem:[#allocation2 + $0x2e8] sm:$0xff] %v9844_v45  ;;  %7764 = vst [vmem:[#allocation2 + $0x2f8] sm:$0xff] %v10036_v22  ;;  %v4001_v45 = vld [vmem:[#allocation2 + $0x3b8] sm:$0xff] }
 0x4c1   : > { %v7309_v24 = vpop.f32.mrb[112].mxu0  ;;  %v7502_v36 = vpop.f32.mrb[112].mxu1 }
 0x4c2   : > { %v9847_v6 = vadd.f32 %v7309_v24, %v3978_v48  ;;  %v10039_v33 = vadd.f32 %v7502_v36, %v3980_v11  ;;  %v7311_v46 = vpop.f32.mrb[113].mxu0  ;;  %v7504_v5 = vpop.f32.mrb[113].mxu1 }
 0x4c3   : > { %v9850_v2 = vadd.f32 %v7311_v46, %v3979_v7  ;;  %v10042_v34 = vadd.f32 %v7504_v5, %v3981_v4  ;;  %v7313_v27 = vpop.f32.mrb[114].mxu0  ;;  %v7506_v52 = vpop.f32.mrb[114].mxu1  ;;  %v4004_v46 = vld [vmem:[#allocation2 + $0x3d0] sm:$0xff]  ;;  %v4003_v5 = vld [vmem:[#allocation2 + $0x3c8] sm:$0xff] }
 0x4c4   : > { %7765 = vst [vmem:[#allocation2 + $0x300] sm:$0xff] %v9847_v6  ;;  %7767 = vst [vmem:[#allocation2 + $0x310] sm:$0xff] %v10039_v33  ;;  %v9853_v42 = vadd.f32 %v7313_v27, %v3982_v8  ;;  %v10045_v37 = vadd.f32 %v7506_v52, %v3984_v28  ;;  %v7315_v47 = vpop.f32.mrb[115].mxu0  ;;  %v7508_v15 = vpop.f32.mrb[115].mxu1  ;;  %v4002_v33 = vld [vmem:[#allocation2 + $0x3c0] sm:$0xff]  ;;  %v4008_v27 = vld [vmem:[#allocation2 + $0x3f0] sm:$0xff] }
 0x4c5   : > { %7766 = vst [vmem:[#allocation2 + $0x308] sm:$0xff] %v9850_v2  ;;  %7768 = vst [vmem:[#allocation2 + $0x318] sm:$0xff] %v10042_v34  ;;  %v9856_v43 = vadd.f32 %v7315_v47, %v3983_v20  ;;  %v10048_v31 = vadd.f32 %v7508_v15, %v3985_v56  ;;  %v4005_v20 = vld [vmem:[#allocation2 + $0x3d8] sm:$0xff]  ;;  %v4006_v34 = vld [vmem:[#allocation2 + $0x3e0] sm:$0xff] }
 0x4c6   : > { %7769 = vst [vmem:[#allocation2 + $0x320] sm:$0xff] %v9853_v42  ;;  %7771 = vst [vmem:[#allocation2 + $0x330] sm:$0xff] %v10045_v37  ;;  %v4007_v15 = vld [vmem:[#allocation2 + $0x3e8] sm:$0xff] }
 0x4c7   : > { %7770 = vst [vmem:[#allocation2 + $0x328] sm:$0xff] %v9856_v43  ;;  %7772 = vst [vmem:[#allocation2 + $0x338] sm:$0xff] %v10048_v31  ;;  %v4009_v43 = vld [vmem:[#allocation2 + $0x3f8] sm:$0xff] }
 0x4c9   : > { %v7319_v60 = vpop.f32.mrb[116].mxu0  ;;  %v7512_v10 = vpop.f32.mrb[116].mxu1 }
 0x4ca   : > { %v9859_v59 = vadd.f32 %v7319_v60, %v3986_v14  ;;  %v10051_v54 = vadd.f32 %v7512_v10, %v3988_v50  ;;  %v7321_v30 = vpop.f32.mrb[117].mxu0  ;;  %v7514_v51 = vpop.f32.mrb[117].mxu1 }
 0x4cb   : > { %v9862_v44 = vadd.f32 %v7321_v30, %v3987_v1  ;;  %v10054_v53 = vadd.f32 %v7514_v51, %v3989_v58  ;;  %v7323_v38 = vpop.f32.mrb[118].mxu0  ;;  %v7516_v12 = vpop.f32.mrb[118].mxu1  ;;  %v7929_v30 = vld [vmem:[%s16351_s4] sm:$0xf] (!%p9467_p1)  ;;  %v7933_v51 = vsub.s32 (!%p9467_p1), 0, %v12359_v61 }
 0x4cc   : > { %7773 = vst [vmem:[#allocation2 + $0x340] sm:$0xff] %v9859_v59  ;;  %7775 = vst [vmem:[#allocation2 + $0x350] sm:$0xff] %v10051_v54  ;;  %v9865_v32 = vadd.f32 %v7323_v38, %v3990_v29  ;;  %v10057_v19 = vadd.f32 %v7516_v12, %v3992_v16  ;;  %v7325_v3 = vpop.f32.mrb[119].mxu0  ;;  %v7518_v41 = vpop.f32.mrb[119].mxu1  ;;  %v7801_v54 = vld [vmem:[#allocation2] sm:$0xff] (!%p9467_p1)  ;;  %v7804_v38 = vld [vmem:[#allocation2 + $0x18] sm:$0xff] (!%p9467_p1) }
 0x4cd   : > { %7774 = vst [vmem:[#allocation2 + $0x348] sm:$0xff] %v9862_v44  ;;  %7776 = vst [vmem:[#allocation2 + $0x358] sm:$0xff] %v10054_v53  ;;  %v9868_v25 = vadd.f32 %v7325_v3, %v3991_v57  ;;  %v10060_v35 = vadd.f32 %v7518_v41, %v3993_v26  ;;  %v7802_v57 = vld [vmem:[#allocation2 + $0x8] sm:$0xff] (!%p9467_p1)  ;;  %v7937_v26 = vsub.s32 (!%p9467_p1), 1, %v12359_v61  ;;  %v7803_v44 = vld [vmem:[#allocation2 + $0x10] sm:$0xff] (!%p9467_p1)  ;;  %v7941_v53 = vsub.s32 (!%p9467_p1), 2, %v12359_v61 }
 0x4ce   : > { %7777 = vst [vmem:[#allocation2 + $0x360] sm:$0xff] %v9865_v32  ;;  %7779 = vst [vmem:[#allocation2 + $0x370] sm:$0xff] %v10057_v19  ;;  %v7945_v12 = vsub.s32 (!%p9467_p1), 3, %v12359_v61  ;;  %v7805_v32 = vld [vmem:[#allocation2 + $0x20] sm:$0xff] (!%p9467_p1)  ;;  %v15501_v19 = vrot.slane (!%p9467_p1), %v7929_v30, %v7933_v51  ;;  %v7806_v41 = vld [vmem:[#allocation2 + $0x28] sm:$0xff] (!%p9467_p1) }
 0x4cf   : > { %7778 = vst [vmem:[#allocation2 + $0x368] sm:$0xff] %v9868_v25  ;;  %7780 = vst [vmem:[#allocation2 + $0x378] sm:$0xff] %v10060_v35  ;;  %v15503_v3 = vrot.slane (!%p9467_p1), %v7929_v30, %v7937_v26  ;;  %v7807_v25 = vld [vmem:[#allocation2 + $0x30] sm:$0xff] (!%p9467_p1)  ;;  %v7808_v35 = vld [vmem:[#allocation2 + $0x38] sm:$0xff] (!%p9467_p1) }
 0x4d0   : > { %v15516_v61 = vadd.f32 (!%p9467_p1), %v15501_v19, %v7805_v32 }
 0x4d1   : > { %v7329_v21 = vpop.f32.mrb[120].mxu0  ;;  %v7522_v23 = vpop.f32.mrb[120].mxu1 }
 0x4d2   : > { %v9871_v49 = vadd.f32 %v7329_v21, %v3994_v13  ;;  %v10063_v40 = vadd.f32 %v7522_v23, %v3996_v39  ;;  %v7331_v62 = vpop.f32.mrb[121].mxu0  ;;  %v7524_v9 = vpop.f32.mrb[121].mxu1  ;;  %v15505_v13 = vrot.slane (!%p9467_p1), %v7929_v30, %v7941_v53  ;;  %v15507_v39 = vrot.slane (!%p9467_p1), %v7929_v30, %v7945_v12  ;;  %v7817_v12 = vld [vmem:[#allocation2 + $0x80] sm:$0xff] (!%p9467_p1) }
 0x4d3   : > { %v9874_v22 = vadd.f32 %v7331_v62, %v3995_v55  ;;  %v10066_v48 = vadd.f32 %v7524_v9, %v3997_v17  ;;  %v7333_v11 = vpop.f32.mrb[122].mxu0  ;;  %v7526_v7 = vpop.f32.mrb[122].mxu1  ;;  %v15510_v55 = vadd.f32 (!%p9467_p1), %v15501_v19, %v7801_v54  ;;  %v15513_v17 = vadd.f32 (!%p9467_p1), %v15503_v3, %v7802_v57 }
 0x4d4   : > { %7781 = vst [vmem:[#allocation2 + $0x380] sm:$0xff] %v9871_v49  ;;  %7783 = vst [vmem:[#allocation2 + $0x390] sm:$0xff] %v10063_v40  ;;  %v9877_v4 = vadd.f32 %v7333_v11, %v3998_v63  ;;  %v10069_v24 = vadd.f32 %v7526_v7, %v4000_v18  ;;  %v7335_v36 = vpop.f32.mrb[123].mxu0  ;;  %v7528_v8 = vpop.f32.mrb[123].mxu1  ;;  %v15519_v21 = vadd.f32 (!%p9467_p1), %v15503_v3, %v7806_v41  ;;  %v7809_v40 = vld [vmem:[#allocation2 + $0x40] sm:$0xff] (!%p9467_p1)  ;;  %v7811_v7 = vld [vmem:[#allocation2 + $0x50] sm:$0xff] (!%p9467_p1) }
 0x4d5   : > { %7782 = vst [vmem:[#allocation2 + $0x388] sm:$0xff] %v9874_v22  ;;  %7784 = vst [vmem:[#allocation2 + $0x398] sm:$0xff] %v10066_v48  ;;  %v9880_v28 = vadd.f32 %v7335_v36, %v3999_v0  ;;  %v10072_v6 = vadd.f32 %v7528_v8, %v4001_v45  ;;  %v15522_v23 = vadd.f32 (!%p9467_p1), %v15505_v13, %v7803_v44  ;;  %v8079_v62 = vsub.f32 (!%p9467_p1), 0.0, %v15510_v55  ;;  %v7810_v22 = vld [vmem:[#allocation2 + $0x48] sm:$0xff] (!%p9467_p1) }
 0x4d6   : > { %7785 = vst [vmem:[#allocation2 + $0x3a0] sm:$0xff] %v9877_v4  ;;  %7787 = vst [vmem:[#allocation2 + $0x3b0] sm:$0xff] %v10069_v24  ;;  %v15525_v63 = vadd.f32 (!%p9467_p1), %v15507_v39, %v7804_v38  ;;  %v15528_v18 = vadd.f32 (!%p9467_p1), %v15505_v13, %v7807_v25  ;;  %v15531_v49 = vadd.f32 (!%p9467_p1), %v15507_v39, %v7808_v35  ;;  %v8080_v9 = vsub.f32 (!%p9467_p1), 0.0, %v15513_v17  ;;  %v7818_v25 = vld [vmem:[#allocation2 + $0x88] sm:$0xff] (!%p9467_p1) }
 0x4d7   : > { %7786 = vst [vmem:[#allocation2 + $0x3a8] sm:$0xff] %v9880_v28  ;;  %7788 = vst [vmem:[#allocation2 + $0x3b8] sm:$0xff] %v10072_v6  ;;  %v8083_v0 = vsub.f32 (!%p9467_p1), 0.0, %v15516_v61  ;;  %v8084_v45 = vsub.f32 (!%p9467_p1), 0.0, %v15519_v21  ;;  %v8081_v48 = vsub.f32 (!%p9467_p1), 0.0, %v15522_v23  ;;  %v15541_v8 = vadd.f32 (!%p9467_p1), %v15501_v19, %v7809_v40  ;;  %v7812_v28 = vld [vmem:[#allocation2 + $0x58] sm:$0xff] (!%p9467_p1) }
 0x4d8   : > { %v8082_v11 = vsub.f32 (!%p9467_p1), 0.0, %v15525_v63  ;;  %v8207_v4 = vmul.f32 (!%p9467_p1), 1.442695, %v8079_v62  ;;  %v8209_v24 = vmul.f32 (!%p9467_p1), 1.442695, %v8080_v9  ;;  %v8085_v36 = vsub.f32 (!%p9467_p1), 0.0, %v15528_v18 }
 0x4d9   : > { %v7339_v56 = vpop.f32.mrb[124].mxu0  ;;  %v7532_v2 = vpop.f32.mrb[124].mxu1  ;;  %7800 = sbr.rel (%p9467_p1) target bundleno = 1515 (0x5eb), region = 60  ;;  %v8211_v6 = vmul.f32 (!%p9467_p1), 1.442695, %v8081_v48  ;;  %v7819_v9 = vld [vmem:[#allocation2 + $0x90] sm:$0xff] (!%p9467_p1)  ;;  %v15573_v48 = vadd.f32 (!%p9467_p1), %v15501_v19, %v7817_v12 }
 0x4da   : > { %v9883_v52 = vadd.f32 %v7339_v56, %v4002_v33  ;;  %v10075_v42 = vadd.f32 %v7532_v2, %v4004_v46  ;;  %v7341_v37 = vpop.f32.mrb[125].mxu0  ;;  %v7534_v47 = vpop.f32.mrb[125].mxu1  ;;  %v8213_v33 = vmul.f32 (!%p9467_p1), 1.442695, %v8082_v11  ;;  %v8086_v46 = vsub.f32 (!%p9467_p1), 0.0, %v15531_v49  ;;  %v7820_v11 = vld [vmem:[#allocation2 + $0x98] sm:$0xff] (!%p9467_p1) }
 0x4db   : > { %v9886_v31 = vadd.f32 %v7341_v37, %v4003_v5  ;;  %v10078_v14 = vadd.f32 %v7534_v47, %v4005_v20  ;;  %v7343_v50 = vpop.f32.mrb[126].mxu0  ;;  %v7536_v1 = vpop.f32.mrb[126].mxu1  ;;  %v15545_v5 = vadd.f32 (!%p9467_p1), %v15503_v3, %v7810_v22  ;;  %v7813_v20 = vld [vmem:[#allocation2 + $0x60] sm:$0xff] (!%p9467_p1)  ;;  %11044 = vpow2.f32 (!%p9467_p1), %v8207_v4 }
 0x4dc   : > { %7789 = vst [vmem:[#allocation2 + $0x3c0] sm:$0xff] %v9883_v52  ;;  %7791 = vst [vmem:[#allocation2 + $0x3d0] sm:$0xff] %v10075_v42  ;;  %v9889_v58 = vadd.f32 %v7343_v50, %v4006_v34  ;;  %v10081_v60 = vadd.f32 %v7536_v1, %v4008_v27  ;;  %v7345_v10 = vpop.f32.mrb[127].mxu0  ;;  %v7538_v29 = vpop.f32.mrb[127].mxu1  ;;  %v8215_v56 = vmul.f32 (!%p9467_p1), 1.442695, %v8083_v0  ;;  %11046 = vpow2.f32 (!%p9467_p1), %v8209_v24 }
 0x4dd   : > { %7790 = vst [vmem:[#allocation2 + $0x3c8] sm:$0xff] %v9886_v31  ;;  %7792 = vst [vmem:[#allocation2 + $0x3d8] sm:$0xff] %v10078_v14  ;;  %v9892_v16 = vadd.f32 %v7345_v10, %v4007_v15  ;;  %v10084_v59 = vadd.f32 %v7538_v29, %v4009_v43  ;;  %v8217_v2 = vmul.f32 (!%p9467_p1), 1.442695, %v8084_v45  ;;  %v8087_v34 = vsub.f32 (!%p9467_p1), 0.0, %v15541_v8  ;;  %v7814_v10 = vld [vmem:[#allocation2 + $0x68] sm:$0xff] (!%p9467_p1) }
 0x4de   : > { %7793 = vst [vmem:[#allocation2 + $0x3e0] sm:$0xff] %v9889_v58  ;;  %7795 = vst [vmem:[#allocation2 + $0x3f0] sm:$0xff] %v10081_v60  ;;  %v8088_v27 = vsub.f32 (!%p9467_p1), 0.0, %v15545_v5  ;;  %v15550_v52 = vadd.f32 (!%p9467_p1), %v15505_v13, %v7811_v7  ;;  %v15553_v42 = vadd.f32 (!%p9467_p1), %v15507_v39, %v7812_v28  ;;  %11048 = vpow2.f32 (!%p9467_p1), %v8211_v6  ;;  %v7825_v12 = vld [vmem:[#allocation2 + $0xc0] sm:$0xff] (!%p9467_p1) }
 0x4df   : > { %7794 = vst [vmem:[#allocation2 + $0x3e8] sm:$0xff] %v9892_v16  ;;  %7796 = vst [vmem:[#allocation2 + $0x3f8] sm:$0xff] %v10084_v59  ;;  %v8219_v37 = vmul.f32 (!%p9467_p1), 1.442695, %v8085_v36  ;;  %v15556_v47 = vadd.f32 (!%p9467_p1), %v15501_v19, %v7813_v20  ;;  %11050 = vpow2.f32 (!%p9467_p1), %v8213_v33  ;;  %v8221_v15 = vmul.f32 (!%p9467_p1), 1.442695, %v8086_v46 }
 0x4e0   : > { %v8089_v43 = vsub.f32 0.0, %v15550_v52  ;;  %v8090_v31 = vsub.f32 0.0, %v15553_v42  ;;  %11052 = vpow2.f32 %v8215_v56  ;;  %v8223_v14 = vmul.f32 1.442695, %v8087_v34  ;;  %v7815_v16 = vld [vmem:[#allocation2 + $0x70] sm:$0xff]  ;;  %v7816_v59 = vld [vmem:[#allocation2 + $0x78] sm:$0xff] }
 0x4e1   : > { %v8091_v50 = vsub.f32 0.0, %v15556_v47  ;;  %11054 = vpow2.f32 %v8217_v2  ;;  %v8225_v1 = vmul.f32 1.442695, %v8088_v27  ;;  %v15562_v30 = vadd.f32 %v15503_v3, %v7814_v10  ;;  %v7821_v34 = vld [vmem:[#allocation2 + $0xa0] sm:$0xff] }
 0x4e2   : > { %11056 = vpow2.f32 %v8219_v37  ;;  %v8227_v58 = vmul.f32 1.442695, %v8089_v43  ;;  %v8229_v60 = vmul.f32 1.442695, %v8090_v31  ;;  %v15565_v26 = vadd.f32 %v15505_v13, %v7815_v16  ;;  %v7822_v31 = vld [vmem:[#allocation2 + $0xa8] sm:$0xff] }
 0x4e3   : > { %11058 = vpow2.f32 %v8221_v15  ;;  %v8231_v29 = vmul.f32 1.442695, %v8091_v50  ;;  %v15568_v38 = vadd.f32 %v15507_v39, %v7816_v59  ;;  %v8092_v62 = vsub.f32 0.0, %v15562_v30 }
 0x4e4   : > { %11060 = vpow2.f32 %v8223_v14  ;;  %v8093_v22 = vsub.f32 0.0, %v15565_v26  ;;  %v15577_v36 = vadd.f32 %v15503_v3, %v7818_v25  ;;  %v15580_v33 = vadd.f32 %v15505_v13, %v7819_v9 }
 0x4e5   : > { %11062 = vpow2.f32 %v8225_v1  ;;  %v11045_v54 = vpop.eup %11044  ;;  %v8094_v24 = vsub.f32 0.0, %v15568_v38  ;;  %v8233_v56 = vmul.f32 1.442695, %v8092_v62  ;;  %v15583_v2 = vadd.f32 %v15507_v39, %v7820_v11 }
 0x4e6   : > { %11064 = vpow2.f32 %v8227_v58  ;;  %v11047_v51 = vpop.eup %11046  ;;  %v8463_v57 = vadd.f32 1.0, %v11045_v54  ;;  %v8235_v15 = vmul.f32 1.442695, %v8093_v22  ;;  %v8095_v43 = vsub.f32 0.0, %v15573_v48  ;;  %v7824_v54 = vld [vmem:[#allocation2 + $0xb8] sm:$0xff] }
 0x4e7   : > { %11066 = vpow2.f32 %v8229_v60  ;;  %v8464_v53 = vadd.f32 1.0, %v11047_v51  ;;  %v8237_v1 = vmul.f32 1.442695, %v8094_v24  ;;  %v8096_v58 = vsub.f32 0.0, %v15577_v36  ;;  %v7823_v60 = vld [vmem:[#allocation2 + $0xb0] sm:$0xff] }
 0x4e8   : > { %v11049_v44 = vpop.eup %11048  ;;  %11068 = vpow2.f32 %v8231_v29  ;;  %v8097_v16 = vsub.f32 0.0, %v15580_v33  ;;  %v15589_v59 = vadd.f32 %v15501_v19, %v7821_v34  ;;  %v8239_v25 = vmul.f32 1.442695, %v8095_v43 }
 0x4e9   : > { %v11051_v32 = vpop.eup %11050  ;;  %11070 = vrcp.f32 %v8463_v57  ;;  %v8465_v41 = vadd.f32 1.0, %v11049_v44  ;;  %v8098_v44 = vsub.f32 0.0, %v15583_v2 }
 0x4ea   : > { %v11053_v35 = vpop.eup %11052  ;;  %11072 = vrcp.f32 %v8464_v53  ;;  %v8466_v40 = vadd.f32 1.0, %v11051_v32  ;;  %v15593_v53 = vadd.f32 %v15503_v3, %v7822_v31 }
 0x4eb   : > { %v11055_v0 = vpop.eup %11054  ;;  %11074 = vrcp.f32 %v8465_v41  ;;  %v8467_v45 = vadd.f32 1.0, %v11053_v35  ;;  %v15596_v35 = vadd.f32 %v15505_v13, %v7823_v60 }
 0x4ec   : > { %v11057_v7 = vpop.eup %11056  ;;  %11076 = vrcp.f32 %v8466_v40  ;;  %v8468_v4 = vadd.f32 1.0, %v11055_v0  ;;  %v7826_v40 = vld [vmem:[#allocation2 + $0xc8] sm:$0xff]  ;;  %v8241_v0 = vmul.f32 1.442695, %v8096_v58 }
 0x4ed   : > { %v11059_v28 = vpop.eup %11058  ;;  %11078 = vrcp.f32 %v8467_v45  ;;  %v8469_v6 = vadd.f32 1.0, %v11057_v7  ;;  %v15600_v45 = vadd.f32 %v15507_v39, %v7824_v54  ;;  %v8099_v7 = vsub.f32 0.0, %v15589_v59 }
 0x4ee   : > { %v11061_v46 = vpop.eup %11060  ;;  %11080 = vrcp.f32 %v8468_v4  ;;  %v8470_v20 = vadd.f32 1.0, %v11059_v28  ;;  %v15605_v4 = vadd.f32 %v15501_v19, %v7825_v12  ;;  %v8100_v28 = vsub.f32 0.0, %v15593_v53 }
 0x4ef   : > { %v11063_v27 = vpop.eup %11062  ;;  %11082 = vrcp.f32 %v8469_v6  ;;  %v8471_v37 = vadd.f32 1.0, %v11061_v46  ;;  %v15611_v6 = vadd.f32 %v15503_v3, %v7826_v40  ;;  %v8101_v34 = vsub.f32 0.0, %v15596_v35 }
 0x4f0   : > { %v11065_v14 = vpop.eup %11064  ;;  %11084 = vrcp.f32 %v8470_v20  ;;  %v8472_v50 = vadd.f32 1.0, %v11063_v27  ;;  %v8243_v20 = vmul.f32 1.442695, %v8097_v16 }
 0x4f1   : > { %v11067_v10 = vpop.eup %11066  ;;  %11086 = vrcp.f32 %v8471_v37  ;;  %v8473_v29 = vadd.f32 1.0, %v11065_v14  ;;  %v8102_v37 = vsub.f32 0.0, %v15600_v45 }
 0x4f2   : > { %v11069_v51 = vpop.eup %11068  ;;  %11088 = vrcp.f32 %v8472_v50  ;;  %v8474_v57 = vadd.f32 1.0, %v11067_v10 }
 0x4f3   : > { %v11071_v32 = vpop.eup %11070  ;;  %11090 = vrcp.f32 %v8473_v29  ;;  %v8475_v41 = vadd.f32 1.0, %v11069_v51  ;;  %v8253_v16 = vmul.f32 1.442695, %v8102_v37 }
 0x4f4   : > { %v11073_v62 = vpop.eup %11072  ;;  %v8719_v9 = vmul.f32 %v11071_v32, %v15510_v55  ;;  %11092 = vrcp.f32 %v8474_v57  ;;  %v7827_v57 = vld [vmem:[#allocation2 + $0xd0] sm:$0xff]  ;;  %v7828_v32 = vld [vmem:[#allocation2 + $0xd8] sm:$0xff] }
 0x4f5   : > { %v11075_v22 = vpop.eup %11074  ;;  %v8720_v11 = vmul.f32 %v11073_v62, %v15513_v17  ;;  %11094 = vrcp.f32 %v8475_v41  ;;  %v15638_v62 = vadd.f32 %v15505_v13, %v7827_v57 }
 0x4f6   : > { %v11077_v24 = vpop.eup %11076  ;;  %8847 = vst [vmem:[%s12045_s18] sm:$0xff] %v8719_v9  ;;  %v8721_v55 = vmul.f32 %v11075_v22, %v15522_v23  ;;  %11096 = vpow2.f32 %v8233_v56  ;;  %v8245_v56 = vmul.f32 1.442695, %v8098_v44  ;;  %v7830_v22 = vld [vmem:[#allocation2 + $0xe8] sm:$0xff] }
 0x4f7   : > { %v11079_v46 = vpop.eup %11078  ;;  %8848 = vst [vmem:[%s12045_s18 + $0x8] sm:$0xff] %v8720_v11  ;;  %v8722_v17 = vmul.f32 %v11077_v24, %v15525_v63  ;;  %11098 = vpow2.f32 %v8235_v15  ;;  %v8247_v63 = vmul.f32 1.442695, %v8099_v7  ;;  %v8103_v15 = vsub.f32 0.0, %v15605_v4 }
 0x4f8   : > { %v11081_v27 = vpop.eup %11080  ;;  %8849 = vst [vmem:[%s12045_s18 + $0x10] sm:$0xff] %v8721_v55  ;;  %v8723_v23 = vmul.f32 %v11079_v46, %v15516_v61  ;;  %11100 = vpow2.f32 %v8237_v1  ;;  %v8249_v61 = vmul.f32 1.442695, %v8100_v28  ;;  %v8104_v1 = vsub.f32 0.0, %v15611_v6 }
 0x4f9   : > { %v11083_v43 = vpop.eup %11082  ;;  %8850 = vst [vmem:[%s12045_s18 + $0x18] sm:$0xff] %v8722_v17  ;;  %v8724_v31 = vmul.f32 %v11081_v27, %v15519_v21  ;;  %11102 = vpow2.f32 %v8239_v25  ;;  %v8251_v21 = vmul.f32 1.442695, %v8101_v34  ;;  %v8255_v51 = vmul.f32 1.442695, %v8103_v15  ;;  %v7829_v25 = vld [vmem:[#allocation2 + $0xe0] sm:$0xff] }
 0x4fa   : > { %v11085_v14 = vpop.eup %11084  ;;  %8851 = vst [vmem:[%s12045_s18 + $0x20] sm:$0xff] %v8723_v23  ;;  %v8725_v50 = vmul.f32 %v11083_v43, %v15528_v18  ;;  %11104 = vpow2.f32 %v8241_v0  ;;  %v8257_v12 = vmul.f32 1.442695, %v8104_v1  ;;  %v15642_v0 = vadd.f32 %v15507_v39, %v7828_v32  ;;  %v7832_v34 = vld [vmem:[#allocation2 + $0xf8] sm:$0xff] }
 0x4fb   : > { %v11087_v58 = vpop.eup %11086  ;;  %8852 = vst [vmem:[%s12045_s18 + $0x28] sm:$0xff] %v8724_v31  ;;  %v8726_v60 = vmul.f32 %v11085_v14, %v15531_v49  ;;  %11106 = vpow2.f32 %v8243_v20  ;;  %v15646_v7 = vadd.f32 %v15501_v19, %v7829_v25  ;;  %v8105_v17 = vsub.f32 0.0, %v15638_v62  ;;  %v7836_v32 = vld [vmem:[#allocation2 + $0x118] sm:$0xff] }
 0x4fc   : > { %v11089_v10 = vpop.eup %11088  ;;  %8853 = vst [vmem:[%s12045_s18 + $0x30] sm:$0xff] %v8725_v50  ;;  %v8727_v29 = vmul.f32 %v11087_v58, %v15541_v8  ;;  %11108 = vpow2.f32 %v8245_v56  ;;  %v15650_v20 = vadd.f32 %v15503_v3, %v7830_v22  ;;  %v8106_v56 = vsub.f32 0.0, %v15642_v0 }
 0x4fd   : > { %v11091_v54 = vpop.eup %11090  ;;  %8854 = vst [vmem:[%s12045_s18 + $0x38] sm:$0xff] %v8726_v60  ;;  %v8728_v18 = vmul.f32 %v11089_v10, %v15545_v5  ;;  %11110 = vpow2.f32 %v8247_v63  ;;  %v8107_v63 = vsub.f32 0.0, %v15646_v7  ;;  %v15658_v50 = vadd.f32 %v15507_v39, %v7832_v34  ;;  %v7834_v10 = vld [vmem:[#allocation2 + $0x108] sm:$0xff] }
 0x4fe   : > { %v11093_v44 = vpop.eup %11092  ;;  %8855 = vst [vmem:[%s12045_s18 + $0x40] sm:$0xff] %v8727_v29  ;;  %v8729_v49 = vmul.f32 %v11091_v54, %v15550_v52  ;;  %11112 = vpow2.f32 %v8249_v61  ;;  %v7833_v61 = vld [vmem:[#allocation2 + $0x100] sm:$0xff]  ;;  %v8259_v60 = vmul.f32 1.442695, %v8105_v17  ;;  %v8261_v54 = vmul.f32 1.442695, %v8106_v56 }
 0x4ff   : > { %v11095_v8 = vpop.eup %11094  ;;  %8856 = vst [vmem:[%s12045_s18 + $0x48] sm:$0xff] %v8728_v18  ;;  %v8730_v41 = vmul.f32 %v11093_v44, %v15553_v42  ;;  %11114 = vpow2.f32 %v8251_v21  ;;  %v8108_v21 = vsub.f32 0.0, %v15650_v20  ;;  %v8110_v25 = vsub.f32 0.0, %v15658_v50 }
 0x500   : > { %v11097_v5 = vpop.eup %11096  ;;  %8857 = vst [vmem:[%s12045_s18 + $0x50] sm:$0xff] %v8729_v49  ;;  %v8731_v40 = vmul.f32 %v11095_v8, %v15556_v47  ;;  %11116 = vpow2.f32 %v8253_v16  ;;  %v7831_v47 = vld [vmem:[#allocation2 + $0xf0] sm:$0xff]  ;;  %v8263_v49 = vmul.f32 1.442695, %v8107_v63 }
 0x501   : > { %v11099_v9 = vpop.eup %11098  ;;  %8858 = vst [vmem:[%s12045_s18 + $0x58] sm:$0xff] %v8730_v41  ;;  %v8476_v52 = vadd.f32 1.0, %v11097_v5  ;;  %11118 = vpow2.f32 %v8255_v51  ;;  %v15654_v37 = vadd.f32 %v15505_v13, %v7831_v47  ;;  %v7835_v51 = vld [vmem:[#allocation2 + $0x110] sm:$0xff]  ;;  %v15667_v5 = vadd.f32 %v15503_v3, %v7834_v10 }
 0x502   : > { %v11101_v11 = vpop.eup %11100  ;;  %8859 = vst [vmem:[%s12045_s18 + $0x60] sm:$0xff] %v8731_v40  ;;  %v8477_v42 = vadd.f32 1.0, %v11099_v9  ;;  %11120 = vpow2.f32 %v8257_v12  ;;  %v15663_v12 = vadd.f32 %v15501_v19, %v7833_v61  ;;  %v7837_v40 = vld [vmem:[#allocation2 + $0x120] sm:$0xff]  ;;  %v8265_v22 = vmul.f32 1.442695, %v8108_v21 }
 0x503   : > { %v11103_v24 = vpop.eup %11102  ;;  %11122 = vrcp.f32 %v8476_v52  ;;  %v8478_v55 = vadd.f32 1.0, %v11101_v11  ;;  %v8109_v18 = vsub.f32 0.0, %v15654_v37  ;;  %v15670_v11 = vadd.f32 %v15505_v13, %v7835_v51 }
 0x504   : > { %v11105_v28 = vpop.eup %11104  ;;  %11124 = vrcp.f32 %v8477_v42  ;;  %v8479_v46 = vadd.f32 1.0, %v11103_v24  ;;  %v7838_v42 = vld [vmem:[#allocation2 + $0x128] sm:$0xff] }
 0x505   : > { %v11107_v27 = vpop.eup %11106  ;;  %11126 = vrcp.f32 %v8478_v55  ;;  %v8480_v23 = vadd.f32 1.0, %v11105_v28  ;;  %v8267_v55 = vmul.f32 1.442695, %v8109_v18  ;;  %v15673_v28 = vadd.f32 %v15507_v39, %v7836_v32 }
 0x506   : > { %v11109_v43 = vpop.eup %11108  ;;  %11128 = vrcp.f32 %v8479_v46  ;;  %v8481_v31 = vadd.f32 1.0, %v11107_v27  ;;  %v7839_v46 = vld [vmem:[#allocation2 + $0x130] sm:$0xff]  ;;  %v8111_v27 = vsub.f32 0.0, %v15663_v12  ;;  %v15683_v63 = vadd.f32 %v15503_v3, %v7838_v42 }
 0x507   : > { %v11111_v15 = vpop.eup %11110  ;;  %11130 = vrcp.f32 %v8480_v23  ;;  %v8482_v14 = vadd.f32 1.0, %v11109_v43  ;;  %v15678_v23 = vadd.f32 %v15501_v19, %v7837_v40  ;;  %v15689_v61 = vadd.f32 %v15505_v13, %v7839_v46 }
 0x508   : > { %v11113_v1 = vpop.eup %11112  ;;  %11132 = vrcp.f32 %v8481_v31  ;;  %v8483_v58 = vadd.f32 1.0, %v11111_v15  ;;  %v8112_v31 = vsub.f32 0.0, %v15667_v5  ;;  %v8114_v21 = vsub.f32 0.0, %v15673_v28 }
 0x509   : > { %v11115_v29 = vpop.eup %11114  ;;  %11134 = vrcp.f32 %v8482_v14  ;;  %v8484_v16 = vadd.f32 1.0, %v11113_v1  ;;  %v8113_v14 = vsub.f32 0.0, %v15670_v11 }
 0x50a   : > { %v11117_v57 = vpop.eup %11116  ;;  %11136 = vrcp.f32 %v8483_v58  ;;  %v8485_v44 = vadd.f32 1.0, %v11115_v29  ;;  %v8269_v58 = vmul.f32 1.442695, %v8110_v25  ;;  %v8115_v29 = vsub.f32 0.0, %v15678_v23 }
 0x50b   : > { %v11119_v8 = vpop.eup %11118  ;;  %11138 = vrcp.f32 %v8484_v16  ;;  %v8486_v41 = vadd.f32 1.0, %v11117_v57 }
 0x50c   : > { %v11121_v9 = vpop.eup %11120  ;;  %11140 = vrcp.f32 %v8485_v44  ;;  %v8487_v52 = vadd.f32 1.0, %v11119_v8  ;;  %v8117_v44 = vsub.f32 0.0, %v15689_v61  ;;  %v8279_v25 = vmul.f32 1.442695, %v8115_v29 }
 0x50d   : > { %v11123_v47 = vpop.eup %11122  ;;  %11142 = vrcp.f32 %v8486_v41  ;;  %v8488_v24 = vadd.f32 1.0, %v11121_v9 }
 0x50e   : > { %v11125_v17 = vpop.eup %11124  ;;  %v8732_v34 = vmul.f32 %v11123_v47, %v15562_v30  ;;  %11144 = vrcp.f32 %v8487_v52  ;;  %v7840_v52 = vld [vmem:[#allocation2 + $0x138] sm:$0xff]  ;;  %v8283_v42 = vmul.f32 1.442695, %v8117_v44  ;;  %v7841_v47 = vld [vmem:[#allocation2 + $0x140] sm:$0xff] }
 0x50f   : > { %v11127_v56 = vpop.eup %11126  ;;  %v8733_v43 = vmul.f32 %v11125_v17, %v15565_v26  ;;  %11146 = vrcp.f32 %v8488_v24  ;;  %v15716_v17 = vadd.f32 %v15507_v39, %v7840_v52 }
 0x510   : > { %v11129_v15 = vpop.eup %11128  ;;  %8860 = vst [vmem:[%s12045_s18 + $0x68] sm:$0xff] %v8732_v34  ;;  %v8734_v30 = vmul.f32 %v11127_v56, %v15568_v38  ;;  %11148 = vpow2.f32 %v8259_v60  ;;  %v8271_v60 = vmul.f32 1.442695, %v8111_v27  ;;  %v15720_v56 = vadd.f32 %v15501_v19, %v7841_v47  ;;  %v7849_v47 = vld [vmem:[#allocation2 + $0x180] sm:$0xff] }
 0x511   : > { %v11131_v1 = vpop.eup %11130  ;;  %8861 = vst [vmem:[%s12045_s18 + $0x70] sm:$0xff] %v8733_v43  ;;  %v8735_v26 = vmul.f32 %v11129_v15, %v15573_v48  ;;  %11150 = vpow2.f32 %v8261_v54  ;;  %v8273_v48 = vmul.f32 1.442695, %v8112_v31  ;;  %v8116_v54 = vsub.f32 0.0, %v15683_v63 }
 0x512   : > { %v11133_v10 = vpop.eup %11132  ;;  %8862 = vst [vmem:[%s12045_s18 + $0x78] sm:$0xff] %v8734_v30  ;;  %v8736_v38 = vmul.f32 %v11131_v1, %v15577_v36  ;;  %11152 = vpow2.f32 %v8263_v49  ;;  %v8275_v36 = vmul.f32 1.442695, %v8113_v14 }
 0x513   : > { %v11135_v16 = vpop.eup %11134  ;;  %8863 = vst [vmem:[%s12045_s18 + $0x80] sm:$0xff] %v8735_v26  ;;  %v8737_v18 = vmul.f32 %v11133_v10, %v15580_v33  ;;  %11154 = vpow2.f32 %v8265_v22  ;;  %v8277_v33 = vmul.f32 1.442695, %v8114_v21  ;;  %v8281_v9 = vmul.f32 1.442695, %v8116_v54 }
 0x514   : > { %v11137_v51 = vpop.eup %11136  ;;  %8864 = vst [vmem:[%s12045_s18 + $0x88] sm:$0xff] %v8736_v38  ;;  %v8738_v57 = vmul.f32 %v11135_v16, %v15583_v2  ;;  %11156 = vpow2.f32 %v8267_v55  ;;  %v7842_v55 = vld [vmem:[#allocation2 + $0x148] sm:$0xff] }
 0x515   : > { %v11139_v49 = vpop.eup %11138  ;;  %8865 = vst [vmem:[%s12045_s18 + $0x90] sm:$0xff] %v8737_v18  ;;  %v8739_v32 = vmul.f32 %v11137_v51, %v15589_v59  ;;  %11158 = vpow2.f32 %v8269_v58  ;;  %v15724_v15 = vadd.f32 %v15503_v3, %v7842_v55  ;;  %v8118_v58 = vsub.f32 0.0, %v15716_v17 }
 0x516   : > { %v11141_v8 = vpop.eup %11140  ;;  %8866 = vst [vmem:[%s12045_s18 + $0x98] sm:$0xff] %v8738_v57  ;;  %v8740_v41 = vmul.f32 %v11139_v49, %v15593_v53  ;;  %11160 = vpow2.f32 %v8271_v60  ;;  %v8119_v60 = vsub.f32 0.0, %v15720_v56 }
 0x517   : > { %v11143_v40 = vpop.eup %11142  ;;  %8867 = vst [vmem:[%s12045_s18 + $0xa0] sm:$0xff] %v8739_v32  ;;  %v8741_v2 = vmul.f32 %v11141_v8, %v15596_v35  ;;  %11162 = vpow2.f32 %v8273_v48  ;;  %v8120_v18 = vsub.f32 0.0, %v15724_v15  ;;  %v7845_v48 = vld [vmem:[#allocation2 + $0x160] sm:$0xff]  ;;  %v8285_v32 = vmul.f32 1.442695, %v8118_v58  ;;  %v7847_v8 = vld [vmem:[#allocation2 + $0x170] sm:$0xff] }
 0x518   : > { %v11145_v22 = vpop.eup %11144  ;;  %8868 = vst [vmem:[%s12045_s18 + $0xa8] sm:$0xff] %v8740_v41  ;;  %v8742_v59 = vmul.f32 %v11143_v40, %v15600_v45  ;;  %11164 = vpow2.f32 %v8275_v36  ;;  %v7843_v45 = vld [vmem:[#allocation2 + $0x150] sm:$0xff]  ;;  %v7846_v36 = vld [vmem:[#allocation2 + $0x168] sm:$0xff]  ;;  %v8287_v40 = vmul.f32 1.442695, %v8119_v60 }
 0x519   : > { %v11147_v53 = vpop.eup %11146  ;;  %8869 = vst [vmem:[%s12045_s18 + $0xb0] sm:$0xff] %v8741_v2  ;;  %v8743_v24 = vmul.f32 %v11145_v22, %v15605_v4  ;;  %11166 = vpow2.f32 %v8277_v33  ;;  %v7844_v4 = vld [vmem:[#allocation2 + $0x158] sm:$0xff]  ;;  %v15727_v14 = vadd.f32 %v15505_v13, %v7843_v45  ;;  %v15738_v2 = vadd.f32 %v15501_v19, %v7845_v48 }
 0x51a   : > { %v11149_v35 = vpop.eup %11148  ;;  %8870 = vst [vmem:[%s12045_s18 + $0xb8] sm:$0xff] %v8742_v59  ;;  %v8744_v46 = vmul.f32 %v11147_v53, %v15611_v6  ;;  %11168 = vpow2.f32 %v8279_v25  ;;  %v15731_v21 = vadd.f32 %v15507_v39, %v7844_v4  ;;  %v8289_v59 = vmul.f32 1.442695, %v8120_v18 }
 0x51b   : > { %v11151_v34 = vpop.eup %11150  ;;  %8871 = vst [vmem:[%s12045_s18 + $0xc0] sm:$0xff] %v8743_v24  ;;  %v8489_v27 = vadd.f32 1.0, %v11149_v35  ;;  %11170 = vpow2.f32 %v8281_v9  ;;  %v8121_v57 = vsub.f32 0.0, %v15727_v14  ;;  %v7848_v9 = vld [vmem:[#allocation2 + $0x178] sm:$0xff]  ;;  %v15744_v35 = vadd.f32 %v15505_v13, %v7847_v8 }
 0x51c   : > { %v11153_v43 = vpop.eup %11152  ;;  %8872 = vst [vmem:[%s12045_s18 + $0xc8] sm:$0xff] %v8744_v46  ;;  %v8490_v31 = vadd.f32 1.0, %v11151_v34  ;;  %11172 = vpow2.f32 %v8283_v42  ;;  %v8122_v33 = vsub.f32 0.0, %v15731_v21  ;;  %v15741_v42 = vadd.f32 %v15503_v3, %v7846_v36  ;;  %v7850_v46 = vld [vmem:[#allocation2 + $0x188] sm:$0xff] }
 0x51d   : > { %v11155_v6 = vpop.eup %11154  ;;  %11174 = vrcp.f32 %v8489_v27  ;;  %v8491_v30 = vadd.f32 1.0, %v11153_v43  ;;  %v8291_v55 = vmul.f32 1.442695, %v8121_v57  ;;  %v15747_v4 = vadd.f32 %v15507_v39, %v7848_v9  ;;  %v7851_v43 = vld [vmem:[#allocation2 + $0x190] sm:$0xff] }
 0x51e   : > { %v11157_v1 = vpop.eup %11156  ;;  %11176 = vrcp.f32 %v8490_v31  ;;  %v8492_v26 = vadd.f32 1.0, %v11155_v6  ;;  %v8293_v27 = vmul.f32 1.442695, %v8122_v33  ;;  %v15756_v60 = vadd.f32 %v15503_v3, %v7850_v46 }
 0x51f   : > { %v11159_v10 = vpop.eup %11158  ;;  %11178 = vrcp.f32 %v8491_v30  ;;  %v8493_v38 = vadd.f32 1.0, %v11157_v1  ;;  %v8123_v30 = vsub.f32 0.0, %v15738_v2  ;;  %v15751_v1 = vadd.f32 %v15501_v19, %v7849_v47 }
 0x520   : > { %v11161_v29 = vpop.eup %11160  ;;  %11180 = vrcp.f32 %v8492_v26  ;;  %v8494_v16 = vadd.f32 1.0, %v11159_v10  ;;  %v7852_v26 = vld [vmem:[#allocation2 + $0x198] sm:$0xff]  ;;  %v8125_v18 = vsub.f32 0.0, %v15744_v35  ;;  %v15761_v48 = vadd.f32 %v15505_v13, %v7851_v43 }
 0x521   : > { %v11163_v54 = vpop.eup %11162  ;;  %11182 = vrcp.f32 %v8493_v38  ;;  %v8495_v51 = vadd.f32 1.0, %v11161_v29  ;;  %v8124_v38 = vsub.f32 0.0, %v15741_v42  ;;  %v15767_v57 = vadd.f32 %v15507_v39, %v7852_v26 }
 0x522   : > { %v11165_v44 = vpop.eup %11164  ;;  %11184 = vrcp.f32 %v8494_v16  ;;  %v8496_v49 = vadd.f32 1.0, %v11163_v54  ;;  %v8128_v8 = vsub.f32 0.0, %v15756_v60 }
 0x523   : > { %v11167_v41 = vpop.eup %11166  ;;  %11186 = vrcp.f32 %v8495_v51  ;;  %v8497_v25 = vadd.f32 1.0, %v11165_v44  ;;  %v8126_v51 = vsub.f32 0.0, %v15747_v4  ;;  %v8295_v44 = vmul.f32 1.442695, %v8123_v30  ;;  %v7855_v30 = vld [vmem:[#allocation2 + $0x1b0] sm:$0xff] }
 0x524   : > { %v11169_v52 = vpop.eup %11168  ;;  %11188 = vrcp.f32 %v8496_v49  ;;  %v8498_v22 = vadd.f32 1.0, %v11167_v41  ;;  %v8127_v49 = vsub.f32 0.0, %v15751_v1 }
 0x525   : > { %v11171_v53 = vpop.eup %11170  ;;  %11190 = vrcp.f32 %v8497_v25  ;;  %v8499_v24 = vadd.f32 1.0, %v11169_v52 }
 0x526   : > { %v11173_v45 = vpop.eup %11172  ;;  %11192 = vrcp.f32 %v8498_v22  ;;  %v8500_v34 = vadd.f32 1.0, %v11171_v53  ;;  %v8130_v22 = vsub.f32 0.0, %v15767_v57 }
 0x527   : > { %v11175_v31 = vpop.eup %11174  ;;  %11194 = vrcp.f32 %v8499_v24  ;;  %v8501_v6 = vadd.f32 1.0, %v11173_v45 }
 0x528   : > { %v11177_v58 = vpop.eup %11176  ;;  %v8745_v10 = vmul.f32 %v11175_v31, %v15638_v62  ;;  %11196 = vrcp.f32 %v8500_v34  ;;  %v7853_v34 = vld [vmem:[#allocation2 + $0x1a0] sm:$0xff]  ;;  %v8309_v43 = vmul.f32 1.442695, %v8130_v22  ;;  %v7854_v31 = vld [vmem:[#allocation2 + $0x1a8] sm:$0xff] }
 0x529   : > { %v11179_v29 = vpop.eup %11178  ;;  %v8746_v16 = vmul.f32 %v11177_v58, %v15642_v0  ;;  %11198 = vrcp.f32 %v8501_v6  ;;  %v15794_v58 = vadd.f32 %v15501_v19, %v7853_v34 }
 0x52a   : > { %v11181_v54 = vpop.eup %11180  ;;  %8873 = vst [vmem:[%s12045_s18 + $0xd0] sm:$0xff] %v8745_v10  ;;  %v8747_v62 = vmul.f32 %v11179_v29, %v15646_v7  ;;  %11200 = vpow2.f32 %v8285_v32  ;;  %v8297_v32 = vmul.f32 1.442695, %v8124_v38  ;;  %v15798_v29 = vadd.f32 %v15503_v3, %v7854_v31  ;;  %v7862_v31 = vld [vmem:[#allocation2 + $0x1e8] sm:$0xff] }
 0x52b   : > { %v11183_v36 = vpop.eup %11182  ;;  %8874 = vst [vmem:[%s12045_s18 + $0xd8] sm:$0xff] %v8746_v16  ;;  %v8748_v0 = vmul.f32 %v11181_v54, %v15650_v20  ;;  %11202 = vpow2.f32 %v8287_v40  ;;  %v8299_v20 = vmul.f32 1.442695, %v8125_v18  ;;  %v8129_v40 = vsub.f32 0.0, %v15761_v48 }
 0x52c   : > { %v11185_v33 = vpop.eup %11184  ;;  %8875 = vst [vmem:[%s12045_s18 + $0xe0] sm:$0xff] %v8747_v62  ;;  %v8749_v7 = vmul.f32 %v11183_v36, %v15654_v37  ;;  %11204 = vpow2.f32 %v8289_v59  ;;  %v8301_v37 = vmul.f32 1.442695, %v8126_v51  ;;  %v15802_v54 = vadd.f32 %v15505_v13, %v7855_v30 }
 0x52d   : > { %v11187_v41 = vpop.eup %11186  ;;  %8876 = vst [vmem:[%s12045_s18 + $0xe8] sm:$0xff] %v8748_v0  ;;  %v8750_v25 = vmul.f32 %v11185_v33, %v15658_v50  ;;  %11206 = vpow2.f32 %v8291_v55  ;;  %v8303_v50 = vmul.f32 1.442695, %v8127_v49  ;;  %v8305_v55 = vmul.f32 1.442695, %v8128_v8 }
 0x52e   : > { %v11189_v9 = vpop.eup %11188  ;;  %8877 = vst [vmem:[%s12045_s18 + $0xf0] sm:$0xff] %v8749_v7  ;;  %v8751_v52 = vmul.f32 %v11187_v41, %v15663_v12  ;;  %11208 = vpow2.f32 %v8293_v27  ;;  %v8307_v45 = vmul.f32 1.442695, %v8129_v40 }
 0x52f   : > { %v11191_v59 = vpop.eup %11190  ;;  %8878 = vst [vmem:[%s12045_s18 + $0xf8] sm:$0xff] %v8750_v25  ;;  %v8752_v47 = vmul.f32 %v11189_v9, %v15667_v5  ;;  %11210 = vpow2.f32 %v8295_v44  ;;  %v8131_v44 = vsub.f32 0.0, %v15794_v58  ;;  %v8133_v25 = vsub.f32 0.0, %v15802_v54 }
 0x530   : > { %v11193_v53 = vpop.eup %11192  ;;  %8879 = vst [vmem:[%s12045_s18 + $0x100] sm:$0xff] %v8751_v52  ;;  %v8753_v24 = vmul.f32 %v11191_v59, %v15670_v11  ;;  %11212 = vpow2.f32 %v8297_v32  ;;  %v8132_v32 = vsub.f32 0.0, %v15798_v29 }
 0x531   : > { %v11195_v46 = vpop.eup %11194  ;;  %8880 = vst [vmem:[%s12045_s18 + $0x108] sm:$0xff] %v8752_v47  ;;  %v8754_v12 = vmul.f32 %v11193_v53, %v15673_v28  ;;  %11214 = vpow2.f32 %v8299_v20  ;;  %v7858_v20 = vld [vmem:[#allocation2 + $0x1c8] sm:$0xff]  ;;  %v8311_v47 = vmul.f32 1.442695, %v8131_v44  ;;  %v7860_v53 = vld [vmem:[#allocation2 + $0x1d8] sm:$0xff] }
 0x532   : > { %v11197_v27 = vpop.eup %11196  ;;  %8881 = vst [vmem:[%s12045_s18 + $0x110] sm:$0xff] %v8753_v24  ;;  %v8755_v5 = vmul.f32 %v11195_v46, %v15678_v23  ;;  %11216 = vpow2.f32 %v8301_v37  ;;  %v7856_v23 = vld [vmem:[#allocation2 + $0x1b8] sm:$0xff]  ;;  %v7859_v37 = vld [vmem:[#allocation2 + $0x1d0] sm:$0xff]  ;;  %v8313_v46 = vmul.f32 1.442695, %v8132_v32 }
 0x533   : > { %v11199_v11 = vpop.eup %11198  ;;  %8882 = vst [vmem:[%s12045_s18 + $0x118] sm:$0xff] %v8754_v12  ;;  %v8756_v6 = vmul.f32 %v11197_v27, %v15683_v63  ;;  %11218 = vpow2.f32 %v8303_v50  ;;  %v7857_v63 = vld [vmem:[#allocation2 + $0x1c0] sm:$0xff]  ;;  %v15805_v51 = vadd.f32 %v15507_v39, %v7856_v23  ;;  %v15816_v12 = vadd.f32 %v15503_v3, %v7858_v20 }
 0x534   : > { %v11201_v28 = vpop.eup %11200  ;;  %8883 = vst [vmem:[%s12045_s18 + $0x120] sm:$0xff] %v8755_v5  ;;  %v8757_v26 = vmul.f32 %v11199_v11, %v15689_v61  ;;  %11220 = vpow2.f32 %v8305_v55  ;;  %v15809_v49 = vadd.f32 %v15501_v19, %v7857_v63  ;;  %v8315_v5 = vmul.f32 1.442695, %v8133_v25 }
 0x535   : > { %v11203_v10 = vpop.eup %11202  ;;  %8884 = vst [vmem:[%s12045_s18 + $0x128] sm:$0xff] %v8756_v6  ;;  %v8502_v38 = vadd.f32 1.0, %v11201_v28  ;;  %11222 = vpow2.f32 %v8307_v45  ;;  %v8134_v52 = vsub.f32 0.0, %v15805_v51  ;;  %v7861_v45 = vld [vmem:[#allocation2 + $0x1e0] sm:$0xff]  ;;  %v15822_v28 = vadd.f32 %v15507_v39, %v7860_v53 }
 0x536   : > { %v11205_v16 = vpop.eup %11204  ;;  %8885 = vst [vmem:[%s12045_s18 + $0x130] sm:$0xff] %v8757_v26  ;;  %v8503_v18 = vadd.f32 1.0, %v11203_v10  ;;  %11224 = vpow2.f32 %v8309_v43  ;;  %v8135_v50 = vsub.f32 0.0, %v15809_v49  ;;  %v15819_v43 = vadd.f32 %v15505_v13, %v7859_v37  ;;  %v7863_v26 = vld [vmem:[#allocation2 + $0x1f0] sm:$0xff] }
 0x537   : > { %v11207_v61 = vpop.eup %11206  ;;  %11226 = vrcp.f32 %v8502_v38  ;;  %v8504_v62 = vadd.f32 1.0, %v11205_v16  ;;  %v8317_v30 = vmul.f32 1.442695, %v8134_v52  ;;  %v15825_v63 = vadd.f32 %v15501_v19, %v7861_v45  ;;  %v7864_v16 = vld [vmem:[#allocation2 + $0x1f8] sm:$0xff] }
 0x538   : > { %v11209_v36 = vpop.eup %11208  ;;  %11228 = vrcp.f32 %v8503_v18  ;;  %v8505_v0 = vadd.f32 1.0, %v11207_v61  ;;  %v8319_v38 = vmul.f32 1.442695, %v8135_v50  ;;  %v15834_v32 = vadd.f32 %v15505_v13, %v7863_v26 }
 0x539   : > { %v11211_v33 = vpop.eup %11210  ;;  %11230 = vrcp.f32 %v8504_v62  ;;  %v8506_v7 = vadd.f32 1.0, %v11209_v36  ;;  %v8136_v62 = vsub.f32 0.0, %v15816_v12  ;;  %v15829_v36 = vadd.f32 %v15503_v3, %v7862_v31 }
 0x53a   : > { %v11213_v8 = vpop.eup %11212  ;;  %11232 = vrcp.f32 %v8505_v0  ;;  %v8507_v41 = vadd.f32 1.0, %v11211_v33  ;;  %v7865_v0 = vld [vmem:[#allocation2 + $0x200] sm:$0xff]  ;;  %v8138_v25 = vsub.f32 0.0, %v15822_v28  ;;  %v15839_v20 = vadd.f32 %v15507_v39, %v7864_v16 }
 0x53b   : > { %v11215_v40 = vpop.eup %11214  ;;  %11234 = vrcp.f32 %v8506_v7  ;;  %v8508_v9 = vadd.f32 1.0, %v11213_v8  ;;  %v8137_v7 = vsub.f32 0.0, %v15819_v43  ;;  %v15845_v52 = vadd.f32 %v15501_v19, %v7865_v0 }
 0x53c   : > { %v11217_v22 = vpop.eup %11216  ;;  %11236 = vrcp.f32 %v8507_v41  ;;  %v8509_v59 = vadd.f32 1.0, %v11215_v40  ;;  %v8141_v53 = vsub.f32 0.0, %v15834_v32 }
 0x53d   : > { %v11219_v24 = vpop.eup %11218  ;;  %11238 = vrcp.f32 %v8508_v9  ;;  %v8510_v55 = vadd.f32 1.0, %v11217_v22  ;;  %v8139_v9 = vsub.f32 0.0, %v15825_v63  ;;  %v8321_v22 = vmul.f32 1.442695, %v8136_v62  ;;  %v7868_v62 = vld [vmem:[#allocation2 + $0x218] sm:$0xff] }
 0x53e   : > { %v11221_v34 = vpop.eup %11220  ;;  %11240 = vrcp.f32 %v8509_v59  ;;  %v8511_v27 = vadd.f32 1.0, %v11219_v24  ;;  %v8140_v59 = vsub.f32 0.0, %v15829_v36 }
 0x53f   : > { %v11223_v11 = vpop.eup %11222  ;;  %11242 = vrcp.f32 %v8510_v55  ;;  %v8512_v6 = vadd.f32 1.0, %v11221_v34 }
 0x540   : > { %v11225_v23 = vpop.eup %11224  ;;  %11244 = vrcp.f32 %v8511_v27  ;;  %v8513_v10 = vadd.f32 1.0, %v11223_v11  ;;  %v8143_v27 = vsub.f32 0.0, %v15845_v52 }
 0x541   : > { %v11227_v18 = vpop.eup %11226  ;;  %11246 = vrcp.f32 %v8512_v6  ;;  %v8514_v61 = vadd.f32 1.0, %v11225_v23 }
 0x542   : > { %v11229_v44 = vpop.eup %11228  ;;  %v8758_v33 = vmul.f32 %v11227_v18, %v15716_v17  ;;  %11248 = vrcp.f32 %v8513_v10  ;;  %v7866_v10 = vld [vmem:[#allocation2 + $0x208] sm:$0xff]  ;;  %v8335_v16 = vmul.f32 1.442695, %v8143_v27  ;;  %v7867_v18 = vld [vmem:[#allocation2 + $0x210] sm:$0xff] }
 0x543   : > { %v11231_v8 = vpop.eup %11230  ;;  %v8759_v41 = vmul.f32 %v11229_v44, %v15720_v56  ;;  %11250 = vrcp.f32 %v8514_v61  ;;  %v15872_v44 = vadd.f32 %v15503_v3, %v7866_v10 }
 0x544   : > { %v11233_v40 = vpop.eup %11232  ;;  %8886 = vst [vmem:[%s12045_s18 + $0x138] sm:$0xff] %v8758_v33  ;;  %v8760_v17 = vmul.f32 %v11231_v8, %v15724_v15  ;;  %11252 = vpow2.f32 %v8311_v47  ;;  %v8323_v47 = vmul.f32 1.442695, %v8137_v7  ;;  %v15876_v8 = vadd.f32 %v15505_v13, %v7867_v18  ;;  %v7875_v18 = vld [vmem:[#allocation2 + $0x250] sm:$0xff] }
 0x545   : > { %v11235_v37 = vpop.eup %11234  ;;  %8887 = vst [vmem:[%s12045_s18 + $0x140] sm:$0xff] %v8759_v41  ;;  %v8761_v56 = vmul.f32 %v11233_v40, %v15727_v14  ;;  %11254 = vpow2.f32 %v8313_v46  ;;  %v8325_v14 = vmul.f32 1.442695, %v8138_v25  ;;  %v8142_v46 = vsub.f32 0.0, %v15839_v20 }
 0x546   : > { %v11237_v50 = vpop.eup %11236  ;;  %8888 = vst [vmem:[%s12045_s18 + $0x148] sm:$0xff] %v8760_v17  ;;  %v8762_v15 = vmul.f32 %v11235_v37, %v15731_v21  ;;  %11256 = vpow2.f32 %v8315_v5  ;;  %v8327_v21 = vmul.f32 1.442695, %v8139_v9  ;;  %v15880_v25 = vadd.f32 %v15507_v39, %v7868_v62  ;;  %v7870_v9 = vld [vmem:[#allocation2 + $0x228] sm:$0xff] }
 0x547   : > { %v11239_v24 = vpop.eup %11238  ;;  %8889 = vst [vmem:[%s12045_s18 + $0x150] sm:$0xff] %v8761_v56  ;;  %v8763_v55 = vmul.f32 %v11237_v50, %v15738_v2  ;;  %11258 = vpow2.f32 %v8317_v30  ;;  %v8329_v2 = vmul.f32 1.442695, %v8140_v59  ;;  %v8331_v30 = vmul.f32 1.442695, %v8141_v53 }
 0x548   : > { %v11241_v45 = vpop.eup %11240  ;;  %8890 = vst [vmem:[%s12045_s18 + $0x158] sm:$0xff] %v8762_v15  ;;  %v8764_v34 = vmul.f32 %v11239_v24, %v15741_v42  ;;  %11260 = vpow2.f32 %v8319_v38  ;;  %v8333_v23 = vmul.f32 1.442695, %v8142_v46  ;;  %v8145_v15 = vsub.f32 0.0, %v15876_v8  ;;  %v7872_v46 = vld [vmem:[#allocation2 + $0x238] sm:$0xff] }
 0x549   : > { %v11243_v5 = vpop.eup %11242  ;;  %8891 = vst [vmem:[%s12045_s18 + $0x160] sm:$0xff] %v8763_v55  ;;  %v8765_v31 = vmul.f32 %v11241_v45, %v15744_v35  ;;  %11262 = vpow2.f32 %v8321_v22  ;;  %v8144_v22 = vsub.f32 0.0, %v15872_v44  ;;  %v8146_v55 = vsub.f32 0.0, %v15880_v25 }
 0x54a   : > { %v11245_v11 = vpop.eup %11244  ;;  %8892 = vst [vmem:[%s12045_s18 + $0x168] sm:$0xff] %v8764_v34  ;;  %v8766_v6 = vmul.f32 %v11243_v5, %v15747_v4  ;;  %11264 = vpow2.f32 %v8323_v47  ;;  %v7871_v47 = vld [vmem:[#allocation2 + $0x230] sm:$0xff] }
 0x54b   : > { %v11247_v26 = vpop.eup %11246  ;;  %8893 = vst [vmem:[%s12045_s18 + $0x170] sm:$0xff] %v8765_v31  ;;  %v8767_v42 = vmul.f32 %v11245_v11, %v15751_v1  ;;  %11266 = vpow2.f32 %v8325_v14  ;;  %v15889_v14 = vadd.f32 %v15503_v3, %v7870_v9  ;;  %v8337_v31 = vmul.f32 1.442695, %v8144_v22  ;;  %v7873_v11 = vld [vmem:[#allocation2 + $0x240] sm:$0xff] }
 0x54c   : > { %v11249_v38 = vpop.eup %11248  ;;  %8894 = vst [vmem:[%s12045_s18 + $0x178] sm:$0xff] %v8766_v6  ;;  %v8768_v35 = vmul.f32 %v11247_v26, %v15756_v60  ;;  %11268 = vpow2.f32 %v8327_v21  ;;  %v7869_v60 = vld [vmem:[#allocation2 + $0x220] sm:$0xff]  ;;  %v8339_v26 = vmul.f32 1.442695, %v8145_v15 }
 0x54d   : > { %v11251_v4 = vpop.eup %11250  ;;  %8895 = vst [vmem:[%s12045_s18 + $0x180] sm:$0xff] %v8767_v42  ;;  %v8769_v61 = vmul.f32 %v11249_v38, %v15761_v48  ;;  %11270 = vpow2.f32 %v8329_v2  ;;  %v15883_v17 = vadd.f32 %v15501_v19, %v7869_v60  ;;  %v15893_v2 = vadd.f32 %v15505_v13, %v7871_v47 }
 0x54e   : > { %v11253_v1 = vpop.eup %11252  ;;  %8896 = vst [vmem:[%s12045_s18 + $0x188] sm:$0xff] %v8768_v35  ;;  %v8770_v0 = vmul.f32 %v11251_v4, %v15767_v57  ;;  %11272 = vpow2.f32 %v8331_v30  ;;  %v15896_v42 = vadd.f32 %v15507_v39, %v7872_v46  ;;  %v8341_v35 = vmul.f32 1.442695, %v8146_v55 }
 0x54f   : > { %v11255_v33 = vpop.eup %11254  ;;  %8897 = vst [vmem:[%s12045_s18 + $0x190] sm:$0xff] %v8769_v61  ;;  %v8515_v7 = vadd.f32 1.0, %v11253_v1  ;;  %11274 = vpow2.f32 %v8333_v23  ;;  %v8147_v21 = vsub.f32 0.0, %v15883_v17  ;;  %v7874_v23 = vld [vmem:[#allocation2 + $0x248] sm:$0xff]  ;;  %v15900_v1 = vadd.f32 %v15501_v19, %v7873_v11 }
 0x550   : > { %v11257_v41 = vpop.eup %11256  ;;  %8898 = vst [vmem:[%s12045_s18 + $0x198] sm:$0xff] %v8770_v0  ;;  %v8516_v48 = vadd.f32 1.0, %v11255_v33  ;;  %11276 = vpow2.f32 %v8335_v16  ;;  %v8148_v16 = vsub.f32 0.0, %v15889_v14  ;;  %v7876_v0 = vld [vmem:[#allocation2 + $0x258] sm:$0xff]  ;;  %v8150_v9 = vsub.f32 0.0, %v15896_v42 }
 0x551   : > { %v11259_v57 = vpop.eup %11258  ;;  %11278 = vrcp.f32 %v8515_v7  ;;  %v8517_v40 = vadd.f32 1.0, %v11257_v41  ;;  %v8343_v62 = vmul.f32 1.442695, %v8147_v21  ;;  %v8149_v7 = vsub.f32 0.0, %v15893_v2 }
 0x552   : > { %v11261_v37 = vpop.eup %11260  ;;  %11280 = vrcp.f32 %v8516_v48  ;;  %v8518_v56 = vadd.f32 1.0, %v11259_v57  ;;  %v15904_v41 = vadd.f32 %v15503_v3, %v7874_v23  ;;  %v7877_v48 = vld [vmem:[#allocation2 + $0x260] sm:$0xff]  ;;  %v15912_v15 = vadd.f32 %v15507_v39, %v7876_v0 }
 0x553   : > { %v11263_v59 = vpop.eup %11262  ;;  %11282 = vrcp.f32 %v8517_v40  ;;  %v8519_v50 = vadd.f32 1.0, %v11261_v37  ;;  %v15908_v37 = vadd.f32 %v15505_v13, %v7875_v18  ;;  %v15917_v55 = vadd.f32 %v15501_v19, %v7877_v48 }
 0x554   : > { %v11265_v53 = vpop.eup %11264  ;;  %11284 = vrcp.f32 %v8518_v56  ;;  %v8520_v24 = vadd.f32 1.0, %v11263_v59  ;;  %v7878_v56 = vld [vmem:[#allocation2 + $0x268] sm:$0xff] }
 0x555   : > { %v11267_v45 = vpop.eup %11266  ;;  %11286 = vrcp.f32 %v8519_v50  ;;  %v8521_v34 = vadd.f32 1.0, %v11265_v53  ;;  %v8345_v50 = vmul.f32 1.442695, %v8148_v16 }
 0x556   : > { %v11269_v27 = vpop.eup %11268  ;;  %11288 = vrcp.f32 %v8520_v24  ;;  %v8522_v5 = vadd.f32 1.0, %v11267_v45  ;;  %v8151_v24 = vsub.f32 0.0, %v15900_v1  ;;  %v8152_v45 = vsub.f32 0.0, %v15904_v41 }
 0x557   : > { %v11271_v6 = vpop.eup %11270  ;;  %11290 = vrcp.f32 %v8521_v34  ;;  %v8523_v30 = vadd.f32 1.0, %v11269_v27  ;;  %v15923_v34 = vadd.f32 %v15503_v3, %v7878_v56  ;;  %v8347_v27 = vmul.f32 1.442695, %v8149_v7 }
 0x558   : > { %v11273_v10 = vpop.eup %11272  ;;  %11292 = vrcp.f32 %v8522_v5  ;;  %v8524_v38 = vadd.f32 1.0, %v11271_v6  ;;  %v8153_v5 = vsub.f32 0.0, %v15908_v37  ;;  %v8154_v6 = vsub.f32 0.0, %v15912_v15 }
 0x559   : > { %v11275_v4 = vpop.eup %11274  ;;  %11294 = vrcp.f32 %v8523_v30  ;;  %v8525_v61 = vadd.f32 1.0, %v11273_v10 }
 0x55a   : > { %v11277_v60 = vpop.eup %11276  ;;  %11296 = vrcp.f32 %v8524_v38  ;;  %v8526_v33 = vadd.f32 1.0, %v11275_v4 }
 0x55b   : > { %v11279_v57 = vpop.eup %11278  ;;  %11298 = vrcp.f32 %v8525_v61  ;;  %v8527_v40 = vadd.f32 1.0, %v11277_v60 }
 0x55c   : > { %v11281_v22 = vpop.eup %11280  ;;  %v8771_v59 = vmul.f32 %v11279_v57, %v15794_v58  ;;  %11300 = vrcp.f32 %v8526_v33  ;;  %v7879_v33 = vld [vmem:[#allocation2 + $0x270] sm:$0xff]  ;;  %v7880_v57 = vld [vmem:[#allocation2 + $0x278] sm:$0xff] }
 0x55d   : > { %v11283_v47 = vpop.eup %11282  ;;  %v8772_v53 = vmul.f32 %v11281_v22, %v15798_v29  ;;  %11302 = vrcp.f32 %v8527_v40  ;;  %v15950_v22 = vadd.f32 %v15505_v13, %v7879_v33 }
 0x55e   : > { %v11285_v46 = vpop.eup %11284  ;;  %8899 = vst [vmem:[%s12045_s18 + $0x1a0] sm:$0xff] %v8771_v59  ;;  %v8773_v58 = vmul.f32 %v11283_v47, %v15802_v54  ;;  %11304 = vpow2.f32 %v8337_v31  ;;  %v8349_v31 = vmul.f32 1.442695, %v8150_v9  ;;  %v7881_v9 = vld [vmem:[#allocation2 + $0x280] sm:$0xff]  ;;  %v7882_v47 = vld [vmem:[#allocation2 + $0x288] sm:$0xff] }
 0x55f   : > { %v11287_v21 = vpop.eup %11286  ;;  %8900 = vst [vmem:[%s12045_s18 + $0x1a8] sm:$0xff] %v8772_v53  ;;  %v8774_v29 = vmul.f32 %v11285_v46, %v15805_v51  ;;  %11306 = vpow2.f32 %v8339_v26  ;;  %v8351_v51 = vmul.f32 1.442695, %v8151_v24  ;;  %v8155_v26 = vsub.f32 0.0, %v15917_v55 }
 0x560   : > { %v11289_v11 = vpop.eup %11288  ;;  %8901 = vst [vmem:[%s12045_s18 + $0x1b0] sm:$0xff] %v8773_v58  ;;  %v8775_v54 = vmul.f32 %v11287_v21, %v15809_v49  ;;  %11308 = vpow2.f32 %v8341_v35  ;;  %v8353_v49 = vmul.f32 1.442695, %v8152_v45  ;;  %v8156_v35 = vsub.f32 0.0, %v15923_v34 }
 0x561   : > { %v11291_v30 = vpop.eup %11290  ;;  %8902 = vst [vmem:[%s12045_s18 + $0x1b8] sm:$0xff] %v8774_v29  ;;  %v8776_v23 = vmul.f32 %v11289_v11, %v15816_v12  ;;  %11310 = vpow2.f32 %v8343_v62  ;;  %v8355_v12 = vmul.f32 1.442695, %v8153_v5  ;;  %v8357_v62 = vmul.f32 1.442695, %v8154_v6  ;;  %v7884_v5 = vld [vmem:[#allocation2 + $0x298] sm:$0xff] }
 0x562   : > { %v11293_v10 = vpop.eup %11292  ;;  %8903 = vst [vmem:[%s12045_s18 + $0x1c0] sm:$0xff] %v8775_v54  ;;  %v8777_v38 = vmul.f32 %v11291_v30, %v15819_v43  ;;  %11312 = vpow2.f32 %v8345_v50  ;;  %v8359_v60 = vmul.f32 1.442695, %v8155_v26  ;;  %v8361_v48 = vmul.f32 1.442695, %v8156_v35 }
 0x563   : > { %v11295_v16 = vpop.eup %11294  ;;  %8904 = vst [vmem:[%s12045_s18 + $0x1c8] sm:$0xff] %v8776_v23  ;;  %v8778_v18 = vmul.f32 %v11293_v10, %v15822_v28  ;;  %11314 = vpow2.f32 %v8347_v27  ;;  %v15954_v50 = vadd.f32 %v15507_v39, %v7880_v57  ;;  %v15958_v24 = vadd.f32 %v15501_v19, %v7881_v9  ;;  %v7888_v57 = vld [vmem:[#allocation2 + $0x2b8] sm:$0xff] }
 0x564   : > { %v11297_v4 = vpop.eup %11296  ;;  %8905 = vst [vmem:[%s12045_s18 + $0x1d0] sm:$0xff] %v8777_v38  ;;  %v8779_v61 = vmul.f32 %v11295_v16, %v15825_v63  ;;  %11316 = vpow2.f32 %v8349_v31  ;;  %v8157_v29 = vsub.f32 0.0, %v15950_v22  ;;  %v15962_v27 = vadd.f32 %v15503_v3, %v7882_v47 }
 0x565   : > { %v11299_v0 = vpop.eup %11298  ;;  %8906 = vst [vmem:[%s12045_s18 + $0x1d8] sm:$0xff] %v8778_v18  ;;  %v8780_v43 = vmul.f32 %v11297_v4, %v15829_v36  ;;  %11318 = vpow2.f32 %v8351_v51  ;;  %v8158_v31 = vsub.f32 0.0, %v15954_v50  ;;  %v8159_v51 = vsub.f32 0.0, %v15958_v24  ;;  %v7886_v4 = vld [vmem:[#allocation2 + $0x2a8] sm:$0xff] }
 0x566   : > { %v11301_v7 = vpop.eup %11300  ;;  %8907 = vst [vmem:[%s12045_s18 + $0x1e0] sm:$0xff] %v8779_v61  ;;  %v8781_v28 = vmul.f32 %v11299_v0, %v15834_v32  ;;  %11320 = vpow2.f32 %v8353_v49  ;;  %v15970_v38 = vadd.f32 %v15507_v39, %v7884_v5  ;;  %v7885_v49 = vld [vmem:[#allocation2 + $0x2a0] sm:$0xff]  ;;  %v8363_v18 = vmul.f32 1.442695, %v8157_v29 }
 0x567   : > { %v11303_v63 = vpop.eup %11302  ;;  %8908 = vst [vmem:[%s12045_s18 + $0x1e8] sm:$0xff] %v8780_v43  ;;  %v8782_v40 = vmul.f32 %v11301_v7, %v15839_v20  ;;  %11322 = vpow2.f32 %v8355_v12  ;;  %v8160_v12 = vsub.f32 0.0, %v15962_v27  ;;  %v8365_v0 = vmul.f32 1.442695, %v8158_v31 }
 0x568   : > { %v11305_v36 = vpop.eup %11304  ;;  %8909 = vst [vmem:[%s12045_s18 + $0x1f0] sm:$0xff] %v8781_v28  ;;  %v8783_v56 = vmul.f32 %v11303_v63, %v15845_v52  ;;  %11324 = vpow2.f32 %v8357_v62  ;;  %v7883_v52 = vld [vmem:[#allocation2 + $0x290] sm:$0xff]  ;;  %v8367_v28 = vmul.f32 1.442695, %v8159_v51  ;;  %v8162_v9 = vsub.f32 0.0, %v15970_v38 }
 0x569   : > { %v11307_v59 = vpop.eup %11306  ;;  %8910 = vst [vmem:[%s12045_s18 + $0x1f8] sm:$0xff] %v8782_v40  ;;  %v8528_v32 = vadd.f32 1.0, %v11305_v36  ;;  %11326 = vpow2.f32 %v8359_v60  ;;  %v15966_v6 = vadd.f32 %v15505_v13, %v7883_v52  ;;  %v7887_v60 = vld [vmem:[#allocation2 + $0x2b0] sm:$0xff]  ;;  %v15979_v36 = vadd.f32 %v15503_v3, %v7886_v4 }
 0x56a   : > { %v11309_v53 = vpop.eup %11308  ;;  %8911 = vst [vmem:[%s12045_s18 + $0x200] sm:$0xff] %v8783_v56  ;;  %v8529_v20 = vadd.f32 1.0, %v11307_v59  ;;  %11328 = vpow2.f32 %v8361_v48  ;;  %v15975_v48 = vadd.f32 %v15501_v19, %v7885_v49  ;;  %v7889_v56 = vld [vmem:[#allocation2 + $0x2c0] sm:$0xff]  ;;  %v8369_v47 = vmul.f32 1.442695, %v8160_v12 }
 0x56b   : > { %v11311_v46 = vpop.eup %11310  ;;  %11330 = vrcp.f32 %v8528_v32  ;;  %v8530_v58 = vadd.f32 1.0, %v11309_v53  ;;  %v8161_v43 = vsub.f32 0.0, %v15966_v6  ;;  %v15982_v53 = vadd.f32 %v15505_v13, %v7887_v60 }
 0x56c   : > { %v11313_v45 = vpop.eup %11312  ;;  %11332 = vrcp.f32 %v8529_v20  ;;  %v8531_v21 = vadd.f32 1.0, %v11311_v46  ;;  %v7890_v20 = vld [vmem:[#allocation2 + $0x2c8] sm:$0xff] }
 0x56d   : > { %v11315_v11 = vpop.eup %11314  ;;  %11334 = vrcp.f32 %v8530_v58  ;;  %v8532_v54 = vadd.f32 1.0, %v11313_v45  ;;  %v8371_v58 = vmul.f32 1.442695, %v8161_v43  ;;  %v15985_v45 = vadd.f32 %v15507_v39, %v7888_v57 }
 0x56e   : > { %v11317_v30 = vpop.eup %11316  ;;  %11336 = vrcp.f32 %v8531_v21  ;;  %v8533_v23 = vadd.f32 1.0, %v11315_v11  ;;  %v7891_v21 = vld [vmem:[#allocation2 + $0x2d0] sm:$0xff]  ;;  %v8163_v11 = vsub.f32 0.0, %v15975_v48  ;;  %v15995_v51 = vadd.f32 %v15503_v3, %v7890_v20 }
 0x56f   : > { %v11319_v26 = vpop.eup %11318  ;;  %11338 = vrcp.f32 %v8532_v54  ;;  %v8534_v10 = vadd.f32 1.0, %v11317_v30  ;;  %v15990_v54 = vadd.f32 %v15501_v19, %v7889_v56  ;;  %v16001_v49 = vadd.f32 %v15505_v13, %v7891_v21 }
 0x570   : > { %v11321_v35 = vpop.eup %11320  ;;  %11340 = vrcp.f32 %v8533_v23  ;;  %v8535_v16 = vadd.f32 1.0, %v11319_v26  ;;  %v8164_v23 = vsub.f32 0.0, %v15979_v36  ;;  %v8166_v12 = vsub.f32 0.0, %v15985_v45 }
 0x571   : > { %v11323_v61 = vpop.eup %11322  ;;  %11342 = vrcp.f32 %v8534_v10  ;;  %v8536_v62 = vadd.f32 1.0, %v11321_v35  ;;  %v8165_v10 = vsub.f32 0.0, %v15982_v53 }
 0x572   : > { %v11325_v33 = vpop.eup %11324  ;;  %11344 = vrcp.f32 %v8535_v16  ;;  %v8537_v7 = vadd.f32 1.0, %v11323_v61  ;;  %v8373_v16 = vmul.f32 1.442695, %v8162_v9  ;;  %v8167_v61 = vsub.f32 0.0, %v15990_v54 }
 0x573   : > { %v11327_v63 = vpop.eup %11326  ;;  %11346 = vrcp.f32 %v8536_v62  ;;  %v8538_v40 = vadd.f32 1.0, %v11325_v33 }
 0x574   : > { %v11329_v59 = vpop.eup %11328  ;;  %11348 = vrcp.f32 %v8537_v7  ;;  %v8539_v32 = vadd.f32 1.0, %v11327_v63  ;;  %v8169_v7 = vsub.f32 0.0, %v16001_v49  ;;  %v8383_v9 = vmul.f32 1.442695, %v8167_v61 }
 0x575   : > { %v11331_v52 = vpop.eup %11330  ;;  %11350 = vrcp.f32 %v8538_v40  ;;  %v8540_v46 = vadd.f32 1.0, %v11329_v59 }
 0x576   : > { %v11333_v29 = vpop.eup %11332  ;;  %v8784_v5 = vmul.f32 %v11331_v52, %v15872_v44  ;;  %11352 = vrcp.f32 %v8539_v32  ;;  %v7892_v32 = vld [vmem:[#allocation2 + $0x2d8] sm:$0xff]  ;;  %v8387_v20 = vmul.f32 1.442695, %v8169_v7  ;;  %v7893_v52 = vld [vmem:[#allocation2 + $0x2e0] sm:$0xff] }
 0x577   : > { %v11335_v31 = vpop.eup %11334  ;;  %v8785_v30 = vmul.f32 %v11333_v29, %v15876_v8  ;;  %11354 = vrcp.f32 %v8540_v46  ;;  %v16028_v29 = vadd.f32 %v15507_v39, %v7892_v32 }
 0x578   : > { %v11337_v26 = vpop.eup %11336  ;;  %8912 = vst [vmem:[%s12045_s18 + $0x208] sm:$0xff] %v8784_v5  ;;  %v8786_v44 = vmul.f32 %v11335_v31, %v15880_v25  ;;  %11356 = vpow2.f32 %v8363_v18  ;;  %v8375_v18 = vmul.f32 1.442695, %v8163_v11  ;;  %v16032_v31 = vadd.f32 %v15501_v19, %v7893_v52  ;;  %v7901_v52 = vld [vmem:[#allocation2 + $0x320] sm:$0xff] }
 0x579   : > { %v11339_v35 = vpop.eup %11338  ;;  %8913 = vst [vmem:[%s12045_s18 + $0x210] sm:$0xff] %v8785_v30  ;;  %v8787_v8 = vmul.f32 %v11337_v26, %v15883_v17  ;;  %11358 = vpow2.f32 %v8365_v0  ;;  %v8377_v17 = vmul.f32 1.442695, %v8164_v23  ;;  %v8168_v0 = vsub.f32 0.0, %v15995_v51 }
 0x57a   : > { %v11341_v4 = vpop.eup %11340  ;;  %8914 = vst [vmem:[%s12045_s18 + $0x218] sm:$0xff] %v8786_v44  ;;  %v8788_v25 = vmul.f32 %v11339_v35, %v15889_v14  ;;  %11360 = vpow2.f32 %v8367_v28  ;;  %v8379_v14 = vmul.f32 1.442695, %v8165_v10 }
 0x57b   : > { %v11343_v62 = vpop.eup %11342  ;;  %8915 = vst [vmem:[%s12045_s18 + $0x220] sm:$0xff] %v8787_v8  ;;  %v8789_v43 = vmul.f32 %v11341_v4, %v15893_v2  ;;  %11362 = vpow2.f32 %v8369_v47  ;;  %v8381_v2 = vmul.f32 1.442695, %v8166_v12  ;;  %v8385_v59 = vmul.f32 1.442695, %v8168_v0 }
 0x57c   : > { %v11345_v60 = vpop.eup %11344  ;;  %8916 = vst [vmem:[%s12045_s18 + $0x228] sm:$0xff] %v8788_v25  ;;  %v8790_v33 = vmul.f32 %v11343_v62, %v15896_v42  ;;  %11364 = vpow2.f32 %v8371_v58  ;;  %v7894_v58 = vld [vmem:[#allocation2 + $0x2e8] sm:$0xff] }
 0x57d   : > { %v11347_v28 = vpop.eup %11346  ;;  %8917 = vst [vmem:[%s12045_s18 + $0x230] sm:$0xff] %v8789_v43  ;;  %v8791_v57 = vmul.f32 %v11345_v60, %v15900_v1  ;;  %11366 = vpow2.f32 %v8373_v16  ;;  %v16036_v26 = vadd.f32 %v15503_v3, %v7894_v58  ;;  %v8170_v16 = vsub.f32 0.0, %v16028_v29 }
 0x57e   : > { %v11349_v63 = vpop.eup %11348  ;;  %8918 = vst [vmem:[%s12045_s18 + $0x238] sm:$0xff] %v8790_v33  ;;  %v8792_v40 = vmul.f32 %v11347_v28, %v15904_v41  ;;  %11368 = vpow2.f32 %v8375_v18  ;;  %v8171_v18 = vsub.f32 0.0, %v16032_v31 }
 0x57f   : > { %v11351_v56 = vpop.eup %11350  ;;  %8919 = vst [vmem:[%s12045_s18 + $0x240] sm:$0xff] %v8791_v57  ;;  %v8793_v42 = vmul.f32 %v11349_v63, %v15908_v37  ;;  %11370 = vpow2.f32 %v8377_v17  ;;  %v8172_v43 = vsub.f32 0.0, %v16036_v26  ;;  %v7897_v17 = vld [vmem:[#allocation2 + $0x300] sm:$0xff]  ;;  %v8389_v57 = vmul.f32 1.442695, %v8170_v16  ;;  %v7899_v63 = vld [vmem:[#allocation2 + $0x310] sm:$0xff] }
 0x580   : > { %v11353_v47 = vpop.eup %11352  ;;  %8920 = vst [vmem:[%s12045_s18 + $0x248] sm:$0xff] %v8792_v40  ;;  %v8794_v1 = vmul.f32 %v11351_v56, %v15912_v15  ;;  %11372 = vpow2.f32 %v8379_v14  ;;  %v7895_v15 = vld [vmem:[#allocation2 + $0x2f0] sm:$0xff]  ;;  %v7898_v14 = vld [vmem:[#allocation2 + $0x308] sm:$0xff]  ;;  %v8391_v56 = vmul.f32 1.442695, %v8171_v18 }
 0x581   : > { %v11355_v41 = vpop.eup %11354  ;;  %8921 = vst [vmem:[%s12045_s18 + $0x250] sm:$0xff] %v8793_v42  ;;  %v8795_v46 = vmul.f32 %v11353_v47, %v15917_v55  ;;  %11374 = vpow2.f32 %v8381_v2  ;;  %v7896_v55 = vld [vmem:[#allocation2 + $0x2f8] sm:$0xff]  ;;  %v16039_v10 = vadd.f32 %v15505_v13, %v7895_v15  ;;  %v16050_v42 = vadd.f32 %v15501_v19, %v7897_v17 }
 0x582   : > { %v11357_v37 = vpop.eup %11356  ;;  %8922 = vst [vmem:[%s12045_s18 + $0x258] sm:$0xff] %v8794_v1  ;;  %v8796_v21 = vmul.f32 %v11355_v41, %v15923_v34  ;;  %11376 = vpow2.f32 %v8383_v9  ;;  %v16043_v12 = vadd.f32 %v15507_v39, %v7896_v55  ;;  %v8393_v1 = vmul.f32 1.442695, %v8172_v43 }
 0x583   : > { %v11359_v5 = vpop.eup %11358  ;;  %8923 = vst [vmem:[%s12045_s18 + $0x260] sm:$0xff] %v8795_v46  ;;  %v8541_v11 = vadd.f32 1.0, %v11357_v37  ;;  %11378 = vpow2.f32 %v8385_v59  ;;  %v8173_v33 = vsub.f32 0.0, %v16039_v10  ;;  %v7900_v59 = vld [vmem:[#allocation2 + $0x318] sm:$0xff]  ;;  %v16056_v37 = vadd.f32 %v15505_v13, %v7899_v63 }
 0x584   : > { %v11361_v30 = vpop.eup %11360  ;;  %8924 = vst [vmem:[%s12045_s18 + $0x268] sm:$0xff] %v8796_v21  ;;  %v8542_v23 = vadd.f32 1.0, %v11359_v5  ;;  %11380 = vpow2.f32 %v8387_v20  ;;  %v8174_v2 = vsub.f32 0.0, %v16043_v12  ;;  %v16053_v20 = vadd.f32 %v15503_v3, %v7898_v14  ;;  %v7902_v21 = vld [vmem:[#allocation2 + $0x328] sm:$0xff] }
 0x585   : > { %v11363_v34 = vpop.eup %11362  ;;  %11382 = vrcp.f32 %v8541_v11  ;;  %v8543_v44 = vadd.f32 1.0, %v11361_v30  ;;  %v8395_v58 = vmul.f32 1.442695, %v8173_v33  ;;  %v16059_v55 = vadd.f32 %v15507_v39, %v7900_v59  ;;  %v7903_v30 = vld [vmem:[#allocation2 + $0x330] sm:$0xff] }
 0x586   : > { %v11365_v35 = vpop.eup %11364  ;;  %11384 = vrcp.f32 %v8542_v23  ;;  %v8544_v8 = vadd.f32 1.0, %v11363_v34  ;;  %v8397_v11 = vmul.f32 1.442695, %v8174_v2  ;;  %v16068_v18 = vadd.f32 %v15503_v3, %v7902_v21 }
 0x587   : > { %v11367_v4 = vpop.eup %11366  ;;  %11386 = vrcp.f32 %v8543_v44  ;;  %v8545_v25 = vadd.f32 1.0, %v11365_v35  ;;  %v8175_v44 = vsub.f32 0.0, %v16050_v42  ;;  %v16063_v35 = vadd.f32 %v15501_v19, %v7901_v52 }
 0x588   : > { %v11369_v61 = vpop.eup %11368  ;;  %11388 = vrcp.f32 %v8544_v8  ;;  %v8546_v62 = vadd.f32 1.0, %v11367_v4  ;;  %v7904_v8 = vld [vmem:[#allocation2 + $0x338] sm:$0xff]  ;;  %v8177_v43 = vsub.f32 0.0, %v16056_v37  ;;  %v16073_v17 = vadd.f32 %v15505_v13, %v7903_v30 }
 0x589   : > { %v11371_v0 = vpop.eup %11370  ;;  %11390 = vrcp.f32 %v8545_v25  ;;  %v8547_v60 = vadd.f32 1.0, %v11369_v61  ;;  %v8176_v25 = vsub.f32 0.0, %v16053_v20  ;;  %v16079_v33 = vadd.f32 %v15507_v39, %v7904_v8 }
 0x58a   : > { %v11373_v7 = vpop.eup %11372  ;;  %11392 = vrcp.f32 %v8546_v62  ;;  %v8548_v28 = vadd.f32 1.0, %v11371_v0  ;;  %v8180_v63 = vsub.f32 0.0, %v16068_v18 }
 0x58b   : > { %v11375_v40 = vpop.eup %11374  ;;  %11394 = vrcp.f32 %v8547_v60  ;;  %v8549_v9 = vadd.f32 1.0, %v11373_v7  ;;  %v8178_v60 = vsub.f32 0.0, %v16059_v55  ;;  %v8399_v7 = vmul.f32 1.442695, %v8175_v44  ;;  %v7907_v44 = vld [vmem:[#allocation2 + $0x350] sm:$0xff] }
 0x58c   : > { %v11377_v32 = vpop.eup %11376  ;;  %11396 = vrcp.f32 %v8548_v28  ;;  %v8550_v47 = vadd.f32 1.0, %v11375_v40  ;;  %v8179_v28 = vsub.f32 0.0, %v16063_v35 }
 0x58d   : > { %v11379_v41 = vpop.eup %11378  ;;  %11398 = vrcp.f32 %v8549_v9  ;;  %v8551_v46 = vadd.f32 1.0, %v11377_v32 }
 0x58e   : > { %v11381_v15 = vpop.eup %11380  ;;  %11400 = vrcp.f32 %v8550_v47  ;;  %v8552_v5 = vadd.f32 1.0, %v11379_v41  ;;  %v8182_v47 = vsub.f32 0.0, %v16079_v33 }
 0x58f   : > { %v11383_v23 = vpop.eup %11382  ;;  %11402 = vrcp.f32 %v8551_v46  ;;  %v8553_v34 = vadd.f32 1.0, %v11381_v15 }
 0x590   : > { %v11385_v16 = vpop.eup %11384  ;;  %v8797_v4 = vmul.f32 %v11383_v23, %v15950_v22  ;;  %11404 = vrcp.f32 %v8552_v5  ;;  %v7905_v5 = vld [vmem:[#allocation2 + $0x340] sm:$0xff]  ;;  %v8413_v30 = vmul.f32 1.442695, %v8182_v47  ;;  %v7906_v23 = vld [vmem:[#allocation2 + $0x348] sm:$0xff] }
 0x591   : > { %v11387_v61 = vpop.eup %11386  ;;  %v8798_v62 = vmul.f32 %v11385_v16, %v15954_v50  ;;  %11406 = vrcp.f32 %v8553_v34  ;;  %v16106_v16 = vadd.f32 %v15501_v19, %v7905_v5 }
 0x592   : > { %v11389_v0 = vpop.eup %11388  ;;  %8925 = vst [vmem:[%s12045_s18 + $0x270] sm:$0xff] %v8797_v4  ;;  %v8799_v22 = vmul.f32 %v11387_v61, %v15958_v24  ;;  %11408 = vpow2.f32 %v8389_v57  ;;  %v8401_v57 = vmul.f32 1.442695, %v8176_v25  ;;  %v16110_v61 = vadd.f32 %v15503_v3, %v7906_v23  ;;  %v7914_v23 = vld [vmem:[#allocation2 + $0x388] sm:$0xff] }
 0x593   : > { %v11391_v14 = vpop.eup %11390  ;;  %8926 = vst [vmem:[%s12045_s18 + $0x278] sm:$0xff] %v8798_v62  ;;  %v8800_v50 = vmul.f32 %v11389_v0, %v15962_v27  ;;  %11410 = vpow2.f32 %v8391_v56  ;;  %v8403_v27 = vmul.f32 1.442695, %v8177_v43  ;;  %v8181_v56 = vsub.f32 0.0, %v16073_v17 }
 0x594   : > { %v11393_v2 = vpop.eup %11392  ;;  %8927 = vst [vmem:[%s12045_s18 + $0x280] sm:$0xff] %v8799_v22  ;;  %v8801_v24 = vmul.f32 %v11391_v14, %v15966_v6  ;;  %11412 = vpow2.f32 %v8393_v1  ;;  %v8405_v6 = vmul.f32 1.442695, %v8178_v60  ;;  %v16114_v0 = vadd.f32 %v15505_v13, %v7907_v44 }
 0x595   : > { %v11395_v40 = vpop.eup %11394  ;;  %8928 = vst [vmem:[%s12045_s18 + $0x288] sm:$0xff] %v8800_v50  ;;  %v8802_v9 = vmul.f32 %v11393_v2, %v15970_v38  ;;  %11414 = vpow2.f32 %v8395_v58  ;;  %v8407_v38 = vmul.f32 1.442695, %v8179_v28  ;;  %v8409_v58 = vmul.f32 1.442695, %v8180_v63 }
 0x596   : > { %v11397_v59 = vpop.eup %11396  ;;  %8929 = vst [vmem:[%s12045_s18 + $0x290] sm:$0xff] %v8801_v24  ;;  %v8803_v32 = vmul.f32 %v11395_v40, %v15975_v48  ;;  %11416 = vpow2.f32 %v8397_v11  ;;  %v8411_v15 = vmul.f32 1.442695, %v8181_v56 }
 0x597   : > { %v11399_v1 = vpop.eup %11398  ;;  %8930 = vst [vmem:[%s12045_s18 + $0x298] sm:$0xff] %v8802_v9  ;;  %v8804_v52 = vmul.f32 %v11397_v59, %v15979_v36  ;;  %11418 = vpow2.f32 %v8399_v7  ;;  %v8183_v7 = vsub.f32 0.0, %v16106_v16  ;;  %v8185_v9 = vsub.f32 0.0, %v16114_v0 }
 0x598   : > { %v11401_v41 = vpop.eup %11400  ;;  %8931 = vst [vmem:[%s12045_s18 + $0x2a0] sm:$0xff] %v8803_v32  ;;  %v8805_v46 = vmul.f32 %v11399_v1, %v15982_v53  ;;  %11420 = vpow2.f32 %v8401_v57  ;;  %v8184_v57 = vsub.f32 0.0, %v16110_v61 }
 0x599   : > { %v11403_v21 = vpop.eup %11402  ;;  %8932 = vst [vmem:[%s12045_s18 + $0x2a8] sm:$0xff] %v8804_v52  ;;  %v8806_v48 = vmul.f32 %v11401_v41, %v15985_v45  ;;  %11422 = vpow2.f32 %v8403_v27  ;;  %v7910_v27 = vld [vmem:[#allocation2 + $0x368] sm:$0xff]  ;;  %v8415_v52 = vmul.f32 1.442695, %v8183_v7  ;;  %v7912_v41 = vld [vmem:[#allocation2 + $0x378] sm:$0xff] }
 0x59a   : > { %v11405_v11 = vpop.eup %11404  ;;  %8933 = vst [vmem:[%s12045_s18 + $0x2b0] sm:$0xff] %v8805_v46  ;;  %v8807_v36 = vmul.f32 %v11403_v21, %v15990_v54  ;;  %11424 = vpow2.f32 %v8405_v6  ;;  %v7908_v54 = vld [vmem:[#allocation2 + $0x358] sm:$0xff]  ;;  %v7911_v6 = vld [vmem:[#allocation2 + $0x370] sm:$0xff]  ;;  %v8417_v21 = vmul.f32 1.442695, %v8184_v57 }
 0x59b   : > { %v11407_v53 = vpop.eup %11406  ;;  %8934 = vst [vmem:[%s12045_s18 + $0x2b8] sm:$0xff] %v8806_v48  ;;  %v8808_v34 = vmul.f32 %v11405_v11, %v15995_v51  ;;  %11426 = vpow2.f32 %v8407_v38  ;;  %v7909_v51 = vld [vmem:[#allocation2 + $0x360] sm:$0xff]  ;;  %v16117_v60 = vadd.f32 %v15507_v39, %v7908_v54  ;;  %v16128_v48 = vadd.f32 %v15503_v3, %v7910_v27 }
 0x59c   : > { %v11409_v45 = vpop.eup %11408  ;;  %8935 = vst [vmem:[%s12045_s18 + $0x2c0] sm:$0xff] %v8807_v36  ;;  %v8809_v8 = vmul.f32 %v11407_v53, %v16001_v49  ;;  %11428 = vpow2.f32 %v8409_v58  ;;  %v16121_v28 = vadd.f32 %v15501_v19, %v7909_v51  ;;  %v8419_v36 = vmul.f32 1.442695, %v8185_v9 }
 0x59d   : > { %v11411_v4 = vpop.eup %11410  ;;  %8936 = vst [vmem:[%s12045_s18 + $0x2c8] sm:$0xff] %v8808_v34  ;;  %v8554_v25 = vadd.f32 1.0, %v11409_v45  ;;  %11430 = vpow2.f32 %v8411_v15  ;;  %v8186_v32 = vsub.f32 0.0, %v16117_v60  ;;  %v7913_v15 = vld [vmem:[#allocation2 + $0x380] sm:$0xff]  ;;  %v16134_v45 = vadd.f32 %v15507_v39, %v7912_v41 }
 0x59e   : > { %v11413_v62 = vpop.eup %11412  ;;  %8937 = vst [vmem:[%s12045_s18 + $0x2d0] sm:$0xff] %v8809_v8  ;;  %v8555_v43 = vadd.f32 1.0, %v11411_v4  ;;  %11432 = vpow2.f32 %v8413_v30  ;;  %v8187_v38 = vsub.f32 0.0, %v16121_v28  ;;  %v16131_v30 = vadd.f32 %v15505_v13, %v7911_v6  ;;  %v7915_v8 = vld [vmem:[#allocation2 + $0x390] sm:$0xff] }
 0x59f   : > { %v11415_v49 = vpop.eup %11414  ;;  %11434 = vrcp.f32 %v8554_v25  ;;  %v8556_v22 = vadd.f32 1.0, %v11413_v62  ;;  %v8421_v44 = vmul.f32 1.442695, %v8186_v32  ;;  %v16137_v51 = vadd.f32 %v15501_v19, %v7913_v15  ;;  %v7916_v62 = vld [vmem:[#allocation2 + $0x398] sm:$0xff] }
 0x5a0   : > { %v11417_v14 = vpop.eup %11416  ;;  %11436 = vrcp.f32 %v8555_v43  ;;  %v8557_v50 = vadd.f32 1.0, %v11415_v49  ;;  %v8423_v25 = vmul.f32 1.442695, %v8187_v38  ;;  %v16146_v57 = vadd.f32 %v15505_v13, %v7915_v8 }
 0x5a1   : > { %v11419_v2 = vpop.eup %11418  ;;  %11438 = vrcp.f32 %v8556_v22  ;;  %v8558_v24 = vadd.f32 1.0, %v11417_v14  ;;  %v8188_v22 = vsub.f32 0.0, %v16128_v48  ;;  %v16141_v14 = vadd.f32 %v15503_v3, %v7914_v23 }
 0x5a2   : > { %v11421_v63 = vpop.eup %11420  ;;  %11440 = vrcp.f32 %v8557_v50  ;;  %v8559_v40 = vadd.f32 1.0, %v11419_v2  ;;  %v7917_v50 = vld [vmem:[#allocation2 + $0x3a0] sm:$0xff]  ;;  %v8190_v9 = vsub.f32 0.0, %v16134_v45  ;;  %v16151_v27 = vadd.f32 %v15507_v39, %v7916_v62 }
 0x5a3   : > { %v11423_v56 = vpop.eup %11422  ;;  %11442 = vrcp.f32 %v8558_v24  ;;  %v8560_v59 = vadd.f32 1.0, %v11421_v63  ;;  %v8189_v24 = vsub.f32 0.0, %v16131_v30  ;;  %v16157_v32 = vadd.f32 %v15501_v19, %v7917_v50 }
 0x5a4   : > { %v11425_v47 = vpop.eup %11424  ;;  %11444 = vrcp.f32 %v8559_v40  ;;  %v8561_v1 = vadd.f32 1.0, %v11423_v56  ;;  %v8193_v41 = vsub.f32 0.0, %v16146_v57 }
 0x5a5   : > { %v11427_v46 = vpop.eup %11426  ;;  %11446 = vrcp.f32 %v8560_v59  ;;  %v8562_v58 = vadd.f32 1.0, %v11425_v47  ;;  %v8191_v59 = vsub.f32 0.0, %v16137_v51  ;;  %v8425_v47 = vmul.f32 1.442695, %v8188_v22  ;;  %v7920_v22 = vld [vmem:[#allocation2 + $0x3b8] sm:$0xff] }
 0x5a6   : > { %v11429_v5 = vpop.eup %11428  ;;  %11448 = vrcp.f32 %v8561_v1  ;;  %v8563_v11 = vadd.f32 1.0, %v11427_v46  ;;  %v8192_v1 = vsub.f32 0.0, %v16141_v14 }
 0x5a7   : > { %v11431_v53 = vpop.eup %11430  ;;  %11450 = vrcp.f32 %v8562_v58  ;;  %v8564_v34 = vadd.f32 1.0, %v11429_v5 }
 0x5a8   : > { %v11433_v54 = vpop.eup %11432  ;;  %11452 = vrcp.f32 %v8563_v11  ;;  %v8565_v4 = vadd.f32 1.0, %v11431_v53  ;;  %v8195_v11 = vsub.f32 0.0, %v16157_v32 }
 0x5a9   : > { %v11435_v43 = vpop.eup %11434  ;;  %11454 = vrcp.f32 %v8564_v34  ;;  %v8566_v49 = vadd.f32 1.0, %v11433_v54 }
 0x5aa   : > { %v11437_v7 = vpop.eup %11436  ;;  %v8810_v2 = vmul.f32 %v11435_v43, %v16028_v29  ;;  %11456 = vrcp.f32 %v8565_v4  ;;  %v7918_v4 = vld [vmem:[#allocation2 + $0x3a8] sm:$0xff]  ;;  %v8439_v62 = vmul.f32 1.442695, %v8195_v11  ;;  %v7919_v43 = vld [vmem:[#allocation2 + $0x3b0] sm:$0xff] }
 0x5ab   : > { %v11439_v63 = vpop.eup %11438  ;;  %v8811_v40 = vmul.f32 %v11437_v7, %v16032_v31  ;;  %11458 = vrcp.f32 %v8566_v49  ;;  %v16184_v7 = vadd.f32 %v15503_v3, %v7918_v4 }
 0x5ac   : > { %v11441_v56 = vpop.eup %11440  ;;  %8938 = vst [vmem:[%s12045_s18 + $0x2d8] sm:$0xff] %v8810_v2  ;;  %v8812_v29 = vmul.f32 %v11439_v63, %v16036_v26  ;;  %11460 = vpow2.f32 %v8415_v52  ;;  %v8427_v52 = vmul.f32 1.442695, %v8189_v24  ;;  %v16188_v24 = vadd.f32 %v15505_v13, %v7919_v43 }
 0x5ad   : > { %v11443_v6 = vpop.eup %11442  ;;  %8939 = vst [vmem:[%s12045_s18 + $0x2e0] sm:$0xff] %v8811_v40  ;;  %v8813_v31 = vmul.f32 %v11441_v56, %v16039_v10  ;;  %11462 = vpow2.f32 %v8417_v21  ;;  %v8429_v10 = vmul.f32 1.442695, %v8190_v9  ;;  %v8194_v21 = vsub.f32 0.0, %v16151_v27 }
 0x5ae   : > { %v11445_v38 = vpop.eup %11444  ;;  %8940 = vst [vmem:[%s12045_s18 + $0x2e8] sm:$0xff] %v8812_v29  ;;  %v8814_v26 = vmul.f32 %v11443_v6, %v16043_v12  ;;  %11464 = vpow2.f32 %v8419_v36  ;;  %v8431_v12 = vmul.f32 1.442695, %v8191_v59  ;;  %v16192_v40 = vadd.f32 %v15507_v39, %v7920_v22  ;;  %v7921_v6 = vld [vmem:[#allocation2 + $0x3c0] sm:$0xff]  ;;  %v7928_v22 = vld [vmem:[#allocation2 + $0x3f8] sm:$0xff] }
 0x5af   : > { %v11447_v46 = vpop.eup %11446  ;;  %8941 = vst [vmem:[%s12045_s18 + $0x2f0] sm:$0xff] %v8813_v31  ;;  %v8815_v58 = vmul.f32 %v11445_v38, %v16050_v42  ;;  %11466 = vpow2.f32 %v8421_v44  ;;  %v8433_v42 = vmul.f32 1.442695, %v8192_v1  ;;  %v8435_v44 = vmul.f32 1.442695, %v8193_v41  ;;  %v7922_v38 = vld [vmem:[#allocation2 + $0x3c8] sm:$0xff] }
 0x5b0   : > { %v11449_v15 = vpop.eup %11448  ;;  %8942 = vst [vmem:[%s12045_s18 + $0x2f8] sm:$0xff] %v8814_v26  ;;  %v8816_v5 = vmul.f32 %v11447_v46, %v16053_v20  ;;  %11468 = vpow2.f32 %v8423_v25  ;;  %v8437_v54 = vmul.f32 1.442695, %v8194_v21  ;;  %v8196_v59 = vsub.f32 0.0, %v16184_v7  ;;  %v7923_v46 = vld [vmem:[#allocation2 + $0x3d0] sm:$0xff] }
 0x5b1   : > { %v11451_v36 = vpop.eup %11450  ;;  %8943 = vst [vmem:[%s12045_s18 + $0x300] sm:$0xff] %v8815_v58  ;;  %v8817_v23 = vmul.f32 %v11449_v15, %v16056_v37  ;;  %11470 = vpow2.f32 %v8425_v47  ;;  %v8197_v1 = vsub.f32 0.0, %v16188_v24  ;;  %v8198_v41 = vsub.f32 0.0, %v16192_v40  ;;  %v7924_v15 = vld [vmem:[#allocation2 + $0x3d8] sm:$0xff] }
 0x5b2   : > { %v11453_v53 = vpop.eup %11452  ;;  %8944 = vst [vmem:[%s12045_s18 + $0x308] sm:$0xff] %v8816_v5  ;;  %v8818_v34 = vmul.f32 %v11451_v36, %v16059_v55  ;;  %11472 = vpow2.f32 %v8427_v52  ;;  %v16198_v21 = vadd.f32 %v15501_v19, %v7921_v6  ;;  %v8441_v11 = vmul.f32 1.442695, %v8196_v59 }
 0x5b3   : > { %v11455_v8 = vpop.eup %11454  ;;  %8945 = vst [vmem:[%s12045_s18 + $0x310] sm:$0xff] %v8817_v23  ;;  %v8819_v20 = vmul.f32 %v11453_v53, %v16063_v35  ;;  %11474 = vpow2.f32 %v8429_v10  ;;  %v16201_v36 = vadd.f32 %v15503_v3, %v7922_v38  ;;  %v7925_v23 = vld [vmem:[#allocation2 + $0x3e0] sm:$0xff]  ;;  %v8445_v4 = vmul.f32 1.442695, %v8198_v41 }
 0x5b4   : > { %v11457_v25 = vpop.eup %11456  ;;  %8946 = vst [vmem:[%s12045_s18 + $0x318] sm:$0xff] %v8818_v34  ;;  %v8820_v37 = vmul.f32 %v11455_v8, %v16068_v18  ;;  %11476 = vpow2.f32 %v8431_v12  ;;  %v8443_v34 = vmul.f32 1.442695, %v8197_v1  ;;  %v7926_v8 = vld [vmem:[#allocation2 + $0x3e8] sm:$0xff]  ;;  %v16224_v59 = vadd.f32 %v15507_v39, %v7928_v22 }
 0x5b5   : > { %v11459_v55 = vpop.eup %11458  ;;  %8947 = vst [vmem:[%s12045_s18 + $0x320] sm:$0xff] %v8819_v20  ;;  %v8821_v49 = vmul.f32 %v11457_v25, %v16073_v17  ;;  %11478 = vpow2.f32 %v8433_v42  ;;  %v16207_v25 = vadd.f32 %v15507_v39, %v7924_v15 }
 0x5b6   : > { %v11461_v35 = vpop.eup %11460  ;;  %8948 = vst [vmem:[%s12045_s18 + $0x328] sm:$0xff] %v8820_v37  ;;  %v8822_v50 = vmul.f32 %v11459_v55, %v16079_v33  ;;  %11480 = vpow2.f32 %v8435_v44  ;;  %v16204_v44 = vadd.f32 %v15505_v13, %v7923_v46  ;;  %v7927_v37 = vld [vmem:[#allocation2 + $0x3f0] sm:$0xff]  ;;  %v8199_v55 = vsub.f32 0.0, %v16198_v21 }
 0x5b7   : > { %v11463_v2 = vpop.eup %11462  ;;  %8949 = vst [vmem:[%s12045_s18 + $0x330] sm:$0xff] %v8821_v49  ;;  %v8567_v18 = vadd.f32 1.0, %v11461_v35  ;;  %11482 = vpow2.f32 %v8437_v54  ;;  %v16211_v49 = vadd.f32 %v15501_v19, %v7925_v23 }
 0x5b8   : > { %v11465_v63 = vpop.eup %11464  ;;  %8950 = vst [vmem:[%s12045_s18 + $0x338] sm:$0xff] %v8822_v50  ;;  %v8568_v17 = vadd.f32 1.0, %v11463_v2  ;;  %11484 = vpow2.f32 %v8439_v62  ;;  %v8200_v2 = vsub.f32 0.0, %v16201_v36 }
 0x5b9   : > { %v11467_v9 = vpop.eup %11466  ;;  %11486 = vrcp.f32 %v8567_v18  ;;  %v8569_v33 = vadd.f32 1.0, %v11465_v63  ;;  %v16215_v18 = vadd.f32 %v15503_v3, %v7926_v8 }
 0x5ba   : > { %v11469_v56 = vpop.eup %11468  ;;  %11488 = vrcp.f32 %v8568_v17  ;;  %v8570_v29 = vadd.f32 1.0, %v11467_v9  ;;  %v8201_v9 = vsub.f32 0.0, %v16204_v44 }
 0x5bb   : > { %v11471_v31 = vpop.eup %11470  ;;  %11490 = vrcp.f32 %v8569_v33  ;;  %v8571_v47 = vadd.f32 1.0, %v11469_v56  ;;  %v16219_v33 = vadd.f32 %v15505_v13, %v7927_v37  ;;  %v8204_v38 = vsub.f32 0.0, %v16215_v18 }
 0x5bc   : > { %v11473_v26 = vpop.eup %11472  ;;  %11492 = vrcp.f32 %v8570_v29  ;;  %v8572_v52 = vadd.f32 1.0, %v11471_v31  ;;  %v8202_v29 = vsub.f32 0.0, %v16207_v25  ;;  %v8447_v31 = vmul.f32 1.442695, %v8199_v55 }
 0x5bd   : > { %v11475_v58 = vpop.eup %11474  ;;  %11494 = vrcp.f32 %v8571_v47  ;;  %v8573_v10 = vadd.f32 1.0, %v11473_v26  ;;  %v8203_v47 = vsub.f32 0.0, %v16211_v49 }
 0x5be   : > { %v11477_v5 = vpop.eup %11476  ;;  %11496 = vrcp.f32 %v8572_v52  ;;  %v8574_v12 = vadd.f32 1.0, %v11475_v58  ;;  %v8205_v52 = vsub.f32 0.0, %v16219_v33  ;;  %v8206_v58 = vsub.f32 0.0, %v16224_v59 }
 0x5bf   : > { %v11479_v42 = vpop.eup %11478  ;;  %11498 = vrcp.f32 %v8573_v10  ;;  %v8575_v53 = vadd.f32 1.0, %v11477_v5 }
 0x5c0   : > { %v11481_v20 = vpop.eup %11480  ;;  %11500 = vrcp.f32 %v8574_v12  ;;  %v8576_v54 = vadd.f32 1.0, %v11479_v42  ;;  %v8459_v42 = vmul.f32 1.442695, %v8205_v52 }
 0x5c1   : > { %v11483_v62 = vpop.eup %11482  ;;  %11502 = vrcp.f32 %v8575_v53  ;;  %v8577_v43 = vadd.f32 1.0, %v11481_v20 }
 0x5c2   : > { %v11485_v35 = vpop.eup %11484  ;;  %11504 = vrcp.f32 %v8576_v54  ;;  %v8578_v50 = vadd.f32 1.0, %v11483_v62 }
 0x5c3   : > { %v11487_v63 = vpop.eup %11486  ;;  %11506 = vrcp.f32 %v8577_v43  ;;  %v8579_v17 = vadd.f32 1.0, %v11485_v35 }
 0x5c4   : > { %v11489_v19 = vpop.eup %11488  ;;  %v8823_v56 = vmul.f32 %v11487_v63, %v16106_v16  ;;  %11508 = vrcp.f32 %v8578_v50  ;;  %v8449_v16 = vmul.f32 1.442695, %v8200_v2 }
 0x5c5   : > { %v11491_v3 = vpop.eup %11490  ;;  %v8824_v6 = vmul.f32 %v11489_v19, %v16110_v61  ;;  %11510 = vrcp.f32 %v8579_v17  ;;  %v8451_v61 = vmul.f32 1.442695, %v8201_v9 }
 0x5c6   : > { %v11493_v13 = vpop.eup %11492  ;;  %8951 = vst [vmem:[%s12045_s18 + $0x340] sm:$0xff] %v8823_v56  ;;  %v8825_v1 = vmul.f32 %v11491_v3, %v16114_v0  ;;  %11512 = vpow2.f32 %v8441_v11  ;;  %v8453_v0 = vmul.f32 1.442695, %v8202_v29  ;;  %v8457_v11 = vmul.f32 1.442695, %v8204_v38 }
 0x5c7   : > { %v11495_v26 = vpop.eup %11494  ;;  %8952 = vst [vmem:[%s12045_s18 + $0x348] sm:$0xff] %v8824_v6  ;;  %v8826_v39 = vmul.f32 %v11493_v13, %v16117_v60  ;;  %11514 = vpow2.f32 %v8443_v34  ;;  %v8455_v60 = vmul.f32 1.442695, %v8203_v47  ;;  %v8461_v34 = vmul.f32 1.442695, %v8206_v58 }
 0x5c8   : > { %v11497_v41 = vpop.eup %11496  ;;  %8953 = vst [vmem:[%s12045_s18 + $0x350] sm:$0xff] %v8825_v1  ;;  %v8827_v46 = vmul.f32 %v11495_v26, %v16121_v28  ;;  %11516 = vpow2.f32 %v8445_v4 }
 0x5c9   : > { %v11499_v10 = vpop.eup %11498  ;;  %8954 = vst [vmem:[%s12045_s18 + $0x358] sm:$0xff] %v8826_v39  ;;  %v8828_v15 = vmul.f32 %v11497_v41, %v16128_v48  ;;  %11518 = vpow2.f32 %v8447_v31 }
 0x5ca   : > { %v11501_v5 = vpop.eup %11500  ;;  %8955 = vst [vmem:[%s12045_s18 + $0x360] sm:$0xff] %v8827_v46  ;;  %v8829_v12 = vmul.f32 %v11499_v10, %v16131_v30  ;;  %11520 = vpow2.f32 %v8449_v16 }
 0x5cb   : > { %v11503_v28 = vpop.eup %11502  ;;  %8956 = vst [vmem:[%s12045_s18 + $0x368] sm:$0xff] %v8828_v15  ;;  %v8830_v23 = vmul.f32 %v11501_v5, %v16134_v45  ;;  %11522 = vpow2.f32 %v8451_v61 }
 0x5cc   : > { %v11505_v53 = vpop.eup %11504  ;;  %8957 = vst [vmem:[%s12045_s18 + $0x370] sm:$0xff] %v8829_v12  ;;  %v8831_v48 = vmul.f32 %v11503_v28, %v16137_v51  ;;  %11524 = vpow2.f32 %v8453_v0 }
 0x5cd   : > { %v11507_v8 = vpop.eup %11506  ;;  %8958 = vst [vmem:[%s12045_s18 + $0x378] sm:$0xff] %v8830_v23  ;;  %v8832_v30 = vmul.f32 %v11505_v53, %v16141_v14  ;;  %11526 = vpow2.f32 %v8455_v60 }
 0x5ce   : > { %v11509_v20 = vpop.eup %11508  ;;  %8959 = vst [vmem:[%s12045_s18 + $0x380] sm:$0xff] %v8831_v48  ;;  %v8833_v45 = vmul.f32 %v11507_v8, %v16146_v57  ;;  %11528 = vpow2.f32 %v8457_v11 }
 0x5cf   : > { %v11511_v54 = vpop.eup %11510  ;;  %8960 = vst [vmem:[%s12045_s18 + $0x388] sm:$0xff] %v8832_v30  ;;  %v8834_v4 = vmul.f32 %v11509_v20, %v16151_v27  ;;  %11530 = vpow2.f32 %v8459_v42 }
 0x5d0   : > { %v11513_v51 = vpop.eup %11512  ;;  %8961 = vst [vmem:[%s12045_s18 + $0x390] sm:$0xff] %v8833_v45  ;;  %v8835_v37 = vmul.f32 %v11511_v54, %v16157_v32  ;;  %11532 = vpow2.f32 %v8461_v34 }
 0x5d1   : > { %v11515_v62 = vpop.eup %11514  ;;  %8962 = vst [vmem:[%s12045_s18 + $0x398] sm:$0xff] %v8834_v4  ;;  %v8580_v14 = vadd.f32 1.0, %v11513_v51 }
 0x5d2   : > { %v11517_v43 = vpop.eup %11516  ;;  %8963 = vst [vmem:[%s12045_s18 + $0x3a0] sm:$0xff] %v8835_v37  ;;  %v8581_v55 = vadd.f32 1.0, %v11515_v62 }
 0x5d3   : > { %v11519_v22 = vpop.eup %11518  ;;  %11534 = vrcp.f32 %v8580_v14  ;;  %v8582_v57 = vadd.f32 1.0, %v11517_v43 }
 0x5d4   : > { %v11521_v35 = vpop.eup %11520  ;;  %11536 = vrcp.f32 %v8581_v55  ;;  %v8583_v50 = vadd.f32 1.0, %v11519_v22 }
 0x5d5   : > { %v11523_v2 = vpop.eup %11522  ;;  %11538 = vrcp.f32 %v8582_v57  ;;  %v8584_v27 = vadd.f32 1.0, %v11521_v35 }
 0x5d6   : > { %v11525_v63 = vpop.eup %11524  ;;  %11540 = vrcp.f32 %v8583_v50  ;;  %v8585_v17 = vadd.f32 1.0, %v11523_v2 }
 0x5d7   : > { %v11527_v32 = vpop.eup %11526  ;;  %11542 = vrcp.f32 %v8584_v27  ;;  %v8586_v9 = vadd.f32 1.0, %v11525_v63 }
 0x5d8   : > { %v11529_v19 = vpop.eup %11528  ;;  %11544 = vrcp.f32 %v8585_v17  ;;  %v8587_v56 = vadd.f32 1.0, %v11527_v32 }
 0x5d9   : > { %v11531_v29 = vpop.eup %11530  ;;  %11546 = vrcp.f32 %v8586_v9  ;;  %v8588_v3 = vadd.f32 1.0, %v11529_v19 }
 0x5da   : > { %v11533_v6 = vpop.eup %11532  ;;  %11548 = vrcp.f32 %v8587_v56  ;;  %v8589_v31 = vadd.f32 1.0, %v11531_v29 }
 0x5db   : > { %11550 = vrcp.f32 %v8588_v3  ;;  %v8590_v47 = vadd.f32 1.0, %v11533_v6 }
 0x5dc   : > { %11552 = vrcp.f32 %v8589_v31 }
 0x5dd   : > { %v11535_v13 = vpop.eup %11534  ;;  %11554 = vrcp.f32 %v8590_v47 }
 0x5de   : > { %v11537_v1 = vpop.eup %11536  ;;  %v8836_v16 = vmul.f32 %v11535_v13, %v16184_v7 }
 0x5df   : > { %v11539_v38 = vpop.eup %11538  ;;  %v8837_v26 = vmul.f32 %v11537_v1, %v16188_v24 }
 0x5e0   : > { %v11541_v39 = vpop.eup %11540  ;;  %8964 = vst [vmem:[%s12045_s18 + $0x3a8] sm:$0xff] %v8836_v16  ;;  %v8838_v61 = vmul.f32 %v11539_v38, %v16192_v40 }
 0x5e1   : > { %v11543_v52 = vpop.eup %11542  ;;  %8965 = vst [vmem:[%s12045_s18 + $0x3b0] sm:$0xff] %v8837_v26  ;;  %v8839_v41 = vmul.f32 %v11541_v39, %v16198_v21 }
 0x5e2   : > { %v11545_v46 = vpop.eup %11544  ;;  %8966 = vst [vmem:[%s12045_s18 + $0x3b8] sm:$0xff] %v8838_v61  ;;  %v8840_v0 = vmul.f32 %v11543_v52, %v16201_v36 }
 0x5e3   : > { %v11547_v7 = vpop.eup %11546  ;;  %8967 = vst [vmem:[%s12045_s18 + $0x3c0] sm:$0xff] %v8839_v41  ;;  %v8841_v24 = vmul.f32 %v11545_v46, %v16204_v44 }
 0x5e4   : > { %v11549_v58 = vpop.eup %11548  ;;  %8968 = vst [vmem:[%s12045_s18 + $0x3c8] sm:$0xff] %v8840_v0  ;;  %v8842_v40 = vmul.f32 %v11547_v7, %v16207_v25 }
 0x5e5   : > { %v11551_v10 = vpop.eup %11550  ;;  %8969 = vst [vmem:[%s12045_s18 + $0x3d0] sm:$0xff] %v8841_v24  ;;  %v8843_v21 = vmul.f32 %v11549_v58, %v16211_v49 }
 0x5e6   : > { %v11553_v15 = vpop.eup %11552  ;;  %8970 = vst [vmem:[%s12045_s18 + $0x3d8] sm:$0xff] %v8842_v40  ;;  %v8844_v60 = vmul.f32 %v11551_v10, %v16215_v18 }
 0x5e7   : > { %v11555_v36 = vpop.eup %11554  ;;  %8971 = vst [vmem:[%s12045_s18 + $0x3e0] sm:$0xff] %v8843_v21  ;;  %v8845_v5 = vmul.f32 %v11553_v15, %v16219_v33 }
 0x5e8   : > { %8972 = vst [vmem:[%s12045_s18 + $0x3e8] sm:$0xff] %v8844_v60  ;;  %v8846_v44 = vmul.f32 %v11555_v36, %v16224_v59 }
 0x5e9   : > { %8973 = vst [vmem:[%s12045_s18 + $0x3f0] sm:$0xff] %v8845_v5 }
 0x5ea   : > { %8974 = vst [vmem:[%s12045_s18 + $0x3f8] sm:$0xff] %v8846_v44 }
 0x5eb PF: > { %s9476_s24 = sshll.u32 %s11726_s25, 14  ;;  %s16418_s30 = sld [smem:[#allocation28_spill]] }
 0x5ec   : > { %s8989_s9 = sshll.u32 %s12045_s18, 4  ;;  %s8976_s7 = scalar_lea.sflag [#allocation7], %s12017_s13  ;;  %s16284_s9 = int_to_ptr.vmem [resolvable:$true] %s8989_s9 }
 0x5ed   : > { %s11612_s5 = scalar_lea.vmem %s16284_s9, 16384  ;;  %p16419_p11 = scmp.ne.s32.totalorder %s16380_s10, 0 }
 0x5ee   : > { %p11613_p6 = scmp.ne.s32.totalorder %s16284_s9, %s11612_s5  ;;  %s11755_s8 = smov [#allocation11]  }
 0x5ef   : > { %s11616_s23 = sshll.u32 %s11755_s8, 4  ;;  %s11617_s23 = int_to_ptr.vmem [resolvable:$false] %s11616_s23 }
 0x5f0   : > { %p11614_p0 = pnand %p11613_p6, %p16419_p11  ;;  %s11618_s25 = scalar_lea.vmem %s11617_s23, 32768 }
 0x5f1   : > { %s16281_s16 = scalar_lea.hbm %s16418_s30, %s9476_s24  ;;  %p11619_p4 = scmp.lt.s32.totalorder %s16284_s9, %s11617_s23 }
 0x5f2   : > { %p11615_p3 = pneg %p11614_p0  ;;  %p11620_p13 = scmp.lt.s32.totalorder %s11618_s25, %s11612_s5 }
 0x5f4   : > { %p11621_p7 = por %p11620_p13, %p11619_p4 }
 0x5f6   : > { %p11622_p10 = pnand %p11621_p7, %p11615_p3 }
 0x5f8   : > { %11625 = shalt.err (!%p11622_p10)
}
 0x5f9   : > { %s11626_s12 = scalar_lea.hbm %s16281_s16, 16384  ;;  %s11630_s6 = scalar_lea.hbm %s16418_s30, 32768 }
 0x5fa   : > { %p11627_p9 = scmp.ne.s32.totalorder %s16281_s16, %s11626_s12  ;;  %p11631_p8 = scmp.lt.u32.totalorder %s16281_s16, %s16418_s30 }
 0x5fb   : > { %p11632_p2 = scmp.lt.u32.totalorder %s11630_s6, %s11626_s12  ;;  %p11634_p6 = scmp.lt.u32.totalorder %s11626_s12, %s16281_s16 }
 0x5fc   : > { %p11628_p5 = pnand %p11627_p9, %p16419_p11 }
 0x5fd   : > { %p11633_p1 = por %p11632_p2, %p11631_p8 }
 0x5fe   : > { %p11629_p12 = pneg %p11628_p5 }
 0x5ff   : > { %p11635_p0 = por %p11634_p6, %p11633_p1 }
 0x601   : > { %p11636_p3 = pnand %p11635_p0, %p11629_p12 }
 0x603   : > { %11639 = shalt.err (!%p11636_p3)
}
 0x604   : > { %s11756_s18 = smov 512   ;;  %s11757_s17 = smov 32  }
 0x605   : > { %10482 = dma.vmem_to_hbm [thread:$0]  (%p16419_p11), %s16284_s9, 16384, %s16281_s16, %s8976_s7, %s11756_s18, %s11756_s18, %s11757_s17  }
 0x606 PF: > { %s16420_s21 = sld [smem:[#allocation18_spill]]  ;;  %s16421_s24 = sld [smem:[#allocation25_spill]] }
 0x607   : > { %p10488_p4 = scmp.ge.s32.totalorder %s11738_s28, 2 }
 0x60c   : > { %s9004_s15 = sand.u32 1, %s16420_s21   ;;  %p16422_p13 = scmp.ne.s32.totalorder %s16421_s24, 0 }
 0x60d   : > { %s9005_s0 = scalar_lea.sflag [#allocation7], %s9004_s15 }
 0x60e   : > { %p10485_p7 = pnand %p10488_p4, %p16422_p13 }
 0x610   : > { %11693 = dma.done.wait (!%p10485_p7), %s9005_s0, 16384  }
 0x611   : > { %11695 = vsyncadd (!%p10485_p7), %s9005_s0, 4294950912  ;;  %s24_s28 = sadd.s32 1, %s11738_s28   ;;  %s16423_s5 = sld [smem:[#allocation23_spill]] }
 0x612   : > { %p21_p10 = scmp.ge.s32.totalorder %s24_s28, 6   ;;  %s16424_s10 = sld [smem:[#allocation19_spill]] }
 0x613   : > { %s16425_s23 = sld [smem:[#allocation24_spill]]  ;;  %s16426_s25 = sld [smem:[#allocation20_spill]] }
 0x614   : > { %s16427_s13 = sld [smem:[#allocation21_spill]]  ;;  %s16428_s27 = sld [smem:[#allocation22_spill]] }
 0x615   : > { %s16429_s18 = smov %s11702_s19  ;;  %s16430_s19 = smov %s11706_s20 }
 0x616   : > { %s16432_s21 = smov %s11714_s22  ;;  %s16434_s24 = smov %s11730_s26 }
 0x617   : > { %s16431_s20 = smov %s16423_s5  ;;  %23 = sbr.rel (!%p21_p10) target bundleno = 14 (0xe), region = 130 }
 0x618   : > { %s16433_s22 = smov %s16424_s10 }
 0x61a   : > { %s16435_s26 = smov %s16427_s13 }
 0x61e   :  { %9010 = vsyncpa [#allocation6], 1 }
 0x61f   :  { %9012 = vsyncpa [#allocation6 + $0x1], 1 }
 0x620   :  { %9013 = vsyncpa [#allocation9], 1 }
 0x621   :  { %9015 = vsyncpa [#allocation9 + $0x1], 1 }
 0x622   :  { %9016 = vsyncpa [#allocation7], 1 }
 0x623   :  { %9018 = vsyncpa [#allocation7 + $0x1], 1 }

</bundles_post_ra>
